<compile_context>
chip_gen: v5e
topology: v5e:2x2
jax: 0.10.0
libtpu: 0.0.40
codegen_flags: <defaults>
</compile_context>

<pallas_src>
import math

import jax
import jax.numpy as jnp
from jax.experimental import pallas as pl
from jax.experimental.pallas import tpu as pltpu

EPS = 1e-5
LANE = 128


def _round_up(n, m):
    return ((n + m - 1) // m) * m


def fold_bn(bn):
    gamma, beta, mean, var = bn
    scale = gamma / jnp.sqrt(var + EPS)
    bias = beta - mean * scale
    return scale, bias


# ----------------------------------------------------------------------------
# Fused kernel, per batch element n:
#   stage 1:  y[t] = relu( x_im2col[t] @ Ws * s1 + b1 )      one (HW,128)x(128,128) dot
#             -> bf16 scratch, frame-contiguous along the lane axis
#   stage 2:  o[t] = relu( y[t:t+kt] @ Wt * s2 + b2 )         one (HW,384)x(384,128) dot
# ----------------------------------------------------------------------------
def _make_r2p1d_kernel(T, HW, kt, pt, Cmid_p):
    def kernel(x_ref, ws_ref, s1_ref, b1_ref, wt_ref, s2_ref, b2_ref, o_ref, y_scr):
        s1 = s1_ref[...]
        b1 = b1_ref[...]
        s2 = s2_ref[...]
        b2 = b2_ref[...]
        ws = ws_ref[...]
        wt = wt_ref[...]

        # zero the temporal halo frames of the intermediate scratch (columns)
        if pt > 0:
            zero_halo = jnp.zeros((HW, pt * Cmid_p), jnp.bfloat16)
            y_scr[:, 0:pt * Cmid_p] = zero_halo
            y_scr[:, (pt + T) * Cmid_p:(T + 2 * pt) * Cmid_p] = zero_halo

        # ---- stage 1: spatial conv (im2col'd) + BN1 + ReLU -> bf16 VMEM scratch ----
        for t in range(T):
            acc = jnp.dot(x_ref[0, t], ws, preferred_element_type=jnp.float32)
            y = jnp.maximum(acc * s1 + b1, 0.0)
            y_scr[:, (pt + t) * Cmid_p:(pt + t + 1) * Cmid_p] = y.astype(jnp.bfloat16)

        # ---- stage 2: temporal conv (frames concatenated along K) + BN2 + ReLU ----
        for t in range(T):
            win = y_scr[:, t * Cmid_p:(t + kt) * Cmid_p]          # (HW, kt*Cmid_p) bf16
            acc = jnp.dot(win, wt, preferred_element_type=jnp.float32)
            o_ref[0, t] = jnp.maximum(acc * s2 + b2, 0.0)

    return kernel


# ----------------------------------------------------------------------------
# Wrapper: NCDHW / OIDHW (PyTorch layouts) in, NCDHW out.
# ----------------------------------------------------------------------------
def r2p1d_forward(x_ncdhw, w_spatial, bn1, w_temporal, bn2, *, kernel_size, padding):
    kt, kh, kw = kernel_size
    pt, ph, pw = padding
    N, Cin, T, H, W = x_ncdhw.shape
    Cmid = w_spatial.shape[0]
    Cout = w_temporal.shape[0]

    # supported configuration: stride 1 and "same"-sized outputs
    assert kh == 2 * ph + 1 and kw == 2 * pw + 1 and kt == 2 * pt + 1

    HW = H * W
    K1 = kh * kw * Cin
    K1p = _round_up(K1, LANE)
    Cmid_p = _round_up(Cmid, LANE)
    Cout_p = _round_up(Cout, LANE)

    # ---- wrapper-side im2col over the spatial taps; bf16, K padded to a lane multiple ----
    x = jnp.transpose(x_ncdhw, (0, 2, 3, 4, 1))                       # (N,T,H,W,Cin)
    x = jnp.pad(x, ((0, 0), (0, 0), (ph, ph), (pw, pw), (0, 0)))
    patches = [x[:, :, dh:dh + H, dw:dw + W, :]
               for dh in range(kh) for dw in range(kw)]
    x_im = jnp.concatenate(patches, axis=-1).reshape(N, T, HW, K1)    # (dh,dw,cin) order
    x_im = jnp.pad(x_im, ((0, 0), (0, 0), (0, 0), (0, K1p - K1))).astype(jnp.bfloat16)

    # spatial weight (Cmid,Cin,1,kh,kw) -> (K1p, Cmid_p) in matching (dh,dw,cin) order
    ws = jnp.transpose(w_spatial[:, :, 0], (2, 3, 1, 0)).reshape(K1, Cmid)
    ws = jnp.pad(ws, ((0, K1p - K1), (0, Cmid_p - Cmid))).astype(jnp.bfloat16)

    # temporal weight (Cout,Cmid,kt,1,1) -> (kt*Cmid_p, Cout_p) in frame-major order
    wt = jnp.transpose(w_temporal[:, :, :, 0, 0], (2, 1, 0))          # (kt, Cmid, Cout)
    wt = jnp.pad(wt, ((0, 0), (0, Cmid_p - Cmid), (0, Cout_p - Cout)))
    wt = wt.reshape(kt * Cmid_p, Cout_p).astype(jnp.bfloat16)

    # folded eval-mode BatchNorm affines; padded channels get scale=bias=0 -> relu(0)=0
    s1, b1 = fold_bn(bn1)
    s2, b2 = fold_bn(bn2)
    s1 = jnp.pad(s1, (0, Cmid_p - Cmid)).reshape(1, Cmid_p)
    b1 = jnp.pad(b1, (0, Cmid_p - Cmid)).reshape(1, Cmid_p)
    s2 = jnp.pad(s2, (0, Cout_p - Cout)).reshape(1, Cout_p)
    b2 = jnp.pad(b2, (0, Cout_p - Cout)).reshape(1, Cout_p)

    kernel = _make_r2p1d_kernel(T, HW, kt, pt, Cmid_p)

    # derive the VMEM budget from the actual per-step footprint (double-buffered in/out)
    in_block = T * HW * K1p * 2
    out_block = T * HW * Cout_p * 4
    w_bytes = K1p * Cmid_p * 2 + kt * Cmid_p * Cout_p * 2
    scr_bytes = HW * (T + 2 * pt) * Cmid_p * 2
    vmem_limit = 4 * (2 * in_block + 2 * out_block + w_bytes + scr_bytes) + (4 << 20)
    vmem_limit = int(min(max(vmem_limit, 32 << 20), 100 << 20))

    out = pl.pallas_call(
        kernel,
        out_shape=jax.ShapeDtypeStruct((N, T, HW, Cout_p), jnp.float32),
        grid=(N,),
        in_specs=[
            pl.BlockSpec((1, T, HW, K1p), lambda n: (n, 0, 0, 0)),
            pl.BlockSpec((K1p, Cmid_p), lambda n: (0, 0)),
            pl.BlockSpec((1, Cmid_p), lambda n: (0, 0)),
            pl.BlockSpec((1, Cmid_p), lambda n: (0, 0)),
            pl.BlockSpec((kt * Cmid_p, Cout_p), lambda n: (0, 0)),
            pl.BlockSpec((1, Cout_p), lambda n: (0, 0)),
            pl.BlockSpec((1, Cout_p), lambda n: (0, 0)),
        ],
        out_specs=pl.BlockSpec((1, T, HW, Cout_p), lambda n: (n, 0, 0, 0)),
        scratch_shapes=[pltpu.VMEM((HW, (T + 2 * pt) * Cmid_p), jnp.bfloat16)],
        compiler_params=pltpu.CompilerParams(
            dimension_semantics=("parallel",),
            vmem_limit_bytes=vmem_limit),
    )(x_im, ws, s1, b1, wt, s2, b2)

    # slice channels BEFORE the transpose so the epilogue moves Cout, not Cout_p, channels
    out = out.reshape(N, T, H, W, Cout_p)[..., :Cout]
    return jnp.transpose(out, (0, 4, 1, 2, 3))                        # back to NCDHW


r2p1d_forward_jit = jax.jit(r2p1d_forward, static_argnames=("kernel_size", "padding"))


# ----------------------------------------------------------------------------
# Pure-JAX reference (PyTorch semantics, NCDHW / OIDHW, f32 HIGHEST) for validation.
# ----------------------------------------------------------------------------
def r2p1d_reference(x, w_spatial, bn1, w_temporal, bn2, *, padding):
    pt, ph, pw = padding

    def conv(v, w, pads):
        return jax.lax.conv_general_dilated(
            v, w, (1, 1, 1), [(p, p) for p in pads],
            dimension_numbers=("NCDHW", "OIDHW", "NCDHW"),
            precision=jax.lax.Precision.HIGHEST)

    def bn_relu(v, bn):
        gamma, beta, mean, var = bn
        inv = gamma / jnp.sqrt(var + EPS)
        s = inv.reshape(1, -1, 1, 1, 1)
        b = (beta - mean * inv).reshape(1, -1, 1, 1, 1)
        return jnp.maximum(v * s + b, 0.0)

    h = bn_relu(conv(x, w_spatial, (0, ph, pw)), bn1)
    return bn_relu(conv(h, w_temporal, (pt, 0, 0)), bn2)


# ----------------------------------------------------------------------------
# Deterministic parameter init (mirrors R2P1D.__init__ shapes, first_conv=False).
# ----------------------------------------------------------------------------
def init_bn(key, c):
    k1, k2, k3, k4 = jax.random.split(key, 4)
    gamma = jax.random.uniform(k1, (c,), jnp.float32, 0.8, 1.2)
    beta = jax.random.normal(k2, (c,), jnp.float32) * 0.1
    mean = jax.random.normal(k3, (c,), jnp.float32) * 0.1
    var = jax.random.uniform(k4, (c,), jnp.float32, 0.8, 1.2)
    return gamma, beta, mean, var


def init_conv(key, cout, cin, kt, kh, kw):
    std = 1.0 / math.sqrt(cin * kt * kh * kw)
    return jax.random.normal(key, (cout, cin, kt, kh, kw), jnp.float32) * std


if __name__ == "__main__":
    # R2P1D(in_channels=8, out_channels=16, kernel_size=3, stride=1, padding=1,
    #       bias=False, first_conv=False)
    N, Cin, T, H, W = 2, 8, 8, 16, 16
    Cout = 16
    kt, kh, kw = 3, 3, 3
    pt, ph, pw = 1, 1, 1
    Cmid = int(math.floor(kt * kh * kw * Cin * Cout / (kh * kw * Cin + kt * Cout)))  # 28

    key = jax.random.PRNGKey(0)
    ks = jax.random.split(key, 5)

    x = jax.random.normal(ks[0], (N, Cin, T, H, W), jnp.float32)
    w_spatial = init_conv(ks[1], Cmid, Cin, 1, kh, kw)     # (Cmid, Cin, 1, kh, kw)
    w_temporal = init_conv(ks[2], Cout, Cmid, kt, 1, 1)    # (Cout, Cmid, kt, 1, 1)
    bn1 = init_bn(ks[3], Cmid)
    bn2 = init_bn(ks[4], Cout)

    out = r2p1d_forward_jit(x, w_spatial, bn1, w_temporal, bn2,
                            kernel_size=(kt, kh, kw), padding=(pt, ph, pw))
    out = jax.block_until_ready(out)

    ref = jax.block_until_ready(
        r2p1d_reference(x, w_spatial, bn1, w_temporal, bn2, padding=(pt, ph, pw)))

    assert out.shape == (N, Cout, T, H, W), out.shape
    err = float(jnp.max(jnp.abs(out - ref)))
    scale = float(jnp.max(jnp.abs(ref)))
    # bf16 MXU operands / bf16 intermediate with f32 accumulation vs f32 HIGHEST reference.
    assert err <= 1e-3 + 2e-2 * scale, f"max abs err {err} (ref max {scale})"

    print("KERNEL_OK")
</pallas_src>

<mosaic_0001>
module attributes {stable_mosaic.version = 11 : i64} {
  func.func @kernel(%arg0: i32, %arg1: memref<1x8x256x128xbf16, #tpu.memory_space<vmem>>, %arg2: memref<128x128xbf16, #tpu.memory_space<vmem>>, %arg3: memref<1x128xf32, #tpu.memory_space<vmem>>, %arg4: memref<1x128xf32, #tpu.memory_space<vmem>>, %arg5: memref<384x128xbf16, #tpu.memory_space<vmem>>, %arg6: memref<1x128xf32, #tpu.memory_space<vmem>>, %arg7: memref<1x128xf32, #tpu.memory_space<vmem>>, %arg8: memref<1x8x256x128xf32, #tpu.memory_space<vmem>>, %arg9: memref<256x1280xbf16, #tpu.memory_space<vmem>>) attributes {dimension_semantics = [#tpu.dimension_semantics<parallel>], iteration_bounds = array<i64: 2>, scalar_prefetch = 0 : i64, scratch_operands = 1 : i64, tpu.core_type = #tpu.core_type<tc>, window_params = [{transform_indices = @transform_0, window_bounds = array<i64: 1, 8, 256, 128>}, {pipeline_mode = #tpu.pipeline_mode<synchronous>, transform_indices = @transform_1, window_bounds = array<i64: 128, 128>}, {pipeline_mode = #tpu.pipeline_mode<synchronous>, transform_indices = @transform_2, window_bounds = array<i64: 1, 128>}, {pipeline_mode = #tpu.pipeline_mode<synchronous>, transform_indices = @transform_3, window_bounds = array<i64: 1, 128>}, {pipeline_mode = #tpu.pipeline_mode<synchronous>, transform_indices = @transform_4, window_bounds = array<i64: 384, 128>}, {pipeline_mode = #tpu.pipeline_mode<synchronous>, transform_indices = @transform_5, window_bounds = array<i64: 1, 128>}, {pipeline_mode = #tpu.pipeline_mode<synchronous>, transform_indices = @transform_6, window_bounds = array<i64: 1, 128>}, {transform_indices = @transform_7, window_bounds = array<i64: 1, 8, 256, 128>}]} {
    %c0 = arith.constant 0 : index
    %c0_0 = arith.constant 0 : index
    %0 = vector.load %arg3[%c0, %c0_0] : memref<1x128xf32, #tpu.memory_space<vmem>>, vector<1x128xf32>
    %c0_1 = arith.constant 0 : index
    %c0_2 = arith.constant 0 : index
    %1 = vector.load %arg4[%c0_1, %c0_2] : memref<1x128xf32, #tpu.memory_space<vmem>>, vector<1x128xf32>
    %c0_3 = arith.constant 0 : index
    %c0_4 = arith.constant 0 : index
    %2 = vector.load %arg6[%c0_3, %c0_4] : memref<1x128xf32, #tpu.memory_space<vmem>>, vector<1x128xf32>
    %c0_5 = arith.constant 0 : index
    %c0_6 = arith.constant 0 : index
    %3 = vector.load %arg7[%c0_5, %c0_6] : memref<1x128xf32, #tpu.memory_space<vmem>>, vector<1x128xf32>
    %c0_7 = arith.constant 0 : index
    %c0_8 = arith.constant 0 : index
    %4 = vector.load %arg2[%c0_7, %c0_8] : memref<128x128xbf16, #tpu.memory_space<vmem>>, vector<128x128xbf16>
    %c0_9 = arith.constant 0 : index
    %c0_10 = arith.constant 0 : index
    %5 = vector.load %arg5[%c0_9, %c0_10] : memref<384x128xbf16, #tpu.memory_space<vmem>>, vector<384x128xbf16>
    %cst = arith.constant 0.000000e+00 : bf16
    %6 = vector.broadcast %cst : bf16 to vector<256x128xbf16>
    %c0_11 = arith.constant 0 : index
    %c0_12 = arith.constant 0 : index
    %7 = vector.load %arg9[%c0_11, %c0_12] : memref<256x1280xbf16, #tpu.memory_space<vmem>>, vector<256x128xbf16>
    tpu.vector_store %arg9[%c0_11, %c0_12], %6 {strides = array<i32>} : memref<256x1280xbf16, #tpu.memory_space<vmem>>, vector<256x128xbf16>,
    %c0_13 = arith.constant 0 : index
    %c1152 = arith.constant 1152 : index
    %8 = vector.load %arg9[%c0_13, %c1152] : memref<256x1280xbf16, #tpu.memory_space<vmem>>, vector<256x128xbf16>
    tpu.vector_store %arg9[%c0_13, %c1152], %6 {strides = array<i32>} : memref<256x1280xbf16, #tpu.memory_space<vmem>>, vector<256x128xbf16>,
    %c0_14 = arith.constant 0 : index
    %c0_15 = arith.constant 0 : index
    %c0_16 = arith.constant 0 : index
    %c0_17 = arith.constant 0 : index
    %9 = vector.load %arg1[%c0_14, %c0_15, %c0_16, %c0_17] : memref<1x8x256x128xbf16, #tpu.memory_space<vmem>>, vector<1x1x256x128xbf16>
    %10 = vector.shape_cast %9 : vector<1x1x256x128xbf16> to vector<256x128xbf16>
    %cst_18 = arith.constant dense<0.000000e+00> : vector<256x128xf32>
    %11 = tpu.matmul %10, %4, %cst_18 {dimension_numbers = #tpu.dot_dimension_numbers<[1], [0], [0], [1], [0, 0, 1, 1], [], []>} : vector<256x128xbf16>, vector<128x128xbf16>, vector<256x128xf32> -> vector<256x128xf32>
    %12 = vector.broadcast %0 : vector<1x128xf32> to vector<256x128xf32>
    %13 = arith.mulf %11, %12 : vector<256x128xf32>
    %14 = vector.broadcast %1 : vector<1x128xf32> to vector<256x128xf32>
    %15 = arith.addf %13, %14 : vector<256x128xf32>
    %cst_19 = arith.constant 0.000000e+00 : f32
    %16 = vector.broadcast %cst_19 : f32 to vector<256x128xf32>
    %17 = arith.maximumf %15, %16 : vector<256x128xf32>
    %18 = arith.truncf %17 : vector<256x128xf32> to vector<256x128xbf16>
    %c0_20 = arith.constant 0 : index
    %c128 = arith.constant 128 : index
    %19 = vector.load %arg9[%c0_20, %c128] : memref<256x1280xbf16, #tpu.memory_space<vmem>>, vector<256x128xbf16>
    tpu.vector_store %arg9[%c0_20, %c128], %18 {strides = array<i32>} : memref<256x1280xbf16, #tpu.memory_space<vmem>>, vector<256x128xbf16>,
    %c0_21 = arith.constant 0 : index
    %c1 = arith.constant 1 : index
    %c0_22 = arith.constant 0 : index
    %c0_23 = arith.constant 0 : index
    %20 = vector.load %arg1[%c0_21, %c1, %c0_22, %c0_23] : memref<1x8x256x128xbf16, #tpu.memory_space<vmem>>, vector<1x1x256x128xbf16>
    %21 = vector.shape_cast %20 : vector<1x1x256x128xbf16> to vector<256x128xbf16>
    %cst_24 = arith.constant dense<0.000000e+00> : vector<256x128xf32>
    %22 = tpu.matmul %21, %4, %cst_24 {dimension_numbers = #tpu.dot_dimension_numbers<[1], [0], [0], [1], [0, 0, 1, 1], [], []>} : vector<256x128xbf16>, vector<128x128xbf16>, vector<256x128xf32> -> vector<256x128xf32>
    %23 = vector.broadcast %0 : vector<1x128xf32> to vector<256x128xf32>
    %24 = arith.mulf %22, %23 : vector<256x128xf32>
    %25 = vector.broadcast %1 : vector<1x128xf32> to vector<256x128xf32>
    %26 = arith.addf %24, %25 : vector<256x128xf32>
    %cst_25 = arith.constant 0.000000e+00 : f32
    %27 = vector.broadcast %cst_25 : f32 to vector<256x128xf32>
    %28 = arith.maximumf %26, %27 : vector<256x128xf32>
    %29 = arith.truncf %28 : vector<256x128xf32> to vector<256x128xbf16>
    %c0_26 = arith.constant 0 : index
    %c256 = arith.constant 256 : index
    %30 = vector.load %arg9[%c0_26, %c256] : memref<256x1280xbf16, #tpu.memory_space<vmem>>, vector<256x128xbf16>
    tpu.vector_store %arg9[%c0_26, %c256], %29 {strides = array<i32>} : memref<256x1280xbf16, #tpu.memory_space<vmem>>, vector<256x128xbf16>,
    %c0_27 = arith.constant 0 : index
    %c2 = arith.constant 2 : index
    %c0_28 = arith.constant 0 : index
    %c0_29 = arith.constant 0 : index
    %31 = vector.load %arg1[%c0_27, %c2, %c0_28, %c0_29] : memref<1x8x256x128xbf16, #tpu.memory_space<vmem>>, vector<1x1x256x128xbf16>
    %32 = vector.shape_cast %31 : vector<1x1x256x128xbf16> to vector<256x128xbf16>
    %cst_30 = arith.constant dense<0.000000e+00> : vector<256x128xf32>
    %33 = tpu.matmul %32, %4, %cst_30 {dimension_numbers = #tpu.dot_dimension_numbers<[1], [0], [0], [1], [0, 0, 1, 1], [], []>} : vector<256x128xbf16>, vector<128x128xbf16>, vector<256x128xf32> -> vector<256x128xf32>
    %34 = vector.broadcast %0 : vector<1x128xf32> to vector<256x128xf32>
    %35 = arith.mulf %33, %34 : vector<256x128xf32>
    %36 = vector.broadcast %1 : vector<1x128xf32> to vector<256x128xf32>
    %37 = arith.addf %35, %36 : vector<256x128xf32>
    %cst_31 = arith.constant 0.000000e+00 : f32
    %38 = vector.broadcast %cst_31 : f32 to vector<256x128xf32>
    %39 = arith.maximumf %37, %38 : vector<256x128xf32>
    %40 = arith.truncf %39 : vector<256x128xf32> to vector<256x128xbf16>
    %c0_32 = arith.constant 0 : index
    %c384 = arith.constant 384 : index
    %41 = vector.load %arg9[%c0_32, %c384] : memref<256x1280xbf16, #tpu.memory_space<vmem>>, vector<256x128xbf16>
    tpu.vector_store %arg9[%c0_32, %c384], %40 {strides = array<i32>} : memref<256x1280xbf16, #tpu.memory_space<vmem>>, vector<256x128xbf16>,
    %c0_33 = arith.constant 0 : index
    %c3 = arith.constant 3 : index
    %c0_34 = arith.constant 0 : index
    %c0_35 = arith.constant 0 : index
    %42 = vector.load %arg1[%c0_33, %c3, %c0_34, %c0_35] : memref<1x8x256x128xbf16, #tpu.memory_space<vmem>>, vector<1x1x256x128xbf16>
    %43 = vector.shape_cast %42 : vector<1x1x256x128xbf16> to vector<256x128xbf16>
    %cst_36 = arith.constant dense<0.000000e+00> : vector<256x128xf32>
    %44 = tpu.matmul %43, %4, %cst_36 {dimension_numbers = #tpu.dot_dimension_numbers<[1], [0], [0], [1], [0, 0, 1, 1], [], []>} : vector<256x128xbf16>, vector<128x128xbf16>, vector<256x128xf32> -> vector<256x128xf32>
    %45 = vector.broadcast %0 : vector<1x128xf32> to vector<256x128xf32>
    %46 = arith.mulf %44, %45 : vector<256x128xf32>
    %47 = vector.broadcast %1 : vector<1x128xf32> to vector<256x128xf32>
    %48 = arith.addf %46, %47 : vector<256x128xf32>
    %cst_37 = arith.constant 0.000000e+00 : f32
    %49 = vector.broadcast %cst_37 : f32 to vector<256x128xf32>
    %50 = arith.maximumf %48, %49 : vector<256x128xf32>
    %51 = arith.truncf %50 : vector<256x128xf32> to vector<256x128xbf16>
    %c0_38 = arith.constant 0 : index
    %c512 = arith.constant 512 : index
    %52 = vector.load %arg9[%c0_38, %c512] : memref<256x1280xbf16, #tpu.memory_space<vmem>>, vector<256x128xbf16>
    tpu.vector_store %arg9[%c0_38, %c512], %51 {strides = array<i32>} : memref<256x1280xbf16, #tpu.memory_space<vmem>>, vector<256x128xbf16>,
    %c0_39 = arith.constant 0 : index
    %c4 = arith.constant 4 : index
    %c0_40 = arith.constant 0 : index
    %c0_41 = arith.constant 0 : index
    %53 = vector.load %arg1[%c0_39, %c4, %c0_40, %c0_41] : memref<1x8x256x128xbf16, #tpu.memory_space<vmem>>, vector<1x1x256x128xbf16>
    %54 = vector.shape_cast %53 : vector<1x1x256x128xbf16> to vector<256x128xbf16>
    %cst_42 = arith.constant dense<0.000000e+00> : vector<256x128xf32>
    %55 = tpu.matmul %54, %4, %cst_42 {dimension_numbers = #tpu.dot_dimension_numbers<[1], [0], [0], [1], [0, 0, 1, 1], [], []>} : vector<256x128xbf16>, vector<128x128xbf16>, vector<256x128xf32> -> vector<256x128xf32>
    %56 = vector.broadcast %0 : vector<1x128xf32> to vector<256x128xf32>
    %57 = arith.mulf %55, %56 : vector<256x128xf32>
    %58 = vector.broadcast %1 : vector<1x128xf32> to vector<256x128xf32>
    %59 = arith.addf %57, %58 : vector<256x128xf32>
    %cst_43 = arith.constant 0.000000e+00 : f32
    %60 = vector.broadcast %cst_43 : f32 to vector<256x128xf32>
    %61 = arith.maximumf %59, %60 : vector<256x128xf32>
    %62 = arith.truncf %61 : vector<256x128xf32> to vector<256x128xbf16>
    %c0_44 = arith.constant 0 : index
    %c640 = arith.constant 640 : index
    %63 = vector.load %arg9[%c0_44, %c640] : memref<256x1280xbf16, #tpu.memory_space<vmem>>, vector<256x128xbf16>
    tpu.vector_store %arg9[%c0_44, %c640], %62 {strides = array<i32>} : memref<256x1280xbf16, #tpu.memory_space<vmem>>, vector<256x128xbf16>,
    %c0_45 = arith.constant 0 : index
    %c5 = arith.constant 5 : index
    %c0_46 = arith.constant 0 : index
    %c0_47 = arith.constant 0 : index
    %64 = vector.load %arg1[%c0_45, %c5, %c0_46, %c0_47] : memref<1x8x256x128xbf16, #tpu.memory_space<vmem>>, vector<1x1x256x128xbf16>
    %65 = vector.shape_cast %64 : vector<1x1x256x128xbf16> to vector<256x128xbf16>
    %cst_48 = arith.constant dense<0.000000e+00> : vector<256x128xf32>
    %66 = tpu.matmul %65, %4, %cst_48 {dimension_numbers = #tpu.dot_dimension_numbers<[1], [0], [0], [1], [0, 0, 1, 1], [], []>} : vector<256x128xbf16>, vector<128x128xbf16>, vector<256x128xf32> -> vector<256x128xf32>
    %67 = vector.broadcast %0 : vector<1x128xf32> to vector<256x128xf32>
    %68 = arith.mulf %66, %67 : vector<256x128xf32>
    %69 = vector.broadcast %1 : vector<1x128xf32> to vector<256x128xf32>
    %70 = arith.addf %68, %69 : vector<256x128xf32>
    %cst_49 = arith.constant 0.000000e+00 : f32
    %71 = vector.broadcast %cst_49 : f32 to vector<256x128xf32>
    %72 = arith.maximumf %70, %71 : vector<256x128xf32>
    %73 = arith.truncf %72 : vector<256x128xf32> to vector<256x128xbf16>
    %c0_50 = arith.constant 0 : index
    %c768 = arith.constant 768 : index
    %74 = vector.load %arg9[%c0_50, %c768] : memref<256x1280xbf16, #tpu.memory_space<vmem>>, vector<256x128xbf16>
    tpu.vector_store %arg9[%c0_50, %c768], %73 {strides = array<i32>} : memref<256x1280xbf16, #tpu.memory_space<vmem>>, vector<256x128xbf16>,
    %c0_51 = arith.constant 0 : index
    %c6 = arith.constant 6 : index
    %c0_52 = arith.constant 0 : index
    %c0_53 = arith.constant 0 : index
    %75 = vector.load %arg1[%c0_51, %c6, %c0_52, %c0_53] : memref<1x8x256x128xbf16, #tpu.memory_space<vmem>>, vector<1x1x256x128xbf16>
    %76 = vector.shape_cast %75 : vector<1x1x256x128xbf16> to vector<256x128xbf16>
    %cst_54 = arith.constant dense<0.000000e+00> : vector<256x128xf32>
    %77 = tpu.matmul %76, %4, %cst_54 {dimension_numbers = #tpu.dot_dimension_numbers<[1], [0], [0], [1], [0, 0, 1, 1], [], []>} : vector<256x128xbf16>, vector<128x128xbf16>, vector<256x128xf32> -> vector<256x128xf32>
    %78 = vector.broadcast %0 : vector<1x128xf32> to vector<256x128xf32>
    %79 = arith.mulf %77, %78 : vector<256x128xf32>
    %80 = vector.broadcast %1 : vector<1x128xf32> to vector<256x128xf32>
    %81 = arith.addf %79, %80 : vector<256x128xf32>
    %cst_55 = arith.constant 0.000000e+00 : f32
    %82 = vector.broadcast %cst_55 : f32 to vector<256x128xf32>
    %83 = arith.maximumf %81, %82 : vector<256x128xf32>
    %84 = arith.truncf %83 : vector<256x128xf32> to vector<256x128xbf16>
    %c0_56 = arith.constant 0 : index
    %c896 = arith.constant 896 : index
    %85 = vector.load %arg9[%c0_56, %c896] : memref<256x1280xbf16, #tpu.memory_space<vmem>>, vector<256x128xbf16>
    tpu.vector_store %arg9[%c0_56, %c896], %84 {strides = array<i32>} : memref<256x1280xbf16, #tpu.memory_space<vmem>>, vector<256x128xbf16>,
    %c0_57 = arith.constant 0 : index
    %c7 = arith.constant 7 : index
    %c0_58 = arith.constant 0 : index
    %c0_59 = arith.constant 0 : index
    %86 = vector.load %arg1[%c0_57, %c7, %c0_58, %c0_59] : memref<1x8x256x128xbf16, #tpu.memory_space<vmem>>, vector<1x1x256x128xbf16>
    %87 = vector.shape_cast %86 : vector<1x1x256x128xbf16> to vector<256x128xbf16>
    %cst_60 = arith.constant dense<0.000000e+00> : vector<256x128xf32>
    %88 = tpu.matmul %87, %4, %cst_60 {dimension_numbers = #tpu.dot_dimension_numbers<[1], [0], [0], [1], [0, 0, 1, 1], [], []>} : vector<256x128xbf16>, vector<128x128xbf16>, vector<256x128xf32> -> vector<256x128xf32>
    %89 = vector.broadcast %0 : vector<1x128xf32> to vector<256x128xf32>
    %90 = arith.mulf %88, %89 : vector<256x128xf32>
    %91 = vector.broadcast %1 : vector<1x128xf32> to vector<256x128xf32>
    %92 = arith.addf %90, %91 : vector<256x128xf32>
    %cst_61 = arith.constant 0.000000e+00 : f32
    %93 = vector.broadcast %cst_61 : f32 to vector<256x128xf32>
    %94 = arith.maximumf %92, %93 : vector<256x128xf32>
    %95 = arith.truncf %94 : vector<256x128xf32> to vector<256x128xbf16>
    %c0_62 = arith.constant 0 : index
    %c1024 = arith.constant 1024 : index
    %96 = vector.load %arg9[%c0_62, %c1024] : memref<256x1280xbf16, #tpu.memory_space<vmem>>, vector<256x128xbf16>
    tpu.vector_store %arg9[%c0_62, %c1024], %95 {strides = array<i32>} : memref<256x1280xbf16, #tpu.memory_space<vmem>>, vector<256x128xbf16>,
    %c0_63 = arith.constant 0 : index
    %c0_64 = arith.constant 0 : index
    %97 = vector.load %arg9[%c0_63, %c0_64] : memref<256x1280xbf16, #tpu.memory_space<vmem>>, vector<256x384xbf16>
    %cst_65 = arith.constant dense<0.000000e+00> : vector<256x128xf32>
    %98 = tpu.matmul %97, %5, %cst_65 {dimension_numbers = #tpu.dot_dimension_numbers<[1], [0], [0], [1], [0, 0, 1, 1], [], []>} : vector<256x384xbf16>, vector<384x128xbf16>, vector<256x128xf32> -> vector<256x128xf32>
    %99 = vector.broadcast %2 : vector<1x128xf32> to vector<256x128xf32>
    %100 = arith.mulf %98, %99 : vector<256x128xf32>
    %101 = vector.broadcast %3 : vector<1x128xf32> to vector<256x128xf32>
    %102 = arith.addf %100, %101 : vector<256x128xf32>
    %cst_66 = arith.constant 0.000000e+00 : f32
    %103 = vector.broadcast %cst_66 : f32 to vector<256x128xf32>
    %104 = arith.maximumf %102, %103 : vector<256x128xf32>
    %c0_67 = arith.constant 0 : index
    %c0_68 = arith.constant 0 : index
    %c0_69 = arith.constant 0 : index
    %c0_70 = arith.constant 0 : index
    %105 = vector.load %arg8[%c0_67, %c0_68, %c0_69, %c0_70] : memref<1x8x256x128xf32, #tpu.memory_space<vmem>>, vector<1x1x256x128xf32>
    %106 = vector.shape_cast %105 : vector<1x1x256x128xf32> to vector<256x128xf32>
    %107 = vector.shape_cast %104 : vector<256x128xf32> to vector<1x1x256x128xf32>
    tpu.vector_store %arg8[%c0_67, %c0_68, %c0_69, %c0_70], %107 {strides = array<i32>} : memref<1x8x256x128xf32, #tpu.memory_space<vmem>>, vector<1x1x256x128xf32>,
    %c0_71 = arith.constant 0 : index
    %c128_72 = arith.constant 128 : index
    %108 = vector.load %arg9[%c0_71, %c128_72] : memref<256x1280xbf16, #tpu.memory_space<vmem>>, vector<256x384xbf16>
    %cst_73 = arith.constant dense<0.000000e+00> : vector<256x128xf32>
    %109 = tpu.matmul %108, %5, %cst_73 {dimension_numbers = #tpu.dot_dimension_numbers<[1], [0], [0], [1], [0, 0, 1, 1], [], []>} : vector<256x384xbf16>, vector<384x128xbf16>, vector<256x128xf32> -> vector<256x128xf32>
    %110 = vector.broadcast %2 : vector<1x128xf32> to vector<256x128xf32>
    %111 = arith.mulf %109, %110 : vector<256x128xf32>
    %112 = vector.broadcast %3 : vector<1x128xf32> to vector<256x128xf32>
    %113 = arith.addf %111, %112 : vector<256x128xf32>
    %cst_74 = arith.constant 0.000000e+00 : f32
    %114 = vector.broadcast %cst_74 : f32 to vector<256x128xf32>
    %115 = arith.maximumf %113, %114 : vector<256x128xf32>
    %c0_75 = arith.constant 0 : index
    %c1_76 = arith.constant 1 : index
    %c0_77 = arith.constant 0 : index
    %c0_78 = arith.constant 0 : index
    %116 = vector.load %arg8[%c0_75, %c1_76, %c0_77, %c0_78] : memref<1x8x256x128xf32, #tpu.memory_space<vmem>>, vector<1x1x256x128xf32>
    %117 = vector.shape_cast %116 : vector<1x1x256x128xf32> to vector<256x128xf32>
    %118 = vector.shape_cast %115 : vector<256x128xf32> to vector<1x1x256x128xf32>
    tpu.vector_store %arg8[%c0_75, %c1_76, %c0_77, %c0_78], %118 {strides = array<i32>} : memref<1x8x256x128xf32, #tpu.memory_space<vmem>>, vector<1x1x256x128xf32>,
    %c0_79 = arith.constant 0 : index
    %c256_80 = arith.constant 256 : index
    %119 = vector.load %arg9[%c0_79, %c256_80] : memref<256x1280xbf16, #tpu.memory_space<vmem>>, vector<256x384xbf16>
    %cst_81 = arith.constant dense<0.000000e+00> : vector<256x128xf32>
    %120 = tpu.matmul %119, %5, %cst_81 {dimension_numbers = #tpu.dot_dimension_numbers<[1], [0], [0], [1], [0, 0, 1, 1], [], []>} : vector<256x384xbf16>, vector<384x128xbf16>, vector<256x128xf32> -> vector<256x128xf32>
    %121 = vector.broadcast %2 : vector<1x128xf32> to vector<256x128xf32>
    %122 = arith.mulf %120, %121 : vector<256x128xf32>
    %123 = vector.broadcast %3 : vector<1x128xf32> to vector<256x128xf32>
    %124 = arith.addf %122, %123 : vector<256x128xf32>
    %cst_82 = arith.constant 0.000000e+00 : f32
    %125 = vector.broadcast %cst_82 : f32 to vector<256x128xf32>
    %126 = arith.maximumf %124, %125 : vector<256x128xf32>
    %c0_83 = arith.constant 0 : index
    %c2_84 = arith.constant 2 : index
    %c0_85 = arith.constant 0 : index
    %c0_86 = arith.constant 0 : index
    %127 = vector.load %arg8[%c0_83, %c2_84, %c0_85, %c0_86] : memref<1x8x256x128xf32, #tpu.memory_space<vmem>>, vector<1x1x256x128xf32>
    %128 = vector.shape_cast %127 : vector<1x1x256x128xf32> to vector<256x128xf32>
    %129 = vector.shape_cast %126 : vector<256x128xf32> to vector<1x1x256x128xf32>
    tpu.vector_store %arg8[%c0_83, %c2_84, %c0_85, %c0_86], %129 {strides = array<i32>} : memref<1x8x256x128xf32, #tpu.memory_space<vmem>>, vector<1x1x256x128xf32>,
    %c0_87 = arith.constant 0 : index
    %c384_88 = arith.constant 384 : index
    %130 = vector.load %arg9[%c0_87, %c384_88] : memref<256x1280xbf16, #tpu.memory_space<vmem>>, vector<256x384xbf16>
    %cst_89 = arith.constant dense<0.000000e+00> : vector<256x128xf32>
    %131 = tpu.matmul %130, %5, %cst_89 {dimension_numbers = #tpu.dot_dimension_numbers<[1], [0], [0], [1], [0, 0, 1, 1], [], []>} : vector<256x384xbf16>, vector<384x128xbf16>, vector<256x128xf32> -> vector<256x128xf32>
    %132 = vector.broadcast %2 : vector<1x128xf32> to vector<256x128xf32>
    %133 = arith.mulf %131, %132 : vector<256x128xf32>
    %134 = vector.broadcast %3 : vector<1x128xf32> to vector<256x128xf32>
    %135 = arith.addf %133, %134 : vector<256x128xf32>
    %cst_90 = arith.constant 0.000000e+00 : f32
    %136 = vector.broadcast %cst_90 : f32 to vector<256x128xf32>
    %137 = arith.maximumf %135, %136 : vector<256x128xf32>
    %c0_91 = arith.constant 0 : index
    %c3_92 = arith.constant 3 : index
    %c0_93 = arith.constant 0 : index
    %c0_94 = arith.constant 0 : index
    %138 = vector.load %arg8[%c0_91, %c3_92, %c0_93, %c0_94] : memref<1x8x256x128xf32, #tpu.memory_space<vmem>>, vector<1x1x256x128xf32>
    %139 = vector.shape_cast %138 : vector<1x1x256x128xf32> to vector<256x128xf32>
    %140 = vector.shape_cast %137 : vector<256x128xf32> to vector<1x1x256x128xf32>
    tpu.vector_store %arg8[%c0_91, %c3_92, %c0_93, %c0_94], %140 {strides = array<i32>} : memref<1x8x256x128xf32, #tpu.memory_space<vmem>>, vector<1x1x256x128xf32>,
    %c0_95 = arith.constant 0 : index
    %c512_96 = arith.constant 512 : index
    %141 = vector.load %arg9[%c0_95, %c512_96] : memref<256x1280xbf16, #tpu.memory_space<vmem>>, vector<256x384xbf16>
    %cst_97 = arith.constant dense<0.000000e+00> : vector<256x128xf32>
    %142 = tpu.matmul %141, %5, %cst_97 {dimension_numbers = #tpu.dot_dimension_numbers<[1], [0], [0], [1], [0, 0, 1, 1], [], []>} : vector<256x384xbf16>, vector<384x128xbf16>, vector<256x128xf32> -> vector<256x128xf32>
    %143 = vector.broadcast %2 : vector<1x128xf32> to vector<256x128xf32>
    %144 = arith.mulf %142, %143 : vector<256x128xf32>
    %145 = vector.broadcast %3 : vector<1x128xf32> to vector<256x128xf32>
    %146 = arith.addf %144, %145 : vector<256x128xf32>
    %cst_98 = arith.constant 0.000000e+00 : f32
    %147 = vector.broadcast %cst_98 : f32 to vector<256x128xf32>
    %148 = arith.maximumf %146, %147 : vector<256x128xf32>
    %c0_99 = arith.constant 0 : index
    %c4_100 = arith.constant 4 : index
    %c0_101 = arith.constant 0 : index
    %c0_102 = arith.constant 0 : index
    %149 = vector.load %arg8[%c0_99, %c4_100, %c0_101, %c0_102] : memref<1x8x256x128xf32, #tpu.memory_space<vmem>>, vector<1x1x256x128xf32>
    %150 = vector.shape_cast %149 : vector<1x1x256x128xf32> to vector<256x128xf32>
    %151 = vector.shape_cast %148 : vector<256x128xf32> to vector<1x1x256x128xf32>
    tpu.vector_store %arg8[%c0_99, %c4_100, %c0_101, %c0_102], %151 {strides = array<i32>} : memref<1x8x256x128xf32, #tpu.memory_space<vmem>>, vector<1x1x256x128xf32>,
    %c0_103 = arith.constant 0 : index
    %c640_104 = arith.constant 640 : index
    %152 = vector.load %arg9[%c0_103, %c640_104] : memref<256x1280xbf16, #tpu.memory_space<vmem>>, vector<256x384xbf16>
    %cst_105 = arith.constant dense<0.000000e+00> : vector<256x128xf32>
    %153 = tpu.matmul %152, %5, %cst_105 {dimension_numbers = #tpu.dot_dimension_numbers<[1], [0], [0], [1], [0, 0, 1, 1], [], []>} : vector<256x384xbf16>, vector<384x128xbf16>, vector<256x128xf32> -> vector<256x128xf32>
    %154 = vector.broadcast %2 : vector<1x128xf32> to vector<256x128xf32>
    %155 = arith.mulf %153, %154 : vector<256x128xf32>
    %156 = vector.broadcast %3 : vector<1x128xf32> to vector<256x128xf32>
    %157 = arith.addf %155, %156 : vector<256x128xf32>
    %cst_106 = arith.constant 0.000000e+00 : f32
    %158 = vector.broadcast %cst_106 : f32 to vector<256x128xf32>
    %159 = arith.maximumf %157, %158 : vector<256x128xf32>
    %c0_107 = arith.constant 0 : index
    %c5_108 = arith.constant 5 : index
    %c0_109 = arith.constant 0 : index
    %c0_110 = arith.constant 0 : index
    %160 = vector.load %arg8[%c0_107, %c5_108, %c0_109, %c0_110] : memref<1x8x256x128xf32, #tpu.memory_space<vmem>>, vector<1x1x256x128xf32>
    %161 = vector.shape_cast %160 : vector<1x1x256x128xf32> to vector<256x128xf32>
    %162 = vector.shape_cast %159 : vector<256x128xf32> to vector<1x1x256x128xf32>
    tpu.vector_store %arg8[%c0_107, %c5_108, %c0_109, %c0_110], %162 {strides = array<i32>} : memref<1x8x256x128xf32, #tpu.memory_space<vmem>>, vector<1x1x256x128xf32>,
    %c0_111 = arith.constant 0 : index
    %c768_112 = arith.constant 768 : index
    %163 = vector.load %arg9[%c0_111, %c768_112] : memref<256x1280xbf16, #tpu.memory_space<vmem>>, vector<256x384xbf16>
    %cst_113 = arith.constant dense<0.000000e+00> : vector<256x128xf32>
    %164 = tpu.matmul %163, %5, %cst_113 {dimension_numbers = #tpu.dot_dimension_numbers<[1], [0], [0], [1], [0, 0, 1, 1], [], []>} : vector<256x384xbf16>, vector<384x128xbf16>, vector<256x128xf32> -> vector<256x128xf32>
    %165 = vector.broadcast %2 : vector<1x128xf32> to vector<256x128xf32>
    %166 = arith.mulf %164, %165 : vector<256x128xf32>
    %167 = vector.broadcast %3 : vector<1x128xf32> to vector<256x128xf32>
    %168 = arith.addf %166, %167 : vector<256x128xf32>
    %cst_114 = arith.constant 0.000000e+00 : f32
    %169 = vector.broadcast %cst_114 : f32 to vector<256x128xf32>
    %170 = arith.maximumf %168, %169 : vector<256x128xf32>
    %c0_115 = arith.constant 0 : index
    %c6_116 = arith.constant 6 : index
    %c0_117 = arith.constant 0 : index
    %c0_118 = arith.constant 0 : index
    %171 = vector.load %arg8[%c0_115, %c6_116, %c0_117, %c0_118] : memref<1x8x256x128xf32, #tpu.memory_space<vmem>>, vector<1x1x256x128xf32>
    %172 = vector.shape_cast %171 : vector<1x1x256x128xf32> to vector<256x128xf32>
    %173 = vector.shape_cast %170 : vector<256x128xf32> to vector<1x1x256x128xf32>
    tpu.vector_store %arg8[%c0_115, %c6_116, %c0_117, %c0_118], %173 {strides = array<i32>} : memref<1x8x256x128xf32, #tpu.memory_space<vmem>>, vector<1x1x256x128xf32>,
    %c0_119 = arith.constant 0 : index
    %c896_120 = arith.constant 896 : index
    %174 = vector.load %arg9[%c0_119, %c896_120] : memref<256x1280xbf16, #tpu.memory_space<vmem>>, vector<256x384xbf16>
    %cst_121 = arith.constant dense<0.000000e+00> : vector<256x128xf32>
    %175 = tpu.matmul %174, %5, %cst_121 {dimension_numbers = #tpu.dot_dimension_numbers<[1], [0], [0], [1], [0, 0, 1, 1], [], []>} : vector<256x384xbf16>, vector<384x128xbf16>, vector<256x128xf32> -> vector<256x128xf32>
    %176 = vector.broadcast %2 : vector<1x128xf32> to vector<256x128xf32>
    %177 = arith.mulf %175, %176 : vector<256x128xf32>
    %178 = vector.broadcast %3 : vector<1x128xf32> to vector<256x128xf32>
    %179 = arith.addf %177, %178 : vector<256x128xf32>
    %cst_122 = arith.constant 0.000000e+00 : f32
    %180 = vector.broadcast %cst_122 : f32 to vector<256x128xf32>
    %181 = arith.maximumf %179, %180 : vector<256x128xf32>
    %c0_123 = arith.constant 0 : index
    %c7_124 = arith.constant 7 : index
    %c0_125 = arith.constant 0 : index
    %c0_126 = arith.constant 0 : index
    %182 = vector.load %arg8[%c0_123, %c7_124, %c0_125, %c0_126] : memref<1x8x256x128xf32, #tpu.memory_space<vmem>>, vector<1x1x256x128xf32>
    %183 = vector.shape_cast %182 : vector<1x1x256x128xf32> to vector<256x128xf32>
    %184 = vector.shape_cast %181 : vector<256x128xf32> to vector<1x1x256x128xf32>
    tpu.vector_store %arg8[%c0_123, %c7_124, %c0_125, %c0_126], %184 {strides = array<i32>} : memref<1x8x256x128xf32, #tpu.memory_space<vmem>>, vector<1x1x256x128xf32>,
    return
  }
  func.func @transform_0(%arg0: i32) -> (i32, i32, i32, i32) {
    %c0_i32 = arith.constant 0 : i32
    %c0_i32_0 = arith.constant 0 : i32
    %c0_i32_1 = arith.constant 0 : i32
    %c0_i32_2 = arith.constant 0 : i32
    return %arg0, %c0_i32, %c0_i32_0, %c0_i32_1 : i32, i32, i32, i32
  }
  func.func @transform_1(%arg0: i32) -> (i32, i32) {
    %c0_i32 = arith.constant 0 : i32
    %c0_i32_0 = arith.constant 0 : i32
    %c0_i32_1 = arith.constant 0 : i32
    return %c0_i32, %c0_i32_0 : i32, i32
  }
  func.func @transform_2(%arg0: i32) -> (i32, i32) {
    %c0_i32 = arith.constant 0 : i32
    %c0_i32_0 = arith.constant 0 : i32
    %c0_i32_1 = arith.constant 0 : i32
    return %c0_i32, %c0_i32_0 : i32, i32
  }
  func.func @transform_3(%arg0: i32) -> (i32, i32) {
    %c0_i32 = arith.constant 0 : i32
    %c0_i32_0 = arith.constant 0 : i32
    %c0_i32_1 = arith.constant 0 : i32
    return %c0_i32, %c0_i32_0 : i32, i32
  }
  func.func @transform_4(%arg0: i32) -> (i32, i32) {
    %c0_i32 = arith.constant 0 : i32
    %c0_i32_0 = arith.constant 0 : i32
    %c0_i32_1 = arith.constant 0 : i32
    return %c0_i32, %c0_i32_0 : i32, i32
  }
  func.func @transform_5(%arg0: i32) -> (i32, i32) {
    %c0_i32 = arith.constant 0 : i32
    %c0_i32_0 = arith.constant 0 : i32
    %c0_i32_1 = arith.constant 0 : i32
    return %c0_i32, %c0_i32_0 : i32, i32
  }
  func.func @transform_6(%arg0: i32) -> (i32, i32) {
    %c0_i32 = arith.constant 0 : i32
    %c0_i32_0 = arith.constant 0 : i32
    %c0_i32_1 = arith.constant 0 : i32
    return %c0_i32, %c0_i32_0 : i32, i32
  }
  func.func @transform_7(%arg0: i32) -> (i32, i32, i32, i32) {
    %c0_i32 = arith.constant 0 : i32
    %c0_i32_0 = arith.constant 0 : i32
    %c0_i32_1 = arith.constant 0 : i32
    %c0_i32_2 = arith.constant 0 : i32
    return %arg0, %c0_i32, %c0_i32_0, %c0_i32_1 : i32, i32, i32, i32
  }
}

</mosaic_0001>

<bundles_post_ra>
// kernel: r2p1d_forward.1
= control target key start
LH: loop header
LB: loop body
LE: loop exit
PB: predicated region body
PF: predicated region fallthrough
CT: control target
= control target key end

     0   :  { %s12774_s24 = smov 0   ;;  %s15331_s0 = inlined_call_operand.vmem [shape: bf16[2,8,256,128], index: 0, kind: input, shape index: {}]   ;;  %s15332_s1 = inlined_call_operand.vmem [shape: bf16[128,128], index: 1, kind: input, shape index: {}]   ;;  %s15333_s2 = inlined_call_operand.vmem [shape: f32[1,128], index: 2, kind: input, shape index: {}]   ;;  %s15334_s3 = inlined_call_operand.vmem [shape: f32[1,128], index: 3, kind: input, shape index: {}]   ;;  %s15335_s4 = inlined_call_operand.vmem [shape: bf16[384,128], index: 4, kind: input, shape index: {}]   ;;  %s15336_s5 = inlined_call_operand.vmem [shape: f32[1,128], index: 5, kind: input, shape index: {}]   ;;  %s15337_s6 = inlined_call_operand.vmem [shape: f32[1,128], index: 6, kind: input, shape index: {}]   ;;  %s15338_s7 = inlined_call_operand.vmem [shape: f32[2,8,256,128], index: 7, kind: output, shape index: {}]  }
   0x1 LB: > { %s9421_s25 = sadd.s32 4294967295, %s12731_s24   ;;  %p9425_p0 = scmp.ge.s32.totalorder %s12731_s24, 1  ;;  %s12731_s24 = sphi %s12774_s24, %s17_s24  }
   0x2   : > { %p237_p1 = scmp.lt.s32.totalorder %s12731_s24, 3 }
   0x4   : > { %p238_p2 = pnand %p9425_p0, %p237_p1 }
   0x5   : > { %p269_p3 = scmp.lt.s32.totalorder (!%p238_p2), %s9421_s25, 1 }
   0x6   : > { %241 = sbr.rel (%p238_p2) target bundleno = 2227 (0x8b3), region = 48 }
   0xb   : > { %v12065_v0 = vld [vmem:[%s15332_s1 + $0x38] sm:$0xff]  ;;  %v12064_v1 = vld [vmem:[%s15332_s1 + $0x30] sm:$0xff]  ;;  %v12063_v2 = vld [vmem:[%s15332_s1 + $0x28] sm:$0xff]  ;;  %s15340_s25 = smov (!%p269_p3, %s9421_s25), 1 }
   0xc   : > { %588 = vmatpush.bf16.msra.mxu0 %v12065_v0  ;;  %972 = vmatpush.bf16.msra.mxu1 %v12065_v0  ;;  %v12062_v3 = vld [vmem:[%s15332_s1 + $0x20] sm:$0xff]  ;;  %v12061_v4 = vld [vmem:[%s15332_s1 + $0x18] sm:$0xff]  ;;  %v12060_v5 = vld [vmem:[%s15332_s1 + $0x10] sm:$0xff]  ;;  %s12056_s17 = sshll.u32 %s15340_s25, 10  ;;  %s12057_s26 = sshll.u32 %s15340_s25, 11 }
   0xd   : > { %1350 = vmatpush.bf16.msra.mxu2 %v12065_v0  ;;  %1728 = vmatpush.bf16.msra.mxu3 %v12065_v0  ;;  %v12059_v6 = vld [vmem:[%s15332_s1 + $0x8] sm:$0xff]  ;;  %v12058_v7 = vld [vmem:[%s15332_s1] sm:$0xff]  ;;  %s12816_s22 = scalar_lea.vmem %s15331_s0, %s12056_s17  ;;  %s13892_s29 = scalar_lea.vmem %s15338_s7, %s12057_s26 }
   0xe   : > { %v12090_v8 = vld [vmem:[%s12816_s22] sm:$0xff]  ;;  %v12091_v12 = vld [vmem:[%s12816_s22 + $0x8] sm:$0xff]  ;;  %v12092_v16 = vld [vmem:[%s12816_s22 + $0x10] sm:$0xff] }
   0xf   : > { %v12106_v9 = vld [vmem:[%s12816_s22 + $0x80] sm:$0xff]  ;;  %v12107_v13 = vld [vmem:[%s12816_s22 + $0x88] sm:$0xff]  ;;  %v12108_v17 = vld [vmem:[%s12816_s22 + $0x90] sm:$0xff] }
  0x10   : > { %589 = vmatpush.bf16.msra.mxu0 %v12064_v1  ;;  %973 = vmatpush.bf16.msra.mxu1 %v12064_v1  ;;  %v12122_v10 = vld [vmem:[%s12816_s22 + $0x100] sm:$0xff]  ;;  %v12123_v14 = vld [vmem:[%s12816_s22 + $0x108] sm:$0xff]  ;;  %v12124_v18 = vld [vmem:[%s12816_s22 + $0x110] sm:$0xff] }
  0x11   : > { %1351 = vmatpush.bf16.msra.mxu2 %v12064_v1  ;;  %1729 = vmatpush.bf16.msra.mxu3 %v12064_v1  ;;  %v12138_v11 = vld [vmem:[%s12816_s22 + $0x180] sm:$0xff]  ;;  %v12139_v15 = vld [vmem:[%s12816_s22 + $0x188] sm:$0xff]  ;;  %v12140_v19 = vld [vmem:[%s12816_s22 + $0x190] sm:$0xff] }
  0x12   : > { %v12093_v20 = vld [vmem:[%s12816_s22 + $0x18] sm:$0xff]  ;;  %v12094_v24 = vld [vmem:[%s12816_s22 + $0x20] sm:$0xff]  ;;  %v12095_v28 = vld [vmem:[%s12816_s22 + $0x28] sm:$0xff] }
  0x13   : > { %v12109_v21 = vld [vmem:[%s12816_s22 + $0x98] sm:$0xff]  ;;  %v12110_v25 = vld [vmem:[%s12816_s22 + $0xa0] sm:$0xff]  ;;  %v12111_v29 = vld [vmem:[%s12816_s22 + $0xa8] sm:$0xff] }
  0x14   : > { %590 = vmatpush.bf16.msra.mxu0 %v12063_v2  ;;  %974 = vmatpush.bf16.msra.mxu1 %v12063_v2  ;;  %v12125_v22 = vld [vmem:[%s12816_s22 + $0x118] sm:$0xff]  ;;  %v12126_v26 = vld [vmem:[%s12816_s22 + $0x120] sm:$0xff]  ;;  %v12127_v30 = vld [vmem:[%s12816_s22 + $0x128] sm:$0xff] }
  0x15   : > { %1352 = vmatpush.bf16.msra.mxu2 %v12063_v2  ;;  %1730 = vmatpush.bf16.msra.mxu3 %v12063_v2  ;;  %v12141_v23 = vld [vmem:[%s12816_s22 + $0x198] sm:$0xff]  ;;  %v12142_v27 = vld [vmem:[%s12816_s22 + $0x1a0] sm:$0xff]  ;;  %v12143_v31 = vld [vmem:[%s12816_s22 + $0x1a8] sm:$0xff] }
  0x16   : > { %v12096_v32 = vld [vmem:[%s12816_s22 + $0x30] sm:$0xff]  ;;  %v12097_v36 = vld [vmem:[%s12816_s22 + $0x38] sm:$0xff]  ;;  %v12853_v40 = vld [vmem:[%s15333_s2] ss:$0 sm:$0xff] }
  0x17   : > { %v12112_v33 = vld [vmem:[%s12816_s22 + $0xb0] sm:$0xff]  ;;  %v12113_v37 = vld [vmem:[%s12816_s22 + $0xb8] sm:$0xff]  ;;  %v12858_v41 = vld [vmem:[%s15334_s3] ss:$0 sm:$0xff] }
  0x18   : > { %591 = vmatpush.bf16.msra.mxu0 %v12062_v3  ;;  %975 = vmatpush.bf16.msra.mxu1 %v12062_v3  ;;  %v12128_v34 = vld [vmem:[%s12816_s22 + $0x130] sm:$0xff]  ;;  %v12129_v38 = vld [vmem:[%s12816_s22 + $0x138] sm:$0xff]  ;;  %v12098_v42 = vld [vmem:[%s12816_s22 + $0x40] sm:$0xff] }
  0x19   : > { %1353 = vmatpush.bf16.msra.mxu2 %v12062_v3  ;;  %1731 = vmatpush.bf16.msra.mxu3 %v12062_v3  ;;  %v12144_v35 = vld [vmem:[%s12816_s22 + $0x1b0] sm:$0xff]  ;;  %v12145_v39 = vld [vmem:[%s12816_s22 + $0x1b8] sm:$0xff]  ;;  %v12114_v43 = vld [vmem:[%s12816_s22 + $0xc0] sm:$0xff] }
  0x1a   : > { %v12130_v46 = vld [vmem:[%s12816_s22 + $0x140] sm:$0xff] }
  0x1b   : > { %v12146_v47 = vld [vmem:[%s12816_s22 + $0x1c0] sm:$0xff] }
  0x1c   : > { %592 = vmatpush.bf16.msra.mxu0 %v12061_v4  ;;  %976 = vmatpush.bf16.msra.mxu1 %v12061_v4 }
  0x1d   : > { %1354 = vmatpush.bf16.msra.mxu2 %v12061_v4  ;;  %1732 = vmatpush.bf16.msra.mxu3 %v12061_v4 }
  0x20   : > { %593 = vmatpush.bf16.msra.mxu0 %v12060_v5  ;;  %977 = vmatpush.bf16.msra.mxu1 %v12060_v5 }
  0x21   : > { %1355 = vmatpush.bf16.msra.mxu2 %v12060_v5  ;;  %1733 = vmatpush.bf16.msra.mxu3 %v12060_v5 }
  0x24   : > { %594 = vmatpush.bf16.msra.mxu0 %v12059_v6  ;;  %978 = vmatpush.bf16.msra.mxu1 %v12059_v6 }
  0x25   : > { %1356 = vmatpush.bf16.msra.mxu2 %v12059_v6  ;;  %1734 = vmatpush.bf16.msra.mxu3 %v12059_v6 }
  0x28   : > { %595 = vmatpush.bf16.msra.mxu0 %v12058_v7  ;;  %979 = vmatpush.bf16.msra.mxu1 %v12058_v7 }
  0x29   : > { %1357 = vmatpush.bf16.msra.mxu2 %v12058_v7  ;;  %1735 = vmatpush.bf16.msra.mxu3 %v12058_v7 }
  0x2b   : > { %596 = vmatmul.bf16.vlgmr.msra.gmra.mxu0 %v12090_v8  ;;  %980 = vmatmul.bf16.vlgmr.msra.gmra.mxu1 %v12106_v9 }
  0x2c   : > { %1358 = vmatmul.bf16.vlgmr.msra.gmra.mxu2 %v12122_v10  ;;  %1736 = vmatmul.bf16.vlgmr.msra.gmra.mxu3 %v12138_v11 }
  0x2d   : > { %2862 = vmatpush.bf16.msrb.mxu2 %v12065_v0  ;;  %3240 = vmatpush.bf16.msrb.mxu3 %v12065_v0 }
  0x2e   : > { %2484 = vmatpush.bf16.msrb.mxu1 %v12065_v0  ;;  %2106 = vmatpush.bf16.msrb.mxu0 %v12065_v0 }
  0x31   : > { %2863 = vmatpush.bf16.msrb.mxu2 %v12064_v1  ;;  %3241 = vmatpush.bf16.msrb.mxu3 %v12064_v1 }
  0x32   : > { %2485 = vmatpush.bf16.msrb.mxu1 %v12064_v1  ;;  %2107 = vmatpush.bf16.msrb.mxu0 %v12064_v1 }
  0x35   : > { %2864 = vmatpush.bf16.msrb.mxu2 %v12063_v2  ;;  %3242 = vmatpush.bf16.msrb.mxu3 %v12063_v2 }
  0x36   : > { %2486 = vmatpush.bf16.msrb.mxu1 %v12063_v2  ;;  %2108 = vmatpush.bf16.msrb.mxu0 %v12063_v2 }
  0x39   : > { %2865 = vmatpush.bf16.msrb.mxu2 %v12062_v3  ;;  %3243 = vmatpush.bf16.msrb.mxu3 %v12062_v3 }
  0x3a   : > { %2487 = vmatpush.bf16.msrb.mxu1 %v12062_v3  ;;  %2109 = vmatpush.bf16.msrb.mxu0 %v12062_v3 }
  0x3b   : > { %601 = vmatmul.bf16.gmra.mxu0 %v12091_v12  ;;  %985 = vmatmul.bf16.gmra.mxu1 %v12107_v13 }
  0x3c   : > { %1363 = vmatmul.bf16.gmra.mxu2 %v12123_v14  ;;  %1741 = vmatmul.bf16.gmra.mxu3 %v12139_v15  ;;  %v12099_v14 = vld [vmem:[%s12816_s22 + $0x48] sm:$0xff] }
  0x3d   : > { %2866 = vmatpush.bf16.msrb.mxu2 %v12061_v4  ;;  %3244 = vmatpush.bf16.msrb.mxu3 %v12061_v4  ;;  %v12115_v15 = vld [vmem:[%s12816_s22 + $0xc8] sm:$0xff] }
  0x3e   : > { %2488 = vmatpush.bf16.msrb.mxu1 %v12061_v4  ;;  %2110 = vmatpush.bf16.msrb.mxu0 %v12061_v4 }
  0x41   : > { %2867 = vmatpush.bf16.msrb.mxu2 %v12060_v5  ;;  %3245 = vmatpush.bf16.msrb.mxu3 %v12060_v5 }
  0x42   : > { %2489 = vmatpush.bf16.msrb.mxu1 %v12060_v5  ;;  %2111 = vmatpush.bf16.msrb.mxu0 %v12060_v5 }
  0x45   : > { %2868 = vmatpush.bf16.msrb.mxu2 %v12059_v6  ;;  %3246 = vmatpush.bf16.msrb.mxu3 %v12059_v6 }
  0x46   : > { %2490 = vmatpush.bf16.msrb.mxu1 %v12059_v6  ;;  %2112 = vmatpush.bf16.msrb.mxu0 %v12059_v6 }
  0x49   : > { %2869 = vmatpush.bf16.msrb.mxu2 %v12058_v7  ;;  %3247 = vmatpush.bf16.msrb.mxu3 %v12058_v7 }
  0x4a   : > { %2491 = vmatpush.bf16.msrb.mxu1 %v12058_v7  ;;  %2113 = vmatpush.bf16.msrb.mxu0 %v12058_v7 }
  0x4b   : > { %606 = vmatmul.bf16.gmra.mxu0 %v12092_v16  ;;  %990 = vmatmul.bf16.gmra.mxu1 %v12108_v17 }
  0x4c   : > { %1368 = vmatmul.bf16.gmra.mxu2 %v12124_v18  ;;  %1746 = vmatmul.bf16.gmra.mxu3 %v12140_v19 }
  0x5b   : > { %611 = vmatmul.bf16.gmra.mxu0 %v12093_v20  ;;  %995 = vmatmul.bf16.gmra.mxu1 %v12109_v21  ;;  %v12131_v20 = vld [vmem:[%s12816_s22 + $0x148] sm:$0xff] }
  0x5c   : > { %1373 = vmatmul.bf16.gmra.mxu2 %v12125_v22  ;;  %1751 = vmatmul.bf16.gmra.mxu3 %v12141_v23  ;;  %v12147_v21 = vld [vmem:[%s12816_s22 + $0x1c8] sm:$0xff] }
  0x6b   : > { %616 = vmatmul.bf16.gmra.mxu0 %v12094_v24  ;;  %1000 = vmatmul.bf16.gmra.mxu1 %v12110_v25 }
  0x6c   : > { %1378 = vmatmul.bf16.gmra.mxu2 %v12126_v26  ;;  %1756 = vmatmul.bf16.gmra.mxu3 %v12142_v27 }
  0x7b   : > { %621 = vmatmul.bf16.gmra.mxu0 %v12095_v28  ;;  %1005 = vmatmul.bf16.gmra.mxu1 %v12111_v29 }
  0x7c   : > { %1383 = vmatmul.bf16.gmra.mxu2 %v12127_v30  ;;  %1761 = vmatmul.bf16.gmra.mxu3 %v12143_v31 }
  0x8b   : > { %626 = vmatmul.bf16.gmra.mxu0 %v12096_v32  ;;  %1010 = vmatmul.bf16.gmra.mxu1 %v12112_v33 }
  0x8c   : > { %1388 = vmatmul.bf16.gmra.mxu2 %v12128_v34  ;;  %1766 = vmatmul.bf16.gmra.mxu3 %v12144_v35 }
  0x9b   : > { %631 = vmatmul.bf16.gmra.mxu0 %v12097_v36  ;;  %1015 = vmatmul.bf16.gmra.mxu1 %v12113_v37 }
  0x9c   : > { %1393 = vmatmul.bf16.gmra.mxu2 %v12129_v38  ;;  %1771 = vmatmul.bf16.gmra.mxu3 %v12145_v39 }
  0xa8   : > { %v597_v44 = vpop.f32.mrf.mxu0  ;;  %v981_v45 = vpop.f32.mrf.mxu1 }
  0xa9   : > { %v680_v48 = vmul.f32 %v12853_v40, %v597_v44  ;;  %v1061_v49 = vmul.f32 %v12853_v40, %v981_v45 }
  0xab   : > { %v715_v50 = vadd.f32 %v12858_v41, %v680_v48  ;;  %v1093_v51 = vadd.f32 %v12858_v41, %v1061_v49  ;;  %636 = vmatmul.bf16.gmra.mxu0 %v12098_v42  ;;  %1020 = vmatmul.bf16.gmra.mxu1 %v12114_v43 }
  0xac   : > { %1398 = vmatmul.bf16.gmra.mxu2 %v12130_v46  ;;  %1776 = vmatmul.bf16.gmra.mxu3 %v12146_v47 }
  0xad   : > { %v747_v52 = vmax.f32 %v715_v50, 0.0  ;;  %v1125_v53 = vmax.f32 %v1093_v51, 0.0 }
  0xaf   : > { %v779_v54 = vpack.c.bf16 %v747_v52, %v747_v52  ;;  %v1157_v55 = vpack.c.bf16 %v1125_v53, %v1125_v53  ;;  %v1359_v56 = vpop.f32.mrf.mxu2  ;;  %v1737_v57 = vpop.f32.mrf.mxu3 }
  0xb0   : > { %v1439_v58 = vmul.f32 %v12853_v40, %v1359_v56  ;;  %v1817_v59 = vmul.f32 %v12853_v40, %v1737_v57  ;;  %v599_v60 = vpop.f32.mrf.mxu0  ;;  %v983_v61 = vpop.f32.mrf.mxu1 }
  0xb1   : > { %811 = vst [vmem:[#allocation2 + $0x4] sm:$0xf] %v779_v54  ;;  %v681_v62 = vmul.f32 %v12853_v40, %v599_v60  ;;  %v1062_v63 = vmul.f32 %v12853_v40, %v983_v61  ;;  %v12100_v60 = vld [vmem:[%s12816_s22 + $0x50] sm:$0xff] }
  0xb2   : > { %1189 = vst [vmem:[#allocation2 + $0x8] sm:$0xf] %v1157_v55  ;;  %v1471_v0 = vadd.f32 %v12858_v41, %v1439_v58  ;;  %v1849_v1 = vadd.f32 %v12858_v41, %v1817_v59  ;;  %v12116_v61 = vld [vmem:[%s12816_s22 + $0xd0] sm:$0xff] }
  0xb3   : > { %v716_v2 = vadd.f32 %v12858_v41, %v681_v62  ;;  %v1094_v3 = vadd.f32 %v12858_v41, %v1062_v63 }
  0xb4   : > { %v1503_v4 = vmax.f32 %v1471_v0, 0.0  ;;  %v1881_v5 = vmax.f32 %v1849_v1, 0.0 }
  0xb5   : > { %v748_v6 = vmax.f32 %v716_v2, 0.0  ;;  %v1126_v7 = vmax.f32 %v1094_v3, 0.0  ;;  %v12132_v2 = vld [vmem:[%s12816_s22 + $0x150] sm:$0xff] }
  0xb6   : > { %v1535_v8 = vpack.c.bf16 %v1503_v4, %v1503_v4  ;;  %v1913_v9 = vpack.c.bf16 %v1881_v5, %v1881_v5  ;;  %v12148_v3 = vld [vmem:[%s12816_s22 + $0x1d0] sm:$0xff] }
  0xb7   : > { %v780_v10 = vpack.c.bf16 %v748_v6, %v748_v6  ;;  %v1158_v11 = vpack.c.bf16 %v1126_v7, %v1126_v7  ;;  %v1361_v12 = vpop.f32.mrf.mxu2  ;;  %v1739_v13 = vpop.f32.mrf.mxu3 }
  0xb8   : > { %1567 = vst [vmem:[#allocation2 + $0xc] sm:$0xf] %v1535_v8  ;;  %v1440_v16 = vmul.f32 %v12853_v40, %v1361_v12  ;;  %v1818_v17 = vmul.f32 %v12853_v40, %v1739_v13  ;;  %v602_v18 = vpop.f32.mrf.mxu0  ;;  %v986_v19 = vpop.f32.mrf.mxu1 }
  0xb9   : > { %1945 = vst [vmem:[#allocation2 + $0x10] sm:$0xf] %v1913_v9  ;;  %v682_v22 = vmul.f32 %v12853_v40, %v602_v18  ;;  %v1063_v23 = vmul.f32 %v12853_v40, %v986_v19 }
  0xba   : > { %812 = vst [vmem:[#allocation2 + $0x2c] sm:$0xf] %v780_v10  ;;  %v1472_v24 = vadd.f32 %v12858_v41, %v1440_v16  ;;  %v1850_v25 = vadd.f32 %v12858_v41, %v1818_v17 }
  0xbb   : > { %1190 = vst [vmem:[#allocation2 + $0x30] sm:$0xf] %v1158_v11  ;;  %v717_v26 = vadd.f32 %v12858_v41, %v682_v22  ;;  %v1095_v27 = vadd.f32 %v12858_v41, %v1063_v23  ;;  %641 = vmatmul.bf16.gmra.mxu0 %v12099_v14  ;;  %1025 = vmatmul.bf16.gmra.mxu1 %v12115_v15 }
  0xbc   : > { %v1504_v28 = vmax.f32 %v1472_v24, 0.0  ;;  %v1882_v29 = vmax.f32 %v1850_v25, 0.0  ;;  %1403 = vmatmul.bf16.gmra.mxu2 %v12131_v20  ;;  %1781 = vmatmul.bf16.gmra.mxu3 %v12147_v21 }
  0xbd   : > { %v749_v30 = vmax.f32 %v717_v26, 0.0  ;;  %v1127_v31 = vmax.f32 %v1095_v27, 0.0 }
  0xbe   : > { %v1536_v32 = vpack.c.bf16 %v1504_v28, %v1504_v28  ;;  %v1914_v33 = vpack.c.bf16 %v1882_v29, %v1882_v29 }
  0xbf   : > { %v781_v34 = vpack.c.bf16 %v749_v30, %v749_v30  ;;  %v1159_v35 = vpack.c.bf16 %v1127_v31, %v1127_v31  ;;  %v1364_v36 = vpop.f32.mrf.mxu2  ;;  %v1742_v37 = vpop.f32.mrf.mxu3 }
  0xc0   : > { %1568 = vst [vmem:[#allocation2 + $0x34] sm:$0xf] %v1536_v32  ;;  %v1441_v38 = vmul.f32 %v12853_v40, %v1364_v36  ;;  %v1819_v39 = vmul.f32 %v12853_v40, %v1742_v37  ;;  %v604_v42 = vpop.f32.mrf.mxu0  ;;  %v988_v43 = vpop.f32.mrf.mxu1 }
  0xc1   : > { %1946 = vst [vmem:[#allocation2 + $0x38] sm:$0xf] %v1914_v33  ;;  %v683_v44 = vmul.f32 %v12853_v40, %v604_v42  ;;  %v1064_v45 = vmul.f32 %v12853_v40, %v988_v43  ;;  %v12101_v42 = vld [vmem:[%s12816_s22 + $0x58] sm:$0xff] }
  0xc2   : > { %813 = vst [vmem:[#allocation2 + $0x54] sm:$0xf] %v781_v34  ;;  %v1473_v46 = vadd.f32 %v12858_v41, %v1441_v38  ;;  %v1851_v47 = vadd.f32 %v12858_v41, %v1819_v39  ;;  %v12117_v43 = vld [vmem:[%s12816_s22 + $0xd8] sm:$0xff] }
  0xc3   : > { %1191 = vst [vmem:[#allocation2 + $0x58] sm:$0xf] %v1159_v35  ;;  %v718_v48 = vadd.f32 %v12858_v41, %v683_v44  ;;  %v1096_v49 = vadd.f32 %v12858_v41, %v1064_v45 }
  0xc4   : > { %v1505_v50 = vmax.f32 %v1473_v46, 0.0  ;;  %v1883_v51 = vmax.f32 %v1851_v47, 0.0 }
  0xc5   : > { %v750_v52 = vmax.f32 %v718_v48, 0.0  ;;  %v1128_v53 = vmax.f32 %v1096_v49, 0.0  ;;  %v12133_v48 = vld [vmem:[%s12816_s22 + $0x158] sm:$0xff] }
  0xc6   : > { %v1537_v54 = vpack.c.bf16 %v1505_v50, %v1505_v50  ;;  %v1915_v55 = vpack.c.bf16 %v1883_v51, %v1883_v51  ;;  %v12149_v49 = vld [vmem:[%s12816_s22 + $0x1d8] sm:$0xff] }
  0xc7   : > { %v782_v56 = vpack.c.bf16 %v750_v52, %v750_v52  ;;  %v1160_v57 = vpack.c.bf16 %v1128_v53, %v1128_v53  ;;  %v1366_v58 = vpop.f32.mrf.mxu2  ;;  %v1744_v59 = vpop.f32.mrf.mxu3 }
  0xc8   : > { %1569 = vst [vmem:[#allocation2 + $0x5c] sm:$0xf] %v1537_v54  ;;  %v1442_v62 = vmul.f32 %v12853_v40, %v1366_v58  ;;  %v1820_v63 = vmul.f32 %v12853_v40, %v1744_v59  ;;  %v607_v0 = vpop.f32.mrf.mxu0  ;;  %v991_v1 = vpop.f32.mrf.mxu1 }
  0xc9   : > { %1947 = vst [vmem:[#allocation2 + $0x60] sm:$0xf] %v1915_v55  ;;  %v684_v4 = vmul.f32 %v12853_v40, %v607_v0  ;;  %v1065_v5 = vmul.f32 %v12853_v40, %v991_v1 }
  0xca   : > { %814 = vst [vmem:[#allocation2 + $0x7c] sm:$0xf] %v782_v56  ;;  %v1474_v6 = vadd.f32 %v12858_v41, %v1442_v62  ;;  %v1852_v7 = vadd.f32 %v12858_v41, %v1820_v63 }
  0xcb   : > { %1192 = vst [vmem:[#allocation2 + $0x80] sm:$0xf] %v1160_v57  ;;  %v719_v8 = vadd.f32 %v12858_v41, %v684_v4  ;;  %v1097_v9 = vadd.f32 %v12858_v41, %v1065_v5  ;;  %646 = vmatmul.bf16.gmra.mxu0 %v12100_v60  ;;  %1030 = vmatmul.bf16.gmra.mxu1 %v12116_v61 }
  0xcc   : > { %v1506_v10 = vmax.f32 %v1474_v6, 0.0  ;;  %v1884_v11 = vmax.f32 %v1852_v7, 0.0  ;;  %1408 = vmatmul.bf16.gmra.mxu2 %v12132_v2  ;;  %1786 = vmatmul.bf16.gmra.mxu3 %v12148_v3 }
  0xcd   : > { %v751_v12 = vmax.f32 %v719_v8, 0.0  ;;  %v1129_v13 = vmax.f32 %v1097_v9, 0.0 }
  0xce   : > { %v1538_v14 = vpack.c.bf16 %v1506_v10, %v1506_v10  ;;  %v1916_v15 = vpack.c.bf16 %v1884_v11, %v1884_v11 }
  0xcf   : > { %v783_v16 = vpack.c.bf16 %v751_v12, %v751_v12  ;;  %v1161_v17 = vpack.c.bf16 %v1129_v13, %v1129_v13  ;;  %v1369_v18 = vpop.f32.mrf.mxu2  ;;  %v1747_v19 = vpop.f32.mrf.mxu3 }
  0xd0   : > { %1570 = vst [vmem:[#allocation2 + $0x84] sm:$0xf] %v1538_v14  ;;  %v1443_v20 = vmul.f32 %v12853_v40, %v1369_v18  ;;  %v1821_v21 = vmul.f32 %v12853_v40, %v1747_v19  ;;  %v609_v22 = vpop.f32.mrf.mxu0  ;;  %v993_v23 = vpop.f32.mrf.mxu1 }
  0xd1   : > { %1948 = vst [vmem:[#allocation2 + $0x88] sm:$0xf] %v1916_v15  ;;  %v685_v24 = vmul.f32 %v12853_v40, %v609_v22  ;;  %v1066_v25 = vmul.f32 %v12853_v40, %v993_v23  ;;  %v12102_v22 = vld [vmem:[%s12816_s22 + $0x60] sm:$0xff] }
  0xd2   : > { %815 = vst [vmem:[#allocation2 + $0xa4] sm:$0xf] %v783_v16  ;;  %v1475_v26 = vadd.f32 %v12858_v41, %v1443_v20  ;;  %v1853_v27 = vadd.f32 %v12858_v41, %v1821_v21  ;;  %v12118_v23 = vld [vmem:[%s12816_s22 + $0xe0] sm:$0xff] }
  0xd3   : > { %1193 = vst [vmem:[#allocation2 + $0xa8] sm:$0xf] %v1161_v17  ;;  %v720_v28 = vadd.f32 %v12858_v41, %v685_v24  ;;  %v1098_v29 = vadd.f32 %v12858_v41, %v1066_v25 }
  0xd4   : > { %v1507_v30 = vmax.f32 %v1475_v26, 0.0  ;;  %v1885_v31 = vmax.f32 %v1853_v27, 0.0 }
  0xd5   : > { %v752_v32 = vmax.f32 %v720_v28, 0.0  ;;  %v1130_v33 = vmax.f32 %v1098_v29, 0.0  ;;  %v12134_v28 = vld [vmem:[%s12816_s22 + $0x160] sm:$0xff] }
  0xd6   : > { %v1539_v34 = vpack.c.bf16 %v1507_v30, %v1507_v30  ;;  %v1917_v35 = vpack.c.bf16 %v1885_v31, %v1885_v31  ;;  %v12150_v29 = vld [vmem:[%s12816_s22 + $0x1e0] sm:$0xff] }
  0xd7   : > { %v784_v36 = vpack.c.bf16 %v752_v32, %v752_v32  ;;  %v1162_v37 = vpack.c.bf16 %v1130_v33, %v1130_v33  ;;  %v1371_v38 = vpop.f32.mrf.mxu2  ;;  %v1749_v39 = vpop.f32.mrf.mxu3 }
  0xd8   : > { %1571 = vst [vmem:[#allocation2 + $0xac] sm:$0xf] %v1539_v34  ;;  %v1444_v44 = vmul.f32 %v12853_v40, %v1371_v38  ;;  %v1822_v45 = vmul.f32 %v12853_v40, %v1749_v39  ;;  %v612_v46 = vpop.f32.mrf.mxu0  ;;  %v996_v47 = vpop.f32.mrf.mxu1 }
  0xd9   : > { %1949 = vst [vmem:[#allocation2 + $0xb0] sm:$0xf] %v1917_v35  ;;  %v686_v50 = vmul.f32 %v12853_v40, %v612_v46  ;;  %v1067_v51 = vmul.f32 %v12853_v40, %v996_v47 }
  0xda   : > { %816 = vst [vmem:[#allocation2 + $0xcc] sm:$0xf] %v784_v36  ;;  %v1476_v52 = vadd.f32 %v12858_v41, %v1444_v44  ;;  %v1854_v53 = vadd.f32 %v12858_v41, %v1822_v45 }
  0xdb   : > { %1194 = vst [vmem:[#allocation2 + $0xd0] sm:$0xf] %v1162_v37  ;;  %v721_v54 = vadd.f32 %v12858_v41, %v686_v50  ;;  %v1099_v55 = vadd.f32 %v12858_v41, %v1067_v51  ;;  %651 = vmatmul.bf16.gmra.mxu0 %v12101_v42  ;;  %1035 = vmatmul.bf16.gmra.mxu1 %v12117_v43 }
  0xdc   : > { %v1508_v56 = vmax.f32 %v1476_v52, 0.0  ;;  %v1886_v57 = vmax.f32 %v1854_v53, 0.0  ;;  %1413 = vmatmul.bf16.gmra.mxu2 %v12133_v48  ;;  %1791 = vmatmul.bf16.gmra.mxu3 %v12149_v49 }
  0xdd   : > { %v753_v58 = vmax.f32 %v721_v54, 0.0  ;;  %v1131_v59 = vmax.f32 %v1099_v55, 0.0 }
  0xde   : > { %v1540_v60 = vpack.c.bf16 %v1508_v56, %v1508_v56  ;;  %v1918_v61 = vpack.c.bf16 %v1886_v57, %v1886_v57 }
  0xdf   : > { %v785_v62 = vpack.c.bf16 %v753_v58, %v753_v58  ;;  %v1163_v63 = vpack.c.bf16 %v1131_v59, %v1131_v59  ;;  %v1374_v0 = vpop.f32.mrf.mxu2  ;;  %v1752_v1 = vpop.f32.mrf.mxu3 }
  0xe0   : > { %1572 = vst [vmem:[#allocation2 + $0xd4] sm:$0xf] %v1540_v60  ;;  %v1445_v2 = vmul.f32 %v12853_v40, %v1374_v0  ;;  %v1823_v3 = vmul.f32 %v12853_v40, %v1752_v1  ;;  %v614_v4 = vpop.f32.mrf.mxu0  ;;  %v998_v5 = vpop.f32.mrf.mxu1 }
  0xe1   : > { %1950 = vst [vmem:[#allocation2 + $0xd8] sm:$0xf] %v1918_v61  ;;  %v687_v6 = vmul.f32 %v12853_v40, %v614_v4  ;;  %v1068_v7 = vmul.f32 %v12853_v40, %v998_v5  ;;  %v12103_v4 = vld [vmem:[%s12816_s22 + $0x68] sm:$0xff] }
  0xe2   : > { %817 = vst [vmem:[#allocation2 + $0xf4] sm:$0xf] %v785_v62  ;;  %v1477_v8 = vadd.f32 %v12858_v41, %v1445_v2  ;;  %v1855_v9 = vadd.f32 %v12858_v41, %v1823_v3  ;;  %v12119_v5 = vld [vmem:[%s12816_s22 + $0xe8] sm:$0xff] }
  0xe3   : > { %1195 = vst [vmem:[#allocation2 + $0xf8] sm:$0xf] %v1163_v63  ;;  %v722_v10 = vadd.f32 %v12858_v41, %v687_v6  ;;  %v1100_v11 = vadd.f32 %v12858_v41, %v1068_v7 }
  0xe4   : > { %v1509_v12 = vmax.f32 %v1477_v8, 0.0  ;;  %v1887_v13 = vmax.f32 %v1855_v9, 0.0 }
  0xe5   : > { %v754_v14 = vmax.f32 %v722_v10, 0.0  ;;  %v1132_v15 = vmax.f32 %v1100_v11, 0.0  ;;  %v12135_v10 = vld [vmem:[%s12816_s22 + $0x168] sm:$0xff] }
  0xe6   : > { %v1541_v16 = vpack.c.bf16 %v1509_v12, %v1509_v12  ;;  %v1919_v17 = vpack.c.bf16 %v1887_v13, %v1887_v13  ;;  %v12151_v11 = vld [vmem:[%s12816_s22 + $0x1e8] sm:$0xff] }
  0xe7   : > { %v786_v18 = vpack.c.bf16 %v754_v14, %v754_v14  ;;  %v1164_v19 = vpack.c.bf16 %v1132_v15, %v1132_v15  ;;  %v1376_v20 = vpop.f32.mrf.mxu2  ;;  %v1754_v21 = vpop.f32.mrf.mxu3 }
  0xe8   : > { %1573 = vst [vmem:[#allocation2 + $0xfc] sm:$0xf] %v1541_v16  ;;  %v1446_v24 = vmul.f32 %v12853_v40, %v1376_v20  ;;  %v1824_v25 = vmul.f32 %v12853_v40, %v1754_v21  ;;  %v617_v26 = vpop.f32.mrf.mxu0  ;;  %v1001_v27 = vpop.f32.mrf.mxu1 }
  0xe9   : > { %1951 = vst [vmem:[#allocation2 + $0x100] sm:$0xf] %v1919_v17  ;;  %v688_v30 = vmul.f32 %v12853_v40, %v617_v26  ;;  %v1069_v31 = vmul.f32 %v12853_v40, %v1001_v27 }
  0xea   : > { %818 = vst [vmem:[#allocation2 + $0x11c] sm:$0xf] %v786_v18  ;;  %v1478_v32 = vadd.f32 %v12858_v41, %v1446_v24  ;;  %v1856_v33 = vadd.f32 %v12858_v41, %v1824_v25 }
  0xeb   : > { %1196 = vst [vmem:[#allocation2 + $0x120] sm:$0xf] %v1164_v19  ;;  %v723_v34 = vadd.f32 %v12858_v41, %v688_v30  ;;  %v1101_v35 = vadd.f32 %v12858_v41, %v1069_v31  ;;  %656 = vmatmul.bf16.gmra.mxu0 %v12102_v22  ;;  %1040 = vmatmul.bf16.gmra.mxu1 %v12118_v23 }
  0xec   : > { %v1510_v36 = vmax.f32 %v1478_v32, 0.0  ;;  %v1888_v37 = vmax.f32 %v1856_v33, 0.0  ;;  %1418 = vmatmul.bf16.gmra.mxu2 %v12134_v28  ;;  %1796 = vmatmul.bf16.gmra.mxu3 %v12150_v29 }
  0xed   : > { %v755_v38 = vmax.f32 %v723_v34, 0.0  ;;  %v1133_v39 = vmax.f32 %v1101_v35, 0.0 }
  0xee   : > { %v1542_v42 = vpack.c.bf16 %v1510_v36, %v1510_v36  ;;  %v1920_v43 = vpack.c.bf16 %v1888_v37, %v1888_v37 }
  0xef   : > { %v787_v44 = vpack.c.bf16 %v755_v38, %v755_v38  ;;  %v1165_v45 = vpack.c.bf16 %v1133_v39, %v1133_v39  ;;  %v1379_v46 = vpop.f32.mrf.mxu2  ;;  %v1757_v47 = vpop.f32.mrf.mxu3 }
  0xf0   : > { %1574 = vst [vmem:[#allocation2 + $0x124] sm:$0xf] %v1542_v42  ;;  %v1447_v48 = vmul.f32 %v12853_v40, %v1379_v46  ;;  %v1825_v49 = vmul.f32 %v12853_v40, %v1757_v47  ;;  %v619_v50 = vpop.f32.mrf.mxu0  ;;  %v1003_v51 = vpop.f32.mrf.mxu1 }
  0xf1   : > { %1952 = vst [vmem:[#allocation2 + $0x128] sm:$0xf] %v1920_v43  ;;  %v689_v52 = vmul.f32 %v12853_v40, %v619_v50  ;;  %v1070_v53 = vmul.f32 %v12853_v40, %v1003_v51  ;;  %v12104_v50 = vld [vmem:[%s12816_s22 + $0x70] sm:$0xff] }
  0xf2   : > { %819 = vst [vmem:[#allocation2 + $0x144] sm:$0xf] %v787_v44  ;;  %v1479_v54 = vadd.f32 %v12858_v41, %v1447_v48  ;;  %v1857_v55 = vadd.f32 %v12858_v41, %v1825_v49  ;;  %v12120_v51 = vld [vmem:[%s12816_s22 + $0xf0] sm:$0xff] }
  0xf3   : > { %1197 = vst [vmem:[#allocation2 + $0x148] sm:$0xf] %v1165_v45  ;;  %v724_v56 = vadd.f32 %v12858_v41, %v689_v52  ;;  %v1102_v57 = vadd.f32 %v12858_v41, %v1070_v53 }
  0xf4   : > { %v1511_v58 = vmax.f32 %v1479_v54, 0.0  ;;  %v1889_v59 = vmax.f32 %v1857_v55, 0.0 }
  0xf5   : > { %v756_v60 = vmax.f32 %v724_v56, 0.0  ;;  %v1134_v61 = vmax.f32 %v1102_v57, 0.0  ;;  %v12136_v56 = vld [vmem:[%s12816_s22 + $0x170] sm:$0xff] }
  0xf6   : > { %v1543_v62 = vpack.c.bf16 %v1511_v58, %v1511_v58  ;;  %v1921_v63 = vpack.c.bf16 %v1889_v59, %v1889_v59  ;;  %v12152_v57 = vld [vmem:[%s12816_s22 + $0x1f0] sm:$0xff] }
  0xf7   : > { %v788_v0 = vpack.c.bf16 %v756_v60, %v756_v60  ;;  %v1166_v1 = vpack.c.bf16 %v1134_v61, %v1134_v61  ;;  %v1381_v2 = vpop.f32.mrf.mxu2  ;;  %v1759_v3 = vpop.f32.mrf.mxu3 }
  0xf8   : > { %1575 = vst [vmem:[#allocation2 + $0x14c] sm:$0xf] %v1543_v62  ;;  %v1448_v6 = vmul.f32 %v12853_v40, %v1381_v2  ;;  %v1826_v7 = vmul.f32 %v12853_v40, %v1759_v3  ;;  %v622_v8 = vpop.f32.mrf.mxu0  ;;  %v1006_v9 = vpop.f32.mrf.mxu1 }
  0xf9   : > { %1953 = vst [vmem:[#allocation2 + $0x150] sm:$0xf] %v1921_v63  ;;  %v690_v12 = vmul.f32 %v12853_v40, %v622_v8  ;;  %v1071_v13 = vmul.f32 %v12853_v40, %v1006_v9 }
  0xfa   : > { %820 = vst [vmem:[#allocation2 + $0x16c] sm:$0xf] %v788_v0  ;;  %v1480_v14 = vadd.f32 %v12858_v41, %v1448_v6  ;;  %v1858_v15 = vadd.f32 %v12858_v41, %v1826_v7 }
  0xfb   : > { %1198 = vst [vmem:[#allocation2 + $0x170] sm:$0xf] %v1166_v1  ;;  %v725_v16 = vadd.f32 %v12858_v41, %v690_v12  ;;  %v1103_v17 = vadd.f32 %v12858_v41, %v1071_v13  ;;  %661 = vmatmul.bf16.gmra.mxu0 %v12103_v4  ;;  %1045 = vmatmul.bf16.gmra.mxu1 %v12119_v5 }
  0xfc   : > { %v1512_v18 = vmax.f32 %v1480_v14, 0.0  ;;  %v1890_v19 = vmax.f32 %v1858_v15, 0.0  ;;  %1423 = vmatmul.bf16.gmra.mxu2 %v12135_v10  ;;  %1801 = vmatmul.bf16.gmra.mxu3 %v12151_v11 }
  0xfd   : > { %v757_v20 = vmax.f32 %v725_v16, 0.0  ;;  %v1135_v21 = vmax.f32 %v1103_v17, 0.0 }
  0xfe   : > { %v1544_v22 = vpack.c.bf16 %v1512_v18, %v1512_v18  ;;  %v1922_v23 = vpack.c.bf16 %v1890_v19, %v1890_v19 }
  0xff   : > { %v789_v24 = vpack.c.bf16 %v757_v20, %v757_v20  ;;  %v1167_v25 = vpack.c.bf16 %v1135_v21, %v1135_v21  ;;  %v1384_v26 = vpop.f32.mrf.mxu2  ;;  %v1762_v27 = vpop.f32.mrf.mxu3  ;;  %v12089_v20 = vld [vmem:[%s15335_s4 + $0xb8] sm:$0xff] }
 0x100   : > { %1576 = vst [vmem:[#allocation2 + $0x174] sm:$0xf] %v1544_v22  ;;  %v1449_v28 = vmul.f32 %v12853_v40, %v1384_v26  ;;  %v1827_v29 = vmul.f32 %v12853_v40, %v1762_v27  ;;  %v624_v30 = vpop.f32.mrf.mxu0  ;;  %v1008_v31 = vpop.f32.mrf.mxu1  ;;  %v12073_v21 = vld [vmem:[%s15335_s4 + $0x38] sm:$0xff]  ;;  %4131 = vmatpush.bf16.msra.mxu2 %v12089_v20 }
 0x101   : > { %1954 = vst [vmem:[#allocation2 + $0x178] sm:$0xf] %v1922_v23  ;;  %v691_v32 = vmul.f32 %v12853_v40, %v624_v30  ;;  %v1072_v33 = vmul.f32 %v12853_v40, %v1008_v31  ;;  %4674 = vmatpush.bf16.msra.mxu3 %v12073_v21  ;;  %3953 = vmatpush.bf16.msra.mxu0 %v12073_v21  ;;  %v12186_v21 = vld [vmem:[%s12816_s22 + $0x300] sm:$0xff] }
 0x102   : > { %821 = vst [vmem:[#allocation2 + $0x194] sm:$0xf] %v789_v24  ;;  %v1481_v34 = vadd.f32 %v12858_v41, %v1449_v28  ;;  %v1859_v35 = vadd.f32 %v12858_v41, %v1827_v29 }
 0x103   : > { %1199 = vst [vmem:[#allocation2 + $0x198] sm:$0xf] %v1167_v25  ;;  %v726_v36 = vadd.f32 %v12858_v41, %v691_v32  ;;  %v1104_v37 = vadd.f32 %v12858_v41, %v1072_v33  ;;  %v12105_v32 = vld [vmem:[%s12816_s22 + $0x78] sm:$0xff] }
 0x104   : > { %v1513_v38 = vmax.f32 %v1481_v34, 0.0  ;;  %v1891_v39 = vmax.f32 %v1859_v35, 0.0  ;;  %v12121_v33 = vld [vmem:[%s12816_s22 + $0xf8] sm:$0xff] }
 0x105   : > { %v758_v42 = vmax.f32 %v726_v36, 0.0  ;;  %v1136_v43 = vmax.f32 %v1104_v37, 0.0 }
 0x106   : > { %v1545_v44 = vpack.c.bf16 %v1513_v38, %v1513_v38  ;;  %v1923_v45 = vpack.c.bf16 %v1891_v39, %v1891_v39  ;;  %v12137_v38 = vld [vmem:[%s12816_s22 + $0x178] sm:$0xff] }
 0x107   : > { %v790_v46 = vpack.c.bf16 %v758_v42, %v758_v42  ;;  %v1168_v47 = vpack.c.bf16 %v1136_v43, %v1136_v43  ;;  %v1386_v48 = vpop.f32.mrf.mxu2  ;;  %v1764_v49 = vpop.f32.mrf.mxu3  ;;  %v12153_v39 = vld [vmem:[%s12816_s22 + $0x1f8] sm:$0xff] }
 0x108   : > { %1577 = vst [vmem:[#allocation2 + $0x19c] sm:$0xf] %v1545_v44  ;;  %v1450_v52 = vmul.f32 %v12853_v40, %v1386_v48  ;;  %v1828_v53 = vmul.f32 %v12853_v40, %v1764_v49  ;;  %v627_v54 = vpop.f32.mrf.mxu0  ;;  %v1011_v55 = vpop.f32.mrf.mxu1  ;;  %v12081_v48 = vld [vmem:[%s15335_s4 + $0x78] sm:$0xff] }
 0x109   : > { %1955 = vst [vmem:[#allocation2 + $0x1a0] sm:$0xf] %v1923_v45  ;;  %v692_v58 = vmul.f32 %v12853_v40, %v627_v54  ;;  %v1073_v59 = vmul.f32 %v12853_v40, %v1011_v55  ;;  %4042 = vmatpush.bf16.msra.mxu1 %v12081_v48 }
 0x10a   : > { %822 = vst [vmem:[#allocation2 + $0x1bc] sm:$0xf] %v790_v46  ;;  %v1482_v60 = vadd.f32 %v12858_v41, %v1450_v52  ;;  %v1860_v61 = vadd.f32 %v12858_v41, %v1828_v53 }
 0x10b   : > { %1200 = vst [vmem:[#allocation2 + $0x1c0] sm:$0xf] %v1168_v47  ;;  %v727_v62 = vadd.f32 %v12858_v41, %v692_v58  ;;  %v1105_v63 = vadd.f32 %v12858_v41, %v1073_v59  ;;  %666 = vmatmul.bf16.gmra.mxu0 %v12104_v50  ;;  %1050 = vmatmul.bf16.gmra.mxu1 %v12120_v51 }
 0x10c   : > { %v1514_v0 = vmax.f32 %v1482_v60, 0.0  ;;  %v1892_v1 = vmax.f32 %v1860_v61, 0.0  ;;  %1428 = vmatmul.bf16.gmra.mxu2 %v12136_v56  ;;  %1806 = vmatmul.bf16.gmra.mxu3 %v12152_v57 }
 0x10d   : > { %v759_v2 = vmax.f32 %v727_v62, 0.0  ;;  %v1137_v3 = vmax.f32 %v1105_v63, 0.0 }
 0x10e   : > { %v1546_v4 = vpack.c.bf16 %v1514_v0, %v1514_v0  ;;  %v1924_v5 = vpack.c.bf16 %v1892_v1, %v1892_v1 }
 0x10f   : > { %v791_v6 = vpack.c.bf16 %v759_v2, %v759_v2  ;;  %v1169_v7 = vpack.c.bf16 %v1137_v3, %v1137_v3  ;;  %v1389_v8 = vpop.f32.mrf.mxu2  ;;  %v1767_v9 = vpop.f32.mrf.mxu3 }
 0x110   : > { %1578 = vst [vmem:[#allocation2 + $0x1c4] sm:$0xf] %v1546_v4  ;;  %v1451_v10 = vmul.f32 %v12853_v40, %v1389_v8  ;;  %v1829_v11 = vmul.f32 %v12853_v40, %v1767_v9  ;;  %v629_v12 = vpop.f32.mrf.mxu0  ;;  %v1013_v13 = vpop.f32.mrf.mxu1 }
 0x111   : > { %1956 = vst [vmem:[#allocation2 + $0x1c8] sm:$0xf] %v1924_v5  ;;  %v693_v14 = vmul.f32 %v12853_v40, %v629_v12  ;;  %v1074_v15 = vmul.f32 %v12853_v40, %v1013_v13 }
 0x112   : > { %823 = vst [vmem:[#allocation2 + $0x1e4] sm:$0xf] %v791_v6  ;;  %v1483_v16 = vadd.f32 %v12858_v41, %v1451_v10  ;;  %v1861_v17 = vadd.f32 %v12858_v41, %v1829_v11 }
 0x113   : > { %1201 = vst [vmem:[#allocation2 + $0x1e8] sm:$0xf] %v1169_v7  ;;  %v728_v18 = vadd.f32 %v12858_v41, %v693_v14  ;;  %v1106_v19 = vadd.f32 %v12858_v41, %v1074_v15  ;;  %v12154_v15 = vld [vmem:[%s12816_s22 + $0x200] sm:$0xff] }
 0x114   : > { %v1515_v22 = vmax.f32 %v1483_v16, 0.0  ;;  %v1893_v23 = vmax.f32 %v1861_v17, 0.0  ;;  %v12170_v16 = vld [vmem:[%s12816_s22 + $0x280] sm:$0xff] }
 0x115   : > { %v760_v24 = vmax.f32 %v728_v18, 0.0  ;;  %v1138_v25 = vmax.f32 %v1106_v19, 0.0 }
 0x116   : > { %v1547_v26 = vpack.c.bf16 %v1515_v22, %v1515_v22  ;;  %v1925_v27 = vpack.c.bf16 %v1893_v23, %v1893_v23  ;;  %v12202_v22 = vld [vmem:[%s12816_s22 + $0x380] sm:$0xff] }
 0x117   : > { %v792_v28 = vpack.c.bf16 %v760_v24, %v760_v24  ;;  %v1170_v29 = vpack.c.bf16 %v1138_v25, %v1138_v25  ;;  %v1391_v30 = vpop.f32.mrf.mxu2  ;;  %v1769_v31 = vpop.f32.mrf.mxu3 }
 0x118   : > { %1579 = vst [vmem:[#allocation2 + $0x1ec] sm:$0xf] %v1547_v26  ;;  %v1452_v34 = vmul.f32 %v12853_v40, %v1391_v30  ;;  %v1830_v35 = vmul.f32 %v12853_v40, %v1769_v31  ;;  %v632_v36 = vpop.f32.mrf.mxu0  ;;  %v1016_v37 = vpop.f32.mrf.mxu1 }
 0x119   : > { %1957 = vst [vmem:[#allocation2 + $0x1f0] sm:$0xf] %v1925_v27  ;;  %v694_v42 = vmul.f32 %v12853_v40, %v632_v36  ;;  %v1075_v43 = vmul.f32 %v12853_v40, %v1016_v37 }
 0x11a   : > { %824 = vst [vmem:[#allocation2 + $0x20c] sm:$0xf] %v792_v28  ;;  %v1484_v44 = vadd.f32 %v12858_v41, %v1452_v34  ;;  %v1862_v45 = vadd.f32 %v12858_v41, %v1830_v35 }
 0x11b   : > { %1202 = vst [vmem:[#allocation2 + $0x210] sm:$0xf] %v1170_v29  ;;  %v729_v46 = vadd.f32 %v12858_v41, %v694_v42  ;;  %v1107_v47 = vadd.f32 %v12858_v41, %v1075_v43  ;;  %671 = vmatmul.bf16.gmra.mxu0 %v12105_v32  ;;  %1055 = vmatmul.bf16.gmra.mxu1 %v12121_v33 }
 0x11c   : > { %v1516_v49 = vmax.f32 %v1484_v44, 0.0  ;;  %v1894_v50 = vmax.f32 %v1862_v45, 0.0  ;;  %1433 = vmatmul.bf16.gmra.mxu2 %v12137_v38  ;;  %1811 = vmatmul.bf16.gmra.mxu3 %v12153_v39 }
 0x11d   : > { %v761_v51 = vmax.f32 %v729_v46, 0.0  ;;  %v1139_v52 = vmax.f32 %v1107_v47, 0.0 }
 0x11e   : > { %v1548_v53 = vpack.c.bf16 %v1516_v49, %v1516_v49  ;;  %v1926_v54 = vpack.c.bf16 %v1894_v50, %v1894_v50 }
 0x11f   : > { %v793_v55 = vpack.c.bf16 %v761_v51, %v761_v51  ;;  %v1171_v56 = vpack.c.bf16 %v1139_v52, %v1139_v52  ;;  %v1394_v57 = vpop.f32.mrf.mxu2  ;;  %v1772_v58 = vpop.f32.mrf.mxu3  ;;  %v12088_v51 = vld [vmem:[%s15335_s4 + $0xb0] sm:$0xff] }
 0x120   : > { %1580 = vst [vmem:[#allocation2 + $0x214] sm:$0xf] %v1548_v53  ;;  %v1453_v59 = vmul.f32 %v12853_v40, %v1394_v57  ;;  %v1831_v60 = vmul.f32 %v12853_v40, %v1772_v58  ;;  %v634_v61 = vpop.f32.mrf.mxu0  ;;  %v1018_v62 = vpop.f32.mrf.mxu1  ;;  %v12072_v52 = vld [vmem:[%s15335_s4 + $0x30] sm:$0xff]  ;;  %4132 = vmatpush.bf16.msra.mxu2 %v12088_v51 }
 0x121   : > { %1958 = vst [vmem:[#allocation2 + $0x218] sm:$0xf] %v1926_v54  ;;  %v695_v63 = vmul.f32 %v12853_v40, %v634_v61  ;;  %v1076_v0 = vmul.f32 %v12853_v40, %v1018_v62  ;;  %4675 = vmatpush.bf16.msra.mxu3 %v12072_v52  ;;  %3954 = vmatpush.bf16.msra.mxu0 %v12072_v52  ;;  %v12155_v62 = vld [vmem:[%s12816_s22 + $0x208] sm:$0xff]  ;;  %v12188_v52 = vld [vmem:[%s12816_s22 + $0x310] sm:$0xff] }
 0x122   : > { %825 = vst [vmem:[#allocation2 + $0x234] sm:$0xf] %v793_v55  ;;  %v1485_v1 = vadd.f32 %v12858_v41, %v1453_v59  ;;  %v1863_v2 = vadd.f32 %v12858_v41, %v1831_v60 }
 0x123   : > { %1203 = vst [vmem:[#allocation2 + $0x238] sm:$0xf] %v1171_v56  ;;  %v730_v3 = vadd.f32 %v12858_v41, %v695_v63  ;;  %v1108_v4 = vadd.f32 %v12858_v41, %v1076_v0  ;;  %v12171_v63 = vld [vmem:[%s12816_s22 + $0x288] sm:$0xff] }
 0x124   : > { %v1517_v5 = vmax.f32 %v1485_v1, 0.0  ;;  %v1895_v6 = vmax.f32 %v1863_v2, 0.0 }
 0x125   : > { %v762_v7 = vmax.f32 %v730_v3, 0.0  ;;  %v1140_v8 = vmax.f32 %v1108_v4, 0.0  ;;  %v12187_v4 = vld [vmem:[%s12816_s22 + $0x308] sm:$0xff] }
 0x126   : > { %v1549_v9 = vpack.c.bf16 %v1517_v5, %v1517_v5  ;;  %v1927_v10 = vpack.c.bf16 %v1895_v6, %v1895_v6  ;;  %v12203_v5 = vld [vmem:[%s12816_s22 + $0x388] sm:$0xff]  ;;  %v13060_v6 = vld [vmem:[%s15333_s2] ss:$0 sm:$0xff] }
 0x127   : > { %v794_v11 = vpack.c.bf16 %v762_v7, %v762_v7  ;;  %v1172_v12 = vpack.c.bf16 %v1140_v8, %v1140_v8  ;;  %v1396_v13 = vpop.f32.mrf.mxu2  ;;  %v1774_v14 = vpop.f32.mrf.mxu3 }
 0x128   : > { %1581 = vst [vmem:[#allocation2 + $0x23c] sm:$0xf] %v1549_v9  ;;  %v1454_v17 = vmul.f32 %v12853_v40, %v1396_v13  ;;  %v1832_v18 = vmul.f32 %v12853_v40, %v1774_v14  ;;  %v637_v19 = vpop.f32.mrf.mxu0  ;;  %v1021_v20 = vpop.f32.mrf.mxu1  ;;  %v13067_v9 = vld [vmem:[%s15334_s3] ss:$0 sm:$0xff]  ;;  %v12080_v13 = vld [vmem:[%s15335_s4 + $0x70] sm:$0xff] }
 0x129   : > { %1959 = vst [vmem:[#allocation2 + $0x240] sm:$0xf] %v1927_v10  ;;  %v696_v23 = vmul.f32 %v12853_v40, %v637_v19  ;;  %v1077_v24 = vmul.f32 %v12853_v40, %v1021_v20  ;;  %4043 = vmatpush.bf16.msra.mxu1 %v12080_v13 }
 0x12a   : > { %826 = vst [vmem:[#allocation2 + $0x25c] sm:$0xf] %v794_v11  ;;  %v1486_v25 = vadd.f32 %v12858_v41, %v1454_v17  ;;  %v1864_v26 = vadd.f32 %v12858_v41, %v1832_v18 }
 0x12b   : > { %1204 = vst [vmem:[#allocation2 + $0x260] sm:$0xf] %v1172_v12  ;;  %v731_v27 = vadd.f32 %v12858_v41, %v696_v23  ;;  %v1109_v28 = vadd.f32 %v12858_v41, %v1077_v24  ;;  %2114 = vmatmul.bf16.vlgmr.msrb.gmra.mxu0 %v12154_v15  ;;  %2492 = vmatmul.bf16.vlgmr.msrb.gmra.mxu1 %v12170_v16 }
 0x12c   : > { %v1518_v29 = vmax.f32 %v1486_v25, 0.0  ;;  %v1896_v30 = vmax.f32 %v1864_v26, 0.0  ;;  %2870 = vmatmul.bf16.vlgmr.msrb.gmra.mxu2 %v12186_v21  ;;  %3248 = vmatmul.bf16.vlgmr.msrb.gmra.mxu3 %v12202_v22 }
 0x12d   : > { %v763_v31 = vmax.f32 %v731_v27, 0.0  ;;  %v1141_v32 = vmax.f32 %v1109_v28, 0.0 }
 0x12e   : > { %v1550_v33 = vpack.c.bf16 %v1518_v29, %v1518_v29  ;;  %v1928_v34 = vpack.c.bf16 %v1896_v30, %v1896_v30 }
 0x12f   : > { %v795_v35 = vpack.c.bf16 %v763_v31, %v763_v31  ;;  %v1173_v36 = vpack.c.bf16 %v1141_v32, %v1141_v32  ;;  %v1399_v37 = vpop.f32.mrf.mxu2  ;;  %v1777_v38 = vpop.f32.mrf.mxu3 }
 0x130   : > { %1582 = vst [vmem:[#allocation2 + $0x264] sm:$0xf] %v1550_v33  ;;  %v1455_v39 = vmul.f32 %v12853_v40, %v1399_v37  ;;  %v1833_v42 = vmul.f32 %v12853_v40, %v1777_v38  ;;  %v639_v43 = vpop.f32.mrf.mxu0  ;;  %v1023_v44 = vpop.f32.mrf.mxu1 }
 0x131   : > { %1960 = vst [vmem:[#allocation2 + $0x268] sm:$0xf] %v1928_v34  ;;  %v697_v45 = vmul.f32 %v12853_v40, %v639_v43  ;;  %v1078_v46 = vmul.f32 %v12853_v40, %v1023_v44 }
 0x132   : > { %827 = vst [vmem:[#allocation2 + $0x284] sm:$0xf] %v795_v35  ;;  %v1487_v47 = vadd.f32 %v12858_v41, %v1455_v39  ;;  %v1865_v48 = vadd.f32 %v12858_v41, %v1833_v42 }
 0x133   : > { %1205 = vst [vmem:[#allocation2 + $0x288] sm:$0xf] %v1173_v36  ;;  %v732_v49 = vadd.f32 %v12858_v41, %v697_v45  ;;  %v1110_v50 = vadd.f32 %v12858_v41, %v1078_v46  ;;  %v12156_v46 = vld [vmem:[%s12816_s22 + $0x210] sm:$0xff] }
 0x134   : > { %v1519_v53 = vmax.f32 %v1487_v47, 0.0  ;;  %v1897_v54 = vmax.f32 %v1865_v48, 0.0  ;;  %v12172_v47 = vld [vmem:[%s12816_s22 + $0x290] sm:$0xff] }
 0x135   : > { %v764_v55 = vmax.f32 %v732_v49, 0.0  ;;  %v1142_v56 = vmax.f32 %v1110_v50, 0.0 }
 0x136   : > { %v1551_v57 = vpack.c.bf16 %v1519_v53, %v1519_v53  ;;  %v1929_v41 = vpack.c.bf16 %v1897_v54, %v1897_v54  ;;  %v12204_v53 = vld [vmem:[%s12816_s22 + $0x390] sm:$0xff] }
 0x137   : > { %v796_v58 = vpack.c.bf16 %v764_v55, %v764_v55  ;;  %v1174_v59 = vpack.c.bf16 %v1142_v56, %v1142_v56  ;;  %v1401_v60 = vpop.f32.mrf.mxu2  ;;  %v1779_v61 = vpop.f32.mrf.mxu3 }
 0x138   : > { %1583 = vst [vmem:[#allocation2 + $0x28c] sm:$0xf] %v1551_v57  ;;  %v1456_v0 = vmul.f32 %v12853_v40, %v1401_v60  ;;  %v1834_v1 = vmul.f32 %v12853_v40, %v1779_v61  ;;  %v642_v2 = vpop.f32.mrf.mxu0  ;;  %v1026_v3 = vpop.f32.mrf.mxu1 }
 0x139   : > { %1961 = vst [vmem:[#allocation2 + $0x290] sm:$0xf] %v1929_v41  ;;  %v698_v7 = vmul.f32 %v13060_v6, %v642_v2  ;;  %v1079_v8 = vmul.f32 %v13060_v6, %v1026_v3 }
 0x13a   : > { %828 = vst [vmem:[#allocation2 + $0x2ac] sm:$0xf] %v796_v58  ;;  %v1488_v40 = vadd.f32 %v13067_v9, %v1456_v0  ;;  %v1866_v10 = vadd.f32 %v13067_v9, %v1834_v1 }
 0x13b   : > { %1206 = vst [vmem:[#allocation2 + $0x2b0] sm:$0xf] %v1174_v59  ;;  %v733_v11 = vadd.f32 %v13067_v9, %v698_v7  ;;  %v1111_v12 = vadd.f32 %v13067_v9, %v1079_v8  ;;  %2119 = vmatmul.bf16.gmra.mxu0 %v12155_v62  ;;  %2497 = vmatmul.bf16.gmra.mxu1 %v12171_v63 }
 0x13c   : > { %v1520_v14 = vmax.f32 %v1488_v40, 0.0  ;;  %v1898_v15 = vmax.f32 %v1866_v10, 0.0  ;;  %2875 = vmatmul.bf16.gmra.mxu2 %v12187_v4  ;;  %3253 = vmatmul.bf16.gmra.mxu3 %v12203_v5 }
 0x13d   : > { %v765_v16 = vmax.f32 %v733_v11, 0.0  ;;  %v1143_v17 = vmax.f32 %v1111_v12, 0.0 }
 0x13e   : > { %v1552_v18 = vpack.c.bf16 %v1520_v14, %v1520_v14  ;;  %v1930_v19 = vpack.c.bf16 %v1898_v15, %v1898_v15 }
 0x13f   : > { %v797_v20 = vpack.c.bf16 %v765_v16, %v765_v16  ;;  %v1175_v21 = vpack.c.bf16 %v1143_v17, %v1143_v17  ;;  %v1404_v22 = vpop.f32.mrf.mxu2  ;;  %v1782_v23 = vpop.f32.mrf.mxu3  ;;  %v12087_v16 = vld [vmem:[%s15335_s4 + $0xa8] sm:$0xff] }
 0x140   : > { %1584 = vst [vmem:[#allocation2 + $0x2b4] sm:$0xf] %v1552_v18  ;;  %v1457_v24 = vmul.f32 %v13060_v6, %v1404_v22  ;;  %v1835_v25 = vmul.f32 %v13060_v6, %v1782_v23  ;;  %v644_v26 = vpop.f32.mrf.mxu0  ;;  %v1028_v27 = vpop.f32.mrf.mxu1  ;;  %v12071_v17 = vld [vmem:[%s15335_s4 + $0x28] sm:$0xff]  ;;  %4133 = vmatpush.bf16.msra.mxu2 %v12087_v16 }
 0x141   : > { %1962 = vst [vmem:[#allocation2 + $0x2b8] sm:$0xf] %v1930_v19  ;;  %v699_v28 = vmul.f32 %v13060_v6, %v644_v26  ;;  %v1080_v29 = vmul.f32 %v13060_v6, %v1028_v27  ;;  %4676 = vmatpush.bf16.msra.mxu3 %v12071_v17  ;;  %3955 = vmatpush.bf16.msra.mxu0 %v12071_v17  ;;  %v12190_v17 = vld [vmem:[%s12816_s22 + $0x320] sm:$0xff] }
 0x142   : > { %829 = vst [vmem:[#allocation2 + $0x2d4] sm:$0xf] %v797_v20  ;;  %v1489_v30 = vadd.f32 %v13067_v9, %v1457_v24  ;;  %v1867_v31 = vadd.f32 %v13067_v9, %v1835_v25 }
 0x143   : > { %1207 = vst [vmem:[#allocation2 + $0x2d8] sm:$0xf] %v1175_v21  ;;  %v734_v32 = vadd.f32 %v13067_v9, %v699_v28  ;;  %v1112_v33 = vadd.f32 %v13067_v9, %v1080_v29  ;;  %v12157_v28 = vld [vmem:[%s12816_s22 + $0x218] sm:$0xff] }
 0x144   : > { %v1521_v34 = vmax.f32 %v1489_v30, 0.0  ;;  %v1899_v35 = vmax.f32 %v1867_v31, 0.0  ;;  %v12173_v29 = vld [vmem:[%s12816_s22 + $0x298] sm:$0xff] }
 0x145   : > { %v766_v36 = vmax.f32 %v734_v32, 0.0  ;;  %v1144_v37 = vmax.f32 %v1112_v33, 0.0 }
 0x146   : > { %v1553_v38 = vpack.c.bf16 %v1521_v34, %v1521_v34  ;;  %v1931_v39 = vpack.c.bf16 %v1899_v35, %v1899_v35  ;;  %v12189_v34 = vld [vmem:[%s12816_s22 + $0x318] sm:$0xff] }
 0x147   : > { %v798_v42 = vpack.c.bf16 %v766_v36, %v766_v36  ;;  %v1176_v43 = vpack.c.bf16 %v1144_v37, %v1144_v37  ;;  %v1406_v44 = vpop.f32.mrf.mxu2  ;;  %v1784_v45 = vpop.f32.mrf.mxu3  ;;  %v12205_v35 = vld [vmem:[%s12816_s22 + $0x398] sm:$0xff] }
 0x148   : > { %1585 = vst [vmem:[#allocation2 + $0x2dc] sm:$0xf] %v1553_v38  ;;  %v1458_v48 = vmul.f32 %v13060_v6, %v1406_v44  ;;  %v1836_v49 = vmul.f32 %v13060_v6, %v1784_v45  ;;  %v647_v50 = vpop.f32.mrf.mxu0  ;;  %v1031_v51 = vpop.f32.mrf.mxu1  ;;  %v12079_v44 = vld [vmem:[%s15335_s4 + $0x68] sm:$0xff] }
 0x149   : > { %1963 = vst [vmem:[#allocation2 + $0x2e0] sm:$0xf] %v1931_v39  ;;  %v700_v54 = vmul.f32 %v13060_v6, %v647_v50  ;;  %v1081_v55 = vmul.f32 %v13060_v6, %v1031_v51  ;;  %4044 = vmatpush.bf16.msra.mxu1 %v12079_v44 }
 0x14a   : > { %830 = vst [vmem:[#allocation2 + $0x2fc] sm:$0xf] %v798_v42  ;;  %v1490_v56 = vadd.f32 %v13067_v9, %v1458_v48  ;;  %v1868_v57 = vadd.f32 %v13067_v9, %v1836_v49 }
 0x14b   : > { %1208 = vst [vmem:[#allocation2 + $0x300] sm:$0xf] %v1176_v43  ;;  %v735_v41 = vadd.f32 %v13067_v9, %v700_v54  ;;  %v1113_v58 = vadd.f32 %v13067_v9, %v1081_v55  ;;  %2124 = vmatmul.bf16.gmra.mxu0 %v12156_v46  ;;  %2502 = vmatmul.bf16.gmra.mxu1 %v12172_v47 }
 0x14c   : > { %v1522_v59 = vmax.f32 %v1490_v56, 0.0  ;;  %v1900_v60 = vmax.f32 %v1868_v57, 0.0  ;;  %2880 = vmatmul.bf16.gmra.mxu2 %v12188_v52  ;;  %3258 = vmatmul.bf16.gmra.mxu3 %v12204_v53 }
 0x14d   : > { %v767_v61 = vmax.f32 %v735_v41, 0.0  ;;  %v1145_v62 = vmax.f32 %v1113_v58, 0.0 }
 0x14e   : > { %v1554_v63 = vpack.c.bf16 %v1522_v59, %v1522_v59  ;;  %v1932_v0 = vpack.c.bf16 %v1900_v60, %v1900_v60 }
 0x14f   : > { %v799_v1 = vpack.c.bf16 %v767_v61, %v767_v61  ;;  %v1177_v2 = vpack.c.bf16 %v1145_v62, %v1145_v62  ;;  %v1409_v3 = vpop.f32.mrf.mxu2  ;;  %v1787_v4 = vpop.f32.mrf.mxu3 }
 0x150   : > { %1586 = vst [vmem:[#allocation2 + $0x304] sm:$0xf] %v1554_v63  ;;  %v1459_v5 = vmul.f32 %v13060_v6, %v1409_v3  ;;  %v1837_v7 = vmul.f32 %v13060_v6, %v1787_v4  ;;  %v649_v8 = vpop.f32.mrf.mxu0  ;;  %v1033_v40 = vpop.f32.mrf.mxu1 }
 0x151   : > { %1964 = vst [vmem:[#allocation2 + $0x308] sm:$0xf] %v1932_v0  ;;  %v701_v10 = vmul.f32 %v13060_v6, %v649_v8  ;;  %v1082_v11 = vmul.f32 %v13060_v6, %v1033_v40 }
 0x152   : > { %831 = vst [vmem:[#allocation2 + $0x324] sm:$0xf] %v799_v1  ;;  %v1491_v12 = vadd.f32 %v13067_v9, %v1459_v5  ;;  %v1869_v13 = vadd.f32 %v13067_v9, %v1837_v7 }
 0x153   : > { %1209 = vst [vmem:[#allocation2 + $0x328] sm:$0xf] %v1177_v2  ;;  %v736_v14 = vadd.f32 %v13067_v9, %v701_v10  ;;  %v1114_v15 = vadd.f32 %v13067_v9, %v1082_v11  ;;  %v12158_v11 = vld [vmem:[%s12816_s22 + $0x220] sm:$0xff] }
 0x154   : > { %v1523_v18 = vmax.f32 %v1491_v12, 0.0  ;;  %v1901_v19 = vmax.f32 %v1869_v13, 0.0  ;;  %v12174_v12 = vld [vmem:[%s12816_s22 + $0x2a0] sm:$0xff] }
 0x155   : > { %v768_v20 = vmax.f32 %v736_v14, 0.0  ;;  %v1146_v21 = vmax.f32 %v1114_v15, 0.0 }
 0x156   : > { %v1555_v22 = vpack.c.bf16 %v1523_v18, %v1523_v18  ;;  %v1933_v23 = vpack.c.bf16 %v1901_v19, %v1901_v19  ;;  %v12206_v18 = vld [vmem:[%s12816_s22 + $0x3a0] sm:$0xff] }
 0x157   : > { %v800_v24 = vpack.c.bf16 %v768_v20, %v768_v20  ;;  %v1178_v25 = vpack.c.bf16 %v1146_v21, %v1146_v21  ;;  %v1411_v26 = vpop.f32.mrf.mxu2  ;;  %v1789_v27 = vpop.f32.mrf.mxu3 }
 0x158   : > { %1587 = vst [vmem:[#allocation2 + $0x32c] sm:$0xf] %v1555_v22  ;;  %v1460_v30 = vmul.f32 %v13060_v6, %v1411_v26  ;;  %v1838_v31 = vmul.f32 %v13060_v6, %v1789_v27  ;;  %v652_v32 = vpop.f32.mrf.mxu0  ;;  %v1036_v33 = vpop.f32.mrf.mxu1 }
 0x159   : > { %1965 = vst [vmem:[#allocation2 + $0x330] sm:$0xf] %v1933_v23  ;;  %v702_v36 = vmul.f32 %v13060_v6, %v652_v32  ;;  %v1083_v37 = vmul.f32 %v13060_v6, %v1036_v33 }
 0x15a   : > { %832 = vst [vmem:[#allocation2 + $0x34c] sm:$0xf] %v800_v24  ;;  %v1492_v38 = vadd.f32 %v13067_v9, %v1460_v30  ;;  %v1870_v39 = vadd.f32 %v13067_v9, %v1838_v31 }
 0x15b   : > { %1210 = vst [vmem:[#allocation2 + $0x350] sm:$0xf] %v1178_v25  ;;  %v737_v42 = vadd.f32 %v13067_v9, %v702_v36  ;;  %v1115_v43 = vadd.f32 %v13067_v9, %v1083_v37  ;;  %2129 = vmatmul.bf16.gmra.mxu0 %v12157_v28  ;;  %2507 = vmatmul.bf16.gmra.mxu1 %v12173_v29 }
 0x15c   : > { %v1524_v45 = vmax.f32 %v1492_v38, 0.0  ;;  %v1902_v46 = vmax.f32 %v1870_v39, 0.0  ;;  %2885 = vmatmul.bf16.gmra.mxu2 %v12189_v34  ;;  %3263 = vmatmul.bf16.gmra.mxu3 %v12205_v35 }
 0x15d   : > { %v769_v47 = vmax.f32 %v737_v42, 0.0  ;;  %v1147_v48 = vmax.f32 %v1115_v43, 0.0 }
 0x15e   : > { %v1556_v49 = vpack.c.bf16 %v1524_v45, %v1524_v45  ;;  %v1934_v50 = vpack.c.bf16 %v1902_v46, %v1902_v46 }
 0x15f   : > { %v801_v51 = vpack.c.bf16 %v769_v47, %v769_v47  ;;  %v1179_v52 = vpack.c.bf16 %v1147_v48, %v1147_v48  ;;  %v1414_v53 = vpop.f32.mrf.mxu2  ;;  %v1792_v54 = vpop.f32.mrf.mxu3  ;;  %v12086_v47 = vld [vmem:[%s15335_s4 + $0xa0] sm:$0xff] }
 0x160   : > { %1588 = vst [vmem:[#allocation2 + $0x354] sm:$0xf] %v1556_v49  ;;  %v1461_v55 = vmul.f32 %v13060_v6, %v1414_v53  ;;  %v1839_v56 = vmul.f32 %v13060_v6, %v1792_v54  ;;  %v654_v57 = vpop.f32.mrf.mxu0  ;;  %v1038_v41 = vpop.f32.mrf.mxu1  ;;  %v12070_v48 = vld [vmem:[%s15335_s4 + $0x20] sm:$0xff]  ;;  %4134 = vmatpush.bf16.msra.mxu2 %v12086_v47 }
 0x161   : > { %1966 = vst [vmem:[#allocation2 + $0x358] sm:$0xf] %v1934_v50  ;;  %v703_v58 = vmul.f32 %v13060_v6, %v654_v57  ;;  %v1084_v59 = vmul.f32 %v13060_v6, %v1038_v41  ;;  %4677 = vmatpush.bf16.msra.mxu3 %v12070_v48  ;;  %3956 = vmatpush.bf16.msra.mxu0 %v12070_v48  ;;  %v12192_v48 = vld [vmem:[%s12816_s22 + $0x330] sm:$0xff] }
 0x162   : > { %833 = vst [vmem:[#allocation2 + $0x374] sm:$0xf] %v801_v51  ;;  %v1493_v60 = vadd.f32 %v13067_v9, %v1461_v55  ;;  %v1871_v61 = vadd.f32 %v13067_v9, %v1839_v56 }
 0x163   : > { %1211 = vst [vmem:[#allocation2 + $0x378] sm:$0xf] %v1179_v52  ;;  %v738_v62 = vadd.f32 %v13067_v9, %v703_v58  ;;  %v1116_v63 = vadd.f32 %v13067_v9, %v1084_v59  ;;  %v12159_v58 = vld [vmem:[%s12816_s22 + $0x228] sm:$0xff] }
 0x164   : > { %v1525_v0 = vmax.f32 %v1493_v60, 0.0  ;;  %v1903_v1 = vmax.f32 %v1871_v61, 0.0  ;;  %v12175_v59 = vld [vmem:[%s12816_s22 + $0x2a8] sm:$0xff] }
 0x165   : > { %v770_v2 = vmax.f32 %v738_v62, 0.0  ;;  %v1148_v3 = vmax.f32 %v1116_v63, 0.0 }
 0x166   : > { %v1557_v4 = vpack.c.bf16 %v1525_v0, %v1525_v0  ;;  %v1935_v5 = vpack.c.bf16 %v1903_v1, %v1903_v1  ;;  %v12191_v0 = vld [vmem:[%s12816_s22 + $0x328] sm:$0xff] }
 0x167   : > { %v802_v7 = vpack.c.bf16 %v770_v2, %v770_v2  ;;  %v1180_v8 = vpack.c.bf16 %v1148_v3, %v1148_v3  ;;  %v1416_v40 = vpop.f32.mrf.mxu2  ;;  %v1794_v10 = vpop.f32.mrf.mxu3  ;;  %v12207_v1 = vld [vmem:[%s12816_s22 + $0x3a8] sm:$0xff] }
 0x168   : > { %1589 = vst [vmem:[#allocation2 + $0x37c] sm:$0xf] %v1557_v4  ;;  %v1462_v13 = vmul.f32 %v13060_v6, %v1416_v40  ;;  %v1840_v14 = vmul.f32 %v13060_v6, %v1794_v10  ;;  %v657_v15 = vpop.f32.mrf.mxu0  ;;  %v1041_v16 = vpop.f32.mrf.mxu1  ;;  %v12078_v40 = vld [vmem:[%s15335_s4 + $0x60] sm:$0xff] }
 0x169   : > { %1967 = vst [vmem:[#allocation2 + $0x380] sm:$0xf] %v1935_v5  ;;  %v704_v19 = vmul.f32 %v13060_v6, %v657_v15  ;;  %v1085_v20 = vmul.f32 %v13060_v6, %v1041_v16  ;;  %4045 = vmatpush.bf16.msra.mxu1 %v12078_v40 }
 0x16a   : > { %834 = vst [vmem:[#allocation2 + $0x39c] sm:$0xf] %v802_v7  ;;  %v1494_v21 = vadd.f32 %v13067_v9, %v1462_v13  ;;  %v1872_v22 = vadd.f32 %v13067_v9, %v1840_v14 }
 0x16b   : > { %1212 = vst [vmem:[#allocation2 + $0x3a0] sm:$0xf] %v1180_v8  ;;  %v739_v23 = vadd.f32 %v13067_v9, %v704_v19  ;;  %v1117_v24 = vadd.f32 %v13067_v9, %v1085_v20  ;;  %2134 = vmatmul.bf16.gmra.mxu0 %v12158_v11  ;;  %2512 = vmatmul.bf16.gmra.mxu1 %v12174_v12 }
 0x16c   : > { %v1526_v25 = vmax.f32 %v1494_v21, 0.0  ;;  %v1904_v26 = vmax.f32 %v1872_v22, 0.0  ;;  %2890 = vmatmul.bf16.gmra.mxu2 %v12190_v17  ;;  %3268 = vmatmul.bf16.gmra.mxu3 %v12206_v18 }
 0x16d   : > { %v771_v27 = vmax.f32 %v739_v23, 0.0  ;;  %v1149_v28 = vmax.f32 %v1117_v24, 0.0 }
 0x16e   : > { %v1558_v29 = vpack.c.bf16 %v1526_v25, %v1526_v25  ;;  %v1936_v30 = vpack.c.bf16 %v1904_v26, %v1904_v26 }
 0x16f   : > { %v803_v31 = vpack.c.bf16 %v771_v27, %v771_v27  ;;  %v1181_v32 = vpack.c.bf16 %v1149_v28, %v1149_v28  ;;  %v1419_v33 = vpop.f32.mrf.mxu2  ;;  %v1797_v34 = vpop.f32.mrf.mxu3 }
 0x170   : > { %1590 = vst [vmem:[#allocation2 + $0x3a4] sm:$0xf] %v1558_v29  ;;  %v1463_v35 = vmul.f32 %v13060_v6, %v1419_v33  ;;  %v1841_v36 = vmul.f32 %v13060_v6, %v1797_v34  ;;  %v659_v37 = vpop.f32.mrf.mxu0  ;;  %v1043_v38 = vpop.f32.mrf.mxu1 }
 0x171   : > { %1968 = vst [vmem:[#allocation2 + $0x3a8] sm:$0xf] %v1936_v30  ;;  %v705_v39 = vmul.f32 %v13060_v6, %v659_v37  ;;  %v1086_v42 = vmul.f32 %v13060_v6, %v1043_v38 }
 0x172   : > { %835 = vst [vmem:[#allocation2 + $0x3c4] sm:$0xf] %v803_v31  ;;  %v1495_v43 = vadd.f32 %v13067_v9, %v1463_v35  ;;  %v1873_v44 = vadd.f32 %v13067_v9, %v1841_v36 }
 0x173   : > { %1213 = vst [vmem:[#allocation2 + $0x3c8] sm:$0xf] %v1181_v32  ;;  %v740_v45 = vadd.f32 %v13067_v9, %v705_v39  ;;  %v1118_v46 = vadd.f32 %v13067_v9, %v1086_v42  ;;  %v12160_v42 = vld [vmem:[%s12816_s22 + $0x230] sm:$0xff] }
 0x174   : > { %v1527_v49 = vmax.f32 %v1495_v43, 0.0  ;;  %v1905_v50 = vmax.f32 %v1873_v44, 0.0  ;;  %v12176_v43 = vld [vmem:[%s12816_s22 + $0x2b0] sm:$0xff] }
 0x175   : > { %v772_v51 = vmax.f32 %v740_v45, 0.0  ;;  %v1150_v52 = vmax.f32 %v1118_v46, 0.0 }
 0x176   : > { %v1559_v53 = vpack.c.bf16 %v1527_v49, %v1527_v49  ;;  %v1937_v54 = vpack.c.bf16 %v1905_v50, %v1905_v50  ;;  %v12208_v49 = vld [vmem:[%s12816_s22 + $0x3b0] sm:$0xff] }
 0x177   : > { %v804_v55 = vpack.c.bf16 %v772_v51, %v772_v51  ;;  %v1182_v56 = vpack.c.bf16 %v1150_v52, %v1150_v52  ;;  %v1421_v57 = vpop.f32.mrf.mxu2  ;;  %v1799_v41 = vpop.f32.mrf.mxu3 }
 0x178   : > { %1591 = vst [vmem:[#allocation2 + $0x3cc] sm:$0xf] %v1559_v53  ;;  %v1464_v60 = vmul.f32 %v13060_v6, %v1421_v57  ;;  %v1842_v61 = vmul.f32 %v13060_v6, %v1799_v41  ;;  %v662_v62 = vpop.f32.mrf.mxu0  ;;  %v1046_v63 = vpop.f32.mrf.mxu1 }
 0x179   : > { %1969 = vst [vmem:[#allocation2 + $0x3d0] sm:$0xf] %v1937_v54  ;;  %v706_v2 = vmul.f32 %v13060_v6, %v662_v62  ;;  %v1087_v3 = vmul.f32 %v13060_v6, %v1046_v63 }
 0x17a   : > { %836 = vst [vmem:[#allocation2 + $0x3ec] sm:$0xf] %v804_v55  ;;  %v1496_v4 = vadd.f32 %v13067_v9, %v1464_v60  ;;  %v1874_v5 = vadd.f32 %v13067_v9, %v1842_v61 }
 0x17b   : > { %1214 = vst [vmem:[#allocation2 + $0x3f0] sm:$0xf] %v1182_v56  ;;  %v741_v7 = vadd.f32 %v13067_v9, %v706_v2  ;;  %v1119_v8 = vadd.f32 %v13067_v9, %v1087_v3  ;;  %2139 = vmatmul.bf16.gmra.mxu0 %v12159_v58  ;;  %2517 = vmatmul.bf16.gmra.mxu1 %v12175_v59 }
 0x17c   : > { %v1528_v10 = vmax.f32 %v1496_v4, 0.0  ;;  %v1906_v11 = vmax.f32 %v1874_v5, 0.0  ;;  %2895 = vmatmul.bf16.gmra.mxu2 %v12191_v0  ;;  %3273 = vmatmul.bf16.gmra.mxu3 %v12207_v1 }
 0x17d   : > { %v773_v12 = vmax.f32 %v741_v7, 0.0  ;;  %v1151_v13 = vmax.f32 %v1119_v8, 0.0 }
 0x17e   : > { %v1560_v14 = vpack.c.bf16 %v1528_v10, %v1528_v10  ;;  %v1938_v15 = vpack.c.bf16 %v1906_v11, %v1906_v11 }
 0x17f   : > { %v805_v16 = vpack.c.bf16 %v773_v12, %v773_v12  ;;  %v1183_v17 = vpack.c.bf16 %v1151_v13, %v1151_v13  ;;  %v1424_v18 = vpop.f32.mrf.mxu2  ;;  %v1802_v19 = vpop.f32.mrf.mxu3  ;;  %v13205_v12 = vld [vmem:[%s15335_s4 + $0x98] sm:$0xff] }
 0x180   : > { %1592 = vst [vmem:[#allocation2 + $0x3f4] sm:$0xf] %v1560_v14  ;;  %v1465_v20 = vmul.f32 %v13060_v6, %v1424_v18  ;;  %v1843_v21 = vmul.f32 %v13060_v6, %v1802_v19  ;;  %v664_v22 = vpop.f32.mrf.mxu0  ;;  %v1048_v23 = vpop.f32.mrf.mxu1  ;;  %v13210_v13 = vld [vmem:[%s15335_s4 + $0x18] sm:$0xff]  ;;  %4135 = vmatpush.bf16.msra.mxu2 %v13205_v12 }
 0x181   : > { %1970 = vst [vmem:[#allocation2 + $0x3f8] sm:$0xf] %v1938_v15  ;;  %v707_v24 = vmul.f32 %v13060_v6, %v664_v22  ;;  %v1088_v25 = vmul.f32 %v13060_v6, %v1048_v23  ;;  %4678 = vmatpush.bf16.msra.mxu3 %v13210_v13  ;;  %3957 = vmatpush.bf16.msra.mxu0 %v13210_v13 }
 0x182   : > { %837 = vst [vmem:[#allocation2 + $0x414] sm:$0xf] %v805_v16  ;;  %v1497_v26 = vadd.f32 %v13067_v9, %v1465_v20  ;;  %v1875_v27 = vadd.f32 %v13067_v9, %v1843_v21 }
 0x183   : > { %1215 = vst [vmem:[#allocation2 + $0x418] sm:$0xf] %v1183_v17  ;;  %v742_v28 = vadd.f32 %v13067_v9, %v707_v24  ;;  %v1120_v29 = vadd.f32 %v13067_v9, %v1088_v25  ;;  %v12161_v24 = vld [vmem:[%s12816_s22 + $0x238] sm:$0xff] }
 0x184   : > { %v1529_v30 = vmax.f32 %v1497_v26, 0.0  ;;  %v1907_v31 = vmax.f32 %v1875_v27, 0.0  ;;  %v12177_v25 = vld [vmem:[%s12816_s22 + $0x2b8] sm:$0xff] }
 0x185   : > { %v774_v32 = vmax.f32 %v742_v28, 0.0  ;;  %v1152_v33 = vmax.f32 %v1120_v29, 0.0 }
 0x186   : > { %v1561_v34 = vpack.c.bf16 %v1529_v30, %v1529_v30  ;;  %v1939_v35 = vpack.c.bf16 %v1907_v31, %v1907_v31  ;;  %v12193_v30 = vld [vmem:[%s12816_s22 + $0x338] sm:$0xff] }
 0x187   : > { %v806_v36 = vpack.c.bf16 %v774_v32, %v774_v32  ;;  %v1184_v37 = vpack.c.bf16 %v1152_v33, %v1152_v33  ;;  %v1426_v38 = vpop.f32.mrf.mxu2  ;;  %v1804_v39 = vpop.f32.mrf.mxu3  ;;  %v12209_v31 = vld [vmem:[%s12816_s22 + $0x3b8] sm:$0xff] }
 0x188   : > { %1593 = vst [vmem:[#allocation2 + $0x41c] sm:$0xf] %v1561_v34  ;;  %v1466_v44 = vmul.f32 %v13060_v6, %v1426_v38  ;;  %v1844_v45 = vmul.f32 %v13060_v6, %v1804_v39  ;;  %v667_v46 = vpop.f32.mrf.mxu0  ;;  %v1051_v47 = vpop.f32.mrf.mxu1  ;;  %v13230_v38 = vld [vmem:[%s15335_s4 + $0x58] sm:$0xff] }
 0x189   : > { %1971 = vst [vmem:[#allocation2 + $0x420] sm:$0xf] %v1939_v35  ;;  %v708_v50 = vmul.f32 %v13060_v6, %v667_v46  ;;  %v1089_v51 = vmul.f32 %v13060_v6, %v1051_v47  ;;  %4046 = vmatpush.bf16.msra.mxu1 %v13230_v38 }
 0x18a   : > { %838 = vst [vmem:[#allocation2 + $0x43c] sm:$0xf] %v806_v36  ;;  %v1498_v52 = vadd.f32 %v13067_v9, %v1466_v44  ;;  %v1876_v53 = vadd.f32 %v13067_v9, %v1844_v45 }
 0x18b   : > { %1216 = vst [vmem:[#allocation2 + $0x440] sm:$0xf] %v1184_v37  ;;  %v743_v54 = vadd.f32 %v13067_v9, %v708_v50  ;;  %v1121_v55 = vadd.f32 %v13067_v9, %v1089_v51  ;;  %2144 = vmatmul.bf16.gmra.mxu0 %v12160_v42  ;;  %2522 = vmatmul.bf16.gmra.mxu1 %v12176_v43 }
 0x18c   : > { %v1530_v56 = vmax.f32 %v1498_v52, 0.0  ;;  %v1908_v57 = vmax.f32 %v1876_v53, 0.0  ;;  %2900 = vmatmul.bf16.gmra.mxu2 %v12192_v48  ;;  %3278 = vmatmul.bf16.gmra.mxu3 %v12208_v49 }
 0x18d   : > { %v775_v41 = vmax.f32 %v743_v54, 0.0  ;;  %v1153_v58 = vmax.f32 %v1121_v55, 0.0 }
 0x18e   : > { %v1562_v59 = vpack.c.bf16 %v1530_v56, %v1530_v56  ;;  %v1940_v60 = vpack.c.bf16 %v1908_v57, %v1908_v57 }
 0x18f   : > { %v807_v61 = vpack.c.bf16 %v775_v41, %v775_v41  ;;  %v1185_v62 = vpack.c.bf16 %v1153_v58, %v1153_v58  ;;  %v1429_v63 = vpop.f32.mrf.mxu2  ;;  %v1807_v0 = vpop.f32.mrf.mxu3 }
 0x190   : > { %1594 = vst [vmem:[#allocation2 + $0x444] sm:$0xf] %v1562_v59  ;;  %v1467_v1 = vmul.f32 %v13060_v6, %v1429_v63  ;;  %v1845_v2 = vmul.f32 %v13060_v6, %v1807_v0  ;;  %v669_v3 = vpop.f32.mrf.mxu0  ;;  %v1053_v4 = vpop.f32.mrf.mxu1 }
 0x191   : > { %1972 = vst [vmem:[#allocation2 + $0x448] sm:$0xf] %v1940_v60  ;;  %v709_v5 = vmul.f32 %v13060_v6, %v669_v3  ;;  %v1090_v7 = vmul.f32 %v13060_v6, %v1053_v4 }
 0x192   : > { %839 = vst [vmem:[#allocation2 + $0x464] sm:$0xf] %v807_v61  ;;  %v1499_v8 = vadd.f32 %v13067_v9, %v1467_v1  ;;  %v1877_v40 = vadd.f32 %v13067_v9, %v1845_v2 }
 0x193   : > { %1217 = vst [vmem:[#allocation2 + $0x468] sm:$0xf] %v1185_v62  ;;  %v744_v10 = vadd.f32 %v13067_v9, %v709_v5  ;;  %v1122_v11 = vadd.f32 %v13067_v9, %v1090_v7  ;;  %v12162_v7 = vld [vmem:[%s12816_s22 + $0x240] sm:$0xff] }
 0x194   : > { %v1531_v14 = vmax.f32 %v1499_v8, 0.0  ;;  %v1909_v15 = vmax.f32 %v1877_v40, 0.0  ;;  %v12178_v8 = vld [vmem:[%s12816_s22 + $0x2c0] sm:$0xff] }
 0x195   : > { %v776_v16 = vmax.f32 %v744_v10, 0.0  ;;  %v1154_v17 = vmax.f32 %v1122_v11, 0.0 }
 0x196   : > { %v1563_v18 = vpack.c.bf16 %v1531_v14, %v1531_v14  ;;  %v1941_v19 = vpack.c.bf16 %v1909_v15, %v1909_v15  ;;  %v12194_v15 = vld [vmem:[%s12816_s22 + $0x340] sm:$0xff] }
 0x197   : > { %v808_v20 = vpack.c.bf16 %v776_v16, %v776_v16  ;;  %v1186_v21 = vpack.c.bf16 %v1154_v17, %v1154_v17  ;;  %v1431_v22 = vpop.f32.mrf.mxu2  ;;  %v1809_v23 = vpop.f32.mrf.mxu3  ;;  %v12210_v16 = vld [vmem:[%s12816_s22 + $0x3c0] sm:$0xff] }
 0x198   : > { %1595 = vst [vmem:[#allocation2 + $0x46c] sm:$0xf] %v1563_v18  ;;  %v1468_v26 = vmul.f32 %v13060_v6, %v1431_v22  ;;  %v1846_v27 = vmul.f32 %v13060_v6, %v1809_v23  ;;  %v672_v28 = vpop.f32.mrf.mxu0  ;;  %v1056_v29 = vpop.f32.mrf.mxu1 }
 0x199   : > { %1973 = vst [vmem:[#allocation2 + $0x470] sm:$0xf] %v1941_v19  ;;  %v710_v32 = vmul.f32 %v13060_v6, %v672_v28  ;;  %v1091_v33 = vmul.f32 %v13060_v6, %v1056_v29 }
 0x19a   : > { %840 = vst [vmem:[#allocation2 + $0x48c] sm:$0xf] %v808_v20  ;;  %v1500_v34 = vadd.f32 %v13067_v9, %v1468_v26  ;;  %v1878_v35 = vadd.f32 %v13067_v9, %v1846_v27 }
 0x19b   : > { %1218 = vst [vmem:[#allocation2 + $0x490] sm:$0xf] %v1186_v21  ;;  %v745_v36 = vadd.f32 %v13067_v9, %v710_v32  ;;  %v1123_v37 = vadd.f32 %v13067_v9, %v1091_v33  ;;  %2149 = vmatmul.bf16.gmra.mxu0 %v12161_v24  ;;  %2527 = vmatmul.bf16.gmra.mxu1 %v12177_v25 }
 0x19c   : > { %v1532_v39 = vmax.f32 %v1500_v34, 0.0  ;;  %v1910_v42 = vmax.f32 %v1878_v35, 0.0  ;;  %2905 = vmatmul.bf16.gmra.mxu2 %v12193_v30  ;;  %3283 = vmatmul.bf16.gmra.mxu3 %v12209_v31 }
 0x19d   : > { %v777_v43 = vmax.f32 %v745_v36, 0.0  ;;  %v1155_v44 = vmax.f32 %v1123_v37, 0.0 }
 0x19e   : > { %v1564_v45 = vpack.c.bf16 %v1532_v39, %v1532_v39  ;;  %v1942_v46 = vpack.c.bf16 %v1910_v42, %v1910_v42 }
 0x19f   : > { %v809_v47 = vpack.c.bf16 %v777_v43, %v777_v43  ;;  %v1187_v48 = vpack.c.bf16 %v1155_v44, %v1155_v44  ;;  %v1434_v49 = vpop.f32.mrf.mxu2  ;;  %v1812_v50 = vpop.f32.mrf.mxu3 }
 0x1a0   : > { %1596 = vst [vmem:[#allocation2 + $0x494] sm:$0xf] %v1564_v45  ;;  %v1469_v51 = vmul.f32 %v13060_v6, %v1434_v49  ;;  %v1847_v52 = vmul.f32 %v13060_v6, %v1812_v50  ;;  %v674_v53 = vpop.f32.mrf.mxu0  ;;  %v1058_v54 = vpop.f32.mrf.mxu1 }
 0x1a1   : > { %1974 = vst [vmem:[#allocation2 + $0x498] sm:$0xf] %v1942_v46  ;;  %v711_v55 = vmul.f32 %v13060_v6, %v674_v53  ;;  %v1092_v56 = vmul.f32 %v13060_v6, %v1058_v54  ;;  %v13264_v46 = vld [vmem:[%s15335_s4 + $0x90] sm:$0xff] }
 0x1a2   : > { %841 = vst [vmem:[#allocation2 + $0x4b4] sm:$0xf] %v809_v47  ;;  %v1501_v57 = vadd.f32 %v13067_v9, %v1469_v51  ;;  %v1879_v41 = vadd.f32 %v13067_v9, %v1847_v52  ;;  %v13269_v47 = vld [vmem:[%s15335_s4 + $0x10] sm:$0xff]  ;;  %4136 = vmatpush.bf16.msra.mxu2 %v13264_v46 }
 0x1a3   : > { %1219 = vst [vmem:[#allocation2 + $0x4b8] sm:$0xf] %v1187_v48  ;;  %v746_v58 = vadd.f32 %v13067_v9, %v711_v55  ;;  %v1124_v59 = vadd.f32 %v13067_v9, %v1092_v56  ;;  %4679 = vmatpush.bf16.msra.mxu3 %v13269_v47  ;;  %3958 = vmatpush.bf16.msra.mxu0 %v13269_v47 }
 0x1a4   : > { %v1533_v60 = vmax.f32 %v1501_v57, 0.0  ;;  %v1911_v61 = vmax.f32 %v1879_v41, 0.0  ;;  %v12163_v41 = vld [vmem:[%s12816_s22 + $0x248] sm:$0xff] }
 0x1a5   : > { %v778_v62 = vmax.f32 %v746_v58, 0.0  ;;  %v1156_v63 = vmax.f32 %v1124_v59, 0.0  ;;  %v12179_v58 = vld [vmem:[%s12816_s22 + $0x2c8] sm:$0xff] }
 0x1a6   : > { %v1565_v0 = vpack.c.bf16 %v1533_v60, %v1533_v60  ;;  %v1943_v1 = vpack.c.bf16 %v1911_v61, %v1911_v61 }
 0x1a7   : > { %v810_v2 = vpack.c.bf16 %v778_v62, %v778_v62  ;;  %v1188_v3 = vpack.c.bf16 %v1156_v63, %v1156_v63  ;;  %v1436_v4 = vpop.f32.mrf.mxu2  ;;  %v1814_v5 = vpop.f32.mrf.mxu3  ;;  %v12195_v63 = vld [vmem:[%s12816_s22 + $0x348] sm:$0xff] }
 0x1a8   : > { %1597 = vst [vmem:[#allocation2 + $0x4bc] sm:$0xf] %v1565_v0  ;;  %v1470_v40 = vmul.f32 %v13060_v6, %v1436_v4  ;;  %v1848_v10 = vmul.f32 %v13060_v6, %v1814_v5  ;;  %v2115_v11 = vpop.f32.mrf.mxu0  ;;  %v2493_v14 = vpop.f32.mrf.mxu1  ;;  %v12211_v0 = vld [vmem:[%s12816_s22 + $0x3c8] sm:$0xff] }
 0x1a9   : > { %1975 = vst [vmem:[#allocation2 + $0x4c0] sm:$0xf] %v1943_v1  ;;  %v2195_v17 = vmul.f32 %v13060_v6, %v2115_v11  ;;  %v2573_v18 = vmul.f32 %v13060_v6, %v2493_v14 }
 0x1aa   : > { %842 = vst [vmem:[#allocation2 + $0x4dc] sm:$0xf] %v810_v2  ;;  %v1502_v19 = vadd.f32 %v13067_v9, %v1470_v40  ;;  %v1880_v20 = vadd.f32 %v13067_v9, %v1848_v10 }
 0x1ab   : > { %1220 = vst [vmem:[#allocation2 + $0x4e0] sm:$0xf] %v1188_v3  ;;  %v2227_v21 = vadd.f32 %v13067_v9, %v2195_v17  ;;  %v2605_v22 = vadd.f32 %v13067_v9, %v2573_v18  ;;  %2154 = vmatmul.bf16.gmra.mxu0 %v12162_v7  ;;  %2532 = vmatmul.bf16.gmra.mxu1 %v12178_v8  ;;  %v13289_v8 = vld [vmem:[%s15335_s4 + $0x50] sm:$0xff] }
 0x1ac   : > { %v1534_v23 = vmax.f32 %v1502_v19, 0.0  ;;  %v1912_v24 = vmax.f32 %v1880_v20, 0.0  ;;  %2910 = vmatmul.bf16.gmra.mxu2 %v12194_v15  ;;  %3288 = vmatmul.bf16.gmra.mxu3 %v12210_v16 }
 0x1ad   : > { %v2259_v25 = vmax.f32 %v2227_v21, 0.0  ;;  %v2637_v26 = vmax.f32 %v2605_v22, 0.0  ;;  %4047 = vmatpush.bf16.msra.mxu1 %v13289_v8 }
 0x1ae   : > { %v1566_v27 = vpack.c.bf16 %v1534_v23, %v1534_v23  ;;  %v1944_v28 = vpack.c.bf16 %v1912_v24, %v1912_v24 }
 0x1af   : > { %v2291_v29 = vpack.c.bf16 %v2259_v25, %v2259_v25  ;;  %v2669_v30 = vpack.c.bf16 %v2637_v26, %v2637_v26  ;;  %v2871_v31 = vpop.f32.mrf.mxu2  ;;  %v3249_v32 = vpop.f32.mrf.mxu3 }
 0x1b0   : > { %1598 = vst [vmem:[#allocation2 + $0x4e4] sm:$0xf] %v1566_v27  ;;  %v2951_v33 = vmul.f32 %v13060_v6, %v2871_v31  ;;  %v3329_v34 = vmul.f32 %v13060_v6, %v3249_v32  ;;  %v2117_v35 = vpop.f32.mrf.mxu0  ;;  %v2495_v36 = vpop.f32.mrf.mxu1 }
 0x1b1   : > { %1976 = vst [vmem:[#allocation2 + $0x4e8] sm:$0xf] %v1944_v28  ;;  %v2196_v37 = vmul.f32 %v13060_v6, %v2117_v35  ;;  %v2574_v39 = vmul.f32 %v13060_v6, %v2495_v36 }
 0x1b2   : > { %2323 = vst [vmem:[#allocation2 + $0x14] sm:$0xf] %v2291_v29  ;;  %v2983_v42 = vadd.f32 %v13067_v9, %v2951_v33  ;;  %v3361_v43 = vadd.f32 %v13067_v9, %v3329_v34 }
 0x1b3   : > { %2701 = vst [vmem:[#allocation2 + $0x18] sm:$0xf] %v2669_v30  ;;  %v2228_v44 = vadd.f32 %v13067_v9, %v2196_v37  ;;  %v2606_v45 = vadd.f32 %v13067_v9, %v2574_v39 }
 0x1b4   : > { %v3015_v48 = vmax.f32 %v2983_v42, 0.0  ;;  %v3393_v49 = vmax.f32 %v3361_v43, 0.0  ;;  %v12164_v43 = vld [vmem:[%s12816_s22 + $0x250] sm:$0xff] }
 0x1b5   : > { %v2260_v50 = vmax.f32 %v2228_v44, 0.0  ;;  %v2638_v51 = vmax.f32 %v2606_v45, 0.0  ;;  %v12180_v44 = vld [vmem:[%s12816_s22 + $0x2d0] sm:$0xff]  ;;  %v13305_v45 = vld [vmem:[%s15333_s2] ss:$0 sm:$0xff] }
 0x1b6   : > { %v3047_v52 = vpack.c.bf16 %v3015_v48, %v3015_v48  ;;  %v3425_v53 = vpack.c.bf16 %v3393_v49, %v3393_v49 }
 0x1b7   : > { %v2292_v54 = vpack.c.bf16 %v2260_v50, %v2260_v50  ;;  %v2670_v55 = vpack.c.bf16 %v2638_v51, %v2638_v51  ;;  %v2873_v56 = vpop.f32.mrf.mxu2  ;;  %v3251_v57 = vpop.f32.mrf.mxu3  ;;  %v12196_v51 = vld [vmem:[%s12816_s22 + $0x350] sm:$0xff] }
 0x1b8   : > { %3079 = vst [vmem:[#allocation2 + $0x1c] sm:$0xf] %v3047_v52  ;;  %v2952_v59 = vmul.f32 %v13060_v6, %v2873_v56  ;;  %v3330_v60 = vmul.f32 %v13060_v6, %v3251_v57  ;;  %v2120_v61 = vpop.f32.mrf.mxu0  ;;  %v2498_v62 = vpop.f32.mrf.mxu1  ;;  %v12212_v52 = vld [vmem:[%s12816_s22 + $0x3d0] sm:$0xff] }
 0x1b9   : > { %3457 = vst [vmem:[#allocation2 + $0x20] sm:$0xf] %v3425_v53  ;;  %v2197_v1 = vmul.f32 %v13060_v6, %v2120_v61  ;;  %v2575_v2 = vmul.f32 %v13060_v6, %v2498_v62 }
 0x1ba   : > { %2324 = vst [vmem:[#allocation2 + $0x3c] sm:$0xf] %v2292_v54  ;;  %v2984_v3 = vadd.f32 %v13067_v9, %v2952_v59  ;;  %v3362_v4 = vadd.f32 %v13067_v9, %v3330_v60 }
 0x1bb   : > { %2702 = vst [vmem:[#allocation2 + $0x40] sm:$0xf] %v2670_v55  ;;  %v2229_v5 = vadd.f32 %v13067_v9, %v2197_v1  ;;  %v2607_v7 = vadd.f32 %v13067_v9, %v2575_v2  ;;  %2159 = vmatmul.bf16.gmra.mxu0 %v12163_v41  ;;  %2537 = vmatmul.bf16.gmra.mxu1 %v12179_v58  ;;  %v13316_v55 = vld [vmem:[%s15334_s3] ss:$0 sm:$0xff] }
 0x1bc   : > { %v3016_v40 = vmax.f32 %v2984_v3, 0.0  ;;  %v3394_v10 = vmax.f32 %v3362_v4, 0.0  ;;  %2915 = vmatmul.bf16.gmra.mxu2 %v12195_v63  ;;  %3293 = vmatmul.bf16.gmra.mxu3 %v12211_v0 }
 0x1bd   : > { %v2261_v11 = vmax.f32 %v2229_v5, 0.0  ;;  %v2639_v14 = vmax.f32 %v2607_v7, 0.0 }
 0x1be   : > { %v3048_v15 = vpack.c.bf16 %v3016_v40, %v3016_v40  ;;  %v3426_v16 = vpack.c.bf16 %v3394_v10, %v3394_v10 }
 0x1bf   : > { %v2293_v17 = vpack.c.bf16 %v2261_v11, %v2261_v11  ;;  %v2671_v18 = vpack.c.bf16 %v2639_v14, %v2639_v14  ;;  %v2876_v19 = vpop.f32.mrf.mxu2  ;;  %v3254_v20 = vpop.f32.mrf.mxu3 }
 0x1c0   : > { %3080 = vst [vmem:[#allocation2 + $0x44] sm:$0xf] %v3048_v15  ;;  %v2953_v21 = vmul.f32 %v13060_v6, %v2876_v19  ;;  %v3331_v22 = vmul.f32 %v13060_v6, %v3254_v20  ;;  %v2122_v23 = vpop.f32.mrf.mxu0  ;;  %v2500_v24 = vpop.f32.mrf.mxu1  ;;  %v13333_v19 = vld [vmem:[%s15335_s4 + $0x88] sm:$0xff] }
 0x1c1   : > { %3458 = vst [vmem:[#allocation2 + $0x48] sm:$0xf] %v3426_v16  ;;  %v2198_v25 = vmul.f32 %v13060_v6, %v2122_v23  ;;  %v2576_v26 = vmul.f32 %v13060_v6, %v2500_v24  ;;  %v13338_v20 = vld [vmem:[%s15335_s4 + $0x8] sm:$0xff]  ;;  %4137 = vmatpush.bf16.msra.mxu2 %v13333_v19 }
 0x1c2   : > { %2325 = vst [vmem:[#allocation2 + $0x64] sm:$0xf] %v2293_v17  ;;  %v2985_v27 = vadd.f32 %v13067_v9, %v2953_v21  ;;  %v3363_v28 = vadd.f32 %v13067_v9, %v3331_v22  ;;  %4680 = vmatpush.bf16.msra.mxu3 %v13338_v20  ;;  %3959 = vmatpush.bf16.msra.mxu0 %v13338_v20 }
 0x1c3   : > { %2703 = vst [vmem:[#allocation2 + $0x68] sm:$0xf] %v2671_v18  ;;  %v2230_v29 = vadd.f32 %v13067_v9, %v2198_v25  ;;  %v2608_v30 = vadd.f32 %v13067_v9, %v2576_v26 }
 0x1c4   : > { %v3017_v31 = vmax.f32 %v2985_v27, 0.0  ;;  %v3395_v32 = vmax.f32 %v3363_v28, 0.0 }
 0x1c5   : > { %v2262_v33 = vmax.f32 %v2230_v29, 0.0  ;;  %v2640_v34 = vmax.f32 %v2608_v30, 0.0 }
 0x1c6   : > { %v3049_v35 = vpack.c.bf16 %v3017_v31, %v3017_v31  ;;  %v3427_v6 = vpack.c.bf16 %v3395_v32, %v3395_v32  ;;  %v12165_v31 = vld [vmem:[%s12816_s22 + $0x258] sm:$0xff] }
 0x1c7   : > { %v2294_v36 = vpack.c.bf16 %v2262_v33, %v2262_v33  ;;  %v2672_v37 = vpack.c.bf16 %v2640_v34, %v2640_v34  ;;  %v2878_v39 = vpop.f32.mrf.mxu2  ;;  %v3256_v42 = vpop.f32.mrf.mxu3  ;;  %v12181_v32 = vld [vmem:[%s12816_s22 + $0x2d8] sm:$0xff] }
 0x1c8   : > { %3081 = vst [vmem:[#allocation2 + $0x6c] sm:$0xf] %v3049_v35  ;;  %v2954_v9 = vmul.f32 %v13305_v45, %v2878_v39  ;;  %v3332_v48 = vmul.f32 %v13305_v45, %v3256_v42  ;;  %v2125_v49 = vpop.f32.mrf.mxu0  ;;  %v2503_v50 = vpop.f32.mrf.mxu1 }
 0x1c9   : > { %3459 = vst [vmem:[#allocation2 + $0x70] sm:$0xf] %v3427_v6  ;;  %v2199_v53 = vmul.f32 %v13305_v45, %v2125_v49  ;;  %v2577_v54 = vmul.f32 %v13305_v45, %v2503_v50  ;;  %v13358_v49 = vld [vmem:[%s15335_s4 + $0x48] sm:$0xff] }
 0x1ca   : > { %2326 = vst [vmem:[#allocation2 + $0x8c] sm:$0xf] %v2294_v36  ;;  %v2986_v56 = vadd.f32 %v13316_v55, %v2954_v9  ;;  %v3364_v57 = vadd.f32 %v13316_v55, %v3332_v48  ;;  %v12197_v36 = vld [vmem:[%s12816_s22 + $0x358] sm:$0xff]  ;;  %4048 = vmatpush.bf16.msra.mxu1 %v13358_v49 }
 0x1cb   : > { %2704 = vst [vmem:[#allocation2 + $0x90] sm:$0xf] %v2672_v37  ;;  %v2231_v41 = vadd.f32 %v13316_v55, %v2199_v53  ;;  %v2609_v58 = vadd.f32 %v13316_v55, %v2577_v54  ;;  %2164 = vmatmul.bf16.gmra.mxu0 %v12164_v43  ;;  %2542 = vmatmul.bf16.gmra.mxu1 %v12180_v44  ;;  %v12213_v37 = vld [vmem:[%s12816_s22 + $0x3d8] sm:$0xff] }
 0x1cc   : > { %v3018_v59 = vmax.f32 %v2986_v56, 0.0  ;;  %v3396_v60 = vmax.f32 %v3364_v57, 0.0  ;;  %2920 = vmatmul.bf16.gmra.mxu2 %v12196_v51  ;;  %3298 = vmatmul.bf16.gmra.mxu3 %v12212_v52 }
 0x1cd   : > { %v2263_v61 = vmax.f32 %v2231_v41, 0.0  ;;  %v2641_v62 = vmax.f32 %v2609_v58, 0.0 }
 0x1ce   : > { %v3050_v63 = vpack.c.bf16 %v3018_v59, %v3018_v59  ;;  %v3428_v0 = vpack.c.bf16 %v3396_v60, %v3396_v60 }
 0x1cf   : > { %v2295_v1 = vpack.c.bf16 %v2263_v61, %v2263_v61  ;;  %v2673_v2 = vpack.c.bf16 %v2641_v62, %v2641_v62  ;;  %v2881_v3 = vpop.f32.mrf.mxu2  ;;  %v3259_v4 = vpop.f32.mrf.mxu3 }
 0x1d0   : > { %3082 = vst [vmem:[#allocation2 + $0x94] sm:$0xf] %v3050_v63  ;;  %v2955_v5 = vmul.f32 %v13305_v45, %v2881_v3  ;;  %v3333_v7 = vmul.f32 %v13305_v45, %v3259_v4  ;;  %v2127_v40 = vpop.f32.mrf.mxu0  ;;  %v2505_v10 = vpop.f32.mrf.mxu1 }
 0x1d1   : > { %3460 = vst [vmem:[#allocation2 + $0x98] sm:$0xf] %v3428_v0  ;;  %v2200_v11 = vmul.f32 %v13305_v45, %v2127_v40  ;;  %v2578_v14 = vmul.f32 %v13305_v45, %v2505_v10 }
 0x1d2   : > { %2327 = vst [vmem:[#allocation2 + $0xb4] sm:$0xf] %v2295_v1  ;;  %v2987_v15 = vadd.f32 %v13316_v55, %v2955_v5  ;;  %v3365_v16 = vadd.f32 %v13316_v55, %v3333_v7 }
 0x1d3   : > { %2705 = vst [vmem:[#allocation2 + $0xb8] sm:$0xf] %v2673_v2  ;;  %v2232_v17 = vadd.f32 %v13316_v55, %v2200_v11  ;;  %v2610_v18 = vadd.f32 %v13316_v55, %v2578_v14 }
 0x1d4   : > { %v3019_v21 = vmax.f32 %v2987_v15, 0.0  ;;  %v3397_v22 = vmax.f32 %v3365_v16, 0.0 }
 0x1d5   : > { %v2264_v23 = vmax.f32 %v2232_v17, 0.0  ;;  %v2642_v24 = vmax.f32 %v2610_v18, 0.0 }
 0x1d6   : > { %v3051_v25 = vpack.c.bf16 %v3019_v21, %v3019_v21  ;;  %v3429_v26 = vpack.c.bf16 %v3397_v22, %v3397_v22  ;;  %v12166_v22 = vld [vmem:[%s12816_s22 + $0x260] sm:$0xff] }
 0x1d7   : > { %v2296_v27 = vpack.c.bf16 %v2264_v23, %v2264_v23  ;;  %v2674_v28 = vpack.c.bf16 %v2642_v24, %v2642_v24  ;;  %v2883_v29 = vpop.f32.mrf.mxu2  ;;  %v3261_v30 = vpop.f32.mrf.mxu3  ;;  %v12182_v23 = vld [vmem:[%s12816_s22 + $0x2e0] sm:$0xff] }
 0x1d8   : > { %3083 = vst [vmem:[#allocation2 + $0xbc] sm:$0xf] %v3051_v25  ;;  %v2956_v33 = vmul.f32 %v13305_v45, %v2883_v29  ;;  %v3334_v34 = vmul.f32 %v13305_v45, %v3261_v30  ;;  %v2130_v35 = vpop.f32.mrf.mxu0  ;;  %v2508_v6 = vpop.f32.mrf.mxu1  ;;  %v12214_v29 = vld [vmem:[%s12816_s22 + $0x3e0] sm:$0xff] }
 0x1d9   : > { %3461 = vst [vmem:[#allocation2 + $0xc0] sm:$0xf] %v3429_v26  ;;  %v2201_v39 = vmul.f32 %v13305_v45, %v2130_v35  ;;  %v2579_v42 = vmul.f32 %v13305_v45, %v2508_v6 }
 0x1da   : > { %2328 = vst [vmem:[#allocation2 + $0xdc] sm:$0xf] %v2296_v27  ;;  %v2988_v43 = vadd.f32 %v13316_v55, %v2956_v33  ;;  %v3366_v44 = vadd.f32 %v13316_v55, %v3334_v34 }
 0x1db   : > { %2706 = vst [vmem:[#allocation2 + $0xe0] sm:$0xf] %v2674_v28  ;;  %v2233_v9 = vadd.f32 %v13316_v55, %v2201_v39  ;;  %v2611_v48 = vadd.f32 %v13316_v55, %v2579_v42  ;;  %2169 = vmatmul.bf16.gmra.mxu0 %v12165_v31  ;;  %2547 = vmatmul.bf16.gmra.mxu1 %v12181_v32  ;;  %v12198_v28 = vld [vmem:[%s12816_s22 + $0x360] sm:$0xff] }
 0x1dc   : > { %v3020_v50 = vmax.f32 %v2988_v43, 0.0  ;;  %v3398_v51 = vmax.f32 %v3366_v44, 0.0  ;;  %2925 = vmatmul.bf16.gmra.mxu2 %v12197_v36  ;;  %3303 = vmatmul.bf16.gmra.mxu3 %v12213_v37 }
 0x1dd   : > { %v2265_v52 = vmax.f32 %v2233_v9, 0.0  ;;  %v2643_v53 = vmax.f32 %v2611_v48, 0.0 }
 0x1de   : > { %v3052_v54 = vpack.c.bf16 %v3020_v50, %v3020_v50  ;;  %v3430_v56 = vpack.c.bf16 %v3398_v51, %v3398_v51 }
 0x1df   : > { %v2297_v57 = vpack.c.bf16 %v2265_v52, %v2265_v52  ;;  %v2675_v41 = vpack.c.bf16 %v2643_v53, %v2643_v53  ;;  %v2886_v58 = vpop.f32.mrf.mxu2  ;;  %v3264_v59 = vpop.f32.mrf.mxu3 }
 0x1e0   : > { %3084 = vst [vmem:[#allocation2 + $0xe4] sm:$0xf] %v3052_v54  ;;  %v2957_v60 = vmul.f32 %v13305_v45, %v2886_v58  ;;  %v3335_v61 = vmul.f32 %v13305_v45, %v3264_v59  ;;  %v2132_v62 = vpop.f32.mrf.mxu0  ;;  %v2510_v63 = vpop.f32.mrf.mxu1 }
 0x1e1   : > { %3462 = vst [vmem:[#allocation2 + $0xe8] sm:$0xf] %v3430_v56  ;;  %v2202_v0 = vmul.f32 %v13305_v45, %v2132_v62  ;;  %v2580_v1 = vmul.f32 %v13305_v45, %v2510_v63  ;;  %v13397_v62 = vld [vmem:[%s15335_s4] sm:$0xff] }
 0x1e2   : > { %2329 = vst [vmem:[#allocation2 + $0x104] sm:$0xf] %v2297_v57  ;;  %v2989_v2 = vadd.f32 %v13316_v55, %v2957_v60  ;;  %v3367_v3 = vadd.f32 %v13316_v55, %v3335_v61  ;;  %v13392_v61 = vld [vmem:[%s15335_s4 + $0x80] sm:$0xff]  ;;  %4681 = vmatpush.bf16.msra.mxu3 %v13397_v62  ;;  %3960 = vmatpush.bf16.msra.mxu0 %v13397_v62 }
 0x1e3   : > { %2707 = vst [vmem:[#allocation2 + $0x108] sm:$0xf] %v2675_v41  ;;  %v2234_v4 = vadd.f32 %v13316_v55, %v2202_v0  ;;  %v2612_v5 = vadd.f32 %v13316_v55, %v2580_v1  ;;  %4138 = vmatpush.bf16.msra.mxu2 %v13392_v61 }
 0x1e4   : > { %v3021_v7 = vmax.f32 %v2989_v2, 0.0  ;;  %v3399_v40 = vmax.f32 %v3367_v3, 0.0 }
 0x1e5   : > { %v2266_v10 = vmax.f32 %v2234_v4, 0.0  ;;  %v2644_v11 = vmax.f32 %v2612_v5, 0.0  ;;  %v13405_v5 = vld [vmem:[%s15335_s4 + $0x38] sm:$0xff] }
 0x1e6   : > { %v3053_v14 = vpack.c.bf16 %v3021_v7, %v3021_v7  ;;  %v3431_v15 = vpack.c.bf16 %v3399_v40, %v3399_v40 }
 0x1e7   : > { %v2298_v16 = vpack.c.bf16 %v2266_v10, %v2266_v10  ;;  %v2676_v17 = vpack.c.bf16 %v2644_v11, %v2644_v11  ;;  %v2888_v18 = vpop.f32.mrf.mxu2  ;;  %v3266_v21 = vpop.f32.mrf.mxu3  ;;  %5390 = vmatpush.bf16.msrb.mxu2 %v13405_v5 }
 0x1e8   : > { %3085 = vst [vmem:[#allocation2 + $0x10c] sm:$0xf] %v3053_v14  ;;  %v2958_v24 = vmul.f32 %v13305_v45, %v2888_v18  ;;  %v3336_v25 = vmul.f32 %v13305_v45, %v3266_v21  ;;  %v2135_v26 = vpop.f32.mrf.mxu0  ;;  %v2513_v27 = vpop.f32.mrf.mxu1  ;;  %v12167_v14 = vld [vmem:[%s12816_s22 + $0x268] sm:$0xff] }
 0x1e9   : > { %3463 = vst [vmem:[#allocation2 + $0x110] sm:$0xf] %v3431_v15  ;;  %v2203_v30 = vmul.f32 %v13305_v45, %v2135_v26  ;;  %v2581_v31 = vmul.f32 %v13305_v45, %v2513_v27  ;;  %v12183_v15 = vld [vmem:[%s12816_s22 + $0x2e8] sm:$0xff] }
 0x1ea   : > { %2330 = vst [vmem:[#allocation2 + $0x12c] sm:$0xf] %v2298_v16  ;;  %v2990_v32 = vadd.f32 %v13316_v55, %v2958_v24  ;;  %v3368_v33 = vadd.f32 %v13316_v55, %v3336_v25  ;;  %v13413_v16 = vld [vmem:[%s15335_s4 + $0x78] sm:$0xff]  ;;  %v12215_v24 = vld [vmem:[%s12816_s22 + $0x3e8] sm:$0xff] }
 0x1eb   : > { %2708 = vst [vmem:[#allocation2 + $0x130] sm:$0xf] %v2676_v17  ;;  %v2235_v34 = vadd.f32 %v13316_v55, %v2203_v30  ;;  %v2613_v35 = vadd.f32 %v13316_v55, %v2581_v31  ;;  %2174 = vmatmul.bf16.gmra.mxu0 %v12166_v22  ;;  %2552 = vmatmul.bf16.gmra.mxu1 %v12182_v23  ;;  %v12199_v23 = vld [vmem:[%s12816_s22 + $0x368] sm:$0xff] }
 0x1ec   : > { %v3022_v6 = vmax.f32 %v2990_v32, 0.0  ;;  %v3400_v36 = vmax.f32 %v3368_v33, 0.0  ;;  %2930 = vmatmul.bf16.gmra.mxu2 %v12198_v28  ;;  %3308 = vmatmul.bf16.gmra.mxu3 %v12214_v29  ;;  %v13428_v29 = vld [vmem:[%s15335_s4 + $0x30] sm:$0xff]  ;;  %v13436_v32 = vld [vmem:[%s15335_s4 + $0x40] sm:$0xff] }
 0x1ed   : > { %v2267_v37 = vmax.f32 %v2235_v34, 0.0  ;;  %v2645_v39 = vmax.f32 %v2613_v35, 0.0  ;;  %5479 = vmatpush.bf16.msrb.mxu3 %v13413_v16  ;;  %4763 = vmatpush.bf16.msrb.mxu0 %v13413_v16 }
 0x1ee   : > { %v3054_v42 = vpack.c.bf16 %v3022_v6, %v3022_v6  ;;  %v3432_v43 = vpack.c.bf16 %v3400_v36, %v3400_v36  ;;  %5391 = vmatpush.bf16.msrb.mxu2 %v13428_v29  ;;  %4049 = vmatpush.bf16.msra.mxu1 %v13436_v32  ;;  %v13442_v36 = vld [vmem:[%s15335_s4 + $0x70] sm:$0xff] }
 0x1ef   : > { %v2299_v44 = vpack.c.bf16 %v2267_v37, %v2267_v37  ;;  %v2677_v9 = vpack.c.bf16 %v2645_v39, %v2645_v39  ;;  %v2891_v48 = vpop.f32.mrf.mxu2  ;;  %v3269_v50 = vpop.f32.mrf.mxu3 }
 0x1f0   : > { %3086 = vst [vmem:[#allocation2 + $0x134] sm:$0xf] %v3054_v42  ;;  %v2959_v51 = vmul.f32 %v13305_v45, %v2891_v48  ;;  %v3337_v52 = vmul.f32 %v13305_v45, %v3269_v50  ;;  %v2137_v53 = vpop.f32.mrf.mxu0  ;;  %v2515_v54 = vpop.f32.mrf.mxu1  ;;  %v13448_v42 = vld [vmem:[%s15335_s4 + $0xb8] sm:$0xff]  ;;  %v13455_v50 = vld [vmem:[%s15335_s4 + $0x28] sm:$0xff] }
 0x1f1   : > { %3464 = vst [vmem:[#allocation2 + $0x138] sm:$0xf] %v3432_v43  ;;  %v2204_v56 = vmul.f32 %v13305_v45, %v2137_v53  ;;  %v2582_v57 = vmul.f32 %v13305_v45, %v2515_v54  ;;  %5480 = vmatpush.bf16.msrb.mxu3 %v13442_v36  ;;  %4764 = vmatpush.bf16.msrb.mxu0 %v13442_v36 }
 0x1f2   : > { %2331 = vst [vmem:[#allocation2 + $0x154] sm:$0xf] %v2299_v44  ;;  %v2991_v41 = vadd.f32 %v13316_v55, %v2959_v51  ;;  %v3369_v58 = vadd.f32 %v13316_v55, %v3337_v52  ;;  %4852 = vmatpush.bf16.msrb.mxu1 %v13448_v42  ;;  %5392 = vmatpush.bf16.msrb.mxu2 %v13455_v50 }
 0x1f3   : > { %2709 = vst [vmem:[#allocation2 + $0x158] sm:$0xf] %v2677_v9  ;;  %v2236_v59 = vadd.f32 %v13316_v55, %v2204_v56  ;;  %v2614_v60 = vadd.f32 %v13316_v55, %v2582_v57 }
 0x1f4   : > { %v3023_v63 = vmax.f32 %v2991_v41, 0.0  ;;  %v3401_v0 = vmax.f32 %v3369_v58, 0.0  ;;  %v13465_v41 = vld [vmem:[%s15335_s4 + $0x68] sm:$0xff] }
 0x1f5   : > { %v2268_v1 = vmax.f32 %v2236_v59, 0.0  ;;  %v2646_v2 = vmax.f32 %v2614_v60, 0.0  ;;  %5481 = vmatpush.bf16.msrb.mxu3 %v13465_v41  ;;  %v13473_v60 = vld [vmem:[%s15335_s4 + $0xb0] sm:$0xff]  ;;  %4765 = vmatpush.bf16.msrb.mxu0 %v13465_v41 }
 0x1f6   : > { %v3055_v3 = vpack.c.bf16 %v3023_v63, %v3023_v63  ;;  %v3433_v4 = vpack.c.bf16 %v3401_v0, %v3401_v0  ;;  %4853 = vmatpush.bf16.msrb.mxu1 %v13473_v60 }
 0x1f7   : > { %v2300_v7 = vpack.c.bf16 %v2268_v1, %v2268_v1  ;;  %v2678_v40 = vpack.c.bf16 %v2646_v2, %v2646_v2  ;;  %v2893_v10 = vpop.f32.mrf.mxu2  ;;  %v3271_v11 = vpop.f32.mrf.mxu3  ;;  %v13482_v1 = vld [vmem:[%s15335_s4 + $0x20] sm:$0xff] }
 0x1f8   : > { %3087 = vst [vmem:[#allocation2 + $0x15c] sm:$0xf] %v3055_v3  ;;  %v2960_v17 = vmul.f32 %v13305_v45, %v2893_v10  ;;  %v3338_v18 = vmul.f32 %v13305_v45, %v3271_v11  ;;  %v2140_v21 = vpop.f32.mrf.mxu0  ;;  %v2518_v22 = vpop.f32.mrf.mxu1  ;;  %5393 = vmatpush.bf16.msrb.mxu2 %v13482_v1  ;;  %v13490_v10 = vld [vmem:[%s15335_s4 + $0x60] sm:$0xff] }
 0x1f9   : > { %3465 = vst [vmem:[#allocation2 + $0x160] sm:$0xf] %v3433_v4  ;;  %v2205_v25 = vmul.f32 %v13305_v45, %v2140_v21  ;;  %v2583_v26 = vmul.f32 %v13305_v45, %v2518_v22  ;;  %v12733_v4 = vmov 0   ;;  %5482 = vmatpush.bf16.msrb.mxu3 %v13490_v10  ;;  %4766 = vmatpush.bf16.msrb.mxu0 %v13490_v10 }
 0x1fa   : > { %2332 = vst [vmem:[#allocation2 + $0x17c] sm:$0xf] %v2300_v7  ;;  %v2992_v27 = vadd.f32 %v13316_v55, %v2960_v17  ;;  %v3370_v28 = vadd.f32 %v13316_v55, %v3338_v18 }
 0x1fb   : > { %2710 = vst [vmem:[#allocation2 + $0x180] sm:$0xf] %v2678_v40  ;;  %v2237_v30 = vadd.f32 %v13316_v55, %v2205_v25  ;;  %v2615_v31 = vadd.f32 %v13316_v55, %v2583_v26  ;;  %2179 = vmatmul.bf16.gmra.mxu0 %v12167_v14  ;;  %2557 = vmatmul.bf16.gmra.mxu1 %v12183_v15  ;;  %v13497_v15 = vld [vmem:[%s15335_s4 + $0xa8] sm:$0xff] }
 0x1fc   : > { %v3024_v33 = vmax.f32 %v2992_v27, 0.0  ;;  %v3402_v34 = vmax.f32 %v3370_v28, 0.0  ;;  %2935 = vmatmul.bf16.gmra.mxu2 %v12199_v23  ;;  %3313 = vmatmul.bf16.gmra.mxu3 %v12215_v24  ;;  %348 = vst [vmem:[#allocation2] sm:$0xf] %v12733_v4  ;;  %v12168_v23 = vld [vmem:[%s12816_s22 + $0x270] sm:$0xff] }
 0x1fd   : > { %v2269_v35 = vmax.f32 %v2237_v30, 0.0  ;;  %v2647_v6 = vmax.f32 %v2615_v31, 0.0  ;;  %349 = vst [vmem:[#allocation2 + $0x28] sm:$0xf] %v12733_v4  ;;  %4854 = vmatpush.bf16.msrb.mxu1 %v13497_v15  ;;  %v12184_v24 = vld [vmem:[%s12816_s22 + $0x2f0] sm:$0xff]  ;;  %5394 = vmatpush.bf16.msrb.mxu2 %v13210_v13 }
 0x1fe   : > { %v3056_v37 = vpack.c.bf16 %v3024_v33, %v3024_v33  ;;  %v3434_v39 = vpack.c.bf16 %v3402_v34, %v3402_v34  ;;  %350 = vst [vmem:[#allocation2 + $0x50] sm:$0xf] %v12733_v4  ;;  %v12200_v30 = vld [vmem:[%s12816_s22 + $0x370] sm:$0xff]  ;;  %5483 = vmatpush.bf16.msrb.mxu3 %v13230_v38  ;;  %4767 = vmatpush.bf16.msrb.mxu0 %v13230_v38 }
 0x1ff   : > { %v2301_v43 = vpack.c.bf16 %v2269_v35, %v2269_v35  ;;  %v2679_v44 = vpack.c.bf16 %v2647_v6, %v2647_v6  ;;  %v2896_v9 = vpop.f32.mrf.mxu2  ;;  %v3274_v48 = vpop.f32.mrf.mxu3  ;;  %351 = vst [vmem:[#allocation2 + $0x78] sm:$0xf] %v12733_v4  ;;  %v12216_v31 = vld [vmem:[%s12816_s22 + $0x3f0] sm:$0xff]  ;;  %v13517_v6 = vld [vmem:[%s15335_s4 + $0xa0] sm:$0xff] }
 0x200   : > { %3088 = vst [vmem:[#allocation2 + $0x184] sm:$0xf] %v3056_v37  ;;  %v2961_v51 = vmul.f32 %v13305_v45, %v2896_v9  ;;  %v3339_v52 = vmul.f32 %v13305_v45, %v3274_v48  ;;  %v2142_v53 = vpop.f32.mrf.mxu0  ;;  %v2520_v54 = vpop.f32.mrf.mxu1 }
 0x201   : > { %3466 = vst [vmem:[#allocation2 + $0x188] sm:$0xf] %v3434_v39  ;;  %v2206_v56 = vmul.f32 %v13305_v45, %v2142_v53  ;;  %v2584_v57 = vmul.f32 %v13305_v45, %v2520_v54  ;;  %4855 = vmatpush.bf16.msrb.mxu1 %v13517_v6  ;;  %5395 = vmatpush.bf16.msrb.mxu2 %v13269_v47 }
 0x202   : > { %2333 = vst [vmem:[#allocation2 + $0x1a4] sm:$0xf] %v2301_v43  ;;  %v2993_v58 = vadd.f32 %v13316_v55, %v2961_v51  ;;  %v3371_v59 = vadd.f32 %v13316_v55, %v3339_v52  ;;  %5484 = vmatpush.bf16.msrb.mxu3 %v13289_v8  ;;  %4768 = vmatpush.bf16.msrb.mxu0 %v13289_v8 }
 0x203   : > { %2711 = vst [vmem:[#allocation2 + $0x1a8] sm:$0xf] %v2679_v44  ;;  %v2238_v63 = vadd.f32 %v13316_v55, %v2206_v56  ;;  %v2616_v0 = vadd.f32 %v13316_v55, %v2584_v57 }
 0x204   : > { %v3025_v2 = vmax.f32 %v2993_v58, 0.0  ;;  %v3403_v3 = vmax.f32 %v3371_v59, 0.0  ;;  %352 = vst [vmem:[#allocation2 + $0xa0] sm:$0xf] %v12733_v4 }
 0x205   : > { %v2270_v7 = vmax.f32 %v2238_v63, 0.0  ;;  %v2648_v40 = vmax.f32 %v2616_v0, 0.0  ;;  %353 = vst [vmem:[#allocation2 + $0xc8] sm:$0xf] %v12733_v4  ;;  %4856 = vmatpush.bf16.msrb.mxu1 %v13205_v12  ;;  %5396 = vmatpush.bf16.msrb.mxu2 %v13338_v20 }
 0x206   : > { %v3057_v11 = vpack.c.bf16 %v3025_v2, %v3025_v2  ;;  %v3435_v14 = vpack.c.bf16 %v3403_v3, %v3403_v3  ;;  %354 = vst [vmem:[#allocation2 + $0xf0] sm:$0xf] %v12733_v4  ;;  %5485 = vmatpush.bf16.msrb.mxu3 %v13358_v49  ;;  %4769 = vmatpush.bf16.msrb.mxu0 %v13358_v49 }
 0x207   : > { %v2302_v17 = vpack.c.bf16 %v2270_v7, %v2270_v7  ;;  %v2680_v18 = vpack.c.bf16 %v2648_v40, %v2648_v40  ;;  %v2898_v21 = vpop.f32.mrf.mxu2  ;;  %v3276_v22 = vpop.f32.mrf.mxu3  ;;  %355 = vst [vmem:[#allocation2 + $0x118] sm:$0xf] %v12733_v4 }
 0x208   : > { %3089 = vst [vmem:[#allocation2 + $0x1ac] sm:$0xf] %v3057_v11  ;;  %v2962_v25 = vmul.f32 %v13305_v45, %v2898_v21  ;;  %v3340_v26 = vmul.f32 %v13305_v45, %v3276_v22  ;;  %v2145_v27 = vpop.f32.mrf.mxu0  ;;  %v2523_v28 = vpop.f32.mrf.mxu1 }
 0x209   : > { %3467 = vst [vmem:[#allocation2 + $0x1b0] sm:$0xf] %v3435_v14  ;;  %v2207_v33 = vmul.f32 %v13305_v45, %v2145_v27  ;;  %v2585_v34 = vmul.f32 %v13305_v45, %v2523_v28  ;;  %4857 = vmatpush.bf16.msrb.mxu1 %v13264_v46  ;;  %5397 = vmatpush.bf16.msrb.mxu2 %v13397_v62 }
 0x20a   : > { %2334 = vst [vmem:[#allocation2 + $0x1cc] sm:$0xf] %v2302_v17  ;;  %v2994_v35 = vadd.f32 %v13316_v55, %v2962_v25  ;;  %v3372_v13 = vadd.f32 %v13316_v55, %v3340_v26  ;;  %5486 = vmatpush.bf16.msrb.mxu3 %v13436_v32  ;;  %4770 = vmatpush.bf16.msrb.mxu0 %v13436_v32  ;;  %v12185_v25 = vld [vmem:[%s12816_s22 + $0x2f8] sm:$0xff] }
 0x20b   : > { %2712 = vst [vmem:[#allocation2 + $0x1d0] sm:$0xf] %v2680_v18  ;;  %v2239_v37 = vadd.f32 %v13316_v55, %v2207_v33  ;;  %v2617_v39 = vadd.f32 %v13316_v55, %v2585_v34  ;;  %2184 = vmatmul.bf16.gmra.mxu0 %v12168_v23  ;;  %2562 = vmatmul.bf16.gmra.mxu1 %v12184_v24  ;;  %v12169_v24 = vld [vmem:[%s12816_s22 + $0x278] sm:$0xff] }
 0x20c   : > { %v3026_v43 = vmax.f32 %v2994_v35, 0.0  ;;  %v3404_v44 = vmax.f32 %v3372_v13, 0.0  ;;  %2940 = vmatmul.bf16.gmra.mxu2 %v12200_v30  ;;  %3318 = vmatmul.bf16.gmra.mxu3 %v12216_v31  ;;  %356 = vst [vmem:[#allocation2 + $0x140] sm:$0xf] %v12733_v4  ;;  %v12201_v31 = vld [vmem:[%s12816_s22 + $0x378] sm:$0xff] }
 0x20d   : > { %v2271_v9 = vmax.f32 %v2239_v37, 0.0  ;;  %v2649_v48 = vmax.f32 %v2617_v39, 0.0  ;;  %357 = vst [vmem:[#allocation2 + $0x168] sm:$0xf] %v12733_v4  ;;  %4858 = vmatpush.bf16.msrb.mxu1 %v13333_v19  ;;  %v12217_v33 = vld [vmem:[%s12816_s22 + $0x3f8] sm:$0xff] }
 0x20e   : > { %v3058_v38 = vpack.c.bf16 %v3026_v43, %v3026_v43  ;;  %v3436_v51 = vpack.c.bf16 %v3404_v44, %v3404_v44  ;;  %358 = vst [vmem:[#allocation2 + $0x190] sm:$0xf] %v12733_v4 }
 0x20f   : > { %v2303_v52 = vpack.c.bf16 %v2271_v9, %v2271_v9  ;;  %v2681_v53 = vpack.c.bf16 %v2649_v48, %v2649_v48  ;;  %v2901_v54 = vpop.f32.mrf.mxu2  ;;  %v3279_v56 = vpop.f32.mrf.mxu3  ;;  %359 = vst [vmem:[#allocation2 + $0x1b8] sm:$0xf] %v12733_v4 }
 0x210   : > { %3090 = vst [vmem:[#allocation2 + $0x1d4] sm:$0xf] %v3058_v38  ;;  %v2963_v57 = vmul.f32 %v13305_v45, %v2901_v54  ;;  %v3341_v47 = vmul.f32 %v13305_v45, %v3279_v56  ;;  %v2147_v58 = vpop.f32.mrf.mxu0  ;;  %v2525_v59 = vpop.f32.mrf.mxu1 }
 0x211   : > { %3468 = vst [vmem:[#allocation2 + $0x1d8] sm:$0xf] %v3436_v51  ;;  %v2208_v63 = vmul.f32 %v13305_v45, %v2147_v58  ;;  %v2586_v12 = vmul.f32 %v13305_v45, %v2525_v59  ;;  %4859 = vmatpush.bf16.msrb.mxu1 %v13392_v61 }
 0x212   : > { %2335 = vst [vmem:[#allocation2 + $0x1f4] sm:$0xf] %v2303_v52  ;;  %v2995_v8 = vadd.f32 %v13316_v55, %v2963_v57  ;;  %v3373_v0 = vadd.f32 %v13316_v55, %v3341_v47 }
 0x213   : > { %2713 = vst [vmem:[#allocation2 + $0x1f8] sm:$0xf] %v2681_v53  ;;  %v2240_v2 = vadd.f32 %v13316_v55, %v2208_v63  ;;  %v2618_v3 = vadd.f32 %v13316_v55, %v2586_v12 }
 0x214   : > { %v3027_v7 = vmax.f32 %v2995_v8, 0.0  ;;  %v3405_v40 = vmax.f32 %v3373_v0, 0.0  ;;  %360 = vst [vmem:[#allocation2 + $0x1e0] sm:$0xf] %v12733_v4 }
 0x215   : > { %v2272_v11 = vmax.f32 %v2240_v2, 0.0  ;;  %v2650_v14 = vmax.f32 %v2618_v3, 0.0  ;;  %361 = vst [vmem:[#allocation2 + $0x208] sm:$0xf] %v12733_v4 }
 0x216   : > { %v3059_v46 = vpack.c.bf16 %v3027_v7, %v3027_v7  ;;  %v3437_v17 = vpack.c.bf16 %v3405_v40, %v3405_v40  ;;  %362 = vst [vmem:[#allocation2 + $0x230] sm:$0xf] %v12733_v4  ;;  %v10200_v40 = vld [vmem:[#allocation2] sm:$0xf] }
 0x217   : > { %v2304_v18 = vpack.c.bf16 %v2272_v11, %v2272_v11  ;;  %v2682_v21 = vpack.c.bf16 %v2650_v14, %v2650_v14  ;;  %v2903_v22 = vpop.f32.mrf.mxu2  ;;  %v3281_v23 = vpop.f32.mrf.mxu3  ;;  %363 = vst [vmem:[#allocation2 + $0x258] sm:$0xf] %v12733_v4 }
 0x218   : > { %3091 = vst [vmem:[#allocation2 + $0x1fc] sm:$0xf] %v3059_v46  ;;  %v2964_v26 = vmul.f32 %v13305_v45, %v2903_v22  ;;  %v3342_v27 = vmul.f32 %v13305_v45, %v3281_v23  ;;  %v2150_v28 = vpop.f32.mrf.mxu0  ;;  %v2528_v30 = vpop.f32.mrf.mxu1  ;;  %v12219_v46 = vld [vmem:[#allocation2 + $0x24] sm:$0xf0] }
 0x219   : > { %3469 = vst [vmem:[#allocation2 + $0x200] sm:$0xf] %v3437_v17  ;;  %v2209_v34 = vmul.f32 %v13305_v45, %v2150_v28  ;;  %v2587_v35 = vmul.f32 %v13305_v45, %v2528_v30 }
 0x21a   : > { %2336 = vst [vmem:[#allocation2 + $0x21c] sm:$0xf] %v2304_v18  ;;  %v2996_v13 = vadd.f32 %v13316_v55, %v2964_v26  ;;  %v3374_v37 = vadd.f32 %v13316_v55, %v3342_v27 }
 0x21b   : > { %2714 = vst [vmem:[#allocation2 + $0x220] sm:$0xf] %v2682_v21  ;;  %v2241_v39 = vadd.f32 %v13316_v55, %v2209_v34  ;;  %v2619_v43 = vadd.f32 %v13316_v55, %v2587_v35  ;;  %2189 = vmatmul.bf16.gmra.mxu0 %v12169_v24  ;;  %2567 = vmatmul.bf16.gmra.mxu1 %v12185_v25  ;;  %v12218_v21 = vld [vmem:[#allocation2 + $0x4] sm:$0xf]  ;;  %v10202_v24 = vld [vmem:[#allocation2 + $0x28] sm:$0xf0] }
 0x21c   : > { %v3028_v44 = vmax.f32 %v2996_v13, 0.0  ;;  %v3406_v9 = vmax.f32 %v3374_v37, 0.0  ;;  %2945 = vmatmul.bf16.gmra.mxu2 %v12201_v31  ;;  %3323 = vmatmul.bf16.gmra.mxu3 %v12217_v33  ;;  %364 = vst [vmem:[#allocation2 + $0x280] sm:$0xf] %v12733_v4  ;;  %v10488_v25 = vld [vmem:[#allocation2 + $0x4] sm:$0xf]  ;;  %v10201_v31 = vor.u32 %v12219_v46, %v10200_v40 }
 0x21d   : > { %v2273_v48 = vmax.f32 %v2241_v39, 0.0  ;;  %v2651_v38 = vmax.f32 %v2619_v43, 0.0  ;;  %365 = vst [vmem:[#allocation2 + $0x2a8] sm:$0xf] %v12733_v4  ;;  %v12220_v33 = vld [vmem:[#allocation2 + $0x2c] sm:$0xf0] }
 0x21e   : > { %v3060_v51 = vpack.c.bf16 %v3028_v44, %v3028_v44  ;;  %v3438_v52 = vpack.c.bf16 %v3406_v9, %v3406_v9  ;;  %366 = vst [vmem:[#allocation2 + $0x2d0] sm:$0xf] %v12733_v4  ;;  %v12267_v34 = vld [vmem:[#allocation2 + $0x28] sm:$0xf0]  ;;  %v10205_v9 = vor.u32 %v12218_v21, %v10202_v24  ;;  %v12222_v46 = vld [vmem:[#allocation2 + $0x74] sm:$0xf0] }
 0x21f   : > { %v2305_v53 = vpack.c.bf16 %v2273_v48, %v2273_v48  ;;  %v2683_v54 = vpack.c.bf16 %v2651_v38, %v2651_v38  ;;  %v2906_v56 = vpop.f32.mrf.mxu2  ;;  %v3284_v57 = vpop.f32.mrf.mxu3  ;;  %367 = vst [vmem:[#allocation2 + $0x2f8] sm:$0xf] %v12733_v4  ;;  %v10208_v48 = vld [vmem:[#allocation2 + $0x8] sm:$0xf]  ;;  %v12634_v21 = vld [vmem:[%s15335_s4 + $0x50] sm:$0xff] }
 0x220   : > { %3092 = vst [vmem:[#allocation2 + $0x224] sm:$0xf] %v3060_v51  ;;  %v2965_v47 = vmul.f32 %v13305_v45, %v2906_v56  ;;  %v3343_v58 = vmul.f32 %v13305_v45, %v3284_v57  ;;  %v2152_v59 = vpop.f32.mrf.mxu0  ;;  %v2530_v63 = vpop.f32.mrf.mxu1 }
 0x221   : > { %3470 = vst [vmem:[#allocation2 + $0x228] sm:$0xf] %v3438_v52  ;;  %v2210_v12 = vmul.f32 %v13305_v45, %v2152_v59  ;;  %v2588_v8 = vmul.f32 %v13305_v45, %v2530_v63  ;;  %v10209_v52 = vor.u32 %v12220_v33, %v10208_v48  ;;  %v10512_v33 = vld [vmem:[#allocation2 + $0xa4] sm:$0xf] }
 0x222   : > { %2337 = vst [vmem:[#allocation2 + $0x244] sm:$0xf] %v2305_v53  ;;  %v2997_v0 = vadd.f32 %v13316_v55, %v2965_v47  ;;  %v3375_v2 = vadd.f32 %v13316_v55, %v3343_v58  ;;  %v10489_v53 = vor.u32 %v12267_v34, %v10488_v25  ;;  %v12224_v25 = vld [vmem:[#allocation2 + $0xa4] sm:$0xf]  ;;  %v12273_v34 = vld [vmem:[#allocation2 + $0xc8] sm:$0xf0] }
 0x223   : > { %2715 = vst [vmem:[#allocation2 + $0x248] sm:$0xf] %v2683_v54  ;;  %v2242_v3 = vadd.f32 %v13316_v55, %v2210_v12  ;;  %v2620_v7 = vadd.f32 %v13316_v55, %v2588_v8 }
 0x224   : > { %v3029_v11 = vmax.f32 %v2997_v0, 0.0  ;;  %v3407_v14 = vmax.f32 %v3375_v2, 0.0  ;;  %368 = vst [vmem:[#allocation2 + $0x320] sm:$0xf] %v12733_v4  ;;  %v10500_v0 = vld [vmem:[#allocation2 + $0x54] sm:$0xf] }
 0x225   : > { %v2274_v17 = vmax.f32 %v2242_v3, 0.0  ;;  %v2652_v18 = vmax.f32 %v2620_v7, 0.0  ;;  %369 = vst [vmem:[#allocation2 + $0x348] sm:$0xf] %v12733_v4  ;;  %v12270_v2 = vld [vmem:[#allocation2 + $0x78] sm:$0xf0] }
 0x226   : > { %v3061_v22 = vpack.c.bf16 %v3029_v11, %v3029_v11  ;;  %v3439_v23 = vpack.c.bf16 %v3407_v14, %v3407_v14  ;;  %370 = vst [vmem:[#allocation2 + $0x370] sm:$0xf] %v12733_v4  ;;  %v10501_v40 = vor.u32 %v12270_v2, %v10500_v0  ;;  %v10212_v14 = vld [vmem:[#allocation2 + $0x50] sm:$0xf] }
 0x227   : > { %v2306_v26 = vpack.c.bf16 %v2274_v17, %v2274_v17  ;;  %v2684_v27 = vpack.c.bf16 %v2652_v18, %v2652_v18  ;;  %v2908_v28 = vpop.f32.mrf.mxu2  ;;  %v3286_v30 = vpop.f32.mrf.mxu3  ;;  %371 = vst [vmem:[#allocation2 + $0x398] sm:$0xf] %v12733_v4  ;;  %v12632_v17 = vld [vmem:[%s15335_s4 + $0x98] sm:$0xff] }
 0x228   : > { %3093 = vst [vmem:[#allocation2 + $0x24c] sm:$0xf] %v3061_v22  ;;  %v2966_v35 = vmul.f32 %v13305_v45, %v2908_v28  ;;  %v3344_v13 = vmul.f32 %v13305_v45, %v3286_v30  ;;  %v2155_v37 = vpop.f32.mrf.mxu0  ;;  %v2533_v39 = vpop.f32.mrf.mxu1  ;;  %v12633_v18 = vld [vmem:[%s15335_s4 + $0x18] sm:$0xff]  ;;  %v12635_v22 = vld [vmem:[%s15335_s4 + $0x90] sm:$0xff]  ;;  %v10226_v30 = vld [vmem:[#allocation2 + $0xc8] sm:$0xf0] }
 0x229   : > { %3471 = vst [vmem:[#allocation2 + $0x250] sm:$0xf] %v3439_v23  ;;  %v2211_v43 = vmul.f32 %v13305_v45, %v2155_v37  ;;  %v2589_v44 = vmul.f32 %v13305_v45, %v2533_v39 }
 0x22a   : > { %2338 = vst [vmem:[#allocation2 + $0x26c] sm:$0xf] %v2306_v26  ;;  %v2998_v38 = vadd.f32 %v13316_v55, %v2966_v35  ;;  %v3376_v51 = vadd.f32 %v13316_v55, %v3344_v13  ;;  %v12636_v26 = vld [vmem:[%s15335_s4 + $0x10] sm:$0xff]  ;;  %v10229_v35 = vor.u32 %v12224_v25, %v10226_v30  ;;  %v10232_v13 = vld [vmem:[#allocation2 + $0xa8] sm:$0xf] }
 0x22b   : > { %2716 = vst [vmem:[#allocation2 + $0x270] sm:$0xf] %v2684_v27  ;;  %v2243_v54 = vadd.f32 %v13316_v55, %v2211_v43  ;;  %v2621_v56 = vadd.f32 %v13316_v55, %v2589_v44  ;;  %3961 = vmatmul.bf16.vlgmr.msra.gmra.mxu0 %v10201_v31  ;;  %4050 = vmatmul.bf16.vlgmr.msra.gmra.mxu1 %v10205_v9  ;;  %v12226_v31 = vld [vmem:[#allocation2 + $0xcc] sm:$0xf0]  ;;  %v10224_v43 = vld [vmem:[#allocation2 + $0xa0] sm:$0xf] }
 0x22c   : > { %v3030_v57 = vmax.f32 %v2998_v38, 0.0  ;;  %v3408_v47 = vmax.f32 %v3376_v51, 0.0  ;;  %4139 = vmatmul.bf16.vlgmr.msra.gmra.mxu2 %v10209_v52  ;;  %4682 = vmatmul.bf16.vlgmr.msra.gmra.mxu3 %v10489_v53  ;;  %372 = vst [vmem:[#allocation2 + $0x3c0] sm:$0xf] %v12733_v4  ;;  %v10233_v37 = vor.u32 %v12226_v31, %v10232_v13  ;;  %v12225_v38 = vld [vmem:[#allocation2 + $0xc4] sm:$0xf0] }
 0x22d   : > { %v2275_v45 = vmax.f32 %v2243_v54, 0.0  ;;  %v2653_v58 = vmax.f32 %v2621_v56, 0.0  ;;  %6195 = vmatpush.bf16.msra.mxu2 %v13413_v16  ;;  %6284 = vmatpush.bf16.msra.mxu3 %v13448_v42  ;;  %373 = vst [vmem:[#allocation2 + $0x3e8] sm:$0xf] %v12733_v4  ;;  %v10225_v51 = vor.u32 %v12225_v38, %v10224_v43 }
 0x22e   : > { %v3062_v59 = vpack.c.bf16 %v3030_v57, %v3030_v57  ;;  %v3440_v63 = vpack.c.bf16 %v3408_v47, %v3408_v47  ;;  %6106 = vmatpush.bf16.msra.mxu1 %v13405_v5  ;;  %5568 = vmatpush.bf16.msra.mxu0 %v13448_v42  ;;  %374 = vst [vmem:[#allocation2 + $0x410] sm:$0xf] %v12733_v4  ;;  %v13710_v57 = vld [vmem:[%s15334_s3] ss:$0 sm:$0xff] }
 0x22f   : > { %v2307_v55 = vpack.c.bf16 %v2275_v45, %v2275_v45  ;;  %v2685_v12 = vpack.c.bf16 %v2653_v58, %v2653_v58  ;;  %v13598_v16 = vpop.f32.mrf.mxu2  ;;  %v13602_v5 = vpop.f32.mrf.mxu3  ;;  %375 = vst [vmem:[#allocation2 + $0x438] sm:$0xf] %v12733_v4 }
 0x230   : > { %3094 = vst [vmem:[#allocation2 + $0x274] sm:$0xf] %v3062_v59  ;;  %v13606_v42 = vpop.f32.mrf.mxu0  ;;  %v13608_v8 = vpop.f32.mrf.mxu1 }
 0x231   : > { %3472 = vst [vmem:[#allocation2 + $0x278] sm:$0xf] %v3440_v63  ;;  %6196 = vmatpush.bf16.msra.mxu2 %v13442_v36  ;;  %6285 = vmatpush.bf16.msra.mxu3 %v13473_v60  ;;  %v12221_v36 = vld [vmem:[#allocation2 + $0x54] sm:$0xf] }
 0x232   : > { %2339 = vst [vmem:[#allocation2 + $0x294] sm:$0xf] %v2307_v55  ;;  %6107 = vmatpush.bf16.msra.mxu1 %v13428_v29  ;;  %5569 = vmatpush.bf16.msra.mxu0 %v13473_v60  ;;  %v10214_v29 = vld [vmem:[#allocation2 + $0x78] sm:$0xf0]  ;;  %v12223_v60 = vld [vmem:[#allocation2 + $0x7c] sm:$0xf0] }
 0x233   : > { %2717 = vst [vmem:[#allocation2 + $0x298] sm:$0xf] %v2685_v12  ;;  %v10217_v3 = vor.u32 %v12221_v36, %v10214_v29  ;;  %v12276_v29 = vld [vmem:[#allocation2 + $0x118] sm:$0xf0] }
 0x234   : > { %376 = vst [vmem:[#allocation2 + $0x460] sm:$0xf] %v12733_v4 }
 0x235   : > { %6197 = vmatpush.bf16.msra.mxu2 %v13465_v41  ;;  %6286 = vmatpush.bf16.msra.mxu3 %v13497_v15  ;;  %377 = vst [vmem:[#allocation2 + $0x488] sm:$0xf] %v12733_v4  ;;  %v10220_v41 = vld [vmem:[#allocation2 + $0x58] sm:$0xf] }
 0x236   : > { %6108 = vmatpush.bf16.msra.mxu1 %v13455_v50  ;;  %5570 = vmatpush.bf16.msra.mxu0 %v13497_v15  ;;  %378 = vst [vmem:[#allocation2 + $0x4b0] sm:$0xf] %v12733_v4  ;;  %v10221_v7 = vor.u32 %v12223_v60, %v10220_v41  ;;  %v13736_v60 = vld [vmem:[#allocation2 + $0x144] sm:$0xf] }
 0x237   : > { %379 = vst [vmem:[#allocation2 + $0x4d8] sm:$0xf] %v12733_v4  ;;  %v13624_v50 = vpop.f32.mrf.mxu2  ;;  %v13626_v15 = vpop.f32.mrf.mxu3 }
 0x238   : > { %380 = vst [vmem:[#allocation2 + $0x24] sm:$0xf] %v12733_v4  ;;  %v13636_v11 = vpop.f32.mrf.mxu1 }
 0x239   : > { %6198 = vmatpush.bf16.msra.mxu2 %v13490_v10  ;;  %6287 = vmatpush.bf16.msra.mxu3 %v13517_v6  ;;  %381 = vst [vmem:[#allocation2 + $0x4c] sm:$0xf] %v12733_v4  ;;  %v12631_v10 = vld [vmem:[%s15335_s4 + $0x58] sm:$0xff] }
 0x23a   : > { %5571 = vmatpush.bf16.msra.mxu0 %v13517_v6  ;;  %6109 = vmatpush.bf16.msra.mxu1 %v13482_v1  ;;  %382 = vst [vmem:[#allocation2 + $0x74] sm:$0xf] %v12733_v4  ;;  %v13634_v6 = vpop.f32.mrf.mxu0  ;;  %v10213_v1 = vor.u32 %v12222_v46, %v10212_v14 }
 0x23b   : > { %4055 = vmatmul.bf16.gmra.mxu1 %v10217_v3  ;;  %383 = vst [vmem:[#allocation2 + $0x9c] sm:$0xf] %v12733_v4  ;;  %v13741_v3 = vld [vmem:[#allocation2 + $0x168] sm:$0xf0] }
 0x23c   : > { %4144 = vmatmul.bf16.gmra.mxu2 %v10221_v7  ;;  %4687 = vmatmul.bf16.gmra.mxu3 %v10501_v40  ;;  %384 = vst [vmem:[#allocation2 + $0xc4] sm:$0xf] %v12733_v4 }
 0x23d   : > { %6199 = vmatpush.bf16.msra.mxu2 %v12631_v10  ;;  %6288 = vmatpush.bf16.msra.mxu3 %v12632_v17  ;;  %385 = vst [vmem:[#allocation2 + $0xec] sm:$0xf] %v12733_v4 }
 0x23e   : > { %5572 = vmatpush.bf16.msra.mxu0 %v12632_v17  ;;  %6110 = vmatpush.bf16.msra.mxu1 %v12633_v18  ;;  %386 = vst [vmem:[#allocation2 + $0x114] sm:$0xf] %v12733_v4 }
 0x23f   : > { %3966 = vmatmul.bf16.gmra.mxu0 %v10213_v1  ;;  %387 = vst [vmem:[#allocation2 + $0x13c] sm:$0xf] %v12733_v4  ;;  %v2916_v23 = vpop.f32.mrf.mxu2  ;;  %v13656_v24 = vpop.f32.mrf.mxu3 }
 0x240   : > { %388 = vst [vmem:[#allocation2 + $0x164] sm:$0xf] %v12733_v4  ;;  %v13665_v28 = vpop.f32.mrf.mxu1 }
 0x241   : > { %6200 = vmatpush.bf16.msra.mxu2 %v12634_v21  ;;  %6289 = vmatpush.bf16.msra.mxu3 %v12635_v22  ;;  %389 = vst [vmem:[#allocation2 + $0x18c] sm:$0xf] %v12733_v4 }
 0x242   : > { %5573 = vmatpush.bf16.msra.mxu0 %v12635_v22  ;;  %6111 = vmatpush.bf16.msra.mxu1 %v12636_v26  ;;  %390 = vst [vmem:[#allocation2 + $0x1b4] sm:$0xf] %v12733_v4  ;;  %v13663_v27 = vpop.f32.mrf.mxu0 }
 0x243   : > { %391 = vst [vmem:[#allocation2 + $0x1dc] sm:$0xf] %v12733_v4 }
 0x244   : > { %392 = vst [vmem:[#allocation2 + $0x204] sm:$0xf] %v12733_v4 }
 0x245   : > { %6201 = vmatpush.bf16.msra.mxu2 %v13358_v49  ;;  %6290 = vmatpush.bf16.msra.mxu3 %v13333_v19  ;;  %393 = vst [vmem:[#allocation2 + $0x22c] sm:$0xf] %v12733_v4  ;;  %v10513_v49 = vor.u32 %v12273_v34, %v10512_v33 }
 0x246   : > { %5574 = vmatpush.bf16.msra.mxu0 %v13333_v19  ;;  %6112 = vmatpush.bf16.msra.mxu1 %v13338_v20  ;;  %394 = vst [vmem:[#allocation2 + $0x254] sm:$0xf] %v12733_v4  ;;  %v13681_v19 = vld [vmem:[%s15333_s2] ss:$0 sm:$0xff] }
 0x247   : > { %395 = vst [vmem:[#allocation2 + $0x27c] sm:$0xf] %v12733_v4  ;;  %v2967_v39 = vmul.f32 %v13681_v19, %v13598_v16  ;;  %v3345_v20 = vmul.f32 %v13681_v19, %v13602_v5  ;;  %v2590_v44 = vmul.f32 %v13681_v19, %v13608_v8  ;;  %v2918_v9 = vpop.f32.mrf.mxu2  ;;  %v13692_v48 = vpop.f32.mrf.mxu3  ;;  %v2968_v52 = vmul.f32 %v13681_v19, %v13624_v50  ;;  %v13727_v16 = vld [vmem:[#allocation2 + $0xf8] sm:$0xf]  ;;  %v13729_v5 = vld [vmem:[#allocation2 + $0x11c] sm:$0xf0] }
 0x248   : > { %396 = vst [vmem:[#allocation2 + $0x2a4] sm:$0xf] %v12733_v4  ;;  %v3346_v53 = vmul.f32 %v13681_v19, %v13626_v15  ;;  %v13702_v56 = vpop.f32.mrf.mxu1  ;;  %v2213_v63 = vmul.f32 %v13681_v19, %v13634_v6  ;;  %v2591_v55 = vmul.f32 %v13681_v19, %v13636_v11  ;;  %v2969_v12 = vmul.f32 %v13681_v19, %v2916_v23 }
 0x249   : > { %6202 = vmatpush.bf16.msra.mxu2 %v13436_v32  ;;  %6291 = vmatpush.bf16.msra.mxu3 %v13392_v61  ;;  %v2212_v32 = vmul.f32 %v13681_v19, %v13606_v42  ;;  %397 = vst [vmem:[#allocation2 + $0x2cc] sm:$0xf] %v12733_v4  ;;  %v2999_v47 = vadd.f32 %v13710_v57, %v2967_v39  ;;  %v13731_v42 = vld [vmem:[#allocation2 + $0xf4] sm:$0xf] }
 0x24a   : > { %398 = vst [vmem:[#allocation2 + $0x2f4] sm:$0xf] %v12733_v4  ;;  %v13700_v54 = vpop.f32.mrf.mxu0  ;;  %6113 = vmatpush.bf16.msra.mxu1 %v13397_v62  ;;  %5575 = vmatpush.bf16.msra.mxu0 %v13392_v61  ;;  %v3377_v45 = vadd.f32 %v13710_v57, %v3345_v20  ;;  %v2622_v59 = vadd.f32 %v13710_v57, %v2590_v44  ;;  %v13717_v62 = vld [vmem:[#allocation2 + $0xf4] sm:$0xf]  ;;  %v13719_v61 = vld [vmem:[#allocation2 + $0x118] sm:$0xf0] }
 0x24b   : > { %4060 = vmatmul.bf16.gmra.mxu1 %v10229_v35  ;;  %399 = vst [vmem:[#allocation2 + $0x31c] sm:$0xf] %v12733_v4  ;;  %v2244_v58 = vadd.f32 %v13710_v57, %v2212_v32  ;;  %v3000_v8 = vadd.f32 %v13710_v57, %v2968_v52  ;;  %v3378_v36 = vadd.f32 %v13710_v57, %v3346_v53  ;;  %v3031_v0 = vmax.f32 %v2999_v47, 0.0  ;;  %v10236_v32 = vld [vmem:[#allocation2 + $0xf0] sm:$0xf] }
 0x24c   : > { %4149 = vmatmul.bf16.gmra.mxu2 %v10233_v37  ;;  %4692 = vmatmul.bf16.gmra.mxu3 %v10513_v49  ;;  %400 = vst [vmem:[#allocation2 + $0x344] sm:$0xf] %v12733_v4  ;;  %v10241_v2 = vor.u32 %v13717_v62, %v13719_v61  ;;  %v3409_v41 = vmax.f32 %v3377_v45, 0.0  ;;  %v2654_v40 = vmax.f32 %v2622_v59, 0.0  ;;  %v10245_v10 = vor.u32 %v13729_v5, %v13727_v16  ;;  %v12228_v44 = vld [vmem:[#allocation2 + $0x114] sm:$0xf0] }
 0x24d   : > { %401 = vst [vmem:[#allocation2 + $0x36c] sm:$0xf] %v12733_v4  ;;  %v2276_v7 = vmax.f32 %v2244_v58, 0.0  ;;  %v2245_v6 = vadd.f32 %v13710_v57, %v2213_v63  ;;  %v2623_v11 = vadd.f32 %v13710_v57, %v2591_v55  ;;  %v3001_v14 = vadd.f32 %v13710_v57, %v2969_v12 }
 0x24e   : > { %402 = vst [vmem:[#allocation2 + $0x394] sm:$0xf] %v12733_v4  ;;  %v3347_v46 = vmul.f32 %v13681_v19, %v13656_v24  ;;  %v3032_v17 = vmax.f32 %v3000_v8, 0.0  ;;  %v3410_v1 = vmax.f32 %v3378_v36, 0.0  ;;  %v2214_v18 = vmul.f32 %v13681_v19, %v13663_v27 }
 0x24f   : > { %3971 = vmatmul.bf16.gmra.mxu0 %v10225_v51  ;;  %403 = vst [vmem:[#allocation2 + $0x3bc] sm:$0xf] %v12733_v4  ;;  %v2921_v50 = vpop.f32.mrf.mxu2  ;;  %v3299_v15 = vpop.f32.mrf.mxu3  ;;  %v10525_v23 = vor.u32 %v12276_v29, %v13731_v42  ;;  %v3063_v25 = vpack.c.bf16 %v3031_v0, %v3031_v0  ;;  %v2592_v26 = vmul.f32 %v13681_v19, %v13665_v28  ;;  %v2277_v35 = vmax.f32 %v2245_v6, 0.0 }
 0x250   : > { %404 = vst [vmem:[#allocation2 + $0x3e4] sm:$0xf] %v12733_v4  ;;  %v2545_v22 = vpop.f32.mrf.mxu1  ;;  %v2970_v30 = vmul.f32 %v13681_v19, %v2918_v9  ;;  %v10253_v24 = vor.u32 %v13736_v60, %v13741_v3  ;;  %v3441_v31 = vpack.c.bf16 %v3409_v41, %v3409_v41  ;;  %v2308_v33 = vpack.c.bf16 %v2276_v7, %v2276_v7 }
 0x251   : > { %405 = vst [vmem:[#allocation2 + $0x40c] sm:$0xf] %v12733_v4  ;;  %v2686_v27 = vpack.c.bf16 %v2654_v40, %v2654_v40  ;;  %v3348_v34 = vmul.f32 %v13681_v19, %v13692_v48  ;;  %v2655_v13 = vmax.f32 %v2623_v11, 0.0  ;;  %v3033_v37 = vmax.f32 %v3001_v14, 0.0 }
 0x252   : > { %406 = vst [vmem:[#allocation2 + $0x434] sm:$0xf] %v12733_v4  ;;  %v2167_v21 = vpop.f32.mrf.mxu0  ;;  %v3379_v28 = vadd.f32 %v13710_v57, %v3347_v46  ;;  %v3064_v49 = vpack.c.bf16 %v3032_v17, %v3032_v17  ;;  %v3442_v39 = vpack.c.bf16 %v3410_v1, %v3410_v1  ;;  %v2246_v43 = vadd.f32 %v13710_v57, %v2214_v18  ;;  %v12232_v1 = vld [vmem:[#allocation2 + $0x16c] sm:$0xf0] }
 0x253   : > { %407 = vst [vmem:[#allocation2 + $0x45c] sm:$0xf] %v12733_v4  ;;  %v2215_v20 = vmul.f32 %v13681_v19, %v13700_v54  ;;  %v2624_v9 = vadd.f32 %v13710_v57, %v2592_v26  ;;  %v3002_v48 = vadd.f32 %v13710_v57, %v2970_v30  ;;  %v2593_v38 = vmul.f32 %v13681_v19, %v13702_v56 }
 0x254   : > { %408 = vst [vmem:[#allocation2 + $0x484] sm:$0xf] %v12733_v4  ;;  %v3380_v51 = vadd.f32 %v13710_v57, %v3348_v34  ;;  %v2971_v52 = vmul.f32 %v13681_v19, %v2921_v50  ;;  %v3349_v53 = vmul.f32 %v13681_v19, %v3299_v15  ;;  %v3411_v45 = vmax.f32 %v3379_v28, 0.0  ;;  %v10256_v34 = vld [vmem:[#allocation2 + $0x148] sm:$0xf] }
 0x255   : > { %409 = vst [vmem:[#allocation2 + $0x4ac] sm:$0xf] %v12733_v4  ;;  %v2216_v58 = vmul.f32 %v13681_v19, %v2167_v21  ;;  %v10237_v59 = vor.u32 %v12228_v44, %v10236_v32  ;;  %v2687_v56 = vpack.c.bf16 %v2655_v13, %v2655_v13  ;;  %v3065_v62 = vpack.c.bf16 %v3033_v37, %v3033_v37 }
 0x256   : > { %410 = vst [vmem:[#allocation2 + $0x4d4] sm:$0xf] %v12733_v4  ;;  %v2278_v61 = vmax.f32 %v2246_v43, 0.0  ;;  %v2247_v63 = vadd.f32 %v13710_v57, %v2215_v20  ;;  %v2656_v16 = vmax.f32 %v2624_v9, 0.0  ;;  %v3034_v5 = vmax.f32 %v3002_v48, 0.0 }
 0x257   : > { %411 = vst [vmem:[#allocation2 + $0x4fc] sm:$0xf] %v12733_v4  ;;  %v2923_v54 = vpop.f32.mrf.mxu2  ;;  %v3301_v47 = vpop.f32.mrf.mxu3  ;;  %v2309_v4 = vpack.c.bf16 %v2277_v35, %v2277_v35  ;;  %v2625_v42 = vadd.f32 %v13710_v57, %v2593_v38  ;;  %v2594_v8 = vmul.f32 %v13681_v19, %v2545_v22  ;;  %v3412_v36 = vmax.f32 %v3380_v51, 0.0  ;;  %v10536_v43 = vld [vmem:[#allocation2 + $0x144] sm:$0xf] }
 0x258   : > { %3095 = vst [vmem:[#allocation2 + $0x29c] sm:$0xf] %v3063_v25  ;;  %v2548_v12 = vpop.f32.mrf.mxu1  ;;  %v3003_v29 = vadd.f32 %v13710_v57, %v2971_v52  ;;  %v3381_v0 = vadd.f32 %v13710_v57, %v3349_v53  ;;  %v3443_v41 = vpack.c.bf16 %v3411_v45, %v3411_v45  ;;  %v2248_v7 = vadd.f32 %v13710_v57, %v2216_v58  ;;  %v12279_v20 = vld [vmem:[#allocation2 + $0x168] sm:$0xf0]  ;;  %v10248_v45 = vld [vmem:[#allocation2 + $0x140] sm:$0xf] }
 0x259   : > { %3473 = vst [vmem:[#allocation2 + $0x2a0] sm:$0xf] %v3441_v31  ;;  %v3350_v40 = vmul.f32 %v13681_v19, %v3301_v47  ;;  %v2310_v50 = vpack.c.bf16 %v2278_v61, %v2278_v61  ;;  %v2279_v15 = vmax.f32 %v2247_v63, 0.0  ;;  %v2595_v6 = vmul.f32 %v13681_v19, %v2548_v12  ;;  %v12231_v63 = vld [vmem:[#allocation2 + $0x164] sm:$0xf0] }
 0x25a   : > { %2340 = vst [vmem:[#allocation2 + $0x2bc] sm:$0xf] %v2308_v33  ;;  %v2170_v55 = vpop.f32.mrf.mxu0  ;;  %v2688_v11 = vpack.c.bf16 %v2656_v16, %v2656_v16  ;;  %v3066_v14 = vpack.c.bf16 %v3034_v5, %v3034_v5  ;;  %v2657_v46 = vmax.f32 %v2625_v42, 0.0  ;;  %v2626_v17 = vadd.f32 %v13710_v57, %v2594_v8 }
 0x25b   : > { %4065 = vmatmul.bf16.gmra.mxu1 %v10241_v2  ;;  %2718 = vst [vmem:[#allocation2 + $0x2c0] sm:$0xf] %v2686_v27  ;;  %v2972_v2 = vmul.f32 %v13681_v19, %v2923_v54  ;;  %v3444_v18 = vpack.c.bf16 %v3412_v36, %v3412_v36  ;;  %v3035_v21 = vmax.f32 %v3003_v29, 0.0  ;;  %v3413_v22 = vmax.f32 %v3381_v0, 0.0 }
 0x25c   : > { %4154 = vmatmul.bf16.gmra.mxu2 %v10245_v10  ;;  %4697 = vmatmul.bf16.gmra.mxu3 %v10525_v23  ;;  %3096 = vst [vmem:[#allocation2 + $0x2c4] sm:$0xf] %v3064_v49  ;;  %v2217_v10 = vmul.f32 %v13681_v19, %v2170_v55  ;;  %v2280_v30 = vmax.f32 %v2248_v7, 0.0  ;;  %v3382_v31 = vadd.f32 %v13710_v57, %v3350_v40  ;;  %v2658_v44 = vmax.f32 %v2626_v17, 0.0 }
 0x25d   : > { %3474 = vst [vmem:[#allocation2 + $0x2c8] sm:$0xf] %v3442_v39  ;;  %v3004_v23 = vadd.f32 %v13710_v57, %v2972_v2  ;;  %v2311_v35 = vpack.c.bf16 %v2279_v15, %v2279_v15  ;;  %v2627_v37 = vadd.f32 %v13710_v57, %v2595_v6  ;;  %v10257_v39 = vor.u32 %v12232_v1, %v10256_v34 }
 0x25e   : > { %2341 = vst [vmem:[#allocation2 + $0x2e4] sm:$0xf] %v2309_v4  ;;  %v2249_v13 = vadd.f32 %v13710_v57, %v2217_v10  ;;  %v2689_v32 = vpack.c.bf16 %v2657_v46, %v2657_v46  ;;  %v3067_v38 = vpack.c.bf16 %v3035_v21, %v3035_v21  ;;  %v3445_v54 = vpack.c.bf16 %v3413_v22, %v3413_v22 }
 0x25f   : > { %3976 = vmatmul.bf16.gmra.mxu0 %v10237_v59  ;;  %2719 = vst [vmem:[#allocation2 + $0x2e8] sm:$0xf] %v2687_v56  ;;  %v2926_v25 = vpop.f32.mrf.mxu2  ;;  %v3304_v26 = vpop.f32.mrf.mxu3  ;;  %v3036_v51 = vmax.f32 %v3004_v23, 0.0  ;;  %v2312_v47 = vpack.c.bf16 %v2280_v30, %v2280_v30  ;;  %v3414_v4 = vmax.f32 %v3382_v31, 0.0  ;;  %v10537_v58 = vor.u32 %v12279_v20, %v10536_v43  ;;  %v12235_v43 = vld [vmem:[#allocation2 + $0x1bc] sm:$0xf0] }
 0x260   : > { %3097 = vst [vmem:[#allocation2 + $0x2ec] sm:$0xf] %v3065_v62  ;;  %v2973_v33 = vmul.f32 %v13681_v19, %v2926_v25  ;;  %v3351_v27 = vmul.f32 %v13681_v19, %v3304_v26  ;;  %v2550_v49 = vpop.f32.mrf.mxu1  ;;  %v2281_v59 = vmax.f32 %v2249_v13, 0.0  ;;  %v2659_v56 = vmax.f32 %v2627_v37, 0.0  ;;  %v10262_v13 = vld [vmem:[#allocation2 + $0x1b8] sm:$0xf0] }
 0x261   : > { %3475 = vst [vmem:[#allocation2 + $0x2f0] sm:$0xf] %v3443_v41  ;;  %v2596_v48 = vmul.f32 %v13681_v19, %v2550_v49  ;;  %v2690_v55 = vpack.c.bf16 %v2658_v44, %v2658_v44  ;;  %v3068_v12 = vpack.c.bf16 %v3036_v51, %v3036_v51  ;;  %v3446_v36 = vpack.c.bf16 %v3414_v4, %v3414_v4  ;;  %v10260_v51 = vld [vmem:[#allocation2 + $0x190] sm:$0xf] }
 0x262   : > { %2342 = vst [vmem:[#allocation2 + $0x30c] sm:$0xf] %v2310_v50  ;;  %v2172_v28 = vpop.f32.mrf.mxu0  ;;  %v3005_v52 = vadd.f32 %v13710_v57, %v2973_v33  ;;  %v3383_v53 = vadd.f32 %v13710_v57, %v3351_v27  ;;  %v10249_v2 = vor.u32 %v12231_v63, %v10248_v45  ;;  %v2313_v41 = vpack.c.bf16 %v2281_v59, %v2281_v59 }
 0x263   : > { %2720 = vst [vmem:[#allocation2 + $0x310] sm:$0xf] %v2688_v11  ;;  %v2218_v9 = vmul.f32 %v13681_v19, %v2172_v28  ;;  %v2628_v61 = vadd.f32 %v13710_v57, %v2596_v48  ;;  %v2691_v7 = vpack.c.bf16 %v2659_v56, %v2659_v56  ;;  %v10548_v48 = vld [vmem:[#allocation2 + $0x194] sm:$0xf] }
 0x264   : > { %3098 = vst [vmem:[#allocation2 + $0x314] sm:$0xf] %v3066_v14  ;;  %v3037_v16 = vmax.f32 %v3005_v52, 0.0  ;;  %v3415_v5 = vmax.f32 %v3383_v53, 0.0  ;;  %v10268_v53 = vld [vmem:[#allocation2 + $0x198] sm:$0xf] }
 0x265   : > { %3476 = vst [vmem:[#allocation2 + $0x318] sm:$0xf] %v3444_v18  ;;  %v2250_v62 = vadd.f32 %v13710_v57, %v2218_v9  ;;  %v2660_v3 = vmax.f32 %v2628_v61, 0.0  ;;  %v10269_v59 = vor.u32 %v12235_v43, %v10268_v53 }
 0x266   : > { %2343 = vst [vmem:[#allocation2 + $0x334] sm:$0xf] %v2311_v35  ;;  %v3069_v11 = vpack.c.bf16 %v3037_v16, %v3037_v16  ;;  %v3447_v14 = vpack.c.bf16 %v3415_v5, %v3415_v5  ;;  %v12233_v35 = vld [vmem:[#allocation2 + $0x194] sm:$0xf] }
 0x267   : > { %2721 = vst [vmem:[#allocation2 + $0x338] sm:$0xf] %v2689_v32  ;;  %v2928_v42 = vpop.f32.mrf.mxu2  ;;  %v3306_v8 = vpop.f32.mrf.mxu3  ;;  %v2282_v60 = vmax.f32 %v2250_v62, 0.0  ;;  %v2692_v22 = vpack.c.bf16 %v2660_v3, %v2660_v3  ;;  %v10265_v52 = vor.u32 %v12233_v35, %v10262_v13  ;;  %v10560_v13 = vld [vmem:[#allocation2 + $0x1e4] sm:$0xf] }
 0x268   : > { %3099 = vst [vmem:[#allocation2 + $0x33c] sm:$0xf] %v3067_v38  ;;  %v2974_v29 = vmul.f32 %v13681_v19, %v2928_v42  ;;  %v3352_v0 = vmul.f32 %v13681_v19, %v3306_v8  ;;  %v2553_v40 = vpop.f32.mrf.mxu1  ;;  %v12282_v38 = vld [vmem:[#allocation2 + $0x1b8] sm:$0xf0] }
 0x269   : > { %3477 = vst [vmem:[#allocation2 + $0x340] sm:$0xf] %v3445_v54  ;;  %v2597_v6 = vmul.f32 %v13681_v19, %v2553_v40  ;;  %v2314_v21 = vpack.c.bf16 %v2282_v60, %v2282_v60  ;;  %v10549_v56 = vor.u32 %v12282_v38, %v10548_v48 }
 0x26a   : > { %2344 = vst [vmem:[#allocation2 + $0x35c] sm:$0xf] %v2312_v47  ;;  %v3006_v50 = vadd.f32 %v13710_v57, %v2974_v29  ;;  %v3384_v15 = vadd.f32 %v13710_v57, %v3352_v0 }
 0x26b   : > { %4070 = vmatmul.bf16.gmra.mxu1 %v10253_v24  ;;  %v2175_v24 = vpop.f32.mrf.mxu0  ;;  %2722 = vst [vmem:[#allocation2 + $0x360] sm:$0xf] %v2690_v55  ;;  %v2629_v18 = vadd.f32 %v13710_v57, %v2597_v6 }
 0x26c   : > { %4159 = vmatmul.bf16.gmra.mxu2 %v10257_v39  ;;  %4702 = vmatmul.bf16.gmra.mxu3 %v10537_v58  ;;  %v2219_v10 = vmul.f32 %v13681_v19, %v2175_v24  ;;  %3100 = vst [vmem:[#allocation2 + $0x364] sm:$0xf] %v3068_v12  ;;  %v3038_v46 = vmax.f32 %v3006_v50, 0.0  ;;  %v3416_v17 = vmax.f32 %v3384_v15, 0.0  ;;  %v12234_v58 = vld [vmem:[#allocation2 + $0x1b4] sm:$0xf0] }
 0x26d   : > { %3478 = vst [vmem:[#allocation2 + $0x368] sm:$0xf] %v3446_v36  ;;  %v2661_v25 = vmax.f32 %v2629_v18, 0.0  ;;  %v10261_v5 = vor.u32 %v12234_v58, %v10260_v51 }
 0x26e   : > { %v2251_v1 = vadd.f32 %v13710_v57, %v2219_v10  ;;  %2345 = vst [vmem:[#allocation2 + $0x384] sm:$0xf] %v2313_v41  ;;  %v3070_v26 = vpack.c.bf16 %v3038_v46, %v3038_v46  ;;  %v3448_v33 = vpack.c.bf16 %v3416_v17, %v3416_v17 }
 0x26f   : > { %3981 = vmatmul.bf16.gmra.mxu0 %v10249_v2  ;;  %2723 = vst [vmem:[#allocation2 + $0x388] sm:$0xf] %v2691_v7  ;;  %v2931_v30 = vpop.f32.mrf.mxu2  ;;  %v3309_v31 = vpop.f32.mrf.mxu3  ;;  %v2693_v28 = vpack.c.bf16 %v2661_v25, %v2661_v25  ;;  %v10274_v25 = vld [vmem:[#allocation2 + $0x208] sm:$0xf0] }
 0x270   : > { %v2283_v23 = vmax.f32 %v2251_v1, 0.0  ;;  %3101 = vst [vmem:[#allocation2 + $0x38c] sm:$0xf] %v3069_v11  ;;  %v2975_v27 = vmul.f32 %v13681_v19, %v2931_v30  ;;  %v3353_v34 = vmul.f32 %v13681_v19, %v3309_v31  ;;  %v2555_v39 = vpop.f32.mrf.mxu1  ;;  %v12238_v31 = vld [vmem:[#allocation2 + $0x20c] sm:$0xf0] }
 0x271   : > { %3479 = vst [vmem:[#allocation2 + $0x390] sm:$0xf] %v3447_v14  ;;  %v2598_v9 = vmul.f32 %v13681_v19, %v2555_v39 }
 0x272   : > { %2346 = vst [vmem:[#allocation2 + $0x3ac] sm:$0xf] %v2314_v21  ;;  %v2315_v37 = vpack.c.bf16 %v2283_v23, %v2283_v23  ;;  %v3007_v20 = vadd.f32 %v13710_v57, %v2975_v27  ;;  %v3385_v32 = vadd.f32 %v13710_v57, %v3353_v34  ;;  %v12236_v23 = vld [vmem:[#allocation2 + $0x1e4] sm:$0xf] }
 0x273   : > { %v2177_v49 = vpop.f32.mrf.mxu0  ;;  %2724 = vst [vmem:[#allocation2 + $0x3b0] sm:$0xf] %v2692_v22  ;;  %v2630_v45 = vadd.f32 %v13710_v57, %v2598_v9  ;;  %v12237_v9 = vld [vmem:[#allocation2 + $0x204] sm:$0xf0] }
 0x274   : > { %v2220_v44 = vmul.f32 %v13681_v19, %v2177_v49  ;;  %3102 = vst [vmem:[#allocation2 + $0x3b4] sm:$0xf] %v3070_v26  ;;  %v3039_v54 = vmax.f32 %v3007_v20, 0.0  ;;  %v3417_v47 = vmax.f32 %v3385_v32, 0.0  ;;  %v10280_v49 = vld [vmem:[#allocation2 + $0x1e8] sm:$0xf] }
 0x275   : > { %3480 = vst [vmem:[#allocation2 + $0x3b8] sm:$0xf] %v3448_v33  ;;  %v2662_v55 = vmax.f32 %v2630_v45, 0.0  ;;  %v10281_v48 = vor.u32 %v12238_v31, %v10280_v49 }
 0x276   : > { %v2252_v4 = vadd.f32 %v13710_v57, %v2220_v44  ;;  %2347 = vst [vmem:[#allocation2 + $0x3d4] sm:$0xf] %v2315_v37  ;;  %v3071_v62 = vpack.c.bf16 %v3039_v54, %v3039_v54  ;;  %v3449_v61 = vpack.c.bf16 %v3417_v47, %v3417_v47  ;;  %v12285_v37 = vld [vmem:[#allocation2 + $0x208] sm:$0xf0]  ;;  %v10272_v44 = vld [vmem:[#allocation2 + $0x1e0] sm:$0xf] }
 0x277   : > { %2725 = vst [vmem:[#allocation2 + $0x3d8] sm:$0xf] %v2693_v28  ;;  %v2933_v12 = vpop.f32.mrf.mxu2  ;;  %v3311_v16 = vpop.f32.mrf.mxu3  ;;  %v2694_v8 = vpack.c.bf16 %v2662_v55, %v2662_v55  ;;  %v10277_v28 = vor.u32 %v12236_v23, %v10274_v25  ;;  %v10561_v38 = vor.u32 %v12285_v37, %v10560_v13  ;;  %v10273_v45 = vor.u32 %v12237_v9, %v10272_v44  ;;  %v12288_v23 = vld [vmem:[#allocation2 + $0x258] sm:$0xf0] }
 0x278   : > { %v2284_v63 = vmax.f32 %v2252_v4, 0.0  ;;  %3103 = vst [vmem:[#allocation2 + $0x3dc] sm:$0xf] %v3071_v62  ;;  %v2976_v36 = vmul.f32 %v13681_v19, %v2933_v12  ;;  %v3354_v29 = vmul.f32 %v13681_v19, %v3311_v16  ;;  %v2558_v2 = vpop.f32.mrf.mxu1 }
 0x279   : > { %3481 = vst [vmem:[#allocation2 + $0x3e0] sm:$0xf] %v3449_v61  ;;  %v2599_v3 = vmul.f32 %v13681_v19, %v2558_v2 }
 0x27a   : > { %v2316_v42 = vpack.c.bf16 %v2284_v63, %v2284_v63  ;;  %v3008_v41 = vadd.f32 %v13710_v57, %v2976_v36  ;;  %v3386_v7 = vadd.f32 %v13710_v57, %v3354_v29  ;;  %2726 = vst [vmem:[#allocation2 + $0x400] sm:$0xf] %v2694_v8 }
 0x27b   : > { %4075 = vmatmul.bf16.gmra.mxu1 %v10265_v52  ;;  %v2180_v0 = vpop.f32.mrf.mxu0  ;;  %v2631_v15 = vadd.f32 %v13710_v57, %v2599_v3 }
 0x27c   : > { %4164 = vmatmul.bf16.gmra.mxu2 %v10269_v59  ;;  %4707 = vmatmul.bf16.gmra.mxu3 %v10549_v56  ;;  %2348 = vst [vmem:[#allocation2 + $0x3fc] sm:$0xf] %v2316_v42  ;;  %v2221_v60 = vmul.f32 %v13681_v19, %v2180_v0  ;;  %v3040_v24 = vmax.f32 %v3008_v41, 0.0  ;;  %v3418_v40 = vmax.f32 %v3386_v7, 0.0 }
 0x27d   : > { %v2663_v14 = vmax.f32 %v2631_v15, 0.0 }
 0x27e   : > { %v2253_v50 = vadd.f32 %v13710_v57, %v2221_v60  ;;  %v3072_v10 = vpack.c.bf16 %v3040_v24, %v3040_v24  ;;  %v3450_v6 = vpack.c.bf16 %v3418_v40, %v3418_v40 }
 0x27f   : > { %3986 = vmatmul.bf16.gmra.mxu0 %v10261_v5  ;;  %v2936_v46 = vpop.f32.mrf.mxu2  ;;  %v3314_v17 = vpop.f32.mrf.mxu3  ;;  %v2695_v18 = vpack.c.bf16 %v2663_v14, %v2663_v14 }
 0x280   : > { %v2285_v11 = vmax.f32 %v2253_v50, 0.0  ;;  %3104 = vst [vmem:[#allocation2 + $0x404] sm:$0xf] %v3072_v10  ;;  %v2977_v21 = vmul.f32 %v13681_v19, %v2936_v46  ;;  %v3355_v22 = vmul.f32 %v13681_v19, %v3314_v17  ;;  %v2560_v30 = vpop.f32.mrf.mxu1  ;;  %v12239_v10 = vld [vmem:[#allocation2 + $0x234] sm:$0xf] }
 0x281   : > { %3482 = vst [vmem:[#allocation2 + $0x408] sm:$0xf] %v3450_v6  ;;  %v2600_v35 = vmul.f32 %v13681_v19, %v2560_v30  ;;  %v10286_v6 = vld [vmem:[#allocation2 + $0x258] sm:$0xf0]  ;;  %v12241_v46 = vld [vmem:[#allocation2 + $0x25c] sm:$0xf0] }
 0x282   : > { %v2317_v1 = vpack.c.bf16 %v2285_v11, %v2285_v11  ;;  %v3009_v33 = vadd.f32 %v13710_v57, %v2977_v21  ;;  %v3387_v27 = vadd.f32 %v13710_v57, %v3355_v22  ;;  %2727 = vst [vmem:[#allocation2 + $0x428] sm:$0xf] %v2695_v18  ;;  %v10572_v22 = vld [vmem:[#allocation2 + $0x234] sm:$0xf]  ;;  %v10289_v25 = vor.u32 %v12239_v10, %v10286_v6  ;;  %v12291_v10 = vld [vmem:[#allocation2 + $0x2a8] sm:$0xf0] }
 0x283   : > { %v2182_v26 = vpop.f32.mrf.mxu0  ;;  %v2632_v32 = vadd.f32 %v13710_v57, %v2600_v35  ;;  %v12240_v35 = vld [vmem:[#allocation2 + $0x254] sm:$0xf0]  ;;  %v10573_v37 = vor.u32 %v12288_v23, %v10572_v22 }
 0x284   : > { %2349 = vst [vmem:[#allocation2 + $0x424] sm:$0xf] %v2317_v1  ;;  %v2222_v34 = vmul.f32 %v13681_v19, %v2182_v26  ;;  %v3041_v39 = vmax.f32 %v3009_v33, 0.0  ;;  %v3419_v43 = vmax.f32 %v3387_v27, 0.0  ;;  %v10292_v26 = vld [vmem:[#allocation2 + $0x238] sm:$0xf] }
 0x285   : > { %v2664_v54 = vmax.f32 %v2632_v32, 0.0  ;;  %v10293_v13 = vor.u32 %v12241_v46, %v10292_v26 }
 0x286   : > { %v2254_v20 = vadd.f32 %v13710_v57, %v2222_v34  ;;  %v3073_v51 = vpack.c.bf16 %v3041_v39, %v3041_v39  ;;  %v3451_v52 = vpack.c.bf16 %v3419_v43, %v3419_v43  ;;  %v10284_v34 = vld [vmem:[#allocation2 + $0x230] sm:$0xf] }
 0x287   : > { %v2938_v47 = vpop.f32.mrf.mxu2  ;;  %v3316_v4 = vpop.f32.mrf.mxu3  ;;  %v2696_v59 = vpack.c.bf16 %v2664_v54, %v2664_v54  ;;  %v10285_v44 = vor.u32 %v12240_v35, %v10284_v34 }
 0x288   : > { %v2286_v53 = vmax.f32 %v2254_v20, 0.0  ;;  %3105 = vst [vmem:[#allocation2 + $0x42c] sm:$0xf] %v3073_v51  ;;  %v2978_v56 = vmul.f32 %v13681_v19, %v2938_v47  ;;  %v3356_v62 = vmul.f32 %v13681_v19, %v3316_v4  ;;  %v2563_v63 = vpop.f32.mrf.mxu1 }
 0x289   : > { %3483 = vst [vmem:[#allocation2 + $0x430] sm:$0xf] %v3451_v52  ;;  %v2601_v5 = vmul.f32 %v13681_v19, %v2563_v63 }
 0x28a   : > { %v2318_v58 = vpack.c.bf16 %v2286_v53, %v2286_v53  ;;  %v3010_v55 = vadd.f32 %v13710_v57, %v2978_v56  ;;  %v3388_v12 = vadd.f32 %v13710_v57, %v3356_v62  ;;  %2728 = vst [vmem:[#allocation2 + $0x450] sm:$0xf] %v2696_v59 }
 0x28b   : > { %4080 = vmatmul.bf16.gmra.mxu1 %v10277_v28  ;;  %v2185_v61 = vpop.f32.mrf.mxu0  ;;  %v2633_v29 = vadd.f32 %v13710_v57, %v2601_v5 }
 0x28c   : > { %4169 = vmatmul.bf16.gmra.mxu2 %v10281_v48  ;;  %4712 = vmatmul.bf16.gmra.mxu3 %v10561_v38  ;;  %2350 = vst [vmem:[#allocation2 + $0x44c] sm:$0xf] %v2318_v58  ;;  %v2223_v16 = vmul.f32 %v13681_v19, %v2185_v61  ;;  %v3042_v42 = vmax.f32 %v3010_v55, 0.0  ;;  %v3420_v8 = vmax.f32 %v3388_v12, 0.0 }
 0x28d   : > { %v2665_v7 = vmax.f32 %v2633_v29, 0.0 }
 0x28e   : > { %v2255_v36 = vadd.f32 %v13710_v57, %v2223_v16  ;;  %v3074_v0 = vpack.c.bf16 %v3042_v42, %v3042_v42  ;;  %v3452_v2 = vpack.c.bf16 %v3420_v8, %v3420_v8 }
 0x28f   : > { %3991 = vmatmul.bf16.gmra.mxu0 %v10273_v45  ;;  %v2941_v60 = vpop.f32.mrf.mxu2  ;;  %v3319_v3 = vpop.f32.mrf.mxu3  ;;  %v2697_v40 = vpack.c.bf16 %v2665_v7, %v2665_v7 }
 0x290   : > { %v2287_v41 = vmax.f32 %v2255_v36, 0.0  ;;  %3106 = vst [vmem:[#allocation2 + $0x454] sm:$0xf] %v3074_v0  ;;  %v2979_v50 = vmul.f32 %v13681_v19, %v2941_v60  ;;  %v3357_v15 = vmul.f32 %v13681_v19, %v3319_v3  ;;  %v2565_v14 = vpop.f32.mrf.mxu1  ;;  %v12242_v0 = vld [vmem:[#allocation2 + $0x284] sm:$0xf] }
 0x291   : > { %3484 = vst [vmem:[#allocation2 + $0x458] sm:$0xf] %v3452_v2  ;;  %v2602_v21 = vmul.f32 %v13681_v19, %v2565_v14  ;;  %v10298_v2 = vld [vmem:[#allocation2 + $0x2a8] sm:$0xf0]  ;;  %v12244_v60 = vld [vmem:[#allocation2 + $0x2ac] sm:$0xf0] }
 0x292   : > { %v2319_v24 = vpack.c.bf16 %v2287_v41, %v2287_v41  ;;  %v3011_v17 = vadd.f32 %v13710_v57, %v2979_v50  ;;  %v3389_v1 = vadd.f32 %v13710_v57, %v3357_v15  ;;  %2729 = vst [vmem:[#allocation2 + $0x478] sm:$0xf] %v2697_v40  ;;  %v10584_v15 = vld [vmem:[#allocation2 + $0x284] sm:$0xf]  ;;  %v10301_v6 = vor.u32 %v12242_v0, %v10298_v2 }
 0x293   : > { %v2187_v11 = vpop.f32.mrf.mxu0  ;;  %v2634_v27 = vadd.f32 %v13710_v57, %v2602_v21  ;;  %v12243_v21 = vld [vmem:[#allocation2 + $0x2a4] sm:$0xf0]  ;;  %v10585_v23 = vor.u32 %v12291_v10, %v10584_v15 }
 0x294   : > { %2351 = vst [vmem:[#allocation2 + $0x474] sm:$0xf] %v2319_v24  ;;  %v2224_v18 = vmul.f32 %v13681_v19, %v2187_v11  ;;  %v3043_v30 = vmax.f32 %v3011_v17, 0.0  ;;  %v3421_v31 = vmax.f32 %v3389_v1, 0.0  ;;  %v10304_v11 = vld [vmem:[#allocation2 + $0x288] sm:$0xf] }
 0x295   : > { %v2666_v43 = vmax.f32 %v2634_v27, 0.0  ;;  %v10305_v22 = vor.u32 %v12244_v60, %v10304_v11 }
 0x296   : > { %v2256_v33 = vadd.f32 %v13710_v57, %v2224_v18  ;;  %v3075_v28 = vpack.c.bf16 %v3043_v30, %v3043_v30  ;;  %v3453_v49 = vpack.c.bf16 %v3421_v31, %v3421_v31  ;;  %v10296_v18 = vld [vmem:[#allocation2 + $0x280] sm:$0xf] }
 0x297   : > { %v2943_v20 = vpop.f32.mrf.mxu2  ;;  %v3321_v32 = vpop.f32.mrf.mxu3  ;;  %v2698_v48 = vpack.c.bf16 %v2666_v43, %v2666_v43  ;;  %v10297_v34 = vor.u32 %v12243_v21, %v10296_v18  ;;  %v12250_v18 = vld [vmem:[#allocation2 + $0x34c] sm:$0xf0]  ;;  %v10608_v21 = vld [vmem:[#allocation2 + $0x324] sm:$0xf] }
 0x298   : > { %v2288_v39 = vmax.f32 %v2256_v33, 0.0  ;;  %3107 = vst [vmem:[#allocation2 + $0x47c] sm:$0xf] %v3075_v28  ;;  %v2980_v38 = vmul.f32 %v13681_v19, %v2943_v20  ;;  %v3358_v51 = vmul.f32 %v13681_v19, %v3321_v32  ;;  %v2568_v53 = vpop.f32.mrf.mxu1 }
 0x299   : > { %3485 = vst [vmem:[#allocation2 + $0x480] sm:$0xf] %v3453_v49  ;;  %v2603_v45 = vmul.f32 %v13681_v19, %v2568_v53 }
 0x29a   : > { %v2320_v9 = vpack.c.bf16 %v2288_v39, %v2288_v39  ;;  %v3012_v54 = vadd.f32 %v13710_v57, %v2980_v38  ;;  %v3390_v47 = vadd.f32 %v13710_v57, %v3358_v51  ;;  %2730 = vst [vmem:[#allocation2 + $0x4a0] sm:$0xf] %v2698_v48 }
 0x29b   : > { %4085 = vmatmul.bf16.gmra.mxu1 %v10289_v25  ;;  %v2190_v52 = vpop.f32.mrf.mxu0  ;;  %v2635_v62 = vadd.f32 %v13710_v57, %v2603_v45  ;;  %v10310_v45 = vld [vmem:[#allocation2 + $0x2f8] sm:$0xf0] }
 0x29c   : > { %4174 = vmatmul.bf16.gmra.mxu2 %v10293_v13  ;;  %4717 = vmatmul.bf16.gmra.mxu3 %v10573_v37  ;;  %2352 = vst [vmem:[#allocation2 + $0x49c] sm:$0xf] %v2320_v9  ;;  %v2225_v4 = vmul.f32 %v13681_v19, %v2190_v52  ;;  %v3044_v58 = vmax.f32 %v3012_v54, 0.0  ;;  %v3422_v59 = vmax.f32 %v3390_v47, 0.0 }
 0x29d   : > { %v2667_v12 = vmax.f32 %v2635_v62, 0.0  ;;  %v12294_v62 = vld [vmem:[#allocation2 + $0x2f8] sm:$0xf0] }
 0x29e   : > { %v2257_v56 = vadd.f32 %v13710_v57, %v2225_v4  ;;  %v3076_v61 = vpack.c.bf16 %v3044_v58, %v3044_v58  ;;  %v3454_v63 = vpack.c.bf16 %v3422_v59, %v3422_v59  ;;  %v12245_v4 = vld [vmem:[#allocation2 + $0x2d4] sm:$0xf]  ;;  %v12247_v59 = vld [vmem:[#allocation2 + $0x2fc] sm:$0xf0] }
 0x29f   : > { %3996 = vmatmul.bf16.gmra.mxu0 %v10285_v44  ;;  %v2946_v16 = vpop.f32.mrf.mxu2  ;;  %v3324_v5 = vpop.f32.mrf.mxu3  ;;  %v2699_v8 = vpack.c.bf16 %v2667_v12, %v2667_v12  ;;  %v10308_v12 = vld [vmem:[#allocation2 + $0x2d0] sm:$0xf] }
 0x2a0   : > { %v2289_v55 = vmax.f32 %v2257_v56, 0.0  ;;  %3108 = vst [vmem:[#allocation2 + $0x4a4] sm:$0xf] %v3076_v61  ;;  %v2981_v36 = vmul.f32 %v13681_v19, %v2946_v16  ;;  %v3359_v29 = vmul.f32 %v13681_v19, %v3324_v5  ;;  %v2570_v7 = vpop.f32.mrf.mxu1  ;;  %v10596_v56 = vld [vmem:[#allocation2 + $0x2d4] sm:$0xf] }
 0x2a1   : > { %3486 = vst [vmem:[#allocation2 + $0x4a8] sm:$0xf] %v3454_v63  ;;  %v2604_v50 = vmul.f32 %v13681_v19, %v2570_v7  ;;  %v10313_v63 = vor.u32 %v12245_v4, %v10310_v45  ;;  %v12246_v16 = vld [vmem:[#allocation2 + $0x2f4] sm:$0xf0]  ;;  %v10334_v4 = vld [vmem:[#allocation2 + $0x398] sm:$0xf0] }
 0x2a2   : > { %v2321_v42 = vpack.c.bf16 %v2289_v55, %v2289_v55  ;;  %v3013_v3 = vadd.f32 %v13710_v57, %v2981_v36  ;;  %v3391_v24 = vadd.f32 %v13710_v57, %v3359_v29  ;;  %2731 = vst [vmem:[#allocation2 + $0x4c8] sm:$0xf] %v2699_v8  ;;  %v10316_v55 = vld [vmem:[#allocation2 + $0x2d8] sm:$0xf] }
 0x2a3   : > { %v2192_v41 = vpop.f32.mrf.mxu0  ;;  %v2636_v1 = vadd.f32 %v13710_v57, %v2604_v50  ;;  %v10317_v5 = vor.u32 %v12247_v59, %v10316_v55  ;;  %v10620_v59 = vld [vmem:[#allocation2 + $0x374] sm:$0xf]  ;;  %v10332_v55 = vld [vmem:[#allocation2 + $0x370] sm:$0xf] }
 0x2a4   : > { %2353 = vst [vmem:[#allocation2 + $0x4c4] sm:$0xf] %v2321_v42  ;;  %v2226_v40 = vmul.f32 %v13681_v19, %v2192_v41  ;;  %v3045_v14 = vmax.f32 %v3013_v3, 0.0  ;;  %v3423_v46 = vmax.f32 %v3391_v24, 0.0  ;;  %v10597_v42 = vor.u32 %v12294_v62, %v10596_v56  ;;  %v12300_v56 = vld [vmem:[#allocation2 + $0x398] sm:$0xf0] }
 0x2a5   : > { %v2668_v31 = vmax.f32 %v2636_v1, 0.0  ;;  %v10309_v41 = vor.u32 %v12246_v16, %v10308_v12  ;;  %v12252_v12 = vld [vmem:[#allocation2 + $0x394] sm:$0xf0] }
 0x2a6   : > { %v2258_v17 = vadd.f32 %v13710_v57, %v2226_v40  ;;  %v3077_v25 = vpack.c.bf16 %v3045_v14, %v3045_v14  ;;  %v3455_v26 = vpack.c.bf16 %v3423_v46, %v3423_v46  ;;  %v12248_v46 = vld [vmem:[#allocation2 + $0x324] sm:$0xf] }
 0x2a7   : > { %v2948_v33 = vpop.f32.mrf.mxu2  ;;  %v3326_v27 = vpop.f32.mrf.mxu3  ;;  %v2700_v13 = vpack.c.bf16 %v2668_v31, %v2668_v31  ;;  %v12249_v31 = vld [vmem:[#allocation2 + $0x344] sm:$0xf0] }
 0x2a8   : > { %v2290_v30 = vmax.f32 %v2258_v17, 0.0  ;;  %3109 = vst [vmem:[#allocation2 + $0x4cc] sm:$0xf] %v3077_v25  ;;  %v2982_v37 = vmul.f32 %v13681_v19, %v2948_v33  ;;  %v3360_v28 = vmul.f32 %v13681_v19, %v3326_v27  ;;  %v4051_v39 = vpop.f32.mrf.mxu1  ;;  %v13877_v19 = vld [vmem:[%s15336_s5] ss:$0 sm:$0xff] }
 0x2a9   : > { %3487 = vst [vmem:[#allocation2 + $0x4d0] sm:$0xf] %v3455_v26  ;;  %v10322_v17 = vld [vmem:[#allocation2 + $0x348] sm:$0xf0]  ;;  %v10328_v26 = vld [vmem:[#allocation2 + $0x328] sm:$0xf] }
 0x2aa   : > { %v2322_v35 = vpack.c.bf16 %v2290_v30, %v2290_v30  ;;  %v3014_v43 = vadd.f32 %v13710_v57, %v2982_v37  ;;  %v3392_v20 = vadd.f32 %v13710_v57, %v3360_v28  ;;  %2732 = vst [vmem:[#allocation2 + $0x4f0] sm:$0xf] %v2700_v13  ;;  %v13885_v57 = vld [vmem:[%s15337_s6] ss:$0 sm:$0xff]  ;;  %v10325_v25 = vor.u32 %v12248_v46, %v10322_v17  ;;  %v12254_v17 = vld [vmem:[#allocation2 + $0x3c4] sm:$0xf] }
 0x2ab   : > { %4090 = vmatmul.bf16.gmra.mxu1 %v10301_v6  ;;  %v3962_v49 = vpop.f32.mrf.mxu0  ;;  %v10320_v30 = vld [vmem:[#allocation2 + $0x320] sm:$0xf]  ;;  %v10329_v33 = vor.u32 %v12250_v18, %v10328_v26 }
 0x2ac   : > { %4179 = vmatmul.bf16.gmra.mxu2 %v10305_v22  ;;  %4722 = vmatmul.bf16.gmra.mxu3 %v10585_v23  ;;  %2354 = vst [vmem:[#allocation2 + $0x4ec] sm:$0xf] %v2322_v35  ;;  %v3046_v32 = vmax.f32 %v3014_v43, 0.0  ;;  %v3424_v44 = vmax.f32 %v3392_v20, 0.0  ;;  %v4052_v38 = vadd.f32 %v4051_v39, %v3962_v49  ;;  %v12297_v22 = vld [vmem:[#allocation2 + $0x348] sm:$0xf0]  ;;  %v10321_v49 = vor.u32 %v12249_v31, %v10320_v30 }
 0x2ad   : > { %v10609_v27 = vor.u32 %v12297_v22, %v10608_v21  ;;  %v12256_v21 = vld [vmem:[#allocation2 + $0x3ec] sm:$0xf0]  ;;  %v10632_v22 = vld [vmem:[#allocation2 + $0x3c4] sm:$0xf]  ;;  %v10352_v30 = vld [vmem:[#allocation2 + $0x3c8] sm:$0xf] }
 0x2ae   : > { %v3078_v9 = vpack.c.bf16 %v3046_v32, %v3046_v32  ;;  %v3456_v48 = vpack.c.bf16 %v3424_v44, %v3424_v44  ;;  %v10344_v31 = vld [vmem:[#allocation2 + $0x3c0] sm:$0xf] }
 0x2af   : > { %4001 = vmatmul.bf16.gmra.mxu0 %v10297_v34  ;;  %v4140_v51 = vpop.f32.mrf.mxu2  ;;  %v13879_v52 = vpop.f32.mrf.mxu3 }
 0x2b0   : > { %3110 = vst [vmem:[#allocation2 + $0x4f4] sm:$0xf] %v3078_v9  ;;  %v4141_v53 = vadd.f32 %v4140_v51, %v4052_v38  ;;  %v4053_v47 = vpop.f32.mrf.mxu1 }
 0x2b1   : > { %3488 = vst [vmem:[#allocation2 + $0x4f8] sm:$0xf] %v3456_v48 }
 0x2b2   : > { %v4223_v58 = vmul.f32 %v13877_v19, %v4141_v53 }
 0x2b3   : > { %v3964_v54 = vpop.f32.mrf.mxu0 }
 0x2b4   : > { %v4258_v61 = vadd.f32 %v13885_v57, %v4223_v58  ;;  %v4054_v36 = vadd.f32 %v4053_v47, %v3964_v54  ;;  %v12251_v47 = vld [vmem:[#allocation2 + $0x374] sm:$0xf]  ;;  %v12253_v58 = vld [vmem:[#allocation2 + $0x39c] sm:$0xf0] }
 0x2b6   : > { %v4290_v8 = vmax.f32 %v4258_v61, 0.0  ;;  %v10337_v61 = vor.u32 %v12251_v47, %v10334_v4 }
 0x2b7   : > { %v4142_v29 = vpop.f32.mrf.mxu2  ;;  %v13894_v0 = vpop.f32.mrf.mxu3 }
 0x2b8   : > { %4322 = vst [vmem:[%s13892_s29] sm:$0xff] %v4290_v8  ;;  %v4143_v2 = vadd.f32 %v4142_v29, %v4054_v36  ;;  %v4056_v60 = vpop.f32.mrf.mxu1 }
 0x2ba   : > { %v4224_v3 = vmul.f32 %v13877_v19, %v4143_v2 }
 0x2bb   : > { %4095 = vmatmul.bf16.gmra.mxu1 %v10313_v63  ;;  %v10340_v63 = vld [vmem:[#allocation2 + $0x378] sm:$0xf] }
 0x2bc   : > { %4184 = vmatmul.bf16.gmra.mxu2 %v10317_v5  ;;  %4727 = vmatmul.bf16.gmra.mxu3 %v10597_v42  ;;  %v3967_v7 = vpop.f32.mrf.mxu0  ;;  %v4259_v24 = vadd.f32 %v13885_v57, %v4224_v3  ;;  %v10341_v16 = vor.u32 %v12253_v58, %v10340_v63  ;;  %v10621_v5 = vor.u32 %v12300_v56, %v10620_v59  ;;  %v12257_v58 = vld [vmem:[#allocation2 + $0x414] sm:$0xf]  ;;  %v10358_v59 = vld [vmem:[#allocation2 + $0x438] sm:$0xf0] }
 0x2bd   : > { %v4057_v50 = vadd.f32 %v4056_v60, %v3967_v7  ;;  %v12306_v63 = vld [vmem:[#allocation2 + $0x438] sm:$0xf0] }
 0x2be   : > { %v4291_v40 = vmax.f32 %v4259_v24, 0.0 }
 0x2bf   : > { %4006 = vmatmul.bf16.gmra.mxu0 %v10309_v41  ;;  %v4145_v15 = vpop.f32.mrf.mxu2  ;;  %v13899_v10 = vpop.f32.mrf.mxu3  ;;  %v10333_v41 = vor.u32 %v12252_v12, %v10332_v55  ;;  %v10361_v12 = vor.u32 %v12257_v58, %v10358_v59 }
 0x2c0   : > { %4323 = vst [vmem:[%s13892_s29 + $0x8] sm:$0xff] %v4291_v40  ;;  %v4146_v6 = vadd.f32 %v4145_v15, %v4057_v50  ;;  %v4058_v14 = vpop.f32.mrf.mxu1 }
 0x2c2   : > { %v4225_v1 = vmul.f32 %v13877_v19, %v4146_v6 }
 0x2c4   : > { %v3969_v11 = vpop.f32.mrf.mxu0  ;;  %v4260_v23 = vadd.f32 %v13885_v57, %v4225_v1  ;;  %v10346_v1 = vld [vmem:[#allocation2 + $0x3e8] sm:$0xf0] }
 0x2c5   : > { %v4059_v35 = vadd.f32 %v4058_v14, %v3969_v11  ;;  %v10349_v26 = vor.u32 %v12254_v17, %v10346_v1 }
 0x2c6   : > { %v4292_v34 = vmax.f32 %v4260_v23, 0.0  ;;  %v12303_v23 = vld [vmem:[#allocation2 + $0x3e8] sm:$0xf0] }
 0x2c7   : > { %v4147_v13 = vpop.f32.mrf.mxu2  ;;  %v13904_v37 = vpop.f32.mrf.mxu3 }
 0x2c8   : > { %4324 = vst [vmem:[%s13892_s29 + $0x10] sm:$0xff] %v4292_v34  ;;  %v4148_v28 = vadd.f32 %v4147_v13, %v4059_v35  ;;  %v4061_v43 = vpop.f32.mrf.mxu1  ;;  %v10633_v34 = vor.u32 %v12303_v23, %v10632_v22  ;;  %v12260_v23 = vld [vmem:[#allocation2 + $0x464] sm:$0xf] }
 0x2ca   : > { %v4226_v20 = vmul.f32 %v13877_v19, %v4148_v28 }
 0x2cb   : > { %4100 = vmatmul.bf16.gmra.mxu1 %v10325_v25 }
 0x2cc   : > { %4189 = vmatmul.bf16.gmra.mxu2 %v10329_v33  ;;  %4732 = vmatmul.bf16.gmra.mxu3 %v10609_v27  ;;  %v3972_v39 = vpop.f32.mrf.mxu0  ;;  %v4261_v32 = vadd.f32 %v13885_v57, %v4226_v20  ;;  %v12255_v33 = vld [vmem:[#allocation2 + $0x3e4] sm:$0xf0]  ;;  %v10353_v27 = vor.u32 %v12256_v21, %v10352_v30  ;;  %v12262_v30 = vld [vmem:[#allocation2 + $0x48c] sm:$0xf0] }
 0x2cd   : > { %v4062_v9 = vadd.f32 %v4061_v43, %v3972_v39  ;;  %v10345_v43 = vor.u32 %v12255_v33, %v10344_v31  ;;  %v10656_v31 = vld [vmem:[#allocation2 + $0x464] sm:$0xf]  ;;  %v12309_v33 = vld [vmem:[#allocation2 + $0x488] sm:$0xf0] }
 0x2ce   : > { %v4293_v44 = vmax.f32 %v4261_v32, 0.0 }
 0x2cf   : > { %4011 = vmatmul.bf16.gmra.mxu0 %v10321_v49  ;;  %v4150_v48 = vpop.f32.mrf.mxu2  ;;  %v13909_v38 = vpop.f32.mrf.mxu3 }
 0x2d0   : > { %4325 = vst [vmem:[%s13892_s29 + $0x18] sm:$0xff] %v4293_v44  ;;  %v4151_v51 = vadd.f32 %v4150_v48, %v4062_v9  ;;  %v4063_v54 = vpop.f32.mrf.mxu1 }
 0x2d2   : > { %v4227_v45 = vmul.f32 %v13877_v19, %v4151_v51 }
 0x2d4   : > { %v3974_v53 = vpop.f32.mrf.mxu0  ;;  %v4262_v62 = vadd.f32 %v13885_v57, %v4227_v45 }
 0x2d5   : > { %v4064_v8 = vadd.f32 %v4063_v54, %v3974_v53 }
 0x2d6   : > { %v4294_v42 = vmax.f32 %v4262_v62, 0.0  ;;  %v12259_v62 = vld [vmem:[#allocation2 + $0x43c] sm:$0xf0] }
 0x2d7   : > { %v4152_v36 = vpop.f32.mrf.mxu2  ;;  %v13914_v29 = vpop.f32.mrf.mxu3 }
 0x2d8   : > { %4326 = vst [vmem:[%s13892_s29 + $0x20] sm:$0xff] %v4294_v42  ;;  %v4153_v2 = vadd.f32 %v4152_v36, %v4064_v8  ;;  %v4066_v60 = vpop.f32.mrf.mxu1  ;;  %v12258_v42 = vld [vmem:[#allocation2 + $0x434] sm:$0xf0] }
 0x2da   : > { %v4228_v3 = vmul.f32 %v13877_v19, %v4153_v2 }
 0x2db   : > { %4105 = vmatmul.bf16.gmra.mxu1 %v10337_v61  ;;  %v10644_v61 = vld [vmem:[#allocation2 + $0x414] sm:$0xf] }
 0x2dc   : > { %4194 = vmatmul.bf16.gmra.mxu2 %v10341_v16  ;;  %4737 = vmatmul.bf16.gmra.mxu3 %v10621_v5  ;;  %v3977_v7 = vpop.f32.mrf.mxu0  ;;  %v4263_v24 = vadd.f32 %v13885_v57, %v4228_v3  ;;  %v10364_v16 = vld [vmem:[#allocation2 + $0x418] sm:$0xf]  ;;  %v10356_v5 = vld [vmem:[#allocation2 + $0x410] sm:$0xf]  ;;  %v10645_v36 = vor.u32 %v12306_v63, %v10644_v61 }
 0x2dd   : > { %v4067_v50 = vadd.f32 %v4066_v60, %v3977_v7  ;;  %v10365_v8 = vor.u32 %v12259_v62, %v10364_v16  ;;  %v10382_v16 = vld [vmem:[#allocation2 + $0x4d8] sm:$0xf0] }
 0x2de   : > { %v4295_v40 = vmax.f32 %v4263_v24, 0.0  ;;  %v10357_v24 = vor.u32 %v12258_v42, %v10356_v5  ;;  %v12265_v42 = vld [vmem:[#allocation2 + $0x4dc] sm:$0xf0] }
 0x2df   : > { %4016 = vmatmul.bf16.gmra.mxu0 %v10333_v41  ;;  %v4155_v15 = vpop.f32.mrf.mxu2  ;;  %v13919_v6 = vpop.f32.mrf.mxu3 }
 0x2e0   : > { %4327 = vst [vmem:[%s13892_s29 + $0x28] sm:$0xff] %v4295_v40  ;;  %v4156_v11 = vadd.f32 %v4155_v15, %v4067_v50  ;;  %v4068_v46 = vpop.f32.mrf.mxu1 }
 0x2e2   : > { %v4229_v18 = vmul.f32 %v13877_v19, %v4156_v11 }
 0x2e4   : > { %v3979_v14 = vpop.f32.mrf.mxu0  ;;  %v4264_v25 = vadd.f32 %v13885_v57, %v4229_v18 }
 0x2e5   : > { %v4069_v13 = vadd.f32 %v4068_v46, %v3979_v14 }
 0x2e6   : > { %v4296_v35 = vmax.f32 %v4264_v25, 0.0  ;;  %v10370_v25 = vld [vmem:[#allocation2 + $0x488] sm:$0xf0] }
 0x2e7   : > { %v4157_v28 = vpop.f32.mrf.mxu2  ;;  %v13924_v49 = vpop.f32.mrf.mxu3 }
 0x2e8   : > { %4328 = vst [vmem:[%s13892_s29 + $0x30] sm:$0xff] %v4296_v35  ;;  %v4158_v39 = vadd.f32 %v4157_v28, %v4069_v13  ;;  %v4071_v32 = vpop.f32.mrf.mxu1  ;;  %v10376_v35 = vld [vmem:[#allocation2 + $0x468] sm:$0xf]  ;;  %v10368_v13 = vld [vmem:[#allocation2 + $0x460] sm:$0xf] }
 0x2e9   : > { %v12261_v28 = vld [vmem:[#allocation2 + $0x484] sm:$0xf0] }
 0x2ea   : > { %v4230_v44 = vmul.f32 %v13877_v19, %v4158_v39  ;;  %v10377_v39 = vor.u32 %v12262_v30, %v10376_v35 }
 0x2eb   : > { %4110 = vmatmul.bf16.gmra.mxu1 %v10349_v26 }
 0x2ec   : > { %4199 = vmatmul.bf16.gmra.mxu2 %v10353_v27  ;;  %4742 = vmatmul.bf16.gmra.mxu3 %v10633_v34  ;;  %v3982_v20 = vpop.f32.mrf.mxu0  ;;  %v4265_v9 = vadd.f32 %v13885_v57, %v4230_v44  ;;  %v10373_v34 = vor.u32 %v12260_v23, %v10370_v25 }
 0x2ed   : > { %v4072_v51 = vadd.f32 %v4071_v32, %v3982_v20 }
 0x2ee   : > { %v4297_v48 = vmax.f32 %v4265_v9, 0.0 }
 0x2ef   : > { %4021 = vmatmul.bf16.gmra.mxu0 %v10345_v43  ;;  %v4160_v53 = vpop.f32.mrf.mxu2  ;;  %v13929_v54 = vpop.f32.mrf.mxu3  ;;  %v10657_v43 = vor.u32 %v12309_v33, %v10656_v31 }
 0x2f0   : > { %4329 = vst [vmem:[%s13892_s29 + $0x38] sm:$0xff] %v4297_v48  ;;  %v4161_v47 = vadd.f32 %v4160_v53, %v4072_v51  ;;  %v4073_v45 = vpop.f32.mrf.mxu1  ;;  %v10369_v51 = vor.u32 %v12261_v28, %v10368_v13  ;;  %v12268_v13 = vld [vmem:[#allocation2 + $0x30] sm:$0xf0] }
 0x2f2   : > { %v4231_v56 = vmul.f32 %v13877_v19, %v4161_v47 }
 0x2f4   : > { %v3984_v4 = vpop.f32.mrf.mxu0  ;;  %v4266_v55 = vadd.f32 %v13885_v57, %v4231_v56 }
 0x2f5   : > { %v4074_v41 = vadd.f32 %v4073_v45, %v3984_v4 }
 0x2f6   : > { %v4298_v2 = vmax.f32 %v4266_v55, 0.0 }
 0x2f7   : > { %v4162_v7 = vpop.f32.mrf.mxu2  ;;  %v13934_v60 = vpop.f32.mrf.mxu3 }
 0x2f8   : > { %4330 = vst [vmem:[%s13892_s29 + $0x40] sm:$0xff] %v4298_v2  ;;  %v4163_v3 = vadd.f32 %v4162_v7, %v4074_v41  ;;  %v4076_v50 = vpop.f32.mrf.mxu1  ;;  %v10388_v7 = vld [vmem:[#allocation2 + $0x4b8] sm:$0xf] }
 0x2fa   : > { %v4232_v15 = vmul.f32 %v13877_v19, %v4163_v3  ;;  %v10380_v3 = vld [vmem:[#allocation2 + $0x4b0] sm:$0xf] }
 0x2fb   : > { %4115 = vmatmul.bf16.gmra.mxu1 %v10361_v12  ;;  %v12263_v12 = vld [vmem:[#allocation2 + $0x4b4] sm:$0xf] }
 0x2fc   : > { %4204 = vmatmul.bf16.gmra.mxu2 %v10365_v8  ;;  %4747 = vmatmul.bf16.gmra.mxu3 %v10645_v36  ;;  %v3987_v40 = vpop.f32.mrf.mxu0  ;;  %v4267_v11 = vadd.f32 %v13885_v57, %v4232_v15  ;;  %v10668_v8 = vld [vmem:[#allocation2 + $0x4b4] sm:$0xf]  ;;  %v12312_v36 = vld [vmem:[#allocation2 + $0x4d8] sm:$0xf0]  ;;  %v10385_v41 = vor.u32 %v12263_v12, %v10382_v16 }
 0x2fd   : > { %v4077_v46 = vadd.f32 %v4076_v50, %v3987_v40  ;;  %v10389_v40 = vor.u32 %v12265_v42, %v10388_v7  ;;  %v10669_v50 = vor.u32 %v12312_v36, %v10668_v8  ;;  %v12641_v42 = vld [vmem:[%s15335_s4 + $0x78] sm:$0xff]  ;;  %v12643_v7 = vld [vmem:[%s15335_s4 + $0x30] sm:$0xff] }
 0x2fe   : > { %v4299_v14 = vmax.f32 %v4267_v11, 0.0 }
 0x2ff   : > { %4026 = vmatmul.bf16.gmra.mxu0 %v10357_v24  ;;  %v4165_v17 = vpop.f32.mrf.mxu2  ;;  %v13939_v1 = vpop.f32.mrf.mxu3  ;;  %v12264_v24 = vld [vmem:[#allocation2 + $0x4d4] sm:$0xf0] }
 0x300   : > { %4331 = vst [vmem:[%s13892_s29 + $0x48] sm:$0xff] %v4299_v14  ;;  %v4166_v18 = vadd.f32 %v4165_v17, %v4077_v46  ;;  %v4078_v22 = vpop.f32.mrf.mxu1 }
 0x302   : > { %v4233_v26 = vmul.f32 %v13877_v19, %v4166_v18  ;;  %v10381_v18 = vor.u32 %v12264_v24, %v10380_v3 }
 0x304   : > { %v3989_v21 = vpop.f32.mrf.mxu0  ;;  %v4268_v27 = vadd.f32 %v13885_v57, %v4233_v26 }
 0x305   : > { %v4079_v32 = vadd.f32 %v4078_v22, %v3989_v21 }
 0x306   : > { %v4300_v20 = vmax.f32 %v4268_v27, 0.0 }
 0x307   : > { %v4167_v44 = vpop.f32.mrf.mxu2  ;;  %v13944_v9 = vpop.f32.mrf.mxu3 }
 0x308   : > { %4332 = vst [vmem:[%s13892_s29 + $0x50] sm:$0xff] %v4300_v20  ;;  %v4168_v48 = vadd.f32 %v4167_v44, %v4079_v32  ;;  %v4081_v47 = vpop.f32.mrf.mxu1  ;;  %v10496_v20 = vld [vmem:[#allocation2 + $0xc] sm:$0xf] }
 0x309   : > { %v10497_v44 = vor.u32 %v12268_v13, %v10496_v20  ;;  %v12317_v13 = vld [vmem:[#allocation2 + $0x5c] sm:$0xf]  ;;  %v12649_v20 = vld [vmem:[%s15335_s4 + $0x20] sm:$0xff] }
 0x30a   : > { %v4234_v4 = vmul.f32 %v13877_v19, %v4168_v48  ;;  %v10712_v48 = vld [vmem:[#allocation2 + $0x8] sm:$0xf] }
 0x30b   : > { %4120 = vmatmul.bf16.gmra.mxu1 %v10373_v34 }
 0x30c   : > { %4209 = vmatmul.bf16.gmra.mxu2 %v10377_v39  ;;  %4752 = vmatmul.bf16.gmra.mxu3 %v10657_v43  ;;  %v3992_v53 = vpop.f32.mrf.mxu0  ;;  %v4269_v45 = vadd.f32 %v13885_v57, %v4234_v4  ;;  %v12315_v39 = vld [vmem:[#allocation2 + $0x2c] sm:$0xf0]  ;;  %v10714_v43 = vld [vmem:[#allocation2 + $0x30] sm:$0xf0] }
 0x30d   : > { %v4082_v59 = vadd.f32 %v4081_v47, %v3992_v53  ;;  %v10713_v53 = vor.u32 %v12315_v39, %v10712_v48 }
 0x30e   : > { %v4301_v58 = vmax.f32 %v4269_v45, 0.0 }
 0x30f   : > { %4031 = vmatmul.bf16.gmra.mxu0 %v10369_v51  ;;  %v4170_v56 = vpop.f32.mrf.mxu2  ;;  %v13949_v62 = vpop.f32.mrf.mxu3  ;;  %v12314_v51 = vld [vmem:[#allocation2 + $0xc] sm:$0xf] }
 0x310   : > { %4333 = vst [vmem:[%s13892_s29 + $0x58] sm:$0xff] %v4301_v58  ;;  %v4171_v61 = vadd.f32 %v4170_v56, %v4082_v59  ;;  %v4083_v55 = vpop.f32.mrf.mxu1  ;;  %v10717_v47 = vor.u32 %v12314_v51, %v10714_v43  ;;  %v10490_v56 = vld [vmem:[#allocation2 + $0x2c] sm:$0xf0] }
 0x312   : > { %v4235_v5 = vmul.f32 %v13877_v19, %v4171_v61 }
 0x314   : > { %v3994_v63 = vpop.f32.mrf.mxu0  ;;  %v4270_v2 = vadd.f32 %v13885_v57, %v4235_v5  ;;  %v12266_v5 = vld [vmem:[#allocation2 + $0x8] sm:$0xf] }
 0x315   : > { %v4084_v11 = vadd.f32 %v4083_v55, %v3994_v63  ;;  %v12639_v63 = vld [vmem:[%s15335_s4 + $0xb8] sm:$0xff]  ;;  %v10493_v36 = vor.u32 %v12266_v5, %v10490_v56 }
 0x316   : > { %v4302_v15 = vmax.f32 %v4270_v2, 0.0  ;;  %v12640_v55 = vld [vmem:[%s15335_s4 + $0x38] sm:$0xff] }
 0x317   : > { %v4172_v14 = vpop.f32.mrf.mxu2  ;;  %v13954_v46 = vpop.f32.mrf.mxu3  ;;  %v12653_v5 = vld [vmem:[%s15335_s4 + $0x58] sm:$0xff] }
 0x318   : > { %4334 = vst [vmem:[%s13892_s29 + $0x60] sm:$0xff] %v4302_v15  ;;  %v4173_v17 = vadd.f32 %v4172_v14, %v4084_v11  ;;  %v4086_v22 = vpop.f32.mrf.mxu1  ;;  %v12645_v14 = vld [vmem:[%s15335_s4 + $0xa8] sm:$0xff] }
 0x31a   : > { %v4236_v23 = vmul.f32 %v13877_v19, %v4173_v17 }
 0x31b   : > { %4125 = vmatmul.bf16.gmra.mxu1 %v10385_v41  ;;  %v12642_v41 = vld [vmem:[%s15335_s4 + $0xb0] sm:$0xff] }
 0x31c   : > { %4214 = vmatmul.bf16.gmra.mxu2 %v10389_v40  ;;  %4757 = vmatmul.bf16.gmra.mxu3 %v10669_v50  ;;  %v3997_v21 = vpop.f32.mrf.mxu0  ;;  %v4271_v25 = vadd.f32 %v13885_v57, %v4236_v23  ;;  %v12644_v40 = vld [vmem:[%s15335_s4 + $0x70] sm:$0xff] }
 0x31d   : > { %v4087_v30 = vadd.f32 %v4086_v22, %v3997_v21  ;;  %v12271_v21 = vld [vmem:[#allocation2 + $0x80] sm:$0xf0]  ;;  %v12646_v22 = vld [vmem:[%s15335_s4 + $0x28] sm:$0xff] }
 0x31e   : > { %v4303_v26 = vmax.f32 %v4271_v25, 0.0  ;;  %v12318_v25 = vld [vmem:[#allocation2 + $0x7c] sm:$0xf0] }
 0x31f   : > { %4036 = vmatmul.bf16.gmra.mxu0 %v10381_v18  ;;  %v4175_v31 = vpop.f32.mrf.mxu2  ;;  %v13959_v33 = vpop.f32.mrf.mxu3 }
 0x320   : > { %4335 = vst [vmem:[%s13892_s29 + $0x68] sm:$0xff] %v4303_v26  ;;  %v4176_v27 = vadd.f32 %v4175_v31, %v4087_v30  ;;  %v4088_v35 = vpop.f32.mrf.mxu1  ;;  %v10726_v26 = vld [vmem:[#allocation2 + $0x80] sm:$0xf0]  ;;  %v12647_v30 = vld [vmem:[%s15335_s4 + $0x68] sm:$0xff]  ;;  %v10508_v31 = vld [vmem:[#allocation2 + $0x5c] sm:$0xf] }
 0x321   : > { %v10729_v43 = vor.u32 %v12317_v13, %v10726_v26  ;;  %v12660_v13 = vld [vmem:[%s15335_s4 + $0x80] sm:$0xff] }
 0x322   : > { %v4237_v28 = vmul.f32 %v13877_v19, %v4176_v27 }
 0x324   : > { %v3999_v34 = vpop.f32.mrf.mxu0  ;;  %v4272_v32 = vadd.f32 %v13885_v57, %v4237_v28  ;;  %v12648_v28 = vld [vmem:[%s15335_s4 + $0xa0] sm:$0xff] }
 0x325   : > { %v4089_v45 = vadd.f32 %v4088_v35, %v3999_v34  ;;  %v10509_v34 = vor.u32 %v12271_v21, %v10508_v31  ;;  %v10724_v35 = vld [vmem:[#allocation2 + $0x58] sm:$0xf]  ;;  %v10738_v21 = vld [vmem:[#allocation2 + $0xd0] sm:$0xf0]  ;;  %v12320_v31 = vld [vmem:[#allocation2 + $0xac] sm:$0xf] }
 0x326   : > { %v4304_v4 = vmax.f32 %v4272_v32, 0.0  ;;  %v10725_v39 = vor.u32 %v12318_v25, %v10724_v35  ;;  %v10741_v35 = vor.u32 %v12320_v31, %v10738_v21 }
 0x327   : > { %v4177_v58 = vpop.f32.mrf.mxu2  ;;  %v13964_v59 = vpop.f32.mrf.mxu3 }
 0x328   : > { %4336 = vst [vmem:[%s13892_s29 + $0x70] sm:$0xff] %v4304_v4  ;;  %v4178_v61 = vadd.f32 %v4177_v58, %v4089_v45  ;;  %v4091_v16 = vpop.f32.mrf.mxu1  ;;  %v12650_v4 = vld [vmem:[%s15335_s4 + $0x60] sm:$0xff]  ;;  %v12651_v45 = vld [vmem:[%s15335_s4 + $0x98] sm:$0xff] }
 0x32a   : > { %v4238_v8 = vmul.f32 %v13877_v19, %v4178_v61  ;;  %v12269_v61 = vld [vmem:[#allocation2 + $0x58] sm:$0xf] }
 0x32b   : > { %4860 = vmatmul.bf16.vlgmr.msrb.gmra.mxu1 %v10497_v44 }
 0x32c   : > { %5398 = vmatmul.bf16.vlgmr.msrb.gmra.mxu2 %v10713_v53  ;;  %5487 = vmatmul.bf16.vlgmr.msrb.gmra.mxu3 %v10717_v47  ;;  %v4002_v12 = vpop.f32.mrf.mxu0  ;;  %v4273_v2 = vadd.f32 %v13885_v57, %v4238_v8  ;;  %v10502_v53 = vld [vmem:[#allocation2 + $0x7c] sm:$0xf0] }
 0x32d   : > { %7000 = vmatpush.bf16.msrb.mxu2 %v12639_v63  ;;  %7538 = vmatpush.bf16.msrb.mxu3 %v12640_v55  ;;  %v4092_v24 = vadd.f32 %v4091_v16, %v4002_v12  ;;  %v12652_v63 = vld [vmem:[%s15335_s4 + $0x18] sm:$0xff]  ;;  %v10505_v12 = vor.u32 %v12269_v61, %v10502_v53  ;;  %v12662_v53 = vld [vmem:[%s15335_s4 + $0x40] sm:$0xff] }
 0x32e   : > { %6911 = vmatpush.bf16.msrb.mxu1 %v12641_v42  ;;  %v4305_v3 = vmax.f32 %v4273_v2, 0.0  ;;  %v12654_v42 = vld [vmem:[%s15335_s4 + $0x90] sm:$0xff] }
 0x32f   : > { %4771 = vmatmul.bf16.vlgmr.msrb.gmra.mxu0 %v10493_v36  ;;  %v4180_v50 = vpop.f32.mrf.mxu2  ;;  %v13987_v15 = vpop.f32.mrf.mxu3  ;;  %v12655_v2 = vld [vmem:[%s15335_s4 + $0x10] sm:$0xff] }
 0x330   : > { %6822 = vmatpush.bf16.msrb.mxu0 %v12640_v55  ;;  %4337 = vst [vmem:[%s13892_s29 + $0x78] sm:$0xff] %v4305_v3  ;;  %v4181_v11 = vadd.f32 %v4180_v50, %v4092_v24  ;;  %v4093_v18 = vpop.f32.mrf.mxu1  ;;  %v12656_v24 = vld [vmem:[%s15335_s4 + $0x50] sm:$0xff] }
 0x331   : > { %7001 = vmatpush.bf16.msrb.mxu2 %v12642_v41  ;;  %7539 = vmatpush.bf16.msrb.mxu3 %v12643_v7 }
 0x332   : > { %6912 = vmatpush.bf16.msrb.mxu1 %v12644_v40  ;;  %v4239_v23 = vmul.f32 %v13877_v19, %v4181_v11  ;;  %v12274_v11 = vld [vmem:[#allocation2 + $0xd0] sm:$0xf0] }
 0x334   : > { %v4004_v17 = vpop.f32.mrf.mxu0  ;;  %6823 = vmatpush.bf16.msrb.mxu0 %v12643_v7  ;;  %v4274_v27 = vadd.f32 %v13885_v57, %v4239_v23  ;;  %v10520_v23 = vld [vmem:[#allocation2 + $0xac] sm:$0xf] }
 0x335   : > { %7002 = vmatpush.bf16.msrb.mxu2 %v12645_v14  ;;  %7540 = vmatpush.bf16.msrb.mxu3 %v12646_v22  ;;  %v4094_v44 = vadd.f32 %v4093_v18, %v4004_v17  ;;  %v12657_v14 = vld [vmem:[%s15335_s4 + $0x88] sm:$0xff]  ;;  %v12321_v18 = vld [vmem:[#allocation2 + $0xcc] sm:$0xf0]  ;;  %v10521_v26 = vor.u32 %v12274_v11, %v10520_v23  ;;  %v10748_v11 = vld [vmem:[#allocation2 + $0xf8] sm:$0xf] }
 0x336   : > { %6913 = vmatpush.bf16.msrb.mxu1 %v12647_v30  ;;  %v4306_v32 = vmax.f32 %v4274_v27, 0.0  ;;  %v10736_v30 = vld [vmem:[#allocation2 + $0xa8] sm:$0xf] }
 0x337   : > { %v4182_v48 = vpop.f32.mrf.mxu2  ;;  %v14007_v51 = vpop.f32.mrf.mxu3  ;;  %v12659_v27 = vld [vmem:[%s15335_s4 + $0x48] sm:$0xff] }
 0x338   : > { %6824 = vmatpush.bf16.msrb.mxu0 %v12646_v22  ;;  %4338 = vst [vmem:[%s13892_s29 + $0x80] sm:$0xff] %v4306_v32  ;;  %v4183_v47 = vadd.f32 %v4182_v48, %v4094_v44  ;;  %v4096_v56 = vpop.f32.mrf.mxu1  ;;  %v12658_v22 = vld [vmem:[%s15335_s4 + $0x8] sm:$0xff]  ;;  %v10514_v44 = vld [vmem:[#allocation2 + $0xcc] sm:$0xf0] }
 0x339   : > { %7003 = vmatpush.bf16.msrb.mxu2 %v12648_v28  ;;  %7541 = vmatpush.bf16.msrb.mxu3 %v12649_v20 }
 0x33a   : > { %6914 = vmatpush.bf16.msrb.mxu1 %v12650_v4  ;;  %v4240_v55 = vmul.f32 %v13877_v19, %v4183_v47 }
 0x33b   : > { %4865 = vmatmul.bf16.gmra.mxu1 %v10509_v34  ;;  %v10737_v34 = vor.u32 %v12321_v18, %v10736_v30 }
 0x33c   : > { %5403 = vmatmul.bf16.gmra.mxu2 %v10725_v39  ;;  %5492 = vmatmul.bf16.gmra.mxu3 %v10729_v43  ;;  %v4007_v58 = vpop.f32.mrf.mxu0  ;;  %v4275_v16 = vadd.f32 %v13885_v57, %v4240_v55  ;;  %v12661_v43 = vld [vmem:[%s15335_s4] sm:$0xff] }
 0x33d   : > { %7004 = vmatpush.bf16.msrb.mxu2 %v12651_v45  ;;  %6825 = vmatpush.bf16.msrb.mxu0 %v12649_v20  ;;  %v4097_v36 = vadd.f32 %v4096_v56, %v4007_v58  ;;  %v12272_v45 = vld [vmem:[#allocation2 + $0xa8] sm:$0xf] }
 0x33e   : > { %7542 = vmatpush.bf16.msrb.mxu3 %v12652_v63  ;;  %6915 = vmatpush.bf16.msrb.mxu1 %v12653_v5  ;;  %v4307_v8 = vmax.f32 %v4275_v16, 0.0  ;;  %v10517_v56 = vor.u32 %v12272_v45, %v10514_v44 }
 0x33f   : > { %4776 = vmatmul.bf16.gmra.mxu0 %v10505_v12  ;;  %v4185_v41 = vpop.f32.mrf.mxu2  ;;  %v14030_v7 = vpop.f32.mrf.mxu3 }
 0x340   : > { %4339 = vst [vmem:[%s13892_s29 + $0x88] sm:$0xff] %v4307_v8  ;;  %v4186_v3 = vadd.f32 %v4185_v41, %v4097_v36  ;;  %v4098_v50 = vpop.f32.mrf.mxu1  ;;  %v12277_v36 = vld [vmem:[#allocation2 + $0x120] sm:$0xf0]  ;;  %v12324_v41 = vld [vmem:[#allocation2 + $0x11c] sm:$0xf0] }
 0x341   : > { %6826 = vmatpush.bf16.msrb.mxu0 %v12652_v63  ;;  %7005 = vmatpush.bf16.msrb.mxu2 %v12654_v42 }
 0x342   : > { %7543 = vmatpush.bf16.msrb.mxu3 %v12655_v2  ;;  %6916 = vmatpush.bf16.msrb.mxu1 %v12656_v24  ;;  %v4241_v17 = vmul.f32 %v13877_v19, %v4186_v3  ;;  %v10750_v3 = vld [vmem:[#allocation2 + $0x120] sm:$0xf0]  ;;  %v10532_v24 = vld [vmem:[#allocation2 + $0xfc] sm:$0xf] }
 0x344   : > { %v4009_v40 = vpop.f32.mrf.mxu0  ;;  %v4276_v25 = vadd.f32 %v13885_v57, %v4241_v17  ;;  %v10749_v17 = vor.u32 %v12324_v41, %v10748_v11 }
 0x345   : > { %6827 = vmatpush.bf16.msrb.mxu0 %v12655_v2  ;;  %7006 = vmatpush.bf16.msrb.mxu2 %v12657_v14  ;;  %v4099_v39 = vadd.f32 %v4098_v50, %v4009_v40  ;;  %v10533_v50 = vor.u32 %v12277_v36, %v10532_v24  ;;  %v12323_v14 = vld [vmem:[#allocation2 + $0xfc] sm:$0xf]  ;;  %v10538_v24 = vld [vmem:[#allocation2 + $0x16c] sm:$0xf0] }
 0x346   : > { %7544 = vmatpush.bf16.msrb.mxu3 %v12658_v22  ;;  %6917 = vmatpush.bf16.msrb.mxu1 %v12659_v27  ;;  %v4308_v28 = vmax.f32 %v4276_v25, 0.0  ;;  %v10753_v18 = vor.u32 %v12323_v14, %v10750_v3  ;;  %v12278_v14 = vld [vmem:[#allocation2 + $0x148] sm:$0xf] }
 0x347   : > { %v4187_v20 = vpop.f32.mrf.mxu2  ;;  %v14053_v32 = vpop.f32.mrf.mxu3 }
 0x348   : > { %4340 = vst [vmem:[%s13892_s29 + $0x90] sm:$0xff] %v4308_v28  ;;  %v4188_v48 = vadd.f32 %v4187_v20, %v4099_v39  ;;  %v4101_v4 = vpop.f32.mrf.mxu1 }
 0x349   : > { %6828 = vmatpush.bf16.msrb.mxu0 %v12658_v22  ;;  %7007 = vmatpush.bf16.msrb.mxu2 %v12660_v13 }
 0x34a   : > { %7545 = vmatpush.bf16.msrb.mxu3 %v12661_v43  ;;  %6918 = vmatpush.bf16.msrb.mxu1 %v12662_v53  ;;  %v4242_v58 = vmul.f32 %v13877_v19, %v4188_v48 }
 0x34b   : > { %4870 = vmatmul.bf16.gmra.mxu1 %v10521_v26  ;;  %v10526_v26 = vld [vmem:[#allocation2 + $0x11c] sm:$0xf0] }
 0x34c   : > { %5408 = vmatmul.bf16.gmra.mxu2 %v10737_v34  ;;  %5497 = vmatmul.bf16.gmra.mxu3 %v10741_v35  ;;  %v4012_v47 = vpop.f32.mrf.mxu0  ;;  %v4277_v61 = vadd.f32 %v13885_v57, %v4242_v58  ;;  %v12275_v34 = vld [vmem:[#allocation2 + $0xf8] sm:$0xf]  ;;  %v12327_v58 = vld [vmem:[#allocation2 + $0x16c] sm:$0xf0] }
 0x34d   : > { %6829 = vmatpush.bf16.msrb.mxu0 %v12661_v43  ;;  %v4102_v55 = vadd.f32 %v4101_v4, %v4012_v47  ;;  %v10529_v13 = vor.u32 %v12275_v34, %v10526_v26  ;;  %v12280_v4 = vld [vmem:[#allocation2 + $0x170] sm:$0xf0] }
 0x34e   : > { %v4309_v63 = vmax.f32 %v4277_v61, 0.0  ;;  %v10544_v61 = vld [vmem:[#allocation2 + $0x14c] sm:$0xf] }
 0x34f   : > { %4781 = vmatmul.bf16.gmra.mxu0 %v10517_v56  ;;  %v4190_v12 = vpop.f32.mrf.mxu2  ;;  %v14061_v16 = vpop.f32.mrf.mxu3  ;;  %v10762_v56 = vld [vmem:[#allocation2 + $0x170] sm:$0xf0] }
 0x350   : > { %4341 = vst [vmem:[%s13892_s29 + $0x98] sm:$0xff] %v4309_v63  ;;  %v4191_v5 = vadd.f32 %v4190_v12, %v4102_v55  ;;  %v4103_v8 = vpop.f32.mrf.mxu1  ;;  %v10545_v55 = vor.u32 %v12280_v4, %v10544_v61  ;;  %v10760_v12 = vld [vmem:[#allocation2 + $0x148] sm:$0xf] }
 0x352   : > { %v4243_v2 = vmul.f32 %v13877_v19, %v4191_v5  ;;  %v12326_v5 = vld [vmem:[#allocation2 + $0x14c] sm:$0xf] }
 0x354   : > { %v4014_v42 = vpop.f32.mrf.mxu0  ;;  %v4278_v40 = vadd.f32 %v13885_v57, %v4243_v2 }
 0x355   : > { %v4104_v22 = vadd.f32 %v4103_v8, %v4014_v42  ;;  %v10761_v42 = vor.u32 %v12327_v58, %v10760_v12  ;;  %v10765_v8 = vor.u32 %v12326_v5, %v10762_v56 }
 0x356   : > { %v4310_v21 = vmax.f32 %v4278_v40, 0.0 }
 0x357   : > { %v4192_v23 = vpop.f32.mrf.mxu2  ;;  %v14066_v25 = vpop.f32.mrf.mxu3 }
 0x358   : > { %4342 = vst [vmem:[%s13892_s29 + $0xa0] sm:$0xff] %v4310_v21  ;;  %v4193_v30 = vadd.f32 %v4192_v23, %v4104_v22  ;;  %v4106_v27 = vpop.f32.mrf.mxu1 }
 0x35a   : > { %v4244_v35 = vmul.f32 %v13877_v19, %v4193_v30 }
 0x35b   : > { %4875 = vmatmul.bf16.gmra.mxu1 %v10533_v50 }
 0x35c   : > { %5413 = vmatmul.bf16.gmra.mxu2 %v10749_v17  ;;  %5502 = vmatmul.bf16.gmra.mxu3 %v10753_v18  ;;  %v4017_v31 = vpop.f32.mrf.mxu0  ;;  %v4279_v28 = vadd.f32 %v13885_v57, %v4244_v35  ;;  %v10541_v18 = vor.u32 %v12278_v14, %v10538_v24  ;;  %v12283_v35 = vld [vmem:[#allocation2 + $0x1c0] sm:$0xf0] }
 0x35d   : > { %v4107_v43 = vadd.f32 %v4106_v27, %v4017_v31 }
 0x35e   : > { %v4311_v39 = vmax.f32 %v4279_v28, 0.0  ;;  %v12330_v28 = vld [vmem:[#allocation2 + $0x1bc] sm:$0xf0] }
 0x35f   : > { %4786 = vmatmul.bf16.gmra.mxu0 %v10529_v13  ;;  %v4195_v20 = vpop.f32.mrf.mxu2  ;;  %v14071_v44 = vpop.f32.mrf.mxu3 }
 0x360   : > { %4343 = vst [vmem:[%s13892_s29 + $0xa8] sm:$0xff] %v4311_v39  ;;  %v4196_v48 = vadd.f32 %v4195_v20, %v4107_v43  ;;  %v4108_v47 = vpop.f32.mrf.mxu1  ;;  %v10774_v39 = vld [vmem:[#allocation2 + $0x1c0] sm:$0xf0]  ;;  %v10556_v43 = vld [vmem:[#allocation2 + $0x19c] sm:$0xf] }
 0x362   : > { %v4245_v45 = vmul.f32 %v13877_v19, %v4196_v48  ;;  %v10557_v48 = vor.u32 %v12283_v35, %v10556_v43  ;;  %v10784_v35 = vld [vmem:[#allocation2 + $0x1e8] sm:$0xf] }
 0x364   : > { %v4019_v53 = vpop.f32.mrf.mxu0  ;;  %v4280_v63 = vadd.f32 %v13885_v57, %v4245_v45 }
 0x365   : > { %v4109_v2 = vadd.f32 %v4108_v47, %v4019_v53  ;;  %v10772_v53 = vld [vmem:[#allocation2 + $0x198] sm:$0xf]  ;;  %v12329_v47 = vld [vmem:[#allocation2 + $0x19c] sm:$0xf] }
 0x366   : > { %v4312_v36 = vmax.f32 %v4280_v63, 0.0  ;;  %v10773_v4 = vor.u32 %v12330_v28, %v10772_v53  ;;  %v10777_v45 = vor.u32 %v12329_v47, %v10774_v39  ;;  %v10562_v47 = vld [vmem:[#allocation2 + $0x20c] sm:$0xf0] }
 0x367   : > { %v4197_v41 = vpop.f32.mrf.mxu2  ;;  %v14076_v3 = vpop.f32.mrf.mxu3 }
 0x368   : > { %4344 = vst [vmem:[%s13892_s29 + $0xb0] sm:$0xff] %v4312_v36  ;;  %v4198_v40 = vadd.f32 %v4197_v41, %v4109_v2  ;;  %v4111_v11 = vpop.f32.mrf.mxu1 }
 0x36a   : > { %v4246_v17 = vmul.f32 %v13877_v19, %v4198_v40 }
 0x36b   : > { %4880 = vmatmul.bf16.gmra.mxu1 %v10545_v55  ;;  %v10550_v55 = vld [vmem:[#allocation2 + $0x1bc] sm:$0xf0] }
 0x36c   : > { %5418 = vmatmul.bf16.gmra.mxu2 %v10761_v42  ;;  %5507 = vmatmul.bf16.gmra.mxu3 %v10765_v8  ;;  %v4022_v50 = vpop.f32.mrf.mxu0  ;;  %v4281_v21 = vadd.f32 %v13885_v57, %v4246_v17  ;;  %v12281_v8 = vld [vmem:[#allocation2 + $0x198] sm:$0xf] }
 0x36d   : > { %v4112_v23 = vadd.f32 %v4111_v11, %v4022_v50  ;;  %v10553_v2 = vor.u32 %v12281_v8, %v10550_v55  ;;  %v14108_v55 = vld [vmem:[%s15337_s6] ss:$0 sm:$0xff] }
 0x36e   : > { %v4313_v22 = vmax.f32 %v4281_v21, 0.0  ;;  %v12286_v21 = vld [vmem:[#allocation2 + $0x210] sm:$0xf0] }
 0x36f   : > { %4791 = vmatmul.bf16.gmra.mxu0 %v10541_v18  ;;  %v4200_v26 = vpop.f32.mrf.mxu2  ;;  %v14081_v30 = vpop.f32.mrf.mxu3 }
 0x370   : > { %4345 = vst [vmem:[%s13892_s29 + $0xb8] sm:$0xff] %v4313_v22  ;;  %v4201_v31 = vadd.f32 %v4200_v26, %v4112_v23  ;;  %v4113_v34 = vpop.f32.mrf.mxu1  ;;  %v14097_v22 = vld [vmem:[%s15336_s5] ss:$0 sm:$0xff]  ;;  %v12333_v23 = vld [vmem:[#allocation2 + $0x20c] sm:$0xf0] }
 0x371   : > { %v10786_v26 = vld [vmem:[#allocation2 + $0x210] sm:$0xf0]  ;;  %v10785_v28 = vor.u32 %v12333_v23, %v10784_v35  ;;  %v10796_v23 = vld [vmem:[#allocation2 + $0x238] sm:$0xf] }
 0x372   : > { %v4247_v13 = vmul.f32 %v13877_v19, %v4201_v31  ;;  %v10568_v31 = vld [vmem:[#allocation2 + $0x1ec] sm:$0xf] }
 0x374   : > { %v4024_v27 = vpop.f32.mrf.mxu0  ;;  %v4282_v20 = vadd.f32 %v13885_v57, %v4247_v13  ;;  %v12332_v13 = vld [vmem:[#allocation2 + $0x1ec] sm:$0xf] }
 0x375   : > { %v4114_v56 = vadd.f32 %v4113_v34, %v4024_v27  ;;  %v10569_v34 = vor.u32 %v12286_v21, %v10568_v31  ;;  %v10789_v39 = vor.u32 %v12332_v13, %v10786_v26  ;;  %v12335_v26 = vld [vmem:[#allocation2 + $0x23c] sm:$0xf] }
 0x376   : > { %v4314_v58 = vmax.f32 %v4282_v20, 0.0 }
 0x377   : > { %v4202_v61 = vpop.f32.mrf.mxu2  ;;  %v14086_v63 = vpop.f32.mrf.mxu3 }
 0x378   : > { %4346 = vst [vmem:[%s13892_s29 + $0xc0] sm:$0xff] %v4314_v58  ;;  %v4203_v12 = vadd.f32 %v4202_v61, %v4114_v56  ;;  %v4116_v42 = vpop.f32.mrf.mxu1 }
 0x37a   : > { %v4248_v36 = vmul.f32 %v13877_v19, %v4203_v12 }
 0x37b   : > { %4885 = vmatmul.bf16.gmra.mxu1 %v10557_v48 }
 0x37c   : > { %5423 = vmatmul.bf16.gmra.mxu2 %v10773_v4  ;;  %5512 = vmatmul.bf16.gmra.mxu3 %v10777_v45  ;;  %v4027_v5 = vpop.f32.mrf.mxu0  ;;  %v4283_v41 = vadd.f32 %v13885_v57, %v4248_v36 }
 0x37d   : > { %v4117_v40 = vadd.f32 %v4116_v42, %v4027_v5 }
 0x37e   : > { %v4315_v24 = vmax.f32 %v4283_v41, 0.0 }
 0x37f   : > { %4796 = vmatmul.bf16.gmra.mxu0 %v10553_v2  ;;  %v4205_v50 = vpop.f32.mrf.mxu2  ;;  %v14091_v11 = vpop.f32.mrf.mxu3 }
 0x380   : > { %4347 = vst [vmem:[%s13892_s29 + $0xc8] sm:$0xff] %v4315_v24  ;;  %v4206_v14 = vadd.f32 %v4205_v50, %v4117_v40  ;;  %v4118_v18 = vpop.f32.mrf.mxu1  ;;  %v12289_v40 = vld [vmem:[#allocation2 + $0x260] sm:$0xf0] }
 0x382   : > { %v4249_v19 = vmul.f32 %v14097_v22, %v4206_v14  ;;  %v12336_v14 = vld [vmem:[#allocation2 + $0x25c] sm:$0xf0] }
 0x383   : > { %v10797_v31 = vor.u32 %v12336_v14, %v10796_v23 }
 0x384   : > { %v4029_v17 = vpop.f32.mrf.mxu0  ;;  %v4284_v27 = vadd.f32 %v13885_v57, %v4249_v19  ;;  %v12284_v57 = vld [vmem:[#allocation2 + $0x1e8] sm:$0xf] }
 0x385   : > { %v4119_v20 = vadd.f32 %v4118_v18, %v4029_v17  ;;  %v10565_v61 = vor.u32 %v12284_v57, %v10562_v47  ;;  %v10798_v17 = vld [vmem:[#allocation2 + $0x260] sm:$0xf0]  ;;  %v10580_v18 = vld [vmem:[#allocation2 + $0x23c] sm:$0xf]  ;;  %v12287_v47 = vld [vmem:[#allocation2 + $0x238] sm:$0xf] }
 0x386   : > { %v4316_v43 = vmax.f32 %v4284_v27, 0.0  ;;  %v10581_v19 = vor.u32 %v12289_v40, %v10580_v18  ;;  %v10801_v27 = vor.u32 %v12335_v26, %v10798_v17  ;;  %v10810_v40 = vld [vmem:[#allocation2 + $0x2b0] sm:$0xf0]  ;;  %v10808_v18 = vld [vmem:[#allocation2 + $0x288] sm:$0xf] }
 0x387   : > { %v4207_v48 = vpop.f32.mrf.mxu2  ;;  %v14101_v53 = vpop.f32.mrf.mxu3 }
 0x388   : > { %4348 = vst [vmem:[%s13892_s29 + $0xd0] sm:$0xff] %v4316_v43  ;;  %v4208_v4 = vadd.f32 %v4207_v48, %v4119_v20  ;;  %v4121_v58 = vpop.f32.mrf.mxu1 }
 0x38a   : > { %v4250_v56 = vmul.f32 %v14097_v22, %v4208_v4 }
 0x38b   : > { %4890 = vmatmul.bf16.gmra.mxu1 %v10569_v34 }
 0x38c   : > { %5428 = vmatmul.bf16.gmra.mxu2 %v10785_v28  ;;  %5517 = vmatmul.bf16.gmra.mxu3 %v10789_v39  ;;  %v4032_v45 = vpop.f32.mrf.mxu0  ;;  %v4285_v12 = vadd.f32 %v14108_v55, %v4250_v56  ;;  %v10574_v39 = vld [vmem:[#allocation2 + $0x25c] sm:$0xf0] }
 0x38d   : > { %v4122_v42 = vadd.f32 %v4121_v58, %v4032_v45  ;;  %v10577_v45 = vor.u32 %v12287_v47, %v10574_v39 }
 0x38e   : > { %v4317_v5 = vmax.f32 %v4285_v12, 0.0 }
 0x38f   : > { %4801 = vmatmul.bf16.gmra.mxu0 %v10565_v61  ;;  %v4210_v8 = vpop.f32.mrf.mxu2  ;;  %v14111_v36 = vpop.f32.mrf.mxu3 }
 0x390   : > { %4349 = vst [vmem:[%s13892_s29 + $0xd8] sm:$0xff] %v4317_v5  ;;  %v4211_v2 = vadd.f32 %v4210_v8, %v4122_v42  ;;  %v4123_v24 = vpop.f32.mrf.mxu1 }
 0x392   : > { %v4251_v50 = vmul.f32 %v14097_v22, %v4211_v2  ;;  %v12292_v2 = vld [vmem:[#allocation2 + $0x2b0] sm:$0xf0] }
 0x394   : > { %v4034_v41 = vpop.f32.mrf.mxu0  ;;  %v4286_v21 = vadd.f32 %v14108_v55, %v4251_v50  ;;  %v10592_v50 = vld [vmem:[#allocation2 + $0x28c] sm:$0xf] }
 0x395   : > { %v4124_v35 = vadd.f32 %v4123_v24, %v4034_v41  ;;  %v12339_v24 = vld [vmem:[#allocation2 + $0x2ac] sm:$0xf0]  ;;  %v10593_v17 = vor.u32 %v12292_v2, %v10592_v50  ;;  %v12342_v50 = vld [vmem:[#allocation2 + $0x2fc] sm:$0xf0] }
 0x396   : > { %v4318_v34 = vmax.f32 %v4286_v21, 0.0  ;;  %v12338_v21 = vld [vmem:[#allocation2 + $0x28c] sm:$0xf] }
 0x397   : > { %v4212_v13 = vpop.f32.mrf.mxu2  ;;  %v14116_v28 = vpop.f32.mrf.mxu3  ;;  %v10813_v23 = vor.u32 %v12338_v21, %v10810_v40 }
 0x398   : > { %4350 = vst [vmem:[%s13892_s29 + $0xe0] sm:$0xff] %v4318_v34  ;;  %v4213_v43 = vadd.f32 %v4212_v13, %v4124_v35  ;;  %v4126_v48 = vpop.f32.mrf.mxu1  ;;  %v10586_v35 = vld [vmem:[#allocation2 + $0x2ac] sm:$0xf0] }
 0x39a   : > { %v4252_v4 = vmul.f32 %v14097_v22, %v4213_v43 }
 0x39b   : > { %4895 = vmatmul.bf16.gmra.mxu1 %v10581_v19  ;;  %v10809_v19 = vor.u32 %v12339_v24, %v10808_v18  ;;  %v12295_v24 = vld [vmem:[#allocation2 + $0x300] sm:$0xf0] }
 0x39c   : > { %5433 = vmatmul.bf16.gmra.mxu2 %v10797_v31  ;;  %5522 = vmatmul.bf16.gmra.mxu3 %v10801_v27  ;;  %v4037_v20 = vpop.f32.mrf.mxu0  ;;  %v4287_v58 = vadd.f32 %v14108_v55, %v4252_v4 }
 0x39d   : > { %v4127_v56 = vadd.f32 %v4126_v48, %v4037_v20  ;;  %v12290_v20 = vld [vmem:[#allocation2 + $0x288] sm:$0xf] }
 0x39e   : > { %v4319_v57 = vmax.f32 %v4287_v58, 0.0  ;;  %v10589_v4 = vor.u32 %v12290_v20, %v10586_v35 }
 0x39f   : > { %4806 = vmatmul.bf16.gmra.mxu0 %v10577_v45  ;;  %v4215_v61 = vpop.f32.mrf.mxu2  ;;  %v14121_v12 = vpop.f32.mrf.mxu3 }
 0x3a0   : > { %4351 = vst [vmem:[%s13892_s29 + $0xe8] sm:$0xff] %v4319_v57  ;;  %v4216_v5 = vadd.f32 %v4215_v61, %v4127_v56  ;;  %v4128_v8 = vpop.f32.mrf.mxu1 }
 0x3a2   : > { %v4253_v41 = vmul.f32 %v14097_v22, %v4216_v5 }
 0x3a4   : > { %v4039_v42 = vpop.f32.mrf.mxu0  ;;  %v4288_v14 = vadd.f32 %v14108_v55, %v4253_v41 }
 0x3a5   : > { %v4129_v31 = vadd.f32 %v4128_v8, %v4039_v42 }
 0x3a6   : > { %v4320_v26 = vmax.f32 %v4288_v14, 0.0  ;;  %v10822_v14 = vld [vmem:[#allocation2 + $0x300] sm:$0xf0] }
 0x3a7   : > { %v4217_v27 = vpop.f32.mrf.mxu2  ;;  %v14126_v34 = vpop.f32.mrf.mxu3 }
 0x3a8   : > { %4352 = vst [vmem:[%s13892_s29 + $0xf0] sm:$0xff] %v4320_v26  ;;  %v4218_v13 = vadd.f32 %v4217_v27, %v4129_v31  ;;  %v4861_v43 = vpop.f32.mrf.mxu1 }
 0x3aa   : > { %v4254_v48 = vmul.f32 %v14097_v22, %v4218_v13 }
 0x3ab   : > { %4900 = vmatmul.bf16.gmra.mxu1 %v10593_v17  ;;  %v10604_v17 = vld [vmem:[#allocation2 + $0x2dc] sm:$0xf] }
 0x3ac   : > { %5438 = vmatmul.bf16.gmra.mxu2 %v10809_v19  ;;  %5527 = vmatmul.bf16.gmra.mxu3 %v10813_v23  ;;  %v4772_v39 = vpop.f32.mrf.mxu0  ;;  %v4289_v45 = vadd.f32 %v14108_v55, %v4254_v48  ;;  %v10605_v21 = vor.u32 %v12295_v24, %v10604_v17  ;;  %v10820_v19 = vld [vmem:[#allocation2 + $0x2d8] sm:$0xf]  ;;  %v12341_v23 = vld [vmem:[#allocation2 + $0x2dc] sm:$0xf]  ;;  %v10616_v17 = vld [vmem:[#allocation2 + $0x32c] sm:$0xf] }
 0x3ad   : > { %v4773_v47 = vadd.f32 %v4772_v39, %v13879_v52  ;;  %v10821_v26 = vor.u32 %v12342_v50, %v10820_v19  ;;  %v10825_v31 = vor.u32 %v12341_v23, %v10822_v14  ;;  %v10598_v39 = vld [vmem:[#allocation2 + $0x2fc] sm:$0xf0]  ;;  %v10834_v14 = vld [vmem:[#allocation2 + $0x350] sm:$0xf0]  ;;  %v10832_v19 = vld [vmem:[#allocation2 + $0x328] sm:$0xf] }
 0x3ae   : > { %v4321_v57 = vmax.f32 %v4289_v45, 0.0  ;;  %v12344_v23 = vld [vmem:[#allocation2 + $0x32c] sm:$0xf] }
 0x3af   : > { %v4862_v58 = vadd.f32 %v4861_v43, %v4773_v47  ;;  %4811 = vmatmul.bf16.gmra.mxu0 %v10589_v4  ;;  %v5399_v61 = vpop.f32.mrf.mxu2  ;;  %v5488_v5 = vpop.f32.mrf.mxu3  ;;  %v12293_v47 = vld [vmem:[#allocation2 + $0x2d8] sm:$0xf] }
 0x3b0   : > { %4353 = vst [vmem:[%s13892_s29 + $0xf8] sm:$0xff] %v4321_v57  ;;  %v14135_v8 = vadd.f32 %v5488_v5, %v5399_v61  ;;  %v4863_v41 = vpop.f32.mrf.mxu1 }
 0x3b1   : > { %v4941_v56 = vmul.f32 %v14097_v22, %v4862_v58  ;;  %v10601_v58 = vor.u32 %v12293_v47, %v10598_v39  ;;  %v10610_v39 = vld [vmem:[#allocation2 + $0x34c] sm:$0xf0]  ;;  %v12296_v47 = vld [vmem:[#allocation2 + $0x328] sm:$0xf] }
 0x3b3   : > { %v4973_v42 = vadd.f32 %v14108_v55, %v4941_v56 }
 0x3b4   : > { %v4774_v2 = vpop.f32.mrf.mxu0 }
 0x3b5   : > { %v5005_v52 = vmax.f32 %v4973_v42, 0.0  ;;  %v4775_v40 = vadd.f32 %v4774_v2, %v13894_v0 }
 0x3b7   : > { %10678 = vst [vmem:[%s13892_s29 + $0x100] sm:$0xff] %v5005_v52  ;;  %v4864_v18 = vadd.f32 %v4863_v41, %v4775_v40  ;;  %v5401_v35 = vpop.f32.mrf.mxu2  ;;  %v5490_v13 = vpop.f32.mrf.mxu3  ;;  %v12298_v52 = vld [vmem:[#allocation2 + $0x350] sm:$0xf0] }
 0x3b8   : > { %v14141_v43 = vadd.f32 %v5490_v13, %v5401_v35  ;;  %v4866_v48 = vpop.f32.mrf.mxu1 }
 0x3b9   : > { %v4942_v27 = vmul.f32 %v14097_v22, %v4864_v18 }
 0x3bb   : > { %4905 = vmatmul.bf16.gmra.mxu1 %v10605_v21  ;;  %v4974_v0 = vadd.f32 %v14108_v55, %v4942_v27  ;;  %v10617_v21 = vor.u32 %v12298_v52, %v10616_v17  ;;  %v10628_v17 = vld [vmem:[#allocation2 + $0x37c] sm:$0xf] }
 0x3bc   : > { %5443 = vmatmul.bf16.gmra.mxu2 %v10821_v26  ;;  %5532 = vmatmul.bf16.gmra.mxu3 %v10825_v31  ;;  %v4777_v20 = vpop.f32.mrf.mxu0  ;;  %v10837_v31 = vor.u32 %v12344_v23, %v10834_v14  ;;  %v10846_v14 = vld [vmem:[#allocation2 + $0x3a0] sm:$0xf0]  ;;  %v12347_v23 = vld [vmem:[#allocation2 + $0x37c] sm:$0xf] }
 0x3bd   : > { %v5006_v4 = vmax.f32 %v4974_v0, 0.0  ;;  %v4778_v45 = vadd.f32 %v4777_v20, %v13899_v10  ;;  %v12345_v10 = vld [vmem:[#allocation2 + $0x34c] sm:$0xf0] }
 0x3be   : > { %v10833_v26 = vor.u32 %v12345_v10, %v10832_v19  ;;  %v10844_v19 = vld [vmem:[#allocation2 + $0x378] sm:$0xf] }
 0x3bf   : > { %10679 = vst [vmem:[%s13892_s29 + $0x108] sm:$0xff] %v5006_v4  ;;  %v4867_v57 = vadd.f32 %v4866_v48, %v4778_v45  ;;  %4816 = vmatmul.bf16.gmra.mxu0 %v10601_v58  ;;  %v5404_v61 = vpop.f32.mrf.mxu2  ;;  %v5493_v5 = vpop.f32.mrf.mxu3  ;;  %v10613_v58 = vor.u32 %v12296_v47, %v10610_v39  ;;  %v10622_v39 = vld [vmem:[#allocation2 + $0x39c] sm:$0xf0]  ;;  %v12299_v47 = vld [vmem:[#allocation2 + $0x378] sm:$0xf] }
 0x3c0   : > { %v14147_v2 = vadd.f32 %v5493_v5, %v5404_v61  ;;  %v4868_v24 = vpop.f32.mrf.mxu1 }
 0x3c1   : > { %v4943_v56 = vmul.f32 %v14097_v22, %v4867_v57 }
 0x3c3   : > { %v4975_v42 = vadd.f32 %v14108_v55, %v4943_v56 }
 0x3c4   : > { %v4779_v41 = vpop.f32.mrf.mxu0 }
 0x3c5   : > { %v5007_v40 = vmax.f32 %v4975_v42, 0.0  ;;  %v4780_v50 = vadd.f32 %v4779_v41, %v13904_v37 }
 0x3c7   : > { %10680 = vst [vmem:[%s13892_s29 + $0x110] sm:$0xff] %v5007_v40  ;;  %v4869_v18 = vadd.f32 %v4868_v24, %v4780_v50  ;;  %v5406_v35 = vpop.f32.mrf.mxu2  ;;  %v5495_v13 = vpop.f32.mrf.mxu3  ;;  %v12301_v40 = vld [vmem:[#allocation2 + $0x3a0] sm:$0xf0] }
 0x3c8   : > { %v14153_v0 = vadd.f32 %v5495_v13, %v5406_v35  ;;  %v4871_v48 = vpop.f32.mrf.mxu1 }
 0x3c9   : > { %v4944_v27 = vmul.f32 %v14097_v22, %v4869_v18 }
 0x3cb   : > { %4910 = vmatmul.bf16.gmra.mxu1 %v10617_v21  ;;  %v4976_v37 = vadd.f32 %v14108_v55, %v4944_v27  ;;  %v10629_v21 = vor.u32 %v12301_v40, %v10628_v17  ;;  %v10640_v17 = vld [vmem:[#allocation2 + $0x3cc] sm:$0xf] }
 0x3cc   : > { %5448 = vmatmul.bf16.gmra.mxu2 %v10833_v26  ;;  %5537 = vmatmul.bf16.gmra.mxu3 %v10837_v31  ;;  %v4782_v20 = vpop.f32.mrf.mxu0  ;;  %v10849_v31 = vor.u32 %v12347_v23, %v10846_v14  ;;  %v10858_v14 = vld [vmem:[#allocation2 + $0x3f0] sm:$0xf0]  ;;  %v12350_v23 = vld [vmem:[#allocation2 + $0x3cc] sm:$0xf] }
 0x3cd   : > { %v5008_v4 = vmax.f32 %v4976_v37, 0.0  ;;  %v4783_v45 = vadd.f32 %v4782_v20, %v13909_v38  ;;  %v12348_v38 = vld [vmem:[#allocation2 + $0x39c] sm:$0xf0] }
 0x3ce   : > { %v10845_v26 = vor.u32 %v12348_v38, %v10844_v19  ;;  %v10856_v19 = vld [vmem:[#allocation2 + $0x3c8] sm:$0xf] }
 0x3cf   : > { %10681 = vst [vmem:[%s13892_s29 + $0x118] sm:$0xff] %v5008_v4  ;;  %v4872_v57 = vadd.f32 %v4871_v48, %v4783_v45  ;;  %4821 = vmatmul.bf16.gmra.mxu0 %v10613_v58  ;;  %v5409_v61 = vpop.f32.mrf.mxu2  ;;  %v5498_v5 = vpop.f32.mrf.mxu3  ;;  %v10625_v58 = vor.u32 %v12299_v47, %v10622_v39  ;;  %v10634_v39 = vld [vmem:[#allocation2 + $0x3ec] sm:$0xf0]  ;;  %v12302_v47 = vld [vmem:[#allocation2 + $0x3c8] sm:$0xf] }
 0x3d0   : > { %v14159_v41 = vadd.f32 %v5498_v5, %v5409_v61  ;;  %v4873_v52 = vpop.f32.mrf.mxu1 }
 0x3d1   : > { %v4945_v56 = vmul.f32 %v14097_v22, %v4872_v57 }
 0x3d3   : > { %v4977_v42 = vadd.f32 %v14108_v55, %v4945_v56 }
 0x3d4   : > { %v4784_v24 = vpop.f32.mrf.mxu0 }
 0x3d5   : > { %v5009_v50 = vmax.f32 %v4977_v42, 0.0  ;;  %v4785_v10 = vadd.f32 %v4784_v24, %v13914_v29 }
 0x3d7   : > { %10682 = vst [vmem:[%s13892_s29 + $0x120] sm:$0xff] %v5009_v50  ;;  %v4874_v18 = vadd.f32 %v4873_v52, %v4785_v10  ;;  %v5411_v35 = vpop.f32.mrf.mxu2  ;;  %v5500_v13 = vpop.f32.mrf.mxu3  ;;  %v12304_v50 = vld [vmem:[#allocation2 + $0x3f0] sm:$0xf0] }
 0x3d8   : > { %v14165_v37 = vadd.f32 %v5500_v13, %v5411_v35  ;;  %v4876_v48 = vpop.f32.mrf.mxu1 }
 0x3d9   : > { %v4946_v27 = vmul.f32 %v14097_v22, %v4874_v18 }
 0x3db   : > { %4915 = vmatmul.bf16.gmra.mxu1 %v10629_v21  ;;  %v4978_v29 = vadd.f32 %v14108_v55, %v4946_v27  ;;  %v10641_v21 = vor.u32 %v12304_v50, %v10640_v17  ;;  %v10652_v17 = vld [vmem:[#allocation2 + $0x41c] sm:$0xf] }
 0x3dc   : > { %5453 = vmatmul.bf16.gmra.mxu2 %v10845_v26  ;;  %5542 = vmatmul.bf16.gmra.mxu3 %v10849_v31  ;;  %v4787_v20 = vpop.f32.mrf.mxu0  ;;  %v10861_v31 = vor.u32 %v12350_v23, %v10858_v14  ;;  %v10870_v14 = vld [vmem:[#allocation2 + $0x440] sm:$0xf0]  ;;  %v12353_v23 = vld [vmem:[#allocation2 + $0x41c] sm:$0xf] }
 0x3dd   : > { %v5010_v4 = vmax.f32 %v4978_v29, 0.0  ;;  %v4788_v45 = vadd.f32 %v4787_v20, %v13919_v6  ;;  %v12351_v6 = vld [vmem:[#allocation2 + $0x3ec] sm:$0xf0] }
 0x3de   : > { %v10857_v26 = vor.u32 %v12351_v6, %v10856_v19  ;;  %v10868_v19 = vld [vmem:[#allocation2 + $0x418] sm:$0xf] }
 0x3df   : > { %10683 = vst [vmem:[%s13892_s29 + $0x128] sm:$0xff] %v5010_v4  ;;  %v4877_v57 = vadd.f32 %v4876_v48, %v4788_v45  ;;  %4826 = vmatmul.bf16.gmra.mxu0 %v10625_v58  ;;  %v5414_v61 = vpop.f32.mrf.mxu2  ;;  %v5503_v5 = vpop.f32.mrf.mxu3  ;;  %v10637_v58 = vor.u32 %v12302_v47, %v10634_v39  ;;  %v10646_v39 = vld [vmem:[#allocation2 + $0x43c] sm:$0xf0]  ;;  %v12305_v47 = vld [vmem:[#allocation2 + $0x418] sm:$0xf] }
 0x3e0   : > { %v14171_v24 = vadd.f32 %v5503_v5, %v5414_v61  ;;  %v4878_v40 = vpop.f32.mrf.mxu1 }
 0x3e1   : > { %v4947_v56 = vmul.f32 %v14097_v22, %v4877_v57 }
 0x3e3   : > { %v4979_v42 = vadd.f32 %v14108_v55, %v4947_v56 }
 0x3e4   : > { %v4789_v52 = vpop.f32.mrf.mxu0 }
 0x3e5   : > { %v5011_v10 = vmax.f32 %v4979_v42, 0.0  ;;  %v4790_v38 = vadd.f32 %v4789_v52, %v13924_v49 }
 0x3e7   : > { %10684 = vst [vmem:[%s13892_s29 + $0x130] sm:$0xff] %v5011_v10  ;;  %v4879_v18 = vadd.f32 %v4878_v40, %v4790_v38  ;;  %v5416_v35 = vpop.f32.mrf.mxu2  ;;  %v5505_v13 = vpop.f32.mrf.mxu3  ;;  %v12307_v10 = vld [vmem:[#allocation2 + $0x440] sm:$0xf0] }
 0x3e8   : > { %v14177_v29 = vadd.f32 %v5505_v13, %v5416_v35  ;;  %v4881_v48 = vpop.f32.mrf.mxu1 }
 0x3e9   : > { %v4948_v27 = vmul.f32 %v14097_v22, %v4879_v18 }
 0x3eb   : > { %4920 = vmatmul.bf16.gmra.mxu1 %v10641_v21  ;;  %v4980_v49 = vadd.f32 %v14108_v55, %v4948_v27  ;;  %v10653_v21 = vor.u32 %v12307_v10, %v10652_v17  ;;  %v10664_v17 = vld [vmem:[#allocation2 + $0x46c] sm:$0xf] }
 0x3ec   : > { %5458 = vmatmul.bf16.gmra.mxu2 %v10857_v26  ;;  %5547 = vmatmul.bf16.gmra.mxu3 %v10861_v31  ;;  %v4792_v20 = vpop.f32.mrf.mxu0  ;;  %v10873_v31 = vor.u32 %v12353_v23, %v10870_v14  ;;  %v10882_v14 = vld [vmem:[#allocation2 + $0x490] sm:$0xf0]  ;;  %v12356_v23 = vld [vmem:[#allocation2 + $0x46c] sm:$0xf] }
 0x3ed   : > { %v5012_v4 = vmax.f32 %v4980_v49, 0.0  ;;  %v4793_v45 = vadd.f32 %v4792_v20, %v13929_v54  ;;  %v12354_v54 = vld [vmem:[#allocation2 + $0x43c] sm:$0xf0] }
 0x3ee   : > { %v10869_v26 = vor.u32 %v12354_v54, %v10868_v19  ;;  %v10880_v19 = vld [vmem:[#allocation2 + $0x468] sm:$0xf] }
 0x3ef   : > { %10685 = vst [vmem:[%s13892_s29 + $0x138] sm:$0xff] %v5012_v4  ;;  %v4882_v57 = vadd.f32 %v4881_v48, %v4793_v45  ;;  %4831 = vmatmul.bf16.gmra.mxu0 %v10637_v58  ;;  %v5419_v61 = vpop.f32.mrf.mxu2  ;;  %v5508_v5 = vpop.f32.mrf.mxu3  ;;  %v10649_v58 = vor.u32 %v12305_v47, %v10646_v39  ;;  %v10658_v39 = vld [vmem:[#allocation2 + $0x48c] sm:$0xf0]  ;;  %v12308_v47 = vld [vmem:[#allocation2 + $0x468] sm:$0xf] }
 0x3f0   : > { %v14183_v52 = vadd.f32 %v5508_v5, %v5419_v61  ;;  %v4883_v50 = vpop.f32.mrf.mxu1 }
 0x3f1   : > { %v4949_v56 = vmul.f32 %v14097_v22, %v4882_v57 }
 0x3f3   : > { %v4981_v42 = vadd.f32 %v14108_v55, %v4949_v56 }
 0x3f4   : > { %v4794_v40 = vpop.f32.mrf.mxu0 }
 0x3f5   : > { %v5013_v38 = vmax.f32 %v4981_v42, 0.0  ;;  %v4795_v6 = vadd.f32 %v4794_v40, %v13934_v60 }
 0x3f7   : > { %10686 = vst [vmem:[%s13892_s29 + $0x140] sm:$0xff] %v5013_v38  ;;  %v4884_v18 = vadd.f32 %v4883_v50, %v4795_v6  ;;  %v5421_v35 = vpop.f32.mrf.mxu2  ;;  %v5510_v13 = vpop.f32.mrf.mxu3  ;;  %v12310_v38 = vld [vmem:[#allocation2 + $0x490] sm:$0xf0] }
 0x3f8   : > { %v14189_v49 = vadd.f32 %v5510_v13, %v5421_v35  ;;  %v4886_v48 = vpop.f32.mrf.mxu1 }
 0x3f9   : > { %v4950_v27 = vmul.f32 %v14097_v22, %v4884_v18 }
 0x3fb   : > { %4925 = vmatmul.bf16.gmra.mxu1 %v10653_v21  ;;  %v4982_v60 = vadd.f32 %v14108_v55, %v4950_v27  ;;  %v10665_v21 = vor.u32 %v12310_v38, %v10664_v17  ;;  %v10676_v17 = vld [vmem:[#allocation2 + $0x4bc] sm:$0xf] }
 0x3fc   : > { %5463 = vmatmul.bf16.gmra.mxu2 %v10869_v26  ;;  %5552 = vmatmul.bf16.gmra.mxu3 %v10873_v31  ;;  %v4797_v20 = vpop.f32.mrf.mxu0  ;;  %v10885_v31 = vor.u32 %v12356_v23, %v10882_v14  ;;  %v10894_v14 = vld [vmem:[#allocation2 + $0x4e0] sm:$0xf0]  ;;  %v12359_v23 = vld [vmem:[#allocation2 + $0x4bc] sm:$0xf] }
 0x3fd   : > { %v5014_v4 = vmax.f32 %v4982_v60, 0.0  ;;  %v4798_v45 = vadd.f32 %v4797_v20, %v13939_v1  ;;  %v12357_v1 = vld [vmem:[#allocation2 + $0x48c] sm:$0xf0] }
 0x3fe   : > { %v10881_v26 = vor.u32 %v12357_v1, %v10880_v19  ;;  %v10892_v19 = vld [vmem:[#allocation2 + $0x4b8] sm:$0xf] }
 0x3ff   : > { %10687 = vst [vmem:[%s13892_s29 + $0x148] sm:$0xff] %v5014_v4  ;;  %v4887_v57 = vadd.f32 %v4886_v48, %v4798_v45  ;;  %4836 = vmatmul.bf16.gmra.mxu0 %v10649_v58  ;;  %v5424_v61 = vpop.f32.mrf.mxu2  ;;  %v5513_v5 = vpop.f32.mrf.mxu3  ;;  %v10661_v58 = vor.u32 %v12308_v47, %v10658_v39  ;;  %v10670_v39 = vld [vmem:[#allocation2 + $0x4dc] sm:$0xf0]  ;;  %v12311_v47 = vld [vmem:[#allocation2 + $0x4b8] sm:$0xf] }
 0x400   : > { %v14195_v40 = vadd.f32 %v5513_v5, %v5424_v61  ;;  %v4888_v10 = vpop.f32.mrf.mxu1 }
 0x401   : > { %v4951_v56 = vmul.f32 %v14097_v22, %v4887_v57 }
 0x403   : > { %v4983_v42 = vadd.f32 %v14108_v55, %v4951_v56 }
 0x404   : > { %v4799_v50 = vpop.f32.mrf.mxu0 }
 0x405   : > { %v5015_v6 = vmax.f32 %v4983_v42, 0.0  ;;  %v4800_v54 = vadd.f32 %v4799_v50, %v13944_v9 }
 0x407   : > { %10688 = vst [vmem:[%s13892_s29 + $0x150] sm:$0xff] %v5015_v6  ;;  %v4889_v18 = vadd.f32 %v4888_v10, %v4800_v54  ;;  %v5426_v35 = vpop.f32.mrf.mxu2  ;;  %v5515_v13 = vpop.f32.mrf.mxu3  ;;  %v12313_v6 = vld [vmem:[#allocation2 + $0x4e0] sm:$0xf0] }
 0x408   : > { %v14201_v60 = vadd.f32 %v5515_v13, %v5426_v35  ;;  %v4891_v48 = vpop.f32.mrf.mxu1 }
 0x409   : > { %v4952_v27 = vmul.f32 %v14097_v22, %v4889_v18 }
 0x40b   : > { %4930 = vmatmul.bf16.gmra.mxu1 %v10665_v21  ;;  %v4984_v9 = vadd.f32 %v14108_v55, %v4952_v27  ;;  %v10677_v21 = vor.u32 %v12313_v6, %v10676_v17  ;;  %v12364_v17 = vld [vmem:[#allocation2 + $0x38] sm:$0xf0] }
 0x40c   : > { %5468 = vmatmul.bf16.gmra.mxu2 %v10881_v26  ;;  %5557 = vmatmul.bf16.gmra.mxu3 %v10885_v31  ;;  %v4802_v20 = vpop.f32.mrf.mxu0  ;;  %v10897_v31 = vor.u32 %v12359_v23, %v10894_v14  ;;  %v10944_v14 = vld [vmem:[#allocation2 + $0x14] sm:$0xf]  ;;  %v12362_v23 = vld [vmem:[#allocation2 + $0x10] sm:$0xf] }
 0x40d   : > { %v5016_v4 = vmax.f32 %v4984_v9, 0.0  ;;  %v4803_v45 = vadd.f32 %v4802_v20, %v13949_v62  ;;  %v12360_v62 = vld [vmem:[#allocation2 + $0x4dc] sm:$0xf0] }
 0x40e   : > { %v10893_v26 = vor.u32 %v12360_v62, %v10892_v19 }
 0x40f   : > { %10689 = vst [vmem:[%s13892_s29 + $0x158] sm:$0xff] %v5016_v4  ;;  %v4892_v57 = vadd.f32 %v4891_v48, %v4803_v45  ;;  %4841 = vmatmul.bf16.gmra.mxu0 %v10661_v58  ;;  %v5429_v61 = vpop.f32.mrf.mxu2  ;;  %v5518_v5 = vpop.f32.mrf.mxu3  ;;  %v10673_v58 = vor.u32 %v12311_v47, %v10670_v39  ;;  %v12316_v39 = vld [vmem:[#allocation2 + $0x34] sm:$0xf0] }
 0x410   : > { %v14207_v50 = vadd.f32 %v5518_v5, %v5429_v61  ;;  %v4893_v38 = vpop.f32.mrf.mxu1 }
 0x411   : > { %v4953_v56 = vmul.f32 %v14097_v22, %v4892_v57 }
 0x413   : > { %v4985_v42 = vadd.f32 %v14108_v55, %v4953_v56 }
 0x414   : > { %v4804_v10 = vpop.f32.mrf.mxu0 }
 0x415   : > { %v5017_v54 = vmax.f32 %v4985_v42, 0.0  ;;  %v4805_v1 = vadd.f32 %v4804_v10, %v13954_v46 }
 0x417   : > { %10690 = vst [vmem:[%s13892_s29 + $0x160] sm:$0xff] %v5017_v54  ;;  %v4894_v18 = vadd.f32 %v4893_v38, %v4805_v1  ;;  %v5431_v35 = vpop.f32.mrf.mxu2  ;;  %v5520_v13 = vpop.f32.mrf.mxu3  ;;  %v12363_v54 = vld [vmem:[#allocation2 + $0x30] sm:$0xf0]  ;;  %v10938_v1 = vld [vmem:[#allocation2 + $0x34] sm:$0xf0] }
 0x418   : > { %v14213_v9 = vadd.f32 %v5520_v13, %v5431_v35  ;;  %v4896_v48 = vpop.f32.mrf.mxu1 }
 0x419   : > { %v4954_v27 = vmul.f32 %v14097_v22, %v4894_v18  ;;  %v10936_v18 = vld [vmem:[#allocation2 + $0xc] sm:$0xf] }
 0x41a   : > { %v10937_v19 = vor.u32 %v12363_v54, %v10936_v18 }
 0x41b   : > { %4935 = vmatmul.bf16.gmra.mxu1 %v10677_v21  ;;  %v4986_v46 = vadd.f32 %v14108_v55, %v4954_v27 }
 0x41c   : > { %5473 = vmatmul.bf16.gmra.mxu2 %v10893_v26  ;;  %5562 = vmatmul.bf16.gmra.mxu3 %v10897_v31  ;;  %v4807_v20 = vpop.f32.mrf.mxu0  ;;  %v10941_v26 = vor.u32 %v12362_v23, %v10938_v1  ;;  %v10945_v31 = vor.u32 %v12364_v17, %v10944_v14  ;;  %v12671_v14 = vld [vmem:[%s15335_s4 + $0x28] sm:$0xff] }
 0x41d   : > { %v5018_v4 = vmax.f32 %v4986_v46, 0.0  ;;  %v4808_v45 = vadd.f32 %v4807_v20, %v13959_v33  ;;  %v12665_v20 = vld [vmem:[%s15335_s4 + $0x38] sm:$0xff]  ;;  %v12672_v23 = vld [vmem:[%s15335_s4 + $0x68] sm:$0xff] }
 0x41f   : > { %10691 = vst [vmem:[%s13892_s29 + $0x168] sm:$0xff] %v5018_v4  ;;  %v4897_v57 = vadd.f32 %v4896_v48, %v4808_v45  ;;  %4846 = vmatmul.bf16.gmra.mxu0 %v10673_v58  ;;  %v5434_v61 = vpop.f32.mrf.mxu2  ;;  %v5523_v5 = vpop.f32.mrf.mxu3  ;;  %v12666_v48 = vld [vmem:[%s15335_s4 + $0x78] sm:$0xff]  ;;  %v10720_v45 = vld [vmem:[#allocation2 + $0x10] sm:$0xf] }
 0x420   : > { %v14219_v10 = vadd.f32 %v5523_v5, %v5434_v61  ;;  %v4898_v6 = vpop.f32.mrf.mxu1  ;;  %v12667_v58 = vld [vmem:[%s15335_s4 + $0xb8] sm:$0xff]  ;;  %v10721_v61 = vor.u32 %v12316_v39, %v10720_v45 }
 0x421   : > { %v4955_v56 = vmul.f32 %v14097_v22, %v4897_v57  ;;  %v10948_v39 = vld [vmem:[#allocation2 + $0x5c] sm:$0xf] }
 0x423   : > { %v4987_v42 = vadd.f32 %v14108_v55, %v4955_v56 }
 0x424   : > { %v4809_v38 = vpop.f32.mrf.mxu0 }
 0x425   : > { %v5019_v62 = vmax.f32 %v4987_v42, 0.0  ;;  %v4810_v33 = vadd.f32 %v4809_v38, %v13964_v59  ;;  %v12668_v42 = vld [vmem:[%s15335_s4 + $0x30] sm:$0xff] }
 0x426   : > { %v12669_v38 = vld [vmem:[%s15335_s4 + $0x70] sm:$0xff] }
 0x427   : > { %10692 = vst [vmem:[%s13892_s29 + $0x170] sm:$0xff] %v5019_v62  ;;  %v4899_v21 = vadd.f32 %v4898_v6, %v4810_v33  ;;  %v5436_v35 = vpop.f32.mrf.mxu2  ;;  %v5525_v13 = vpop.f32.mrf.mxu3 }
 0x428   : > { %v14225_v46 = vadd.f32 %v5525_v13, %v5436_v35  ;;  %v4901_v4 = vpop.f32.mrf.mxu1  ;;  %v12367_v35 = vld [vmem:[#allocation2 + $0x88] sm:$0xf0] }
 0x429   : > { %v4956_v27 = vmul.f32 %v14097_v22, %v4899_v21  ;;  %v12366_v21 = vld [vmem:[#allocation2 + $0x80] sm:$0xf0]  ;;  %v12673_v13 = vld [vmem:[%s15335_s4 + $0xa8] sm:$0xff] }
 0x42b   : > { %6114 = vmatmul.bf16.vlgmr.msra.gmra.mxu1 %v10937_v19  ;;  %v4988_v59 = vadd.f32 %v14108_v55, %v4956_v27  ;;  %v10950_v19 = vld [vmem:[#allocation2 + $0x84] sm:$0xf0]  ;;  %v10956_v27 = vld [vmem:[#allocation2 + $0x64] sm:$0xf] }
 0x42c   : > { %6203 = vmatmul.bf16.vlgmr.msra.gmra.mxu2 %v10941_v26  ;;  %6292 = vmatmul.bf16.vlgmr.msra.gmra.mxu3 %v10945_v31  ;;  %v4812_v47 = vpop.f32.mrf.mxu0  ;;  %v10957_v45 = vor.u32 %v12367_v35, %v10956_v27 }
 0x42d   : > { %8254 = vmatpush.bf16.msra.mxu2 %v12665_v20  ;;  %8343 = vmatpush.bf16.msra.mxu3 %v12666_v48  ;;  %v5020_v57 = vmax.f32 %v4988_v59, 0.0  ;;  %v4813_v56 = vadd.f32 %v4812_v47, %v13987_v15  ;;  %v12670_v15 = vld [vmem:[%s15335_s4 + $0xb0] sm:$0xff]  ;;  %v10949_v20 = vor.u32 %v12366_v21, %v10948_v39  ;;  %v12674_v47 = vld [vmem:[%s15335_s4 + $0x20] sm:$0xff] }
 0x42e   : > { %7716 = vmatpush.bf16.msra.mxu1 %v12667_v58  ;;  %v12682_v39 = vld [vmem:[%s15335_s4 + $0x90] sm:$0xff] }
 0x42f   : > { %10693 = vst [vmem:[%s13892_s29 + $0x178] sm:$0xff] %v5020_v57  ;;  %v4902_v5 = vadd.f32 %v4901_v4, %v4813_v56  ;;  %5576 = vmatmul.bf16.vlgmr.msra.gmra.mxu0 %v10721_v61  ;;  %v5439_v54 = vpop.f32.mrf.mxu2  ;;  %v5528_v1 = vpop.f32.mrf.mxu3  ;;  %v12319_v61 = vld [vmem:[#allocation2 + $0x84] sm:$0xf0] }
 0x430   : > { %7627 = vmatpush.bf16.msra.mxu0 %v12666_v48  ;;  %v14249_v33 = vadd.f32 %v5528_v1, %v5439_v54  ;;  %v4903_v18 = vpop.f32.mrf.mxu1  ;;  %v12365_v48 = vld [vmem:[#allocation2 + $0x60] sm:$0xf] }
 0x431   : > { %8255 = vmatpush.bf16.msra.mxu2 %v12668_v42  ;;  %8344 = vmatpush.bf16.msra.mxu3 %v12669_v38  ;;  %v4957_v6 = vmul.f32 %v14097_v22, %v4902_v5  ;;  %v10953_v4 = vor.u32 %v12365_v48, %v10950_v19  ;;  %v10732_v1 = vld [vmem:[#allocation2 + $0x60] sm:$0xf]  ;;  %v12679_v19 = vld [vmem:[%s15335_s4 + $0x98] sm:$0xff]  ;;  %v12369_v48 = vld [vmem:[#allocation2 + $0xd0] sm:$0xf0] }
 0x432   : > { %7717 = vmatpush.bf16.msra.mxu1 %v12670_v15 }
 0x433   : > { %v4989_v62 = vadd.f32 %v14108_v55, %v4957_v6  ;;  %v12677_v6 = vld [vmem:[%s15335_s4 + $0x18] sm:$0xff] }
 0x434   : > { %v4814_v17 = vpop.f32.mrf.mxu0  ;;  %7628 = vmatpush.bf16.msra.mxu0 %v12669_v38  ;;  %v12676_v38 = vld [vmem:[%s15335_s4 + $0xa0] sm:$0xff] }
 0x435   : > { %8256 = vmatpush.bf16.msra.mxu2 %v12671_v14  ;;  %8345 = vmatpush.bf16.msra.mxu3 %v12672_v23  ;;  %v5021_v26 = vmax.f32 %v4989_v62, 0.0  ;;  %v4815_v31 = vadd.f32 %v4814_v17, %v14007_v51  ;;  %v12675_v51 = vld [vmem:[%s15335_s4 + $0x60] sm:$0xff]  ;;  %v12678_v62 = vld [vmem:[%s15335_s4 + $0x58] sm:$0xff] }
 0x436   : > { %7718 = vmatpush.bf16.msra.mxu1 %v12673_v13 }
 0x437   : > { %10694 = vst [vmem:[%s13892_s29 + $0x180] sm:$0xff] %v5021_v26  ;;  %v4904_v59 = vadd.f32 %v4903_v18, %v4815_v31  ;;  %v5441_v57 = vpop.f32.mrf.mxu2  ;;  %v5530_v56 = vpop.f32.mrf.mxu3  ;;  %v10733_v18 = vor.u32 %v12319_v61, %v10732_v1  ;;  %v10960_v61 = vld [vmem:[#allocation2 + $0xac] sm:$0xf] }
 0x438   : > { %7629 = vmatpush.bf16.msra.mxu0 %v12672_v23  ;;  %v14270_v42 = vadd.f32 %v5530_v56, %v5441_v57  ;;  %v4906_v54 = vpop.f32.mrf.mxu1  ;;  %v12680_v23 = vld [vmem:[%s15335_s4 + $0x10] sm:$0xff]  ;;  %v12370_v57 = vld [vmem:[#allocation2 + $0xd8] sm:$0xf0]  ;;  %v12684_v56 = vld [vmem:[%s15335_s4 + $0x48] sm:$0xff] }
 0x439   : > { %8257 = vmatpush.bf16.msra.mxu2 %v12674_v47  ;;  %8346 = vmatpush.bf16.msra.mxu3 %v12675_v51  ;;  %v4958_v58 = vmul.f32 %v14097_v22, %v4904_v59  ;;  %v10962_v47 = vld [vmem:[#allocation2 + $0xd4] sm:$0xf0] }
 0x43a   : > { %7719 = vmatpush.bf16.msra.mxu1 %v12676_v38  ;;  %v10961_v38 = vor.u32 %v12369_v48, %v10960_v61 }
 0x43b   : > { %6119 = vmatmul.bf16.gmra.mxu1 %v10949_v20  ;;  %v4990_v5 = vadd.f32 %v14108_v55, %v4958_v58  ;;  %v10968_v58 = vld [vmem:[#allocation2 + $0xb4] sm:$0xf] }
 0x43c   : > { %6208 = vmatmul.bf16.gmra.mxu2 %v10953_v4  ;;  %6297 = vmatmul.bf16.gmra.mxu3 %v10957_v45  ;;  %v4817_v15 = vpop.f32.mrf.mxu0  ;;  %v12683_v4 = vld [vmem:[%s15335_s4 + $0x8] sm:$0xff]  ;;  %v10969_v1 = vor.u32 %v12370_v57, %v10968_v58  ;;  %v12372_v57 = vld [vmem:[#allocation2 + $0x120] sm:$0xf0] }
 0x43d   : > { %8258 = vmatpush.bf16.msra.mxu2 %v12677_v6  ;;  %7630 = vmatpush.bf16.msra.mxu0 %v12675_v51  ;;  %v5022_v14 = vmax.f32 %v4990_v5, 0.0  ;;  %v4818_v17 = vadd.f32 %v4817_v15, %v14030_v7  ;;  %v12681_v7 = vld [vmem:[%s15335_s4 + $0x50] sm:$0xff]  ;;  %v12685_v15 = vld [vmem:[%s15335_s4 + $0x88] sm:$0xff] }
 0x43e   : > { %8347 = vmatpush.bf16.msra.mxu3 %v12678_v62  ;;  %7720 = vmatpush.bf16.msra.mxu1 %v12679_v19  ;;  %v12368_v6 = vld [vmem:[#allocation2 + $0xb0] sm:$0xf] }
 0x43f   : > { %10695 = vst [vmem:[%s13892_s29 + $0x188] sm:$0xff] %v5022_v14  ;;  %v4907_v21 = vadd.f32 %v4906_v54, %v4818_v17  ;;  %5581 = vmatmul.bf16.gmra.mxu0 %v10733_v18  ;;  %v5444_v31 = vpop.f32.mrf.mxu2  ;;  %v5533_v27 = vpop.f32.mrf.mxu3  ;;  %v10965_v54 = vor.u32 %v12368_v6, %v10962_v47  ;;  %v12687_v14 = vld [vmem:[%s15335_s4 + $0x40] sm:$0xff]  ;;  %v12373_v6 = vld [vmem:[#allocation2 + $0x128] sm:$0xf0] }
 0x440   : > { %v14294_v13 = vadd.f32 %v5533_v27, %v5444_v31  ;;  %v4908_v20 = vpop.f32.mrf.mxu1  ;;  %v10744_v31 = vld [vmem:[#allocation2 + $0xb0] sm:$0xf] }
 0x441   : > { %7631 = vmatpush.bf16.msra.mxu0 %v12678_v62  ;;  %8259 = vmatpush.bf16.msra.mxu2 %v12680_v23  ;;  %v4959_v26 = vmul.f32 %v14097_v22, %v4907_v21  ;;  %v12322_v21 = vld [vmem:[#allocation2 + $0xd4] sm:$0xf0] }
 0x442   : > { %8348 = vmatpush.bf16.msra.mxu3 %v12681_v7  ;;  %7721 = vmatpush.bf16.msra.mxu1 %v12682_v39  ;;  %v10745_v39 = vor.u32 %v12322_v21, %v10744_v31  ;;  %v12325_v21 = vld [vmem:[#allocation2 + $0x124] sm:$0xf0]  ;;  %v10756_v31 = vld [vmem:[#allocation2 + $0x100] sm:$0xf] }
 0x443   : > { %v4991_v35 = vadd.f32 %v14108_v55, %v4959_v26 }
 0x444   : > { %v4819_v59 = vpop.f32.mrf.mxu0 }
 0x445   : > { %7632 = vmatpush.bf16.msra.mxu0 %v12681_v7  ;;  %8260 = vmatpush.bf16.msra.mxu2 %v12683_v4  ;;  %v5023_v45 = vmax.f32 %v4991_v35, 0.0  ;;  %v4820_v51 = vadd.f32 %v4819_v59, %v14053_v32  ;;  %v12686_v32 = vld [vmem:[%s15335_s4] sm:$0xff] }
 0x446   : > { %8349 = vmatpush.bf16.msra.mxu3 %v12684_v56  ;;  %7722 = vmatpush.bf16.msra.mxu1 %v12685_v15  ;;  %v10972_v15 = vld [vmem:[#allocation2 + $0xfc] sm:$0xf] }
 0x447   : > { %10696 = vst [vmem:[%s13892_s29 + $0x190] sm:$0xff] %v5023_v45  ;;  %v4909_v5 = vadd.f32 %v4908_v20, %v4820_v51  ;;  %v5446_v17 = vpop.f32.mrf.mxu2  ;;  %v5535_v18 = vpop.f32.mrf.mxu3  ;;  %v14328_v20 = vld [vmem:[%s15336_s5] ss:$0 sm:$0xff] }
 0x448   : > { %v14318_v23 = vadd.f32 %v5535_v18, %v5446_v17  ;;  %v4911_v7 = vpop.f32.mrf.mxu1 }
 0x449   : > { %7633 = vmatpush.bf16.msra.mxu0 %v12684_v56  ;;  %8261 = vmatpush.bf16.msra.mxu2 %v12686_v32  ;;  %v4960_v62 = vmul.f32 %v14097_v22, %v4909_v5  ;;  %v12688_v22 = vld [vmem:[%s15335_s4 + $0x80] sm:$0xff]  ;;  %v10974_v56 = vld [vmem:[#allocation2 + $0x124] sm:$0xf0] }
 0x44a   : > { %8350 = vmatpush.bf16.msra.mxu3 %v12687_v14  ;;  %7723 = vmatpush.bf16.msra.mxu1 %v12688_v22  ;;  %v12371_v32 = vld [vmem:[#allocation2 + $0x100] sm:$0xf] }
 0x44b   : > { %6124 = vmatmul.bf16.gmra.mxu1 %v10961_v38  ;;  %v4992_v19 = vadd.f32 %v14108_v55, %v4960_v62  ;;  %v10980_v38 = vld [vmem:[#allocation2 + $0x104] sm:$0xf]  ;;  %v10977_v62 = vor.u32 %v12371_v32, %v10974_v56  ;;  %v12375_v56 = vld [vmem:[#allocation2 + $0x170] sm:$0xf0]  ;;  %v12374_v32 = vld [vmem:[#allocation2 + $0x150] sm:$0xf] }
 0x44c   : > { %6213 = vmatmul.bf16.gmra.mxu2 %v10965_v54  ;;  %6302 = vmatmul.bf16.gmra.mxu3 %v10969_v1  ;;  %v4822_v26 = vpop.f32.mrf.mxu0  ;;  %v10973_v1 = vor.u32 %v12372_v57, %v10972_v15  ;;  %v10984_v15 = vld [vmem:[#allocation2 + $0x14c] sm:$0xf] }
 0x44d   : > { %7634 = vmatpush.bf16.msra.mxu0 %v12687_v14  ;;  %v5024_v27 = vmax.f32 %v4992_v19, 0.0  ;;  %v4823_v35 = vadd.f32 %v4822_v26, %v14061_v16  ;;  %v10981_v14 = vor.u32 %v12373_v6, %v10980_v38  ;;  %v10992_v38 = vld [vmem:[#allocation2 + $0x154] sm:$0xf]  ;;  %v12376_v6 = vld [vmem:[#allocation2 + $0x178] sm:$0xf0] }
 0x44f   : > { %10697 = vst [vmem:[%s13892_s29 + $0x198] sm:$0xff] %v5024_v27  ;;  %v4912_v59 = vadd.f32 %v4911_v7, %v4823_v35  ;;  %5586 = vmatmul.bf16.gmra.mxu0 %v10745_v39  ;;  %v5449_v47 = vpop.f32.mrf.mxu2  ;;  %v5538_v4 = vpop.f32.mrf.mxu3  ;;  %v10757_v39 = vor.u32 %v12325_v21, %v10756_v31  ;;  %v12328_v21 = vld [vmem:[#allocation2 + $0x174] sm:$0xf0]  ;;  %v10768_v31 = vld [vmem:[#allocation2 + $0x150] sm:$0xf] }
 0x450   : > { %v14332_v51 = vadd.f32 %v5538_v4, %v5449_v47  ;;  %v4913_v16 = vpop.f32.mrf.mxu1 }
 0x451   : > { %v4961_v48 = vmul.f32 %v14328_v20, %v4912_v59 }
 0x453   : > { %v4993_v45 = vadd.f32 %v14108_v55, %v4961_v48 }
 0x454   : > { %v4824_v58 = vpop.f32.mrf.mxu0 }
 0x455   : > { %v5025_v61 = vmax.f32 %v4993_v45, 0.0  ;;  %v4825_v5 = vadd.f32 %v4824_v58, %v14066_v25  ;;  %v14340_v25 = vld [vmem:[%s15337_s6] ss:$0 sm:$0xff] }
 0x457   : > { %10698 = vst [vmem:[%s13892_s29 + $0x1a0] sm:$0xff] %v5025_v61  ;;  %v4914_v54 = vadd.f32 %v4913_v16, %v4825_v5  ;;  %v5451_v17 = vpop.f32.mrf.mxu2  ;;  %v5540_v18 = vpop.f32.mrf.mxu3  ;;  %v10986_v61 = vld [vmem:[#allocation2 + $0x174] sm:$0xf0] }
 0x458   : > { %v14343_v22 = vadd.f32 %v5540_v18, %v5451_v17  ;;  %v4916_v7 = vpop.f32.mrf.mxu1 }
 0x459   : > { %v4962_v55 = vmul.f32 %v14328_v20, %v4914_v54 }
 0x45b   : > { %6129 = vmatmul.bf16.gmra.mxu1 %v10973_v1  ;;  %v4994_v19 = vadd.f32 %v14340_v25, %v4962_v55  ;;  %v10985_v1 = vor.u32 %v12375_v56, %v10984_v15  ;;  %v10996_v15 = vld [vmem:[#allocation2 + $0x19c] sm:$0xf] }
 0x45c   : > { %6218 = vmatmul.bf16.gmra.mxu2 %v10977_v62  ;;  %6307 = vmatmul.bf16.gmra.mxu3 %v10981_v14  ;;  %v4827_v26 = vpop.f32.mrf.mxu0  ;;  %v10989_v62 = vor.u32 %v12374_v32, %v10986_v61  ;;  %v10993_v14 = vor.u32 %v12376_v6, %v10992_v38  ;;  %v12378_v61 = vld [vmem:[#allocation2 + $0x1c0] sm:$0xf0]  ;;  %v12379_v6 = vld [vmem:[#allocation2 + $0x1c8] sm:$0xf0]  ;;  %v12377_v32 = vld [vmem:[#allocation2 + $0x1a0] sm:$0xf] }
 0x45d   : > { %v5026_v27 = vmax.f32 %v4994_v19, 0.0  ;;  %v4828_v35 = vadd.f32 %v4827_v26, %v14071_v44  ;;  %v11004_v38 = vld [vmem:[#allocation2 + $0x1a4] sm:$0xf] }
 0x45f   : > { %10699 = vst [vmem:[%s13892_s29 + $0x1a8] sm:$0xff] %v5026_v27  ;;  %v4917_v59 = vadd.f32 %v4916_v7, %v4828_v35  ;;  %5591 = vmatmul.bf16.gmra.mxu0 %v10757_v39  ;;  %v5454_v47 = vpop.f32.mrf.mxu2  ;;  %v5543_v4 = vpop.f32.mrf.mxu3  ;;  %v10769_v39 = vor.u32 %v12328_v21, %v10768_v31  ;;  %v12331_v21 = vld [vmem:[#allocation2 + $0x1c4] sm:$0xf0]  ;;  %v10780_v31 = vld [vmem:[#allocation2 + $0x1a0] sm:$0xf] }
 0x460   : > { %v14349_v58 = vadd.f32 %v5543_v4, %v5454_v47  ;;  %v4918_v57 = vpop.f32.mrf.mxu1 }
 0x461   : > { %v4963_v48 = vmul.f32 %v14328_v20, %v4917_v59 }
 0x463   : > { %v4995_v45 = vadd.f32 %v14340_v25, %v4963_v48 }
 0x464   : > { %v4829_v16 = vpop.f32.mrf.mxu0 }
 0x465   : > { %v5027_v5 = vmax.f32 %v4995_v45, 0.0  ;;  %v4830_v44 = vadd.f32 %v4829_v16, %v14076_v3 }
 0x467   : > { %10700 = vst [vmem:[%s13892_s29 + $0x1b0] sm:$0xff] %v5027_v5  ;;  %v4919_v54 = vadd.f32 %v4918_v57, %v4830_v44  ;;  %v5456_v17 = vpop.f32.mrf.mxu2  ;;  %v5545_v18 = vpop.f32.mrf.mxu3  ;;  %v10998_v5 = vld [vmem:[#allocation2 + $0x1c4] sm:$0xf0] }
 0x468   : > { %v14355_v19 = vadd.f32 %v5545_v18, %v5456_v17  ;;  %v4921_v7 = vpop.f32.mrf.mxu1 }
 0x469   : > { %v4964_v55 = vmul.f32 %v14328_v20, %v4919_v54 }
 0x46b   : > { %6134 = vmatmul.bf16.gmra.mxu1 %v10985_v1  ;;  %v4996_v3 = vadd.f32 %v14340_v25, %v4964_v55  ;;  %v10997_v1 = vor.u32 %v12378_v61, %v10996_v15  ;;  %v11008_v15 = vld [vmem:[#allocation2 + $0x1ec] sm:$0xf] }
 0x46c   : > { %6223 = vmatmul.bf16.gmra.mxu2 %v10989_v62  ;;  %6312 = vmatmul.bf16.gmra.mxu3 %v10993_v14  ;;  %v4832_v26 = vpop.f32.mrf.mxu0  ;;  %v11001_v62 = vor.u32 %v12377_v32, %v10998_v5  ;;  %v11005_v14 = vor.u32 %v12379_v6, %v11004_v38  ;;  %v12381_v5 = vld [vmem:[#allocation2 + $0x210] sm:$0xf0]  ;;  %v12382_v6 = vld [vmem:[#allocation2 + $0x218] sm:$0xf0]  ;;  %v12380_v32 = vld [vmem:[#allocation2 + $0x1f0] sm:$0xf] }
 0x46d   : > { %v5028_v27 = vmax.f32 %v4996_v3, 0.0  ;;  %v4833_v35 = vadd.f32 %v4832_v26, %v14081_v30  ;;  %v11016_v38 = vld [vmem:[#allocation2 + $0x1f4] sm:$0xf] }
 0x46f   : > { %10701 = vst [vmem:[%s13892_s29 + $0x1b8] sm:$0xff] %v5028_v27  ;;  %v4922_v59 = vadd.f32 %v4921_v7, %v4833_v35  ;;  %5596 = vmatmul.bf16.gmra.mxu0 %v10769_v39  ;;  %v5459_v47 = vpop.f32.mrf.mxu2  ;;  %v5548_v4 = vpop.f32.mrf.mxu3  ;;  %v10781_v39 = vor.u32 %v12331_v21, %v10780_v31  ;;  %v12334_v21 = vld [vmem:[#allocation2 + $0x214] sm:$0xf0]  ;;  %v10792_v31 = vld [vmem:[#allocation2 + $0x1f0] sm:$0xf] }
 0x470   : > { %v14361_v16 = vadd.f32 %v5548_v4, %v5459_v47  ;;  %v4923_v56 = vpop.f32.mrf.mxu1 }
 0x471   : > { %v4965_v48 = vmul.f32 %v14328_v20, %v4922_v59 }
 0x473   : > { %v4997_v45 = vadd.f32 %v14340_v25, %v4965_v48 }
 0x474   : > { %v4834_v57 = vpop.f32.mrf.mxu0 }
 0x475   : > { %v5029_v44 = vmax.f32 %v4997_v45, 0.0  ;;  %v4835_v30 = vadd.f32 %v4834_v57, %v14086_v63 }
 0x477   : > { %10702 = vst [vmem:[%s13892_s29 + $0x1c0] sm:$0xff] %v5029_v44  ;;  %v4924_v54 = vadd.f32 %v4923_v56, %v4835_v30  ;;  %v5461_v17 = vpop.f32.mrf.mxu2  ;;  %v5550_v18 = vpop.f32.mrf.mxu3  ;;  %v11010_v44 = vld [vmem:[#allocation2 + $0x214] sm:$0xf0] }
 0x478   : > { %v14367_v3 = vadd.f32 %v5550_v18, %v5461_v17  ;;  %v4926_v7 = vpop.f32.mrf.mxu1 }
 0x479   : > { %v4966_v55 = vmul.f32 %v14328_v20, %v4924_v54 }
 0x47b   : > { %6139 = vmatmul.bf16.gmra.mxu1 %v10997_v1  ;;  %v4998_v63 = vadd.f32 %v14340_v25, %v4966_v55  ;;  %v11009_v1 = vor.u32 %v12381_v5, %v11008_v15  ;;  %v11020_v15 = vld [vmem:[#allocation2 + $0x23c] sm:$0xf] }
 0x47c   : > { %6228 = vmatmul.bf16.gmra.mxu2 %v11001_v62  ;;  %6317 = vmatmul.bf16.gmra.mxu3 %v11005_v14  ;;  %v4837_v26 = vpop.f32.mrf.mxu0  ;;  %v11013_v62 = vor.u32 %v12380_v32, %v11010_v44  ;;  %v11017_v14 = vor.u32 %v12382_v6, %v11016_v38  ;;  %v12384_v44 = vld [vmem:[#allocation2 + $0x260] sm:$0xf0]  ;;  %v12385_v6 = vld [vmem:[#allocation2 + $0x268] sm:$0xf0]  ;;  %v12383_v32 = vld [vmem:[#allocation2 + $0x240] sm:$0xf] }
 0x47d   : > { %v5030_v27 = vmax.f32 %v4998_v63, 0.0  ;;  %v4838_v35 = vadd.f32 %v4837_v26, %v14091_v11  ;;  %v11028_v38 = vld [vmem:[#allocation2 + $0x244] sm:$0xf] }
 0x47f   : > { %10703 = vst [vmem:[%s13892_s29 + $0x1c8] sm:$0xff] %v5030_v27  ;;  %v4927_v59 = vadd.f32 %v4926_v7, %v4838_v35  ;;  %5601 = vmatmul.bf16.gmra.mxu0 %v10781_v39  ;;  %v5464_v47 = vpop.f32.mrf.mxu2  ;;  %v5553_v4 = vpop.f32.mrf.mxu3  ;;  %v10793_v39 = vor.u32 %v12334_v21, %v10792_v31  ;;  %v12337_v21 = vld [vmem:[#allocation2 + $0x264] sm:$0xf0]  ;;  %v10804_v31 = vld [vmem:[#allocation2 + $0x240] sm:$0xf] }
 0x480   : > { %v14373_v57 = vadd.f32 %v5553_v4, %v5464_v47  ;;  %v4928_v61 = vpop.f32.mrf.mxu1 }
 0x481   : > { %v4967_v48 = vmul.f32 %v14328_v20, %v4927_v59 }
 0x483   : > { %v4999_v45 = vadd.f32 %v14340_v25, %v4967_v48 }
 0x484   : > { %v4839_v56 = vpop.f32.mrf.mxu0 }
 0x485   : > { %v5031_v30 = vmax.f32 %v4999_v45, 0.0  ;;  %v4840_v11 = vadd.f32 %v4839_v56, %v14101_v53 }
 0x487   : > { %10704 = vst [vmem:[%s13892_s29 + $0x1d0] sm:$0xff] %v5031_v30  ;;  %v4929_v54 = vadd.f32 %v4928_v61, %v4840_v11  ;;  %v5466_v17 = vpop.f32.mrf.mxu2  ;;  %v5555_v18 = vpop.f32.mrf.mxu3  ;;  %v11022_v30 = vld [vmem:[#allocation2 + $0x264] sm:$0xf0] }
 0x488   : > { %v14379_v63 = vadd.f32 %v5555_v18, %v5466_v17  ;;  %v4931_v7 = vpop.f32.mrf.mxu1 }
 0x489   : > { %v4968_v55 = vmul.f32 %v14328_v20, %v4929_v54 }
 0x48b   : > { %6144 = vmatmul.bf16.gmra.mxu1 %v11009_v1  ;;  %v5000_v53 = vadd.f32 %v14340_v25, %v4968_v55  ;;  %v11021_v1 = vor.u32 %v12384_v44, %v11020_v15  ;;  %v11032_v15 = vld [vmem:[#allocation2 + $0x28c] sm:$0xf] }
 0x48c   : > { %6233 = vmatmul.bf16.gmra.mxu2 %v11013_v62  ;;  %6322 = vmatmul.bf16.gmra.mxu3 %v11017_v14  ;;  %v4842_v26 = vpop.f32.mrf.mxu0  ;;  %v11025_v62 = vor.u32 %v12383_v32, %v11022_v30  ;;  %v11029_v14 = vor.u32 %v12385_v6, %v11028_v38  ;;  %v12387_v30 = vld [vmem:[#allocation2 + $0x2b0] sm:$0xf0]  ;;  %v12388_v6 = vld [vmem:[#allocation2 + $0x2b8] sm:$0xf0]  ;;  %v12386_v32 = vld [vmem:[#allocation2 + $0x290] sm:$0xf] }
 0x48d   : > { %v5032_v27 = vmax.f32 %v5000_v53, 0.0  ;;  %v4843_v35 = vadd.f32 %v4842_v26, %v14111_v36  ;;  %v11040_v38 = vld [vmem:[#allocation2 + $0x294] sm:$0xf] }
 0x48f   : > { %10705 = vst [vmem:[%s13892_s29 + $0x1d8] sm:$0xff] %v5032_v27  ;;  %v4932_v59 = vadd.f32 %v4931_v7, %v4843_v35  ;;  %5606 = vmatmul.bf16.gmra.mxu0 %v10793_v39  ;;  %v5469_v47 = vpop.f32.mrf.mxu2  ;;  %v5558_v4 = vpop.f32.mrf.mxu3  ;;  %v10805_v39 = vor.u32 %v12337_v21, %v10804_v31  ;;  %v12340_v21 = vld [vmem:[#allocation2 + $0x2b4] sm:$0xf0]  ;;  %v10816_v31 = vld [vmem:[#allocation2 + $0x290] sm:$0xf] }
 0x490   : > { %v14385_v56 = vadd.f32 %v5558_v4, %v5469_v47  ;;  %v4933_v5 = vpop.f32.mrf.mxu1 }
 0x491   : > { %v4969_v48 = vmul.f32 %v14328_v20, %v4932_v59 }
 0x493   : > { %v5001_v45 = vadd.f32 %v14340_v25, %v4969_v48 }
 0x494   : > { %v4844_v61 = vpop.f32.mrf.mxu0 }
 0x495   : > { %v5033_v11 = vmax.f32 %v5001_v45, 0.0  ;;  %v4845_v36 = vadd.f32 %v4844_v61, %v14116_v28 }
 0x497   : > { %10706 = vst [vmem:[%s13892_s29 + $0x1e0] sm:$0xff] %v5033_v11  ;;  %v4934_v54 = vadd.f32 %v4933_v5, %v4845_v36  ;;  %v5471_v17 = vpop.f32.mrf.mxu2  ;;  %v5560_v18 = vpop.f32.mrf.mxu3  ;;  %v11034_v11 = vld [vmem:[#allocation2 + $0x2b4] sm:$0xf0] }
 0x498   : > { %v14391_v53 = vadd.f32 %v5560_v18, %v5471_v17  ;;  %v4936_v7 = vpop.f32.mrf.mxu1 }
 0x499   : > { %v4970_v55 = vmul.f32 %v14328_v20, %v4934_v54 }
 0x49b   : > { %6149 = vmatmul.bf16.gmra.mxu1 %v11021_v1  ;;  %v5002_v28 = vadd.f32 %v14340_v25, %v4970_v55  ;;  %v11033_v1 = vor.u32 %v12387_v30, %v11032_v15  ;;  %v11044_v15 = vld [vmem:[#allocation2 + $0x2dc] sm:$0xf] }
 0x49c   : > { %6238 = vmatmul.bf16.gmra.mxu2 %v11025_v62  ;;  %6327 = vmatmul.bf16.gmra.mxu3 %v11029_v14  ;;  %v4847_v26 = vpop.f32.mrf.mxu0  ;;  %v11037_v62 = vor.u32 %v12386_v32, %v11034_v11  ;;  %v11041_v14 = vor.u32 %v12388_v6, %v11040_v38  ;;  %v12390_v11 = vld [vmem:[#allocation2 + $0x300] sm:$0xf0]  ;;  %v12391_v6 = vld [vmem:[#allocation2 + $0x308] sm:$0xf0] }
 0x49d   : > { %v5034_v27 = vmax.f32 %v5002_v28, 0.0  ;;  %v4848_v35 = vadd.f32 %v4847_v26, %v14121_v12  ;;  %v11045_v32 = vor.u32 %v12390_v11, %v11044_v15  ;;  %v11058_v15 = vld [vmem:[#allocation2 + $0x354] sm:$0xf0] }
 0x49f   : > { %10707 = vst [vmem:[%s13892_s29 + $0x1e8] sm:$0xff] %v5034_v27  ;;  %v4937_v59 = vadd.f32 %v4936_v7, %v4848_v35  ;;  %5611 = vmatmul.bf16.gmra.mxu0 %v10805_v39  ;;  %v5474_v47 = vpop.f32.mrf.mxu2  ;;  %v5563_v4 = vpop.f32.mrf.mxu3  ;;  %v10817_v39 = vor.u32 %v12340_v21, %v10816_v31 }
 0x4a0   : > { %v14397_v61 = vadd.f32 %v5563_v4, %v5474_v47  ;;  %v4938_v44 = vpop.f32.mrf.mxu1 }
 0x4a1   : > { %v4971_v48 = vmul.f32 %v14328_v20, %v4937_v59 }
 0x4a3   : > { %v5003_v45 = vadd.f32 %v14340_v25, %v4971_v48 }
 0x4a4   : > { %v4849_v5 = vpop.f32.mrf.mxu0 }
 0x4a5   : > { %v5035_v36 = vmax.f32 %v5003_v45, 0.0  ;;  %v4850_v12 = vadd.f32 %v4849_v5, %v14126_v34 }
 0x4a7   : > { %10708 = vst [vmem:[%s13892_s29 + $0x1f0] sm:$0xff] %v5035_v36  ;;  %v4939_v54 = vadd.f32 %v4938_v44, %v4850_v12  ;;  %v5476_v17 = vpop.f32.mrf.mxu2  ;;  %v5565_v18 = vpop.f32.mrf.mxu3  ;;  %v11046_v36 = vld [vmem:[#allocation2 + $0x304] sm:$0xf0] }
 0x4a8   : > { %v14403_v28 = vadd.f32 %v5565_v18, %v5476_v17  ;;  %v6115_v7 = vpop.f32.mrf.mxu1 }
 0x4a9   : > { %v4972_v55 = vmul.f32 %v14328_v20, %v4939_v54 }
 0x4ab   : > { %6154 = vmatmul.bf16.gmra.mxu1 %v11033_v1  ;;  %v5004_v34 = vadd.f32 %v14340_v25, %v4972_v55 }
 0x4ac   : > { %6243 = vmatmul.bf16.gmra.mxu2 %v11037_v62  ;;  %6332 = vmatmul.bf16.gmra.mxu3 %v11041_v14  ;;  %v5577_v26 = vpop.f32.mrf.mxu0  ;;  %v12389_v62 = vld [vmem:[#allocation2 + $0x2e0] sm:$0xf] }
 0x4ad   : > { %v5036_v27 = vmax.f32 %v5004_v34, 0.0  ;;  %v5578_v35 = vadd.f32 %v5577_v26, %v14135_v8  ;;  %v11052_v8 = vld [vmem:[#allocation2 + $0x2e4] sm:$0xf]  ;;  %v11049_v14 = vor.u32 %v12389_v62, %v11046_v36  ;;  %v12343_v34 = vld [vmem:[#allocation2 + $0x304] sm:$0xf0] }
 0x4ae   : > { %v11053_v55 = vor.u32 %v12391_v6, %v11052_v8  ;;  %v12393_v6 = vld [vmem:[#allocation2 + $0x350] sm:$0xf0]  ;;  %v12394_v62 = vld [vmem:[#allocation2 + $0x358] sm:$0xf0] }
 0x4af   : > { %10709 = vst [vmem:[%s13892_s29 + $0x1f8] sm:$0xff] %v5036_v27  ;;  %v5657_v59 = vmul.f32 %v14328_v20, %v5578_v35  ;;  %5616 = vmatmul.bf16.gmra.mxu0 %v10817_v39  ;;  %v6204_v47 = vpop.f32.mrf.mxu2  ;;  %v6293_v4 = vpop.f32.mrf.mxu3  ;;  %v10828_v39 = vld [vmem:[#allocation2 + $0x2e0] sm:$0xf] }
 0x4b0   : > { %v6205_v5 = vadd.f32 %v6204_v47, %v6115_v7  ;;  %v6117_v30 = vpop.f32.mrf.mxu1  ;;  %v10829_v47 = vor.u32 %v12343_v34, %v10828_v39 }
 0x4b1   : > { %v5689_v48 = vadd.f32 %v14340_v25, %v5657_v59 }
 0x4b2   : > { %v6294_v12 = vadd.f32 %v6293_v4, %v6205_v5 }
 0x4b3   : > { %v5721_v45 = vmax.f32 %v5689_v48, 0.0 }
 0x4b4   : > { %v5579_v44 = vpop.f32.mrf.mxu0  ;;  %v6373_v54 = vmul.f32 %v14328_v20, %v6294_v12 }
 0x4b5   : > { %10902 = vst [vmem:[%s13892_s29 + $0x200] sm:$0xff] %v5721_v45  ;;  %v5580_v38 = vadd.f32 %v5579_v44, %v14141_v43 }
 0x4b6   : > { %v6405_v17 = vadd.f32 %v14340_v25, %v6373_v54 }
 0x4b7   : > { %v5658_v1 = vmul.f32 %v14328_v20, %v5580_v38  ;;  %v6206_v21 = vpop.f32.mrf.mxu2  ;;  %v6295_v43 = vpop.f32.mrf.mxu3 }
 0x4b8   : > { %v6437_v26 = vmax.f32 %v6405_v17, 0.0  ;;  %v6207_v31 = vadd.f32 %v6206_v21, %v6117_v30  ;;  %v6120_v35 = vpop.f32.mrf.mxu1  ;;  %v12392_v21 = vld [vmem:[#allocation2 + $0x330] sm:$0xf] }
 0x4b9   : > { %v5690_v18 = vadd.f32 %v14340_v25, %v5658_v1 }
 0x4ba   : > { %11126 = vst [vmem:[%s13892_s29 + $0x300] sm:$0xff] %v6437_v26  ;;  %v6296_v59 = vadd.f32 %v6295_v43, %v6207_v31  ;;  %v11061_v43 = vor.u32 %v12392_v21, %v11058_v15 }
 0x4bb   : > { %6159 = vmatmul.bf16.gmra.mxu1 %v11045_v32  ;;  %v5722_v7 = vmax.f32 %v5690_v18, 0.0  ;;  %v11064_v32 = vld [vmem:[#allocation2 + $0x334] sm:$0xf] }
 0x4bc   : > { %6248 = vmatmul.bf16.gmra.mxu2 %v11049_v14  ;;  %6337 = vmatmul.bf16.gmra.mxu3 %v11053_v55  ;;  %v5582_v27 = vpop.f32.mrf.mxu0  ;;  %v6374_v4 = vmul.f32 %v14328_v20, %v6296_v59  ;;  %v11056_v14 = vld [vmem:[#allocation2 + $0x32c] sm:$0xf]  ;;  %v11065_v34 = vor.u32 %v12394_v62, %v11064_v32  ;;  %v11070_v32 = vld [vmem:[#allocation2 + $0x3a4] sm:$0xf0] }
 0x4bd   : > { %v5583_v48 = vadd.f32 %v5582_v27, %v14147_v2  ;;  %10903 = vst [vmem:[%s13892_s29 + $0x208] sm:$0xff] %v5722_v7  ;;  %v11057_v18 = vor.u32 %v12393_v6, %v11056_v14  ;;  %v12346_v27 = vld [vmem:[#allocation2 + $0x354] sm:$0xf0] }
 0x4be   : > { %v6406_v5 = vadd.f32 %v14340_v25, %v6374_v4  ;;  %v10840_v4 = vld [vmem:[#allocation2 + $0x330] sm:$0xf] }
 0x4bf   : > { %v5659_v45 = vmul.f32 %v14328_v20, %v5583_v48  ;;  %5621 = vmatmul.bf16.gmra.mxu0 %v10829_v47  ;;  %v6209_v30 = vpop.f32.mrf.mxu2  ;;  %v6298_v11 = vpop.f32.mrf.mxu3 }
 0x4c0   : > { %v6438_v36 = vmax.f32 %v6406_v5, 0.0  ;;  %v6210_v38 = vadd.f32 %v6209_v30, %v6120_v35  ;;  %v6122_v2 = vpop.f32.mrf.mxu1 }
 0x4c1   : > { %v5691_v44 = vadd.f32 %v14340_v25, %v5659_v45 }
 0x4c2   : > { %11127 = vst [vmem:[%s13892_s29 + $0x308] sm:$0xff] %v6438_v36  ;;  %v6299_v54 = vadd.f32 %v6298_v11, %v6210_v38 }
 0x4c3   : > { %v5723_v12 = vmax.f32 %v5691_v44, 0.0  ;;  %v10841_v44 = vor.u32 %v12346_v27, %v10840_v4 }
 0x4c4   : > { %v5584_v8 = vpop.f32.mrf.mxu0  ;;  %v6375_v55 = vmul.f32 %v14328_v20, %v6299_v54 }
 0x4c5   : > { %v5585_v1 = vadd.f32 %v5584_v8, %v14153_v0  ;;  %10904 = vst [vmem:[%s13892_s29 + $0x210] sm:$0xff] %v5723_v12 }
 0x4c6   : > { %v6407_v26 = vadd.f32 %v14340_v25, %v6375_v55  ;;  %v11076_v55 = vld [vmem:[#allocation2 + $0x384] sm:$0xf] }
 0x4c7   : > { %v5660_v17 = vmul.f32 %v14328_v20, %v5585_v1  ;;  %v6211_v0 = vpop.f32.mrf.mxu2  ;;  %v6300_v31 = vpop.f32.mrf.mxu3  ;;  %v12396_v1 = vld [vmem:[#allocation2 + $0x3a0] sm:$0xf0] }
 0x4c8   : > { %v6439_v35 = vmax.f32 %v6407_v26, 0.0  ;;  %v6212_v59 = vadd.f32 %v6211_v0, %v6122_v2  ;;  %v6125_v47 = vpop.f32.mrf.mxu1  ;;  %v12395_v26 = vld [vmem:[#allocation2 + $0x380] sm:$0xf] }
 0x4c9   : > { %v5692_v7 = vadd.f32 %v14340_v25, %v5660_v17  ;;  %v12397_v17 = vld [vmem:[#allocation2 + $0x3a8] sm:$0xf0] }
 0x4ca   : > { %11128 = vst [vmem:[%s13892_s29 + $0x310] sm:$0xff] %v6439_v35  ;;  %v6301_v45 = vadd.f32 %v6300_v31, %v6212_v59  ;;  %v11077_v0 = vor.u32 %v12397_v17, %v11076_v55  ;;  %v11088_v17 = vld [vmem:[#allocation2 + $0x3d4] sm:$0xf] }
 0x4cb   : > { %6164 = vmatmul.bf16.gmra.mxu1 %v11057_v18  ;;  %v5724_v39 = vmax.f32 %v5692_v7, 0.0  ;;  %v11068_v18 = vld [vmem:[#allocation2 + $0x37c] sm:$0xf]  ;;  %v11073_v7 = vor.u32 %v12395_v26, %v11070_v32  ;;  %v12399_v32 = vld [vmem:[#allocation2 + $0x3f0] sm:$0xf0] }
 0x4cc   : > { %6253 = vmatmul.bf16.gmra.mxu2 %v11061_v43  ;;  %6342 = vmatmul.bf16.gmra.mxu3 %v11065_v34  ;;  %v5587_v48 = vpop.f32.mrf.mxu0  ;;  %v6376_v30 = vmul.f32 %v14328_v20, %v6301_v45  ;;  %v11069_v34 = vor.u32 %v12396_v1, %v11068_v18  ;;  %v12400_v18 = vld [vmem:[#allocation2 + $0x3f8] sm:$0xf0] }
 0x4cd   : > { %v5588_v5 = vadd.f32 %v5587_v48, %v14159_v41  ;;  %10905 = vst [vmem:[%s13892_s29 + $0x218] sm:$0xff] %v5724_v39  ;;  %v12349_v39 = vld [vmem:[#allocation2 + $0x3a4] sm:$0xf0] }
 0x4ce   : > { %v6408_v36 = vadd.f32 %v14340_v25, %v6376_v30 }
 0x4cf   : > { %v5661_v11 = vmul.f32 %v14328_v20, %v5588_v5  ;;  %5626 = vmatmul.bf16.gmra.mxu0 %v10841_v44  ;;  %v6214_v38 = vpop.f32.mrf.mxu2  ;;  %v6303_v8 = vpop.f32.mrf.mxu3  ;;  %v10852_v5 = vld [vmem:[#allocation2 + $0x380] sm:$0xf] }
 0x4d0   : > { %v6440_v2 = vmax.f32 %v6408_v36, 0.0  ;;  %v6215_v15 = vadd.f32 %v6214_v38, %v6125_v47  ;;  %v6127_v41 = vpop.f32.mrf.mxu1 }
 0x4d1   : > { %v5693_v12 = vadd.f32 %v14340_v25, %v5661_v11  ;;  %v10853_v11 = vor.u32 %v12349_v39, %v10852_v5  ;;  %v12352_v39 = vld [vmem:[#allocation2 + $0x3f4] sm:$0xf0]  ;;  %v10864_v5 = vld [vmem:[#allocation2 + $0x3d0] sm:$0xf] }
 0x4d2   : > { %11129 = vst [vmem:[%s13892_s29 + $0x318] sm:$0xff] %v6440_v2  ;;  %v6304_v62 = vadd.f32 %v6303_v8, %v6215_v15 }
 0x4d3   : > { %v5725_v6 = vmax.f32 %v5693_v12, 0.0 }
 0x4d4   : > { %v5589_v54 = vpop.f32.mrf.mxu0  ;;  %v6377_v21 = vmul.f32 %v14328_v20, %v6304_v62  ;;  %v11082_v62 = vld [vmem:[#allocation2 + $0x3f4] sm:$0xf0] }
 0x4d5   : > { %v5590_v14 = vadd.f32 %v5589_v54, %v14165_v37  ;;  %10906 = vst [vmem:[%s13892_s29 + $0x220] sm:$0xff] %v5725_v6 }
 0x4d6   : > { %v6409_v31 = vadd.f32 %v14340_v25, %v6377_v21  ;;  %v11080_v21 = vld [vmem:[#allocation2 + $0x3cc] sm:$0xf] }
 0x4d7   : > { %v5662_v43 = vmul.f32 %v14328_v20, %v5590_v14  ;;  %v6216_v37 = vpop.f32.mrf.mxu2  ;;  %v6305_v35 = vpop.f32.mrf.mxu3  ;;  %v11081_v26 = vor.u32 %v12399_v32, %v11080_v21  ;;  %v11094_v32 = vld [vmem:[#allocation2 + $0x444] sm:$0xf0] }
 0x4d8   : > { %v6441_v59 = vmax.f32 %v6409_v31, 0.0  ;;  %v6217_v47 = vadd.f32 %v6216_v37, %v6127_v41  ;;  %v6130_v45 = vpop.f32.mrf.mxu1  ;;  %v11089_v31 = vor.u32 %v12400_v18, %v11088_v17  ;;  %v12403_v17 = vld [vmem:[#allocation2 + $0x448] sm:$0xf0]  ;;  %v11092_v18 = vld [vmem:[#allocation2 + $0x41c] sm:$0xf] }
 0x4d9   : > { %v5694_v27 = vadd.f32 %v14340_v25, %v5662_v43 }
 0x4da   : > { %11130 = vst [vmem:[%s13892_s29 + $0x320] sm:$0xff] %v6441_v59  ;;  %v6306_v44 = vadd.f32 %v6305_v35, %v6217_v47 }
 0x4db   : > { %6169 = vmatmul.bf16.gmra.mxu1 %v11069_v34  ;;  %v5726_v48 = vmax.f32 %v5694_v27, 0.0 }
 0x4dc   : > { %6258 = vmatmul.bf16.gmra.mxu2 %v11073_v7  ;;  %6347 = vmatmul.bf16.gmra.mxu3 %v11077_v0  ;;  %v5592_v4 = vpop.f32.mrf.mxu0  ;;  %v6378_v36 = vmul.f32 %v14328_v20, %v6306_v44  ;;  %v12398_v7 = vld [vmem:[#allocation2 + $0x3d0] sm:$0xf] }
 0x4dd   : > { %v5593_v30 = vadd.f32 %v5592_v4, %v14171_v24  ;;  %10907 = vst [vmem:[%s13892_s29 + $0x228] sm:$0xff] %v5726_v48  ;;  %v11085_v0 = vor.u32 %v12398_v7, %v11082_v62 }
 0x4de   : > { %v6410_v38 = vadd.f32 %v14340_v25, %v6378_v36 }
 0x4df   : > { %v5663_v12 = vmul.f32 %v14328_v20, %v5593_v30  ;;  %5631 = vmatmul.bf16.gmra.mxu0 %v10853_v11  ;;  %v6219_v2 = vpop.f32.mrf.mxu2  ;;  %v6308_v6 = vpop.f32.mrf.mxu3  ;;  %v10865_v11 = vor.u32 %v12352_v39, %v10864_v5 }
 0x4e0   : > { %v6442_v15 = vmax.f32 %v6410_v38, 0.0  ;;  %v6220_v41 = vadd.f32 %v6219_v2, %v6130_v45  ;;  %v6132_v24 = vpop.f32.mrf.mxu1 }
 0x4e1   : > { %v5695_v8 = vadd.f32 %v14340_v25, %v5663_v12 }
 0x4e2   : > { %11131 = vst [vmem:[%s13892_s29 + $0x328] sm:$0xff] %v6442_v15  ;;  %v6309_v14 = vadd.f32 %v6308_v6, %v6220_v41 }
 0x4e3   : > { %v5727_v54 = vmax.f32 %v5695_v8, 0.0 }
 0x4e4   : > { %v5594_v1 = vpop.f32.mrf.mxu0  ;;  %v6379_v43 = vmul.f32 %v14328_v20, %v6309_v14 }
 0x4e5   : > { %v5595_v55 = vadd.f32 %v5594_v1, %v14177_v29  ;;  %10908 = vst [vmem:[%s13892_s29 + $0x230] sm:$0xff] %v5727_v54 }
 0x4e6   : > { %v6411_v27 = vadd.f32 %v14340_v25, %v6379_v43 }
 0x4e7   : > { %v5664_v34 = vmul.f32 %v14328_v20, %v5595_v55  ;;  %v6221_v29 = vpop.f32.mrf.mxu2  ;;  %v6310_v35 = vpop.f32.mrf.mxu3  ;;  %v11100_v55 = vld [vmem:[#allocation2 + $0x424] sm:$0xf] }
 0x4e8   : > { %v6443_v59 = vmax.f32 %v6411_v27, 0.0  ;;  %v6222_v47 = vadd.f32 %v6221_v29, %v6132_v24  ;;  %v6135_v45 = vpop.f32.mrf.mxu1  ;;  %v12402_v24 = vld [vmem:[#allocation2 + $0x440] sm:$0xf0]  ;;  %v12355_v29 = vld [vmem:[#allocation2 + $0x444] sm:$0xf0] }
 0x4e9   : > { %v5696_v37 = vadd.f32 %v14340_v25, %v5664_v34  ;;  %v11093_v34 = vor.u32 %v12402_v24, %v11092_v18 }
 0x4ea   : > { %11132 = vst [vmem:[%s13892_s29 + $0x330] sm:$0xff] %v6443_v59  ;;  %v6311_v44 = vadd.f32 %v6310_v35, %v6222_v47 }
 0x4eb   : > { %6174 = vmatmul.bf16.gmra.mxu1 %v11081_v26  ;;  %v5728_v48 = vmax.f32 %v5696_v37, 0.0  ;;  %v12401_v26 = vld [vmem:[#allocation2 + $0x420] sm:$0xf] }
 0x4ec   : > { %6263 = vmatmul.bf16.gmra.mxu2 %v11085_v0  ;;  %6352 = vmatmul.bf16.gmra.mxu3 %v11089_v31  ;;  %v5597_v4 = vpop.f32.mrf.mxu0  ;;  %v6380_v36 = vmul.f32 %v14328_v20, %v6311_v44  ;;  %v11097_v7 = vor.u32 %v12401_v26, %v11094_v32  ;;  %v11101_v0 = vor.u32 %v12403_v17, %v11100_v55  ;;  %v11112_v32 = vld [vmem:[#allocation2 + $0x474] sm:$0xf] }
 0x4ed   : > { %v5598_v30 = vadd.f32 %v5597_v4, %v14183_v52  ;;  %10909 = vst [vmem:[%s13892_s29 + $0x238] sm:$0xff] %v5728_v48  ;;  %v10876_v4 = vld [vmem:[#allocation2 + $0x420] sm:$0xf] }
 0x4ee   : > { %v6412_v38 = vadd.f32 %v14340_v25, %v6380_v36  ;;  %v10877_v44 = vor.u32 %v12355_v29, %v10876_v4 }
 0x4ef   : > { %v5665_v12 = vmul.f32 %v14328_v20, %v5598_v30  ;;  %5636 = vmatmul.bf16.gmra.mxu0 %v10865_v11  ;;  %v6224_v2 = vpop.f32.mrf.mxu2  ;;  %v6313_v6 = vpop.f32.mrf.mxu3 }
 0x4f0   : > { %v6444_v15 = vmax.f32 %v6412_v38, 0.0  ;;  %v6225_v41 = vadd.f32 %v6224_v2, %v6135_v45  ;;  %v6137_v52 = vpop.f32.mrf.mxu1 }
 0x4f1   : > { %v5697_v8 = vadd.f32 %v14340_v25, %v5665_v12 }
 0x4f2   : > { %11133 = vst [vmem:[%s13892_s29 + $0x338] sm:$0xff] %v6444_v15  ;;  %v6314_v62 = vadd.f32 %v6313_v6, %v6225_v41  ;;  %v12405_v41 = vld [vmem:[#allocation2 + $0x490] sm:$0xf0] }
 0x4f3   : > { %v5729_v54 = vmax.f32 %v5697_v8, 0.0 }
 0x4f4   : > { %v5599_v1 = vpop.f32.mrf.mxu0  ;;  %v6381_v21 = vmul.f32 %v14328_v20, %v6314_v62  ;;  %v12406_v62 = vld [vmem:[#allocation2 + $0x498] sm:$0xf0] }
 0x4f5   : > { %v5600_v14 = vadd.f32 %v5599_v1, %v14189_v49  ;;  %10910 = vst [vmem:[%s13892_s29 + $0x240] sm:$0xff] %v5729_v54  ;;  %v11106_v1 = vld [vmem:[#allocation2 + $0x494] sm:$0xf0] }
 0x4f6   : > { %v6413_v31 = vadd.f32 %v14340_v25, %v6381_v21  ;;  %v12404_v21 = vld [vmem:[#allocation2 + $0x470] sm:$0xf] }
 0x4f7   : > { %v5666_v43 = vmul.f32 %v14328_v20, %v5600_v14  ;;  %v6226_v49 = vpop.f32.mrf.mxu2  ;;  %v6315_v37 = vpop.f32.mrf.mxu3  ;;  %v11104_v14 = vld [vmem:[#allocation2 + $0x46c] sm:$0xf] }
 0x4f8   : > { %v6445_v35 = vmax.f32 %v6413_v31, 0.0  ;;  %v6227_v59 = vadd.f32 %v6226_v49, %v6137_v52  ;;  %v6140_v47 = vpop.f32.mrf.mxu1  ;;  %v11105_v18 = vor.u32 %v12405_v41, %v11104_v14  ;;  %v12358_v31 = vld [vmem:[#allocation2 + $0x494] sm:$0xf0]  ;;  %v11116_v41 = vld [vmem:[#allocation2 + $0x4bc] sm:$0xf] }
 0x4f9   : > { %v5698_v27 = vadd.f32 %v14340_v25, %v5666_v43  ;;  %v11109_v43 = vor.u32 %v12404_v21, %v11106_v1  ;;  %v14498_v1 = vld [vmem:[%s15336_s5] ss:$0 sm:$0xff] }
 0x4fa   : > { %11134 = vst [vmem:[%s13892_s29 + $0x340] sm:$0xff] %v6445_v35  ;;  %v6316_v45 = vadd.f32 %v6315_v37, %v6227_v59 }
 0x4fb   : > { %6179 = vmatmul.bf16.gmra.mxu1 %v11093_v34  ;;  %v5730_v39 = vmax.f32 %v5698_v27, 0.0  ;;  %v11113_v34 = vor.u32 %v12406_v62, %v11112_v32  ;;  %v12407_v62 = vld [vmem:[#allocation2 + $0x4c0] sm:$0xf] }
 0x4fc   : > { %6268 = vmatmul.bf16.gmra.mxu2 %v11097_v7  ;;  %6357 = vmatmul.bf16.gmra.mxu3 %v11101_v0  ;;  %v5602_v48 = vpop.f32.mrf.mxu0  ;;  %v6382_v30 = vmul.f32 %v14328_v20, %v6316_v45 }
 0x4fd   : > { %v5603_v5 = vadd.f32 %v5602_v48, %v14195_v40  ;;  %10911 = vst [vmem:[%s13892_s29 + $0x248] sm:$0xff] %v5730_v39  ;;  %v10888_v39 = vld [vmem:[#allocation2 + $0x470] sm:$0xf] }
 0x4fe   : > { %v6414_v36 = vadd.f32 %v14340_v25, %v6382_v30 }
 0x4ff   : > { %v5667_v11 = vmul.f32 %v14328_v20, %v5603_v5  ;;  %5641 = vmatmul.bf16.gmra.mxu0 %v10877_v44  ;;  %v6229_v38 = vpop.f32.mrf.mxu2  ;;  %v6318_v8 = vpop.f32.mrf.mxu3 }
 0x500   : > { %v6446_v2 = vmax.f32 %v6414_v36, 0.0  ;;  %v6230_v15 = vadd.f32 %v6229_v38, %v6140_v47  ;;  %v6142_v40 = vpop.f32.mrf.mxu1  ;;  %v10889_v47 = vor.u32 %v12358_v31, %v10888_v39  ;;  %v10900_v31 = vld [vmem:[#allocation2 + $0x4c0] sm:$0xf] }
 0x501   : > { %v5699_v12 = vadd.f32 %v14340_v25, %v5667_v11 }
 0x502   : > { %11135 = vst [vmem:[%s13892_s29 + $0x348] sm:$0xff] %v6446_v2  ;;  %v6319_v52 = vadd.f32 %v6318_v8, %v6230_v15  ;;  %v12408_v2 = vld [vmem:[#allocation2 + $0x4e0] sm:$0xf0] }
 0x503   : > { %v5731_v6 = vmax.f32 %v5699_v12, 0.0  ;;  %v11117_v32 = vor.u32 %v12408_v2, %v11116_v41 }
 0x504   : > { %v5604_v54 = vpop.f32.mrf.mxu0  ;;  %v6383_v55 = vmul.f32 %v14328_v20, %v6319_v52 }
 0x505   : > { %v5605_v24 = vadd.f32 %v5604_v54, %v14201_v60  ;;  %10912 = vst [vmem:[%s13892_s29 + $0x250] sm:$0xff] %v5731_v6  ;;  %v11118_v6 = vld [vmem:[#allocation2 + $0x4e4] sm:$0xf0] }
 0x506   : > { %v6415_v26 = vadd.f32 %v14340_v25, %v6383_v55  ;;  %v11121_v14 = vor.u32 %v12407_v62, %v11118_v6 }
 0x507   : > { %v5668_v17 = vmul.f32 %v14328_v20, %v5605_v24  ;;  %v6231_v60 = vpop.f32.mrf.mxu2  ;;  %v6320_v0 = vpop.f32.mrf.mxu3 }
 0x508   : > { %v6447_v27 = vmax.f32 %v6415_v26, 0.0  ;;  %v6232_v37 = vadd.f32 %v6231_v60, %v6142_v40  ;;  %v6145_v35 = vpop.f32.mrf.mxu1  ;;  %v12409_v40 = vld [vmem:[#allocation2 + $0x4e8] sm:$0xf0] }
 0x509   : > { %v5700_v7 = vadd.f32 %v14340_v25, %v5668_v17 }
 0x50a   : > { %11136 = vst [vmem:[%s13892_s29 + $0x350] sm:$0xff] %v6447_v27  ;;  %v6321_v59 = vadd.f32 %v6320_v0, %v6232_v37 }
 0x50b   : > { %6184 = vmatmul.bf16.gmra.mxu1 %v11105_v18  ;;  %v5732_v49 = vmax.f32 %v5700_v7, 0.0 }
 0x50c   : > { %6273 = vmatmul.bf16.gmra.mxu2 %v11109_v43  ;;  %6362 = vmatmul.bf16.gmra.mxu3 %v11113_v34  ;;  %v5607_v29 = vpop.f32.mrf.mxu0  ;;  %v6384_v4 = vmul.f32 %v14328_v20, %v6321_v59  ;;  %v12361_v43 = vld [vmem:[#allocation2 + $0x4e4] sm:$0xf0] }
 0x50d   : > { %v5608_v48 = vadd.f32 %v5607_v29, %v14207_v50  ;;  %10913 = vst [vmem:[%s13892_s29 + $0x258] sm:$0xff] %v5732_v49  ;;  %v10901_v37 = vor.u32 %v12361_v43, %v10900_v31  ;;  %v11160_v43 = vld [vmem:[#allocation2 + $0x10] sm:$0xf] }
 0x50e   : > { %v6416_v5 = vadd.f32 %v14340_v25, %v6384_v4 }
 0x50f   : > { %v5669_v45 = vmul.f32 %v14328_v20, %v5608_v48  ;;  %5646 = vmatmul.bf16.gmra.mxu0 %v10889_v47  ;;  %v6234_v30 = vpop.f32.mrf.mxu2  ;;  %v6323_v11 = vpop.f32.mrf.mxu3  ;;  %v11124_v20 = vld [vmem:[#allocation2 + $0x4c4] sm:$0xf] }
 0x510   : > { %v6448_v36 = vmax.f32 %v6416_v5, 0.0  ;;  %v6235_v38 = vadd.f32 %v6234_v30, %v6145_v35  ;;  %v6147_v50 = vpop.f32.mrf.mxu1  ;;  %v11125_v55 = vor.u32 %v12409_v40, %v11124_v20  ;;  %v14512_v35 = vld [vmem:[%s15337_s6] ss:$0 sm:$0xff]  ;;  %v12410_v30 = vld [vmem:[#allocation2 + $0x14] sm:$0xf] }
 0x511   : > { %v5701_v44 = vadd.f32 %v14340_v25, %v5669_v45 }
 0x512   : > { %11137 = vst [vmem:[%s13892_s29 + $0x358] sm:$0xff] %v6448_v36  ;;  %v6324_v15 = vadd.f32 %v6323_v11, %v6235_v38  ;;  %v11162_v11 = vld [vmem:[#allocation2 + $0x38] sm:$0xf0]  ;;  %v12412_v36 = vld [vmem:[#allocation2 + $0x3c] sm:$0xf0] }
 0x513   : > { %v5733_v12 = vmax.f32 %v5701_v44, 0.0 }
 0x514   : > { %v5609_v8 = vpop.f32.mrf.mxu0  ;;  %v6385_v52 = vmul.f32 %v14498_v1, %v6324_v15  ;;  %v11165_v15 = vor.u32 %v12410_v30, %v11162_v11  ;;  %v12415_v30 = vld [vmem:[#allocation2 + $0x8c] sm:$0xf0]  ;;  %v12700_v11 = vld [vmem:[%s15335_s4 + $0xa8] sm:$0xff] }
 0x515   : > { %v5610_v54 = vadd.f32 %v5609_v8, %v14213_v9  ;;  %10914 = vst [vmem:[%s13892_s29 + $0x260] sm:$0xff] %v5733_v12  ;;  %v11384_v8 = vld [vmem:[#allocation2 + $0x14] sm:$0xf] }
 0x516   : > { %v6417_v9 = vadd.f32 %v14340_v25, %v6385_v52 }
 0x517   : > { %v5670_v24 = vmul.f32 %v14498_v1, %v5610_v54  ;;  %v6236_v18 = vpop.f32.mrf.mxu2  ;;  %v6325_v21 = vpop.f32.mrf.mxu3  ;;  %v11168_v54 = vld [vmem:[#allocation2 + $0x18] sm:$0xf] }
 0x518   : > { %v6449_v34 = vmax.f32 %v6417_v9, 0.0  ;;  %v6237_v7 = vadd.f32 %v6236_v18, %v6147_v50  ;;  %v6150_v0 = vpop.f32.mrf.mxu1  ;;  %v12459_v50 = vld [vmem:[#allocation2 + $0x38] sm:$0xf0]  ;;  %v11169_v20 = vor.u32 %v12412_v36, %v11168_v54  ;;  %v11180_v54 = vld [vmem:[#allocation2 + $0x68] sm:$0xf] }
 0x519   : > { %v5702_v17 = vadd.f32 %v14340_v25, %v5670_v24  ;;  %v11385_v40 = vor.u32 %v12459_v50, %v11384_v8  ;;  %v12693_v9 = vld [vmem:[%s15335_s4 + $0x78] sm:$0xff]  ;;  %v12462_v8 = vld [vmem:[#allocation2 + $0x88] sm:$0xf0] }
 0x51a   : > { %11138 = vst [vmem:[%s13892_s29 + $0x360] sm:$0xff] %v6449_v34  ;;  %v6326_v27 = vadd.f32 %v6325_v21, %v6237_v7  ;;  %v12695_v34 = vld [vmem:[%s15335_s4 + $0x38] sm:$0xff]  ;;  %v12701_v50 = vld [vmem:[%s15335_s4 + $0x28] sm:$0xff] }
 0x51b   : > { %6189 = vmatmul.bf16.gmra.mxu1 %v11117_v32  ;;  %v5734_v26 = vmax.f32 %v5702_v17, 0.0  ;;  %v12694_v17 = vld [vmem:[%s15335_s4 + $0xb8] sm:$0xff] }
 0x51c   : > { %6278 = vmatmul.bf16.gmra.mxu2 %v11121_v14  ;;  %6367 = vmatmul.bf16.gmra.mxu3 %v11125_v55  ;;  %v5612_v60 = vpop.f32.mrf.mxu0  ;;  %v6386_v25 = vmul.f32 %v14498_v1, %v6326_v27  ;;  %v12696_v27 = vld [vmem:[%s15335_s4 + $0x70] sm:$0xff] }
 0x51d   : > { %v5613_v49 = vadd.f32 %v5612_v60, %v14219_v10  ;;  %10915 = vst [vmem:[%s13892_s29 + $0x268] sm:$0xff] %v5734_v26 }
 0x51e   : > { %v6418_v39 = vadd.f32 %v14512_v35, %v6386_v25  ;;  %v12698_v25 = vld [vmem:[%s15335_s4 + $0x30] sm:$0xff] }
 0x51f   : > { %v5671_v29 = vmul.f32 %v14498_v1, %v5613_v49  ;;  %5651 = vmatmul.bf16.gmra.mxu0 %v10901_v37  ;;  %v6239_v48 = vpop.f32.mrf.mxu2  ;;  %v6328_v10 = vpop.f32.mrf.mxu3  ;;  %v12697_v49 = vld [vmem:[%s15335_s4 + $0xb0] sm:$0xff] }
 0x520   : > { %v6450_v47 = vmax.f32 %v6418_v39, 0.0  ;;  %v6240_v45 = vadd.f32 %v6239_v48, %v6150_v0  ;;  %v6152_v44 = vpop.f32.mrf.mxu1 }
 0x521   : > { %v5703_v59 = vadd.f32 %v14512_v35, %v5671_v29 }
 0x522   : > { %11139 = vst [vmem:[%s13892_s29 + $0x368] sm:$0xff] %v6450_v47  ;;  %v6329_v12 = vadd.f32 %v6328_v10, %v6240_v45  ;;  %v12699_v47 = vld [vmem:[%s15335_s4 + $0x68] sm:$0xff] }
 0x523   : > { %v5735_v4 = vmax.f32 %v5703_v59, 0.0 }
 0x524   : > { %v5614_v5 = vpop.f32.mrf.mxu0  ;;  %v6387_v2 = vmul.f32 %v14498_v1, %v6329_v12 }
 0x525   : > { %v5615_v38 = vadd.f32 %v5614_v5, %v14225_v46  ;;  %10916 = vst [vmem:[%s13892_s29 + $0x270] sm:$0xff] %v5735_v4  ;;  %v12411_v46 = vld [vmem:[#allocation2 + $0x34] sm:$0xf0]  ;;  %v12413_v5 = vld [vmem:[#allocation2 + $0x64] sm:$0xf] }
 0x526   : > { %v6419_v41 = vadd.f32 %v14512_v35, %v6387_v2  ;;  %v11161_v60 = vor.u32 %v12411_v46, %v11160_v43 }
 0x527   : > { %v5672_v6 = vmul.f32 %v14498_v1, %v5615_v38  ;;  %v6241_v24 = vpop.f32.mrf.mxu2  ;;  %v6330_v32 = vpop.f32.mrf.mxu3  ;;  %v11396_v38 = vld [vmem:[#allocation2 + $0x64] sm:$0xf] }
 0x528   : > { %v6451_v62 = vmax.f32 %v6419_v41, 0.0  ;;  %v6242_v55 = vadd.f32 %v6241_v24, %v6152_v44  ;;  %v6155_v21 = vpop.f32.mrf.mxu1  ;;  %v11174_v44 = vld [vmem:[#allocation2 + $0x88] sm:$0xf0]  ;;  %v12703_v41 = vld [vmem:[%s15335_s4 + $0xa0] sm:$0xff] }
 0x529   : > { %v5704_v52 = vadd.f32 %v14512_v35, %v5672_v6 }
 0x52a   : > { %11140 = vst [vmem:[%s13892_s29 + $0x370] sm:$0xff] %v6451_v62  ;;  %v6331_v26 = vadd.f32 %v6330_v32, %v6242_v55  ;;  %v12414_v62 = vld [vmem:[#allocation2 + $0x84] sm:$0xf0] }
 0x52b   : > { %6919 = vmatmul.bf16.vlgmr.msrb.gmra.mxu1 %v11165_v15  ;;  %v5736_v14 = vmax.f32 %v5704_v52, 0.0  ;;  %v11177_v15 = vor.u32 %v12413_v5, %v11174_v44  ;;  %v12416_v5 = vld [vmem:[#allocation2 + $0xb4] sm:$0xf]  ;;  %v11186_v44 = vld [vmem:[#allocation2 + $0xd8] sm:$0xf0] }
 0x52c   : > { %7008 = vmatmul.bf16.vlgmr.msrb.gmra.mxu2 %v11169_v20  ;;  %7546 = vmatmul.bf16.vlgmr.msrb.gmra.mxu3 %v11385_v40  ;;  %v5617_v18 = vpop.f32.mrf.mxu0  ;;  %v6388_v0 = vmul.f32 %v14498_v1, %v6331_v26  ;;  %v12702_v20 = vld [vmem:[%s15335_s4 + $0x60] sm:$0xff]  ;;  %v11397_v40 = vor.u32 %v12462_v8, %v11396_v38  ;;  %v12706_v26 = vld [vmem:[%s15335_s4 + $0x98] sm:$0xff]  ;;  %v11408_v38 = vld [vmem:[#allocation2 + $0xb4] sm:$0xf] }
 0x52d   : > { %9059 = vmatpush.bf16.msrb.mxu2 %v12693_v9  ;;  %9148 = vmatpush.bf16.msrb.mxu3 %v12694_v17  ;;  %v5618_v7 = vadd.f32 %v5617_v18, %v14249_v33  ;;  %10917 = vst [vmem:[%s13892_s29 + $0x278] sm:$0xff] %v5736_v14  ;;  %v12705_v18 = vld [vmem:[%s15335_s4 + $0x58] sm:$0xff] }
 0x52e   : > { %8970 = vmatpush.bf16.msrb.mxu1 %v12695_v34  ;;  %v6420_v33 = vadd.f32 %v14512_v35, %v6388_v0  ;;  %v11172_v34 = vld [vmem:[#allocation2 + $0x60] sm:$0xf]  ;;  %v12465_v8 = vld [vmem:[#allocation2 + $0xd8] sm:$0xf0] }
 0x52f   : > { %v5673_v31 = vmul.f32 %v14498_v1, %v5618_v7  ;;  %6830 = vmatmul.bf16.vlgmr.msrb.gmra.mxu0 %v11161_v60  ;;  %v6244_v29 = vpop.f32.mrf.mxu2  ;;  %v6333_v39 = vpop.f32.mrf.mxu3  ;;  %v11173_v0 = vor.u32 %v12414_v62, %v11172_v34  ;;  %v12417_v62 = vld [vmem:[#allocation2 + $0xd4] sm:$0xf0] }
 0x530   : > { %8432 = vmatpush.bf16.msrb.mxu0 %v12694_v17  ;;  %v6452_v59 = vmax.f32 %v6420_v33, 0.0  ;;  %v6245_v10 = vadd.f32 %v6244_v29, %v6155_v21  ;;  %v6157_v45 = vpop.f32.mrf.mxu1  ;;  %v12704_v17 = vld [vmem:[%s15335_s4 + $0x20] sm:$0xff]  ;;  %v12708_v33 = vld [vmem:[%s15335_s4 + $0x50] sm:$0xff] }
 0x531   : > { %9060 = vmatpush.bf16.msrb.mxu2 %v12696_v27  ;;  %9149 = vmatpush.bf16.msrb.mxu3 %v12697_v49  ;;  %v5705_v37 = vadd.f32 %v14512_v35, %v5673_v31 }
 0x532   : > { %8971 = vmatpush.bf16.msrb.mxu1 %v12698_v25  ;;  %11141 = vst [vmem:[%s13892_s29 + $0x378] sm:$0xff] %v6452_v59  ;;  %v6334_v36 = vadd.f32 %v6333_v39, %v6245_v10  ;;  %v12709_v25 = vld [vmem:[%s15335_s4 + $0x90] sm:$0xff] }
 0x533   : > { %v5737_v48 = vmax.f32 %v5705_v37, 0.0 }
 0x534   : > { %v5619_v4 = vpop.f32.mrf.mxu0  ;;  %8433 = vmatpush.bf16.msrb.mxu0 %v12697_v49  ;;  %v6389_v2 = vmul.f32 %v14498_v1, %v6334_v36  ;;  %v12707_v49 = vld [vmem:[%s15335_s4 + $0x18] sm:$0xff] }
 0x535   : > { %9061 = vmatpush.bf16.msrb.mxu2 %v12699_v47  ;;  %9150 = vmatpush.bf16.msrb.mxu3 %v12700_v11  ;;  %v5620_v12 = vadd.f32 %v5619_v4, %v14270_v42  ;;  %10918 = vst [vmem:[%s13892_s29 + $0x280] sm:$0xff] %v5737_v48  ;;  %v11181_v42 = vor.u32 %v12415_v30, %v11180_v54  ;;  %v12710_v47 = vld [vmem:[%s15335_s4 + $0x10] sm:$0xff]  ;;  %v12418_v30 = vld [vmem:[#allocation2 + $0xdc] sm:$0xf0]  ;;  %v11192_v54 = vld [vmem:[#allocation2 + $0xb8] sm:$0xf] }
 0x536   : > { %8972 = vmatpush.bf16.msrb.mxu1 %v12701_v50  ;;  %v6421_v52 = vadd.f32 %v14512_v35, %v6389_v2  ;;  %v12712_v50 = vld [vmem:[%s15335_s4 + $0x88] sm:$0xff] }
 0x537   : > { %v5674_v6 = vmul.f32 %v14498_v1, %v5620_v12  ;;  %v6246_v32 = vpop.f32.mrf.mxu2  ;;  %v6335_v46 = vpop.f32.mrf.mxu3 }
 0x538   : > { %8434 = vmatpush.bf16.msrb.mxu0 %v12700_v11  ;;  %v6453_v14 = vmax.f32 %v6421_v52, 0.0  ;;  %v6247_v9 = vadd.f32 %v6246_v32, %v6157_v45  ;;  %v6160_v43 = vpop.f32.mrf.mxu1  ;;  %v12711_v11 = vld [vmem:[%s15335_s4 + $0x48] sm:$0xff] }
 0x539   : > { %9062 = vmatpush.bf16.msrb.mxu2 %v12702_v20  ;;  %9151 = vmatpush.bf16.msrb.mxu3 %v12703_v41  ;;  %v5706_v24 = vadd.f32 %v14512_v35, %v5674_v6  ;;  %v12713_v20 = vld [vmem:[%s15335_s4 + $0x8] sm:$0xff] }
 0x53a   : > { %8973 = vmatpush.bf16.msrb.mxu1 %v12704_v17  ;;  %11142 = vst [vmem:[%s13892_s29 + $0x380] sm:$0xff] %v6453_v14  ;;  %v6336_v7 = vadd.f32 %v6335_v46, %v6247_v9  ;;  %v12716_v17 = vld [vmem:[%s15335_s4] sm:$0xff] }
 0x53b   : > { %6924 = vmatmul.bf16.gmra.mxu1 %v11177_v15  ;;  %v5738_v55 = vmax.f32 %v5706_v24, 0.0  ;;  %v11189_v15 = vor.u32 %v12416_v5, %v11186_v44  ;;  %v12715_v24 = vld [vmem:[%s15335_s4 + $0x80] sm:$0xff] }
 0x53c   : > { %7013 = vmatmul.bf16.gmra.mxu2 %v11181_v42  ;;  %7551 = vmatmul.bf16.gmra.mxu3 %v11397_v40  ;;  %v5622_v21 = vpop.f32.mrf.mxu0  ;;  %v6390_v31 = vmul.f32 %v14498_v1, %v6336_v7  ;;  %v11409_v42 = vor.u32 %v12465_v8, %v11408_v38  ;;  %v12714_v40 = vld [vmem:[%s15335_s4 + $0x40] sm:$0xff] }
 0x53d   : > { %9063 = vmatpush.bf16.msrb.mxu2 %v12705_v18  ;;  %8435 = vmatpush.bf16.msrb.mxu0 %v12703_v41  ;;  %v5623_v60 = vadd.f32 %v5622_v21, %v14294_v13  ;;  %10919 = vst [vmem:[%s13892_s29 + $0x288] sm:$0xff] %v5738_v55 }
 0x53e   : > { %9152 = vmatpush.bf16.msrb.mxu3 %v12706_v26  ;;  %8974 = vmatpush.bf16.msrb.mxu1 %v12707_v49  ;;  %v6422_v13 = vadd.f32 %v14512_v35, %v6390_v31 }
 0x53f   : > { %v5675_v27 = vmul.f32 %v14498_v1, %v5623_v60  ;;  %6835 = vmatmul.bf16.gmra.mxu0 %v11173_v0  ;;  %v6249_v29 = vpop.f32.mrf.mxu2  ;;  %v6338_v39 = vpop.f32.mrf.mxu3 }
 0x540   : > { %v6454_v59 = vmax.f32 %v6422_v13, 0.0  ;;  %v6250_v10 = vadd.f32 %v6249_v29, %v6160_v43  ;;  %v6162_v45 = vpop.f32.mrf.mxu1  ;;  %v11184_v43 = vld [vmem:[#allocation2 + $0xb0] sm:$0xf] }
 0x541   : > { %8436 = vmatpush.bf16.msrb.mxu0 %v12706_v26  ;;  %9064 = vmatpush.bf16.msrb.mxu2 %v12708_v33  ;;  %v5707_v37 = vadd.f32 %v14512_v35, %v5675_v27  ;;  %v11185_v7 = vor.u32 %v12417_v62, %v11184_v43  ;;  %v12422_v43 = vld [vmem:[#allocation2 + $0x154] sm:$0xf] }
 0x542   : > { %9153 = vmatpush.bf16.msrb.mxu3 %v12709_v25  ;;  %8975 = vmatpush.bf16.msrb.mxu1 %v12710_v47  ;;  %11143 = vst [vmem:[%s13892_s29 + $0x388] sm:$0xff] %v6454_v59  ;;  %v6339_v36 = vadd.f32 %v6338_v39, %v6250_v10  ;;  %v12419_v39 = vld [vmem:[#allocation2 + $0x104] sm:$0xf]  ;;  %v11198_v59 = vld [vmem:[#allocation2 + $0x128] sm:$0xf0] }
 0x543   : > { %v5739_v48 = vmax.f32 %v5707_v37, 0.0 }
 0x544   : > { %v5624_v4 = vpop.f32.mrf.mxu0  ;;  %v6391_v2 = vmul.f32 %v14498_v1, %v6339_v36 }
 0x545   : > { %8437 = vmatpush.bf16.msrb.mxu0 %v12709_v25  ;;  %9065 = vmatpush.bf16.msrb.mxu2 %v12711_v11  ;;  %v5625_v12 = vadd.f32 %v5624_v4, %v14318_v23  ;;  %10920 = vst [vmem:[%s13892_s29 + $0x290] sm:$0xff] %v5739_v48  ;;  %v11193_v23 = vor.u32 %v12418_v30, %v11192_v54  ;;  %v12421_v48 = vld [vmem:[#allocation2 + $0x12c] sm:$0xf0]  ;;  %v11420_v4 = vld [vmem:[#allocation2 + $0x104] sm:$0xf] }
 0x546   : > { %9154 = vmatpush.bf16.msrb.mxu3 %v12712_v50  ;;  %8976 = vmatpush.bf16.msrb.mxu1 %v12713_v20  ;;  %v6423_v41 = vadd.f32 %v14512_v35, %v6391_v2  ;;  %v11201_v30 = vor.u32 %v12419_v39, %v11198_v59  ;;  %v11204_v11 = vld [vmem:[#allocation2 + $0x108] sm:$0xf]  ;;  %v12423_v59 = vld [vmem:[#allocation2 + $0x174] sm:$0xf0] }
 0x547   : > { %v5676_v6 = vmul.f32 %v14498_v1, %v5625_v12  ;;  %v6251_v32 = vpop.f32.mrf.mxu2  ;;  %v6340_v46 = vpop.f32.mrf.mxu3  ;;  %v11205_v36 = vor.u32 %v12421_v48, %v11204_v11  ;;  %v12420_v2 = vld [vmem:[#allocation2 + $0x124] sm:$0xf0] }
 0x548   : > { %v6455_v14 = vmax.f32 %v6423_v41, 0.0  ;;  %v6252_v9 = vadd.f32 %v6251_v32, %v6162_v45  ;;  %v6165_v21 = vpop.f32.mrf.mxu1  ;;  %v12468_v45 = vld [vmem:[#allocation2 + $0x128] sm:$0xf0] }
 0x549   : > { %8438 = vmatpush.bf16.msrb.mxu0 %v12712_v50  ;;  %9066 = vmatpush.bf16.msrb.mxu2 %v12714_v40  ;;  %v5708_v52 = vadd.f32 %v14512_v35, %v5676_v6  ;;  %v11421_v12 = vor.u32 %v12468_v45, %v11420_v4 }
 0x54a   : > { %9155 = vmatpush.bf16.msrb.mxu3 %v12715_v24  ;;  %8977 = vmatpush.bf16.msrb.mxu1 %v12716_v17  ;;  %11144 = vst [vmem:[%s13892_s29 + $0x390] sm:$0xff] %v6455_v14  ;;  %v6341_v34 = vadd.f32 %v6340_v46, %v6252_v9 }
 0x54b   : > { %6929 = vmatmul.bf16.gmra.mxu1 %v11189_v15  ;;  %v5740_v55 = vmax.f32 %v5708_v52, 0.0 }
 0x54c   : > { %7018 = vmatmul.bf16.gmra.mxu2 %v11193_v23  ;;  %7556 = vmatmul.bf16.gmra.mxu3 %v11409_v42  ;;  %v5627_v18 = vpop.f32.mrf.mxu0  ;;  %v6392_v60 = vmul.f32 %v14498_v1, %v6341_v34  ;;  %v11196_v42 = vld [vmem:[#allocation2 + $0x100] sm:$0xf]  ;;  %v11210_v34 = vld [vmem:[#allocation2 + $0x178] sm:$0xf0] }
 0x54d   : > { %8439 = vmatpush.bf16.msrb.mxu0 %v12715_v24  ;;  %v5628_v26 = vadd.f32 %v5627_v18, %v14332_v51  ;;  %10921 = vst [vmem:[%s13892_s29 + $0x298] sm:$0xff] %v5740_v55  ;;  %v11197_v52 = vor.u32 %v12420_v2, %v11196_v42  ;;  %v12427_v42 = vld [vmem:[#allocation2 + $0x1cc] sm:$0xf0] }
 0x54e   : > { %v6424_v31 = vadd.f32 %v14512_v35, %v6392_v60 }
 0x54f   : > { %v5677_v0 = vmul.f32 %v14498_v1, %v5628_v26  ;;  %6840 = vmatmul.bf16.gmra.mxu0 %v11185_v7  ;;  %v6254_v49 = vpop.f32.mrf.mxu2  ;;  %v6343_v33 = vpop.f32.mrf.mxu3  ;;  %v12424_v26 = vld [vmem:[#allocation2 + $0x17c] sm:$0xf0] }
 0x550   : > { %v6456_v13 = vmax.f32 %v6424_v31, 0.0  ;;  %v6255_v25 = vadd.f32 %v6254_v49, %v6165_v21  ;;  %v6167_v51 = vpop.f32.mrf.mxu1  ;;  %v12471_v31 = vld [vmem:[#allocation2 + $0x178] sm:$0xf0] }
 0x551   : > { %v5709_v27 = vadd.f32 %v14512_v35, %v5677_v0  ;;  %v11432_v0 = vld [vmem:[#allocation2 + $0x154] sm:$0xf] }
 0x552   : > { %11145 = vst [vmem:[%s13892_s29 + $0x398] sm:$0xff] %v6456_v13  ;;  %v6344_v10 = vadd.f32 %v6343_v33, %v6255_v25  ;;  %v11213_v33 = vor.u32 %v12422_v43, %v11210_v34  ;;  %v11216_v13 = vld [vmem:[#allocation2 + $0x158] sm:$0xf]  ;;  %v11433_v25 = vor.u32 %v12471_v31, %v11432_v0  ;;  %v11220_v0 = vld [vmem:[#allocation2 + $0x1a0] sm:$0xf] }
 0x553   : > { %v5741_v37 = vmax.f32 %v5709_v27, 0.0 }
 0x554   : > { %v5629_v29 = vpop.f32.mrf.mxu0  ;;  %v6393_v5 = vmul.f32 %v14498_v1, %v6344_v10 }
 0x555   : > { %v5630_v47 = vadd.f32 %v5629_v29, %v14343_v22  ;;  %10922 = vst [vmem:[%s13892_s29 + $0x2a0] sm:$0xff] %v5741_v37  ;;  %v11217_v37 = vor.u32 %v12424_v26, %v11216_v13 }
 0x556   : > { %v6425_v38 = vadd.f32 %v14512_v35, %v6393_v5  ;;  %v11208_v5 = vld [vmem:[#allocation2 + $0x150] sm:$0xf] }
 0x557   : > { %v5678_v44 = vmul.f32 %v14498_v1, %v5630_v47  ;;  %v6256_v50 = vpop.f32.mrf.mxu2  ;;  %v6345_v22 = vpop.f32.mrf.mxu3  ;;  %v11209_v11 = vor.u32 %v12423_v59, %v11208_v5 }
 0x558   : > { %v6457_v6 = vmax.f32 %v6425_v38, 0.0  ;;  %v6257_v54 = vadd.f32 %v6256_v50, %v6167_v51  ;;  %v6170_v23 = vpop.f32.mrf.mxu1 }
 0x559   : > { %v5710_v8 = vadd.f32 %v14512_v35, %v5678_v44 }
 0x55a   : > { %11146 = vst [vmem:[%s13892_s29 + $0x3a0] sm:$0xff] %v6457_v6  ;;  %v6346_v40 = vadd.f32 %v6345_v22, %v6257_v54 }
 0x55b   : > { %6934 = vmatmul.bf16.gmra.mxu1 %v11201_v30  ;;  %v5742_v15 = vmax.f32 %v5710_v8, 0.0 }
 0x55c   : > { %7023 = vmatmul.bf16.gmra.mxu2 %v11205_v36  ;;  %7561 = vmatmul.bf16.gmra.mxu3 %v11421_v12  ;;  %v5632_v20 = vpop.f32.mrf.mxu0  ;;  %v6394_v24 = vmul.f32 %v14498_v1, %v6346_v40 }
 0x55d   : > { %v5633_v41 = vadd.f32 %v5632_v20, %v14349_v58  ;;  %10923 = vst [vmem:[%s13892_s29 + $0x2a8] sm:$0xff] %v5742_v15  ;;  %v12425_v20 = vld [vmem:[#allocation2 + $0x1a4] sm:$0xf] }
 0x55e   : > { %v6426_v46 = vadd.f32 %v14512_v35, %v6394_v24  ;;  %v12474_v24 = vld [vmem:[#allocation2 + $0x1c8] sm:$0xf0] }
 0x55f   : > { %v5679_v32 = vmul.f32 %v14498_v1, %v5633_v41  ;;  %6845 = vmatmul.bf16.gmra.mxu0 %v11197_v52  ;;  %v6259_v14 = vpop.f32.mrf.mxu2  ;;  %v6348_v55 = vpop.f32.mrf.mxu3  ;;  %v11444_v52 = vld [vmem:[#allocation2 + $0x1a4] sm:$0xf] }
 0x560   : > { %v6458_v9 = vmax.f32 %v6426_v46, 0.0  ;;  %v6260_v18 = vadd.f32 %v6259_v14, %v6170_v23  ;;  %v6172_v58 = vpop.f32.mrf.mxu1  ;;  %v11222_v23 = vld [vmem:[#allocation2 + $0x1c8] sm:$0xf0]  ;;  %v11228_v14 = vld [vmem:[#allocation2 + $0x1a8] sm:$0xf] }
 0x561   : > { %v5711_v62 = vadd.f32 %v14512_v35, %v5679_v32 }
 0x562   : > { %11147 = vst [vmem:[%s13892_s29 + $0x3a8] sm:$0xff] %v6458_v9  ;;  %v6349_v7 = vadd.f32 %v6348_v55, %v6260_v18  ;;  %v11229_v55 = vor.u32 %v12427_v42, %v11228_v14  ;;  %v11445_v9 = vor.u32 %v12474_v24, %v11444_v52 }
 0x563   : > { %v5743_v17 = vmax.f32 %v5711_v62, 0.0  ;;  %v11225_v62 = vor.u32 %v12425_v20, %v11222_v23 }
 0x564   : > { %v5634_v21 = vpop.f32.mrf.mxu0  ;;  %v6395_v27 = vmul.f32 %v14498_v1, %v6349_v7 }
 0x565   : > { %v5635_v60 = vadd.f32 %v5634_v21, %v14355_v19  ;;  %10924 = vst [vmem:[%s13892_s29 + $0x2b0] sm:$0xff] %v5743_v17 }
 0x566   : > { %v6427_v29 = vadd.f32 %v14512_v35, %v6395_v27 }
 0x567   : > { %v5680_v49 = vmul.f32 %v14498_v1, %v5635_v60  ;;  %v6261_v39 = vpop.f32.mrf.mxu2  ;;  %v6350_v19 = vpop.f32.mrf.mxu3 }
 0x568   : > { %v6459_v48 = vmax.f32 %v6427_v29, 0.0  ;;  %v6262_v47 = vadd.f32 %v6261_v39, %v6172_v58  ;;  %v6175_v45 = vpop.f32.mrf.mxu1  ;;  %v12426_v58 = vld [vmem:[#allocation2 + $0x1c4] sm:$0xf0] }
 0x569   : > { %v5712_v51 = vadd.f32 %v14512_v35, %v5680_v49  ;;  %v11221_v49 = vor.u32 %v12426_v58, %v11220_v0  ;;  %v12431_v58 = vld [vmem:[#allocation2 + $0x244] sm:$0xf]  ;;  %v12480_v0 = vld [vmem:[#allocation2 + $0x268] sm:$0xf0] }
 0x56a   : > { %11148 = vst [vmem:[%s13892_s29 + $0x3b0] sm:$0xff] %v6459_v48  ;;  %v6351_v44 = vadd.f32 %v6350_v19, %v6262_v47  ;;  %v11234_v47 = vld [vmem:[#allocation2 + $0x218] sm:$0xf0] }
 0x56b   : > { %6939 = vmatmul.bf16.gmra.mxu1 %v11213_v33  ;;  %v5744_v10 = vmax.f32 %v5712_v51, 0.0 }
 0x56c   : > { %7028 = vmatmul.bf16.gmra.mxu2 %v11217_v37  ;;  %7566 = vmatmul.bf16.gmra.mxu3 %v11433_v25  ;;  %v5637_v4 = vpop.f32.mrf.mxu0  ;;  %v6396_v36 = vmul.f32 %v14498_v1, %v6351_v44  ;;  %v11456_v44 = vld [vmem:[#allocation2 + $0x1f4] sm:$0xf] }
 0x56d   : > { %v5638_v30 = vadd.f32 %v5637_v4, %v14361_v16  ;;  %10925 = vst [vmem:[%s13892_s29 + $0x2b8] sm:$0xff] %v5744_v10  ;;  %v12428_v10 = vld [vmem:[#allocation2 + $0x1f4] sm:$0xf]  ;;  %v12430_v4 = vld [vmem:[#allocation2 + $0x21c] sm:$0xf0] }
 0x56e   : > { %v6428_v38 = vadd.f32 %v14512_v35, %v6396_v36 }
 0x56f   : > { %v5681_v12 = vmul.f32 %v14498_v1, %v5638_v30  ;;  %6850 = vmatmul.bf16.gmra.mxu0 %v11209_v11  ;;  %v6264_v50 = vpop.f32.mrf.mxu2  ;;  %v6353_v22 = vpop.f32.mrf.mxu3  ;;  %v12477_v30 = vld [vmem:[#allocation2 + $0x218] sm:$0xf0] }
 0x570   : > { %v6460_v2 = vmax.f32 %v6428_v38, 0.0  ;;  %v6265_v15 = vadd.f32 %v6264_v50, %v6175_v45  ;;  %v6177_v16 = vpop.f32.mrf.mxu1  ;;  %v11240_v38 = vld [vmem:[#allocation2 + $0x1f8] sm:$0xf]  ;;  %v11457_v50 = vor.u32 %v12477_v30, %v11456_v44 }
 0x571   : > { %v5713_v8 = vadd.f32 %v14512_v35, %v5681_v12  ;;  %v11237_v12 = vor.u32 %v12428_v10, %v11234_v47  ;;  %v11244_v47 = vld [vmem:[#allocation2 + $0x240] sm:$0xf] }
 0x572   : > { %11149 = vst [vmem:[%s13892_s29 + $0x3b8] sm:$0xff] %v6460_v2  ;;  %v6354_v40 = vadd.f32 %v6353_v22, %v6265_v15  ;;  %v12429_v15 = vld [vmem:[#allocation2 + $0x214] sm:$0xf0] }
 0x573   : > { %v5745_v6 = vmax.f32 %v5713_v8, 0.0  ;;  %v11241_v8 = vor.u32 %v12430_v4, %v11240_v38 }
 0x574   : > { %v5639_v54 = vpop.f32.mrf.mxu0  ;;  %v6397_v32 = vmul.f32 %v14498_v1, %v6354_v40  ;;  %v11232_v40 = vld [vmem:[#allocation2 + $0x1f0] sm:$0xf] }
 0x575   : > { %v5640_v41 = vadd.f32 %v5639_v54, %v14367_v3  ;;  %10926 = vst [vmem:[%s13892_s29 + $0x2c0] sm:$0xff] %v5745_v6  ;;  %v11233_v24 = vor.u32 %v12429_v15, %v11232_v40  ;;  %v11480_v15 = vld [vmem:[#allocation2 + $0x294] sm:$0xf] }
 0x576   : > { %v6429_v17 = vadd.f32 %v14512_v35, %v6397_v32 }
 0x577   : > { %v5682_v46 = vmul.f32 %v14498_v1, %v5640_v41  ;;  %v6266_v21 = vpop.f32.mrf.mxu2  ;;  %v6355_v3 = vpop.f32.mrf.mxu3 }
 0x578   : > { %v6461_v43 = vmax.f32 %v6429_v17, 0.0  ;;  %v6267_v26 = vadd.f32 %v6266_v21, %v6177_v16  ;;  %v6180_v60 = vpop.f32.mrf.mxu1 }
 0x579   : > { %v5714_v18 = vadd.f32 %v14512_v35, %v5682_v46 }
 0x57a   : > { %11150 = vst [vmem:[%s13892_s29 + $0x3c0] sm:$0xff] %v6461_v43  ;;  %v6356_v31 = vadd.f32 %v6355_v3, %v6267_v26  ;;  %v11246_v43 = vld [vmem:[#allocation2 + $0x268] sm:$0xf0] }
 0x57b   : > { %6944 = vmatmul.bf16.gmra.mxu1 %v11225_v62  ;;  %v5746_v34 = vmax.f32 %v5714_v18, 0.0 }
 0x57c   : > { %7033 = vmatmul.bf16.gmra.mxu2 %v11229_v55  ;;  %7571 = vmatmul.bf16.gmra.mxu3 %v11445_v9  ;;  %v5642_v7 = vpop.f32.mrf.mxu0  ;;  %v6398_v33 = vmul.f32 %v14498_v1, %v6356_v31 }
 0x57d   : > { %v5643_v27 = vadd.f32 %v5642_v7, %v14373_v57  ;;  %10927 = vst [vmem:[%s13892_s29 + $0x2c8] sm:$0xff] %v5746_v34  ;;  %v12433_v34 = vld [vmem:[#allocation2 + $0x26c] sm:$0xf0] }
 0x57e   : > { %v6430_v37 = vadd.f32 %v14512_v35, %v6398_v33  ;;  %v11252_v33 = vld [vmem:[#allocation2 + $0x248] sm:$0xf] }
 0x57f   : > { %v5683_v13 = vmul.f32 %v14498_v1, %v5643_v27  ;;  %6855 = vmatmul.bf16.gmra.mxu0 %v11221_v49  ;;  %v6269_v29 = vpop.f32.mrf.mxu2  ;;  %v6358_v51 = vpop.f32.mrf.mxu3  ;;  %v11249_v49 = vor.u32 %v12431_v58, %v11246_v43 }
 0x580   : > { %v6462_v39 = vmax.f32 %v6430_v37, 0.0  ;;  %v6270_v59 = vadd.f32 %v6269_v29, %v6180_v60  ;;  %v6182_v57 = vpop.f32.mrf.mxu1  ;;  %v11468_v60 = vld [vmem:[#allocation2 + $0x244] sm:$0xf] }
 0x581   : > { %v5715_v25 = vadd.f32 %v14512_v35, %v5683_v13  ;;  %v11253_v13 = vor.u32 %v12433_v34, %v11252_v33  ;;  %v11469_v37 = vor.u32 %v12480_v0, %v11468_v60 }
 0x582   : > { %11151 = vst [vmem:[%s13892_s29 + $0x3c8] sm:$0xff] %v6462_v39  ;;  %v6359_v45 = vadd.f32 %v6358_v51, %v6270_v59  ;;  %v12432_v39 = vld [vmem:[#allocation2 + $0x264] sm:$0xf0] }
 0x583   : > { %v5747_v19 = vmax.f32 %v5715_v25, 0.0 }
 0x584   : > { %v5644_v48 = vpop.f32.mrf.mxu0  ;;  %v6399_v11 = vmul.f32 %v14498_v1, %v6359_v45 }
 0x585   : > { %v5645_v5 = vadd.f32 %v5644_v48, %v14379_v63  ;;  %10928 = vst [vmem:[%s13892_s29 + $0x2d0] sm:$0xff] %v5747_v19 }
 0x586   : > { %v6431_v22 = vadd.f32 %v14512_v35, %v6399_v11 }
 0x587   : > { %v5684_v36 = vmul.f32 %v14498_v1, %v5645_v5  ;;  %v6271_v6 = vpop.f32.mrf.mxu2  ;;  %v6360_v63 = vpop.f32.mrf.mxu3  ;;  %v11245_v5 = vor.u32 %v12432_v39, %v11244_v47 }
 0x588   : > { %v6463_v54 = vmax.f32 %v6431_v22, 0.0  ;;  %v6272_v20 = vadd.f32 %v6271_v6, %v6182_v57  ;;  %v6185_v42 = vpop.f32.mrf.mxu1  ;;  %v12434_v6 = vld [vmem:[#allocation2 + $0x294] sm:$0xf] }
 0x589   : > { %v5716_v2 = vadd.f32 %v14512_v35, %v5684_v36 }
 0x58a   : > { %11152 = vst [vmem:[%s13892_s29 + $0x3d0] sm:$0xff] %v6463_v54  ;;  %v6361_v41 = vadd.f32 %v6360_v63, %v6272_v20  ;;  %v11258_v63 = vld [vmem:[#allocation2 + $0x2b8] sm:$0xf0]  ;;  %v12436_v20 = vld [vmem:[#allocation2 + $0x2bc] sm:$0xf0] }
 0x58b   : > { %6949 = vmatmul.bf16.gmra.mxu1 %v11237_v12  ;;  %v5748_v16 = vmax.f32 %v5716_v2, 0.0 }
 0x58c   : > { %7038 = vmatmul.bf16.gmra.mxu2 %v11241_v8  ;;  %7576 = vmatmul.bf16.gmra.mxu3 %v11457_v50  ;;  %v5647_v23 = vpop.f32.mrf.mxu0  ;;  %v6400_v32 = vmul.f32 %v14498_v1, %v6361_v41  ;;  %v11261_v41 = vor.u32 %v12434_v6, %v11258_v63 }
 0x58d   : > { %v5648_v52 = vadd.f32 %v5647_v23, %v14385_v56  ;;  %10929 = vst [vmem:[%s13892_s29 + $0x2d8] sm:$0xff] %v5748_v16  ;;  %v12483_v23 = vld [vmem:[#allocation2 + $0x2b8] sm:$0xf0] }
 0x58e   : > { %v6432_v62 = vadd.f32 %v14512_v35, %v6400_v32  ;;  %v11481_v32 = vor.u32 %v12483_v23, %v11480_v15  ;;  %v12442_v23 = vld [vmem:[#allocation2 + $0x35c] sm:$0xf0] }
 0x58f   : > { %v5685_v46 = vmul.f32 %v14498_v1, %v5648_v52  ;;  %6860 = vmatmul.bf16.gmra.mxu0 %v11233_v24  ;;  %v6274_v55 = vpop.f32.mrf.mxu2  ;;  %v6363_v9 = vpop.f32.mrf.mxu3  ;;  %v11264_v52 = vld [vmem:[#allocation2 + $0x298] sm:$0xf] }
 0x590   : > { %v6464_v17 = vmax.f32 %v6432_v62, 0.0  ;;  %v6275_v21 = vadd.f32 %v6274_v55, %v6185_v42  ;;  %v6187_v56 = vpop.f32.mrf.mxu1  ;;  %v11265_v24 = vor.u32 %v12436_v20, %v11264_v52  ;;  %v12435_v55 = vld [vmem:[#allocation2 + $0x2b4] sm:$0xf0]  ;;  %v14727_v20 = vld [vmem:[%s15336_s5] ss:$0 sm:$0xff] }
 0x591   : > { %v5717_v14 = vadd.f32 %v14512_v35, %v5685_v46 }
 0x592   : > { %11153 = vst [vmem:[%s13892_s29 + $0x3d8] sm:$0xff] %v6464_v17  ;;  %v6364_v26 = vadd.f32 %v6363_v9, %v6275_v21 }
 0x593   : > { %v5749_v18 = vmax.f32 %v5717_v14, 0.0 }
 0x594   : > { %v5649_v3 = vpop.f32.mrf.mxu0  ;;  %v6401_v31 = vmul.f32 %v14498_v1, %v6364_v26 }
 0x595   : > { %v5650_v7 = vadd.f32 %v5649_v3, %v14391_v53  ;;  %10930 = vst [vmem:[%s13892_s29 + $0x2e0] sm:$0xff] %v5749_v18 }
 0x596   : > { %v6433_v25 = vadd.f32 %v14512_v35, %v6401_v31 }
 0x597   : > { %v5686_v27 = vmul.f32 %v14498_v1, %v5650_v7  ;;  %v6276_v51 = vpop.f32.mrf.mxu2  ;;  %v6365_v53 = vpop.f32.mrf.mxu3 }
 0x598   : > { %v6465_v19 = vmax.f32 %v6433_v25, 0.0  ;;  %v6277_v48 = vadd.f32 %v6276_v51, %v6187_v56  ;;  %v6190_v10 = vpop.f32.mrf.mxu1  ;;  %v11256_v56 = vld [vmem:[#allocation2 + $0x290] sm:$0xf]  ;;  %v11492_v25 = vld [vmem:[#allocation2 + $0x2e4] sm:$0xf] }
 0x599   : > { %v5718_v29 = vadd.f32 %v14512_v35, %v5686_v27  ;;  %v11257_v43 = vor.u32 %v12435_v55, %v11256_v56  ;;  %v12439_v51 = vld [vmem:[#allocation2 + $0x30c] sm:$0xf0] }
 0x59a   : > { %11154 = vst [vmem:[%s13892_s29 + $0x3e0] sm:$0xff] %v6465_v19  ;;  %v6366_v4 = vadd.f32 %v6365_v53, %v6277_v48  ;;  %v12486_v53 = vld [vmem:[#allocation2 + $0x308] sm:$0xf0] }
 0x59b   : > { %6954 = vmatmul.bf16.gmra.mxu1 %v11249_v49  ;;  %v5750_v59 = vmax.f32 %v5718_v29, 0.0 }
 0x59c   : > { %7043 = vmatmul.bf16.gmra.mxu2 %v11253_v13  ;;  %7581 = vmatmul.bf16.gmra.mxu3 %v11469_v37  ;;  %v5652_v57 = vpop.f32.mrf.mxu0  ;;  %v6402_v44 = vmul.f32 %v14498_v1, %v6366_v4  ;;  %v12437_v13 = vld [vmem:[#allocation2 + $0x2e4] sm:$0xf]  ;;  %v11270_v37 = vld [vmem:[#allocation2 + $0x308] sm:$0xf0] }
 0x59d   : > { %v5653_v45 = vadd.f32 %v5652_v57, %v14397_v61  ;;  %10931 = vst [vmem:[%s13892_s29 + $0x2e8] sm:$0xff] %v5750_v59  ;;  %v11273_v19 = vor.u32 %v12437_v13, %v11270_v37  ;;  %v11276_v59 = vld [vmem:[#allocation2 + $0x2e8] sm:$0xf]  ;;  %v11493_v57 = vor.u32 %v12486_v53, %v11492_v25  ;;  %v11294_v13 = vld [vmem:[#allocation2 + $0x3a8] sm:$0xf0] }
 0x59e   : > { %v6434_v11 = vadd.f32 %v14512_v35, %v6402_v44  ;;  %v11277_v48 = vor.u32 %v12439_v51, %v11276_v59  ;;  %v12445_v25 = vld [vmem:[#allocation2 + $0x3ac] sm:$0xf0]  ;;  %v12492_v51 = vld [vmem:[#allocation2 + $0x3a8] sm:$0xf0] }
 0x59f   : > { %v5687_v30 = vmul.f32 %v14498_v1, %v5653_v45  ;;  %6865 = vmatmul.bf16.gmra.mxu0 %v11245_v5  ;;  %v6279_v12 = vpop.f32.mrf.mxu2  ;;  %v6368_v38 = vpop.f32.mrf.mxu3  ;;  %v12438_v5 = vld [vmem:[#allocation2 + $0x304] sm:$0xf0] }
 0x5a0   : > { %v6466_v8 = vmax.f32 %v6434_v11, 0.0  ;;  %v6280_v22 = vadd.f32 %v6279_v12, %v6190_v10  ;;  %v6192_v61 = vpop.f32.mrf.mxu1 }
 0x5a1   : > { %v5719_v36 = vadd.f32 %v14512_v35, %v5687_v30 }
 0x5a2   : > { %11155 = vst [vmem:[%s13892_s29 + $0x3e8] sm:$0xff] %v6466_v8  ;;  %v6369_v54 = vadd.f32 %v6368_v38, %v6280_v22 }
 0x5a3   : > { %v5751_v50 = vmax.f32 %v5719_v36, 0.0  ;;  %v11268_v36 = vld [vmem:[#allocation2 + $0x2e0] sm:$0xf] }
 0x5a4   : > { %v5654_v2 = vpop.f32.mrf.mxu0  ;;  %v6403_v42 = vmul.f32 %v14498_v1, %v6369_v54  ;;  %v11269_v38 = vor.u32 %v12438_v5, %v11268_v36  ;;  %v12440_v54 = vld [vmem:[#allocation2 + $0x334] sm:$0xf]  ;;  %v12444_v5 = vld [vmem:[#allocation2 + $0x3a4] sm:$0xf0]  ;;  %v11292_v36 = vld [vmem:[#allocation2 + $0x380] sm:$0xf] }
 0x5a5   : > { %v5655_v16 = vadd.f32 %v5654_v2, %v14403_v28  ;;  %10932 = vst [vmem:[%s13892_s29 + $0x2f0] sm:$0xff] %v5751_v50 }
 0x5a6   : > { %v6435_v46 = vadd.f32 %v14512_v35, %v6403_v42  ;;  %v11504_v42 = vld [vmem:[#allocation2 + $0x334] sm:$0xf] }
 0x5a7   : > { %v5688_v40 = vmul.f32 %v14498_v1, %v5655_v16  ;;  %v6281_v14 = vpop.f32.mrf.mxu2  ;;  %v6370_v28 = vpop.f32.mrf.mxu3  ;;  %v11282_v16 = vld [vmem:[#allocation2 + $0x358] sm:$0xf0] }
 0x5a8   : > { %v6467_v9 = vmax.f32 %v6435_v46, 0.0  ;;  %v6282_v18 = vadd.f32 %v6281_v14, %v6192_v61  ;;  %v6920_v3 = vpop.f32.mrf.mxu1  ;;  %v11285_v52 = vor.u32 %v12440_v54, %v11282_v16  ;;  %v12446_v16 = vld [vmem:[#allocation2 + $0x3d4] sm:$0xf] }
 0x5a9   : > { %v5720_v62 = vadd.f32 %v14512_v35, %v5688_v40  ;;  %v12489_v40 = vld [vmem:[#allocation2 + $0x358] sm:$0xf0] }
 0x5aa   : > { %11156 = vst [vmem:[%s13892_s29 + $0x3f0] sm:$0xff] %v6467_v9  ;;  %v6371_v58 = vadd.f32 %v6370_v28, %v6282_v18  ;;  %v11505_v46 = vor.u32 %v12489_v40, %v11504_v42  ;;  %v12441_v9 = vld [vmem:[#allocation2 + $0x354] sm:$0xf0]  ;;  %v12448_v42 = vld [vmem:[#allocation2 + $0x3fc] sm:$0xf0] }
 0x5ab   : > { %6959 = vmatmul.bf16.gmra.mxu1 %v11261_v41  ;;  %v5752_v17 = vmax.f32 %v5720_v62, 0.0  ;;  %v11528_v40 = vld [vmem:[#allocation2 + $0x3d4] sm:$0xf] }
 0x5ac   : > { %7048 = vmatmul.bf16.gmra.mxu2 %v11265_v24  ;;  %7586 = vmatmul.bf16.gmra.mxu3 %v11481_v32  ;;  %v6831_v21 = vpop.f32.mrf.mxu0  ;;  %v6404_v34 = vmul.f32 %v14498_v1, %v6371_v58  ;;  %v11288_v24 = vld [vmem:[#allocation2 + $0x338] sm:$0xf]  ;;  %v14738_v58 = vld [vmem:[%s15337_s6] ss:$0 sm:$0xff] }
 0x5ad   : > { %10933 = vst [vmem:[%s13892_s29 + $0x2f8] sm:$0xff] %v5752_v17  ;;  %v6921_v7 = vadd.f32 %v6920_v3, %v6831_v21  ;;  %v11289_v32 = vor.u32 %v12442_v23, %v11288_v24  ;;  %v11280_v3 = vld [vmem:[#allocation2 + $0x330] sm:$0xf] }
 0x5ae   : > { %v6436_v26 = vadd.f32 %v14512_v35, %v6404_v34  ;;  %v11281_v56 = vor.u32 %v12441_v9, %v11280_v3 }
 0x5af   : > { %6870 = vmatmul.bf16.gmra.mxu0 %v11257_v43  ;;  %v7009_v60 = vpop.f32.mrf.mxu2  ;;  %v14711_v0 = vpop.f32.mrf.mxu3 }
 0x5b0   : > { %v6468_v31 = vmax.f32 %v6436_v26, 0.0  ;;  %v7010_v27 = vadd.f32 %v7009_v60, %v6921_v7  ;;  %v6922_v33 = vpop.f32.mrf.mxu1 }
 0x5b2   : > { %11157 = vst [vmem:[%s13892_s29 + $0x3f8] sm:$0xff] %v6468_v31  ;;  %v7089_v29 = vmul.f32 %v14498_v1, %v7010_v27 }
 0x5b4   : > { %v6833_v49 = vpop.f32.mrf.mxu0  ;;  %v7121_v39 = vadd.f32 %v14512_v35, %v7089_v29  ;;  %v11516_v29 = vld [vmem:[#allocation2 + $0x384] sm:$0xf] }
 0x5b5   : > { %v6923_v47 = vadd.f32 %v6922_v33, %v6833_v49  ;;  %v12443_v33 = vld [vmem:[#allocation2 + $0x384] sm:$0xf] }
 0x5b6   : > { %v7153_v10 = vmax.f32 %v7121_v39, 0.0  ;;  %v11297_v39 = vor.u32 %v12443_v33, %v11294_v13 }
 0x5b7   : > { %v7011_v4 = vpop.f32.mrf.mxu2  ;;  %v14716_v45 = vpop.f32.mrf.mxu3 }
 0x5b8   : > { %11350 = vst [vmem:[%s13892_s29 + $0x400] sm:$0xff] %v7153_v10  ;;  %v7012_v44 = vadd.f32 %v7011_v4, %v6923_v47  ;;  %v6925_v11 = vpop.f32.mrf.mxu1 }
 0x5ba   : > { %v7090_v12 = vmul.f32 %v14498_v1, %v7012_v44 }
 0x5bb   : > { %6964 = vmatmul.bf16.gmra.mxu1 %v11273_v19  ;;  %v11300_v19 = vld [vmem:[#allocation2 + $0x388] sm:$0xf] }
 0x5bc   : > { %7053 = vmatmul.bf16.gmra.mxu2 %v11277_v48  ;;  %7591 = vmatmul.bf16.gmra.mxu3 %v11493_v57  ;;  %v6836_v30 = vpop.f32.mrf.mxu0  ;;  %v7122_v8 = vadd.f32 %v14512_v35, %v7090_v12  ;;  %v11301_v59 = vor.u32 %v12445_v25, %v11300_v19  ;;  %v11517_v48 = vor.u32 %v12492_v51, %v11516_v29  ;;  %v12449_v25 = vld [vmem:[#allocation2 + $0x424] sm:$0xf]  ;;  %v11318_v29 = vld [vmem:[#allocation2 + $0x448] sm:$0xf0] }
 0x5bd   : > { %v6926_v22 = vadd.f32 %v6925_v11, %v6836_v30  ;;  %v12498_v19 = vld [vmem:[#allocation2 + $0x448] sm:$0xf0] }
 0x5be   : > { %v7154_v50 = vmax.f32 %v7122_v8, 0.0 }
 0x5bf   : > { %6875 = vmatmul.bf16.gmra.mxu0 %v11269_v38  ;;  %v7014_v2 = vpop.f32.mrf.mxu2  ;;  %v14721_v61 = vpop.f32.mrf.mxu3  ;;  %v11293_v38 = vor.u32 %v12444_v5, %v11292_v36  ;;  %v12450_v36 = vld [vmem:[#allocation2 + $0x444] sm:$0xf0] }
 0x5c0   : > { %11351 = vst [vmem:[%s13892_s29 + $0x408] sm:$0xff] %v7154_v50  ;;  %v7015_v6 = vadd.f32 %v7014_v2, %v6926_v22  ;;  %v6927_v15 = vpop.f32.mrf.mxu1 }
 0x5c2   : > { %v7091_v1 = vmul.f32 %v14727_v20, %v7015_v6 }
 0x5c4   : > { %v6838_v63 = vpop.f32.mrf.mxu0  ;;  %v7123_v41 = vadd.f32 %v14512_v35, %v7091_v1  ;;  %v11306_v1 = vld [vmem:[#allocation2 + $0x3f8] sm:$0xf0] }
 0x5c5   : > { %v6928_v14 = vadd.f32 %v6927_v15, %v6838_v63  ;;  %v11309_v24 = vor.u32 %v12446_v16, %v11306_v1 }
 0x5c6   : > { %v7155_v62 = vmax.f32 %v7123_v41, 0.0  ;;  %v12495_v41 = vld [vmem:[#allocation2 + $0x3f8] sm:$0xf0] }
 0x5c7   : > { %v7016_v28 = vpop.f32.mrf.mxu2  ;;  %v14731_v55 = vpop.f32.mrf.mxu3 }
 0x5c8   : > { %11352 = vst [vmem:[%s13892_s29 + $0x410] sm:$0xff] %v7155_v62  ;;  %v7017_v17 = vadd.f32 %v7016_v28, %v6928_v14  ;;  %v6930_v21 = vpop.f32.mrf.mxu1  ;;  %v11529_v62 = vor.u32 %v12495_v41, %v11528_v40  ;;  %v12452_v41 = vld [vmem:[#allocation2 + $0x474] sm:$0xf] }
 0x5ca   : > { %v7092_v35 = vmul.f32 %v14727_v20, %v7017_v17 }
 0x5cb   : > { %6969 = vmatmul.bf16.gmra.mxu1 %v11285_v52 }
 0x5cc   : > { %7058 = vmatmul.bf16.gmra.mxu2 %v11289_v32  ;;  %7596 = vmatmul.bf16.gmra.mxu3 %v11505_v46  ;;  %v6841_v18 = vpop.f32.mrf.mxu0  ;;  %v7124_v43 = vadd.f32 %v14738_v58, %v7092_v35  ;;  %v11312_v32 = vld [vmem:[#allocation2 + $0x3d8] sm:$0xf] }
 0x5cd   : > { %v6931_v26 = vadd.f32 %v6930_v21, %v6841_v18  ;;  %v11313_v46 = vor.u32 %v12448_v42, %v11312_v32  ;;  %v12447_v18 = vld [vmem:[#allocation2 + $0x3f4] sm:$0xf0]  ;;  %v12454_v32 = vld [vmem:[#allocation2 + $0x49c] sm:$0xf0] }
 0x5ce   : > { %v7156_v34 = vmax.f32 %v7124_v43, 0.0 }
 0x5cf   : > { %6880 = vmatmul.bf16.gmra.mxu0 %v11281_v56  ;;  %v7019_v7 = vpop.f32.mrf.mxu2  ;;  %v14741_v60 = vpop.f32.mrf.mxu3  ;;  %v11304_v56 = vld [vmem:[#allocation2 + $0x3d0] sm:$0xf] }
 0x5d0   : > { %11353 = vst [vmem:[%s13892_s29 + $0x418] sm:$0xff] %v7156_v34  ;;  %v7020_v31 = vadd.f32 %v7019_v7, %v6931_v26  ;;  %v6932_v49 = vpop.f32.mrf.mxu1  ;;  %v11305_v34 = vor.u32 %v12447_v18, %v11304_v56 }
 0x5d2   : > { %v7093_v37 = vmul.f32 %v14727_v20, %v7020_v31 }
 0x5d4   : > { %v6843_v27 = vpop.f32.mrf.mxu0  ;;  %v7125_v53 = vadd.f32 %v14738_v58, %v7093_v37 }
 0x5d5   : > { %v6933_v10 = vadd.f32 %v6932_v49, %v6843_v27 }
 0x5d6   : > { %v7157_v57 = vmax.f32 %v7125_v53, 0.0  ;;  %v12451_v53 = vld [vmem:[#allocation2 + $0x44c] sm:$0xf0] }
 0x5d7   : > { %v7021_v47 = vpop.f32.mrf.mxu2  ;;  %v14746_v4 = vpop.f32.mrf.mxu3 }
 0x5d8   : > { %11354 = vst [vmem:[%s13892_s29 + $0x420] sm:$0xff] %v7157_v57  ;;  %v7022_v44 = vadd.f32 %v7021_v47, %v6933_v10  ;;  %v6935_v11 = vpop.f32.mrf.mxu1  ;;  %v11324_v57 = vld [vmem:[#allocation2 + $0x428] sm:$0xf] }
 0x5d9   : > { %v11325_v10 = vor.u32 %v12451_v53, %v11324_v57  ;;  %v11342_v57 = vld [vmem:[#allocation2 + $0x4e8] sm:$0xf0] }
 0x5da   : > { %v7094_v12 = vmul.f32 %v14727_v20, %v7022_v44 }
 0x5db   : > { %6974 = vmatmul.bf16.gmra.mxu1 %v11297_v39  ;;  %v11540_v39 = vld [vmem:[#allocation2 + $0x424] sm:$0xf] }
 0x5dc   : > { %7063 = vmatmul.bf16.gmra.mxu2 %v11301_v59  ;;  %7601 = vmatmul.bf16.gmra.mxu3 %v11517_v48  ;;  %v6846_v30 = vpop.f32.mrf.mxu0  ;;  %v7126_v8 = vadd.f32 %v14738_v58, %v7094_v12  ;;  %v11321_v48 = vor.u32 %v12449_v25, %v11318_v29  ;;  %v11541_v47 = vor.u32 %v12498_v19, %v11540_v39 }
 0x5dd   : > { %v6936_v22 = vadd.f32 %v6935_v11, %v6846_v30 }
 0x5de   : > { %v7158_v50 = vmax.f32 %v7126_v8, 0.0 }
 0x5df   : > { %6885 = vmatmul.bf16.gmra.mxu0 %v11293_v38  ;;  %v7024_v2 = vpop.f32.mrf.mxu2  ;;  %v14751_v6 = vpop.f32.mrf.mxu3 }
 0x5e0   : > { %11355 = vst [vmem:[%s13892_s29 + $0x428] sm:$0xff] %v7158_v50  ;;  %v7025_v63 = vadd.f32 %v7024_v2, %v6936_v22  ;;  %v6937_v54 = vpop.f32.mrf.mxu1  ;;  %v11316_v50 = vld [vmem:[#allocation2 + $0x420] sm:$0xf] }
 0x5e1   : > { %v11317_v2 = vor.u32 %v12450_v36, %v11316_v50 }
 0x5e2   : > { %v7095_v23 = vmul.f32 %v14727_v20, %v7025_v63 }
 0x5e4   : > { %v6848_v15 = vpop.f32.mrf.mxu0  ;;  %v7127_v52 = vadd.f32 %v14738_v58, %v7095_v23 }
 0x5e5   : > { %v6938_v28 = vadd.f32 %v6937_v54, %v6848_v15 }
 0x5e6   : > { %v7159_v14 = vmax.f32 %v7127_v52, 0.0  ;;  %v11330_v52 = vld [vmem:[#allocation2 + $0x498] sm:$0xf0] }
 0x5e7   : > { %v7026_v9 = vpop.f32.mrf.mxu2  ;;  %v14756_v17 = vpop.f32.mrf.mxu3 }
 0x5e8   : > { %11356 = vst [vmem:[%s13892_s29 + $0x430] sm:$0xff] %v7159_v14  ;;  %v7027_v21 = vadd.f32 %v7026_v9, %v6938_v28  ;;  %v6940_v35 = vpop.f32.mrf.mxu1  ;;  %v11333_v28 = vor.u32 %v12452_v41, %v11330_v52  ;;  %v11336_v9 = vld [vmem:[#allocation2 + $0x478] sm:$0xf] }
 0x5e9   : > { %v11337_v18 = vor.u32 %v12454_v32, %v11336_v9 }
 0x5ea   : > { %v7096_v43 = vmul.f32 %v14727_v20, %v7027_v21 }
 0x5eb   : > { %6979 = vmatmul.bf16.gmra.mxu1 %v11309_v24 }
 0x5ec   : > { %7068 = vmatmul.bf16.gmra.mxu2 %v11313_v46  ;;  %7606 = vmatmul.bf16.gmra.mxu3 %v11529_v62  ;;  %v6851_v3 = vpop.f32.mrf.mxu0  ;;  %v7128_v26 = vadd.f32 %v14738_v58, %v7096_v43  ;;  %v11552_v46 = vld [vmem:[#allocation2 + $0x474] sm:$0xf]  ;;  %v12501_v62 = vld [vmem:[#allocation2 + $0x498] sm:$0xf0] }
 0x5ed   : > { %v6941_v31 = vadd.f32 %v6940_v35, %v6851_v3  ;;  %v11553_v21 = vor.u32 %v12501_v62, %v11552_v46 }
 0x5ee   : > { %v7160_v7 = vmax.f32 %v7128_v26, 0.0 }
 0x5ef   : > { %6890 = vmatmul.bf16.gmra.mxu0 %v11305_v34  ;;  %v7029_v27 = vpop.f32.mrf.mxu2  ;;  %v14761_v49 = vpop.f32.mrf.mxu3  ;;  %v12453_v34 = vld [vmem:[#allocation2 + $0x494] sm:$0xf0] }
 0x5f0   : > { %11357 = vst [vmem:[%s13892_s29 + $0x438] sm:$0xff] %v7160_v7  ;;  %v7030_v33 = vadd.f32 %v7029_v27, %v6941_v31  ;;  %v6942_v37 = vpop.f32.mrf.mxu1  ;;  %v11328_v27 = vld [vmem:[#allocation2 + $0x470] sm:$0xf] }
 0x5f2   : > { %v7097_v51 = vmul.f32 %v14727_v20, %v7030_v33 }
 0x5f4   : > { %v6853_v13 = vpop.f32.mrf.mxu0  ;;  %v7129_v59 = vadd.f32 %v14738_v58, %v7097_v51 }
 0x5f5   : > { %v6943_v44 = vadd.f32 %v6942_v37, %v6853_v13  ;;  %v11329_v13 = vor.u32 %v12453_v34, %v11328_v27 }
 0x5f6   : > { %v7161_v5 = vmax.f32 %v7129_v59, 0.0 }
 0x5f7   : > { %v7031_v30 = vpop.f32.mrf.mxu2  ;;  %v14766_v11 = vpop.f32.mrf.mxu3 }
 0x5f8   : > { %11358 = vst [vmem:[%s13892_s29 + $0x440] sm:$0xff] %v7161_v5  ;;  %v7032_v12 = vadd.f32 %v7031_v30, %v6943_v44  ;;  %v6945_v8 = vpop.f32.mrf.mxu1  ;;  %v11564_v5 = vld [vmem:[#allocation2 + $0x4c4] sm:$0xf]  ;;  %v12504_v44 = vld [vmem:[#allocation2 + $0x4e8] sm:$0xf0] }
 0x5fa   : > { %v7098_v22 = vmul.f32 %v14727_v20, %v7032_v12  ;;  %v11348_v12 = vld [vmem:[#allocation2 + $0x4c8] sm:$0xf] }
 0x5fb   : > { %6984 = vmatmul.bf16.gmra.mxu1 %v11321_v48  ;;  %v12455_v48 = vld [vmem:[#allocation2 + $0x4c4] sm:$0xf] }
 0x5fc   : > { %7073 = vmatmul.bf16.gmra.mxu2 %v11325_v10  ;;  %7611 = vmatmul.bf16.gmra.mxu3 %v11541_v47  ;;  %v6856_v38 = vpop.f32.mrf.mxu0  ;;  %v7130_v63 = vadd.f32 %v14738_v58, %v7098_v22  ;;  %v12457_v47 = vld [vmem:[#allocation2 + $0x4ec] sm:$0xf0]  ;;  %v11345_v36 = vor.u32 %v12455_v48, %v11342_v57  ;;  %v12458_v48 = vld [vmem:[#allocation2 + $0x18] sm:$0xf] }
 0x5fd   : > { %v6946_v54 = vadd.f32 %v6945_v8, %v6856_v38  ;;  %v11349_v38 = vor.u32 %v12457_v47, %v11348_v12  ;;  %v11565_v8 = vor.u32 %v12504_v44, %v11564_v5 }
 0x5fe   : > { %v7162_v15 = vmax.f32 %v7130_v63, 0.0 }
 0x5ff   : > { %6895 = vmatmul.bf16.gmra.mxu0 %v11317_v2  ;;  %v7034_v16 = vpop.f32.mrf.mxu2  ;;  %v14771_v1 = vpop.f32.mrf.mxu3 }
 0x600   : > { %11359 = vst [vmem:[%s13892_s29 + $0x448] sm:$0xff] %v7162_v15  ;;  %v7035_v23 = vadd.f32 %v7034_v16, %v6946_v54  ;;  %v6947_v40 = vpop.f32.mrf.mxu1  ;;  %v12456_v15 = vld [vmem:[#allocation2 + $0x4e4] sm:$0xf0] }
 0x602   : > { %v7099_v24 = vmul.f32 %v14727_v20, %v7035_v23 }
 0x604   : > { %v6858_v42 = vpop.f32.mrf.mxu0  ;;  %v7131_v14 = vadd.f32 %v14738_v58, %v7099_v24 }
 0x605   : > { %v6948_v35 = vadd.f32 %v6947_v40, %v6858_v42  ;;  %v11340_v42 = vld [vmem:[#allocation2 + $0x4c0] sm:$0xf] }
 0x606   : > { %v7163_v3 = vmax.f32 %v7131_v14, 0.0  ;;  %v11341_v41 = vor.u32 %v12456_v15, %v11340_v42  ;;  %v11622_v15 = vld [vmem:[#allocation2 + $0x90] sm:$0xf0]  ;;  %v11620_v42 = vld [vmem:[#allocation2 + $0x68] sm:$0xf] }
 0x607   : > { %v7036_v56 = vpop.f32.mrf.mxu2  ;;  %v14776_v43 = vpop.f32.mrf.mxu3 }
 0x608   : > { %11360 = vst [vmem:[%s13892_s29 + $0x450] sm:$0xff] %v7163_v3  ;;  %v7037_v26 = vadd.f32 %v7036_v56, %v6948_v35  ;;  %v6950_v31 = vpop.f32.mrf.mxu1  ;;  %v12507_v3 = vld [vmem:[#allocation2 + $0x3c] sm:$0xf0]  ;;  %v11610_v35 = vld [vmem:[#allocation2 + $0x40] sm:$0xf0] }
 0x609   : > { %v11392_v56 = vld [vmem:[#allocation2 + $0x1c] sm:$0xf] }
 0x60a   : > { %v7100_v33 = vmul.f32 %v14727_v20, %v7037_v26 }
 0x60b   : > { %6989 = vmatmul.bf16.gmra.mxu1 %v11333_v28 }
 0x60c   : > { %7078 = vmatmul.bf16.gmra.mxu2 %v11337_v18  ;;  %7616 = vmatmul.bf16.gmra.mxu3 %v11553_v21  ;;  %v6861_v7 = vpop.f32.mrf.mxu0  ;;  %v7132_v37 = vadd.f32 %v14738_v58, %v7100_v33  ;;  %v12460_v18 = vld [vmem:[#allocation2 + $0x40] sm:$0xf0] }
 0x60d   : > { %v6951_v29 = vadd.f32 %v6950_v31, %v6861_v7  ;;  %v11393_v26 = vor.u32 %v12460_v18, %v11392_v56  ;;  %v11608_v7 = vld [vmem:[#allocation2 + $0x18] sm:$0xf]  ;;  %v12506_v31 = vld [vmem:[#allocation2 + $0x1c] sm:$0xf] }
 0x60e   : > { %v7164_v25 = vmax.f32 %v7132_v37, 0.0  ;;  %v11609_v27 = vor.u32 %v12507_v3, %v11608_v7  ;;  %v11613_v33 = vor.u32 %v12506_v31, %v11610_v35  ;;  %v12461_v3 = vld [vmem:[#allocation2 + $0x68] sm:$0xf] }
 0x60f   : > { %6900 = vmatmul.bf16.gmra.mxu0 %v11329_v13  ;;  %v7039_v51 = vpop.f32.mrf.mxu2  ;;  %v14781_v53 = vpop.f32.mrf.mxu3 }
 0x610   : > { %11361 = vst [vmem:[%s13892_s29 + $0x458] sm:$0xff] %v7164_v25  ;;  %v7040_v39 = vadd.f32 %v7039_v51, %v6951_v29  ;;  %v6952_v59 = vpop.f32.mrf.mxu1  ;;  %v11386_v51 = vld [vmem:[#allocation2 + $0x3c] sm:$0xf0] }
 0x612   : > { %v7101_v10 = vmul.f32 %v14727_v20, %v7040_v39 }
 0x614   : > { %v6863_v19 = vpop.f32.mrf.mxu0  ;;  %v7133_v30 = vadd.f32 %v14738_v58, %v7101_v10  ;;  %v11389_v10 = vor.u32 %v12458_v48, %v11386_v51 }
 0x615   : > { %v6953_v22 = vadd.f32 %v6952_v59, %v6863_v19 }
 0x616   : > { %v7165_v50 = vmax.f32 %v7133_v30, 0.0 }
 0x617   : > { %v7041_v2 = vpop.f32.mrf.mxu2  ;;  %v14786_v63 = vpop.f32.mrf.mxu3 }
 0x618   : > { %11362 = vst [vmem:[%s13892_s29 + $0x460] sm:$0xff] %v7165_v50  ;;  %v7042_v54 = vadd.f32 %v7041_v2, %v6953_v22  ;;  %v6955_v23 = vpop.f32.mrf.mxu1  ;;  %v12463_v50 = vld [vmem:[#allocation2 + $0x90] sm:$0xf0]  ;;  %v12510_v2 = vld [vmem:[#allocation2 + $0x8c] sm:$0xf0] }
 0x61a   : > { %v7102_v40 = vmul.f32 %v14727_v20, %v7042_v54  ;;  %v11404_v54 = vld [vmem:[#allocation2 + $0x6c] sm:$0xf] }
 0x61b   : > { %6994 = vmatmul.bf16.gmra.mxu1 %v11345_v36 }
 0x61c   : > { %7083 = vmatmul.bf16.gmra.mxu2 %v11349_v38  ;;  %7621 = vmatmul.bf16.gmra.mxu3 %v11565_v8  ;;  %v6866_v16 = vpop.f32.mrf.mxu0  ;;  %v7134_v52 = vadd.f32 %v14738_v58, %v7102_v40  ;;  %v12509_v40 = vld [vmem:[#allocation2 + $0x6c] sm:$0xf] }
 0x61d   : > { %v6956_v32 = vadd.f32 %v6955_v23, %v6866_v16  ;;  %v11405_v23 = vor.u32 %v12463_v50, %v11404_v54  ;;  %v11410_v50 = vld [vmem:[#allocation2 + $0xdc] sm:$0xf0]  ;;  %v12464_v54 = vld [vmem:[#allocation2 + $0xb8] sm:$0xf] }
 0x61e   : > { %v7166_v24 = vmax.f32 %v7134_v52, 0.0  ;;  %v11625_v52 = vor.u32 %v12509_v40, %v11622_v15 }
 0x61f   : > { %6905 = vmatmul.bf16.gmra.mxu0 %v11341_v41  ;;  %v7044_v46 = vpop.f32.mrf.mxu2  ;;  %v14791_v62 = vpop.f32.mrf.mxu3  ;;  %v11621_v41 = vor.u32 %v12510_v2, %v11620_v42 }
 0x620   : > { %11363 = vst [vmem:[%s13892_s29 + $0x468] sm:$0xff] %v7166_v24  ;;  %v7045_v14 = vadd.f32 %v7044_v46, %v6956_v32  ;;  %v6957_v9 = vpop.f32.mrf.mxu1 }
 0x622   : > { %v7103_v21 = vmul.f32 %v14727_v20, %v7045_v14 }
 0x624   : > { %v6868_v28 = vpop.f32.mrf.mxu0  ;;  %v7135_v34 = vadd.f32 %v14738_v58, %v7103_v21 }
 0x625   : > { %v6958_v37 = vadd.f32 %v6957_v9, %v6868_v28  ;;  %v11398_v28 = vld [vmem:[#allocation2 + $0x8c] sm:$0xf0] }
 0x626   : > { %v7167_v13 = vmax.f32 %v7135_v34, 0.0  ;;  %v11401_v56 = vor.u32 %v12461_v3, %v11398_v28  ;;  %v11646_v3 = vld [vmem:[#allocation2 + $0x130] sm:$0xf0] }
 0x627   : > { %v7046_v25 = vpop.f32.mrf.mxu2  ;;  %v14796_v29 = vpop.f32.mrf.mxu3 }
 0x628   : > { %11364 = vst [vmem:[%s13892_s29 + $0x470] sm:$0xff] %v7167_v13  ;;  %v7047_v39 = vadd.f32 %v7046_v25, %v6958_v37  ;;  %v6960_v59 = vpop.f32.mrf.mxu1  ;;  %v12466_v25 = vld [vmem:[#allocation2 + $0xe0] sm:$0xf0] }
 0x62a   : > { %v7104_v57 = vmul.f32 %v14727_v20, %v7047_v39  ;;  %v12513_v39 = vld [vmem:[#allocation2 + $0xdc] sm:$0xf0] }
 0x62b   : > { %7724 = vmatmul.bf16.vlgmr.msra.gmra.mxu1 %v11393_v26 }
 0x62c   : > { %8262 = vmatmul.bf16.vlgmr.msra.gmra.mxu2 %v11609_v27  ;;  %8351 = vmatmul.bf16.vlgmr.msra.gmra.mxu3 %v11613_v33  ;;  %v6871_v19 = vpop.f32.mrf.mxu0  ;;  %v7136_v47 = vadd.f32 %v14738_v58, %v7104_v57 }
 0x62d   : > { %v6961_v44 = vadd.f32 %v6960_v59, %v6871_v19  ;;  %v11634_v19 = vld [vmem:[#allocation2 + $0xe0] sm:$0xf0]  ;;  %v11416_v59 = vld [vmem:[#allocation2 + $0xbc] sm:$0xf] }
 0x62e   : > { %v7168_v5 = vmax.f32 %v7136_v47, 0.0  ;;  %v11417_v57 = vor.u32 %v12466_v25, %v11416_v59  ;;  %v12512_v47 = vld [vmem:[#allocation2 + $0xbc] sm:$0xf] }
 0x62f   : > { %7635 = vmatmul.bf16.vlgmr.msra.gmra.mxu0 %v11389_v10  ;;  %v7049_v30 = vpop.f32.mrf.mxu2  ;;  %v14801_v36 = vpop.f32.mrf.mxu3  ;;  %v11632_v10 = vld [vmem:[#allocation2 + $0xb8] sm:$0xf] }
 0x630   : > { %11365 = vst [vmem:[%s13892_s29 + $0x478] sm:$0xff] %v7168_v5  ;;  %v7050_v12 = vadd.f32 %v7049_v30, %v6961_v44  ;;  %v6962_v8 = vpop.f32.mrf.mxu1  ;;  %v11633_v5 = vor.u32 %v12513_v39, %v11632_v10  ;;  %v11637_v44 = vor.u32 %v12512_v47, %v11634_v19  ;;  %v11422_v39 = vld [vmem:[#allocation2 + $0x12c] sm:$0xf0] }
 0x632   : > { %v7105_v22 = vmul.f32 %v14727_v20, %v7050_v12 }
 0x634   : > { %v6873_v38 = vpop.f32.mrf.mxu0  ;;  %v7137_v16 = vadd.f32 %v14738_v58, %v7105_v22 }
 0x635   : > { %v6963_v32 = vadd.f32 %v6962_v8, %v6873_v38 }
 0x636   : > { %v7169_v24 = vmax.f32 %v7137_v16, 0.0 }
 0x637   : > { %v7051_v46 = vpop.f32.mrf.mxu2  ;;  %v14806_v14 = vpop.f32.mrf.mxu3 }
 0x638   : > { %11366 = vst [vmem:[%s13892_s29 + $0x480] sm:$0xff] %v7169_v24  ;;  %v7052_v9 = vadd.f32 %v7051_v46, %v6963_v32  ;;  %v6965_v21 = vpop.f32.mrf.mxu1 }
 0x63a   : > { %v7106_v35 = vmul.f32 %v14727_v20, %v7052_v9  ;;  %v12469_v9 = vld [vmem:[#allocation2 + $0x130] sm:$0xf0] }
 0x63b   : > { %7729 = vmatmul.bf16.gmra.mxu1 %v11405_v23  ;;  %v11413_v23 = vor.u32 %v12464_v54, %v11410_v50 }
 0x63c   : > { %8267 = vmatmul.bf16.gmra.mxu2 %v11621_v41  ;;  %8356 = vmatmul.bf16.gmra.mxu3 %v11625_v52  ;;  %v6876_v18 = vpop.f32.mrf.mxu0  ;;  %v7138_v34 = vadd.f32 %v14738_v58, %v7106_v35  ;;  %v11428_v35 = vld [vmem:[#allocation2 + $0x10c] sm:$0xf] }
 0x63d   : > { %v6966_v7 = vadd.f32 %v6965_v21, %v6876_v18  ;;  %v12516_v21 = vld [vmem:[#allocation2 + $0x12c] sm:$0xf0] }
 0x63e   : > { %v7170_v26 = vmax.f32 %v7138_v34, 0.0  ;;  %v11429_v34 = vor.u32 %v12469_v9, %v11428_v35  ;;  %v11434_v35 = vld [vmem:[#allocation2 + $0x17c] sm:$0xf0] }
 0x63f   : > { %7640 = vmatmul.bf16.gmra.mxu0 %v11401_v56  ;;  %v7054_v31 = vpop.f32.mrf.mxu2  ;;  %v14811_v27 = vpop.f32.mrf.mxu3 }
 0x640   : > { %11367 = vst [vmem:[%s13892_s29 + $0x488] sm:$0xff] %v7170_v26  ;;  %v7055_v33 = vadd.f32 %v7054_v31, %v6966_v7  ;;  %v6967_v37 = vpop.f32.mrf.mxu1  ;;  %v11644_v26 = vld [vmem:[#allocation2 + $0x108] sm:$0xf]  ;;  %v12515_v7 = vld [vmem:[#allocation2 + $0x10c] sm:$0xf] }
 0x641   : > { %v11645_v31 = vor.u32 %v12516_v21, %v11644_v26 }
 0x642   : > { %v7107_v51 = vmul.f32 %v14727_v20, %v7055_v33  ;;  %v11649_v33 = vor.u32 %v12515_v7, %v11646_v3  ;;  %v12470_v7 = vld [vmem:[#allocation2 + $0x158] sm:$0xf] }
 0x644   : > { %v6878_v13 = vpop.f32.mrf.mxu0  ;;  %v7139_v48 = vadd.f32 %v14738_v58, %v7107_v51 }
 0x645   : > { %v6968_v12 = vadd.f32 %v6967_v37, %v6878_v13 }
 0x646   : > { %v7171_v30 = vmax.f32 %v7139_v48, 0.0 }
 0x647   : > { %v7056_v38 = vpop.f32.mrf.mxu2  ;;  %v14816_v8 = vpop.f32.mrf.mxu3 }
 0x648   : > { %11368 = vst [vmem:[%s13892_s29 + $0x490] sm:$0xff] %v7171_v30  ;;  %v7057_v22 = vadd.f32 %v7056_v38, %v6968_v12  ;;  %v6970_v15 = vpop.f32.mrf.mxu1 }
 0x64a   : > { %v7108_v16 = vmul.f32 %v14727_v20, %v7057_v22 }
 0x64b   : > { %7734 = vmatmul.bf16.gmra.mxu1 %v11417_v57  ;;  %v12467_v57 = vld [vmem:[#allocation2 + $0x108] sm:$0xf] }
 0x64c   : > { %8272 = vmatmul.bf16.gmra.mxu2 %v11633_v5  ;;  %8361 = vmatmul.bf16.gmra.mxu3 %v11637_v44  ;;  %v6881_v2 = vpop.f32.mrf.mxu0  ;;  %v7140_v42 = vadd.f32 %v14738_v58, %v7108_v16  ;;  %v11425_v47 = vor.u32 %v12467_v57, %v11422_v39  ;;  %v12519_v16 = vld [vmem:[#allocation2 + $0x17c] sm:$0xf0] }
 0x64d   : > { %v6971_v41 = vadd.f32 %v6970_v15, %v6881_v2  ;;  %v12472_v15 = vld [vmem:[#allocation2 + $0x180] sm:$0xf0] }
 0x64e   : > { %v7172_v40 = vmax.f32 %v7140_v42, 0.0  ;;  %v11440_v42 = vld [vmem:[#allocation2 + $0x15c] sm:$0xf] }
 0x64f   : > { %7645 = vmatmul.bf16.gmra.mxu0 %v11413_v23  ;;  %v7059_v52 = vpop.f32.mrf.mxu2  ;;  %v14821_v24 = vpop.f32.mrf.mxu3  ;;  %v11658_v23 = vld [vmem:[#allocation2 + $0x180] sm:$0xf0] }
 0x650   : > { %11369 = vst [vmem:[%s13892_s29 + $0x498] sm:$0xff] %v7172_v40  ;;  %v7060_v32 = vadd.f32 %v7059_v52, %v6971_v41  ;;  %v6972_v28 = vpop.f32.mrf.mxu1  ;;  %v11441_v41 = vor.u32 %v12472_v15, %v11440_v42  ;;  %v11656_v52 = vld [vmem:[#allocation2 + $0x158] sm:$0xf] }
 0x652   : > { %v7109_v18 = vmul.f32 %v14727_v20, %v7060_v32  ;;  %v12518_v32 = vld [vmem:[#allocation2 + $0x15c] sm:$0xf] }
 0x654   : > { %v6883_v46 = vpop.f32.mrf.mxu0  ;;  %v7141_v56 = vadd.f32 %v14738_v58, %v7109_v18 }
 0x655   : > { %v6973_v37 = vadd.f32 %v6972_v28, %v6883_v46  ;;  %v11657_v46 = vor.u32 %v12519_v16, %v11656_v52  ;;  %v11661_v28 = vor.u32 %v12518_v32, %v11658_v23 }
 0x656   : > { %v7173_v13 = vmax.f32 %v7141_v56, 0.0 }
 0x657   : > { %v7061_v25 = vpop.f32.mrf.mxu2  ;;  %v14826_v51 = vpop.f32.mrf.mxu3 }
 0x658   : > { %11370 = vst [vmem:[%s13892_s29 + $0x4a0] sm:$0xff] %v7173_v13  ;;  %v7062_v19 = vadd.f32 %v7061_v25, %v6973_v37  ;;  %v6975_v48 = vpop.f32.mrf.mxu1 }
 0x65a   : > { %v7110_v10 = vmul.f32 %v14727_v20, %v7062_v19 }
 0x65b   : > { %7739 = vmatmul.bf16.gmra.mxu1 %v11429_v34 }
 0x65c   : > { %8277 = vmatmul.bf16.gmra.mxu2 %v11645_v31  ;;  %8366 = vmatmul.bf16.gmra.mxu3 %v11649_v33  ;;  %v6886_v59 = vpop.f32.mrf.mxu0  ;;  %v7142_v5 = vadd.f32 %v14738_v58, %v7110_v10  ;;  %v11437_v33 = vor.u32 %v12470_v7, %v11434_v35  ;;  %v12475_v10 = vld [vmem:[#allocation2 + $0x1d0] sm:$0xf0] }
 0x65d   : > { %v6976_v30 = vadd.f32 %v6975_v48, %v6886_v59 }
 0x65e   : > { %v7174_v44 = vmax.f32 %v7142_v5, 0.0  ;;  %v12522_v5 = vld [vmem:[#allocation2 + $0x1cc] sm:$0xf0] }
 0x65f   : > { %7650 = vmatmul.bf16.gmra.mxu0 %v11425_v47  ;;  %v7064_v12 = vpop.f32.mrf.mxu2  ;;  %v14831_v38 = vpop.f32.mrf.mxu3 }
 0x660   : > { %11371 = vst [vmem:[%s13892_s29 + $0x4a8] sm:$0xff] %v7174_v44  ;;  %v7065_v50 = vadd.f32 %v7064_v12, %v6976_v30  ;;  %v6977_v2 = vpop.f32.mrf.mxu1  ;;  %v11670_v44 = vld [vmem:[#allocation2 + $0x1d0] sm:$0xf0]  ;;  %v11452_v30 = vld [vmem:[#allocation2 + $0x1ac] sm:$0xf] }
 0x662   : > { %v7111_v54 = vmul.f32 %v14727_v20, %v7065_v50  ;;  %v11453_v50 = vor.u32 %v12475_v10, %v11452_v30  ;;  %v11680_v10 = vld [vmem:[#allocation2 + $0x1f8] sm:$0xf] }
 0x664   : > { %v6888_v22 = vpop.f32.mrf.mxu0  ;;  %v7143_v40 = vadd.f32 %v14738_v58, %v7111_v54 }
 0x665   : > { %v6978_v18 = vadd.f32 %v6977_v2, %v6888_v22  ;;  %v11668_v22 = vld [vmem:[#allocation2 + $0x1a8] sm:$0xf]  ;;  %v12521_v2 = vld [vmem:[#allocation2 + $0x1ac] sm:$0xf] }
 0x666   : > { %v7175_v9 = vmax.f32 %v7143_v40, 0.0  ;;  %v11669_v15 = vor.u32 %v12522_v5, %v11668_v22  ;;  %v11673_v54 = vor.u32 %v12521_v2, %v11670_v44  ;;  %v11458_v2 = vld [vmem:[#allocation2 + $0x21c] sm:$0xf0] }
 0x667   : > { %v7066_v21 = vpop.f32.mrf.mxu2  ;;  %v14836_v3 = vpop.f32.mrf.mxu3 }
 0x668   : > { %11372 = vst [vmem:[%s13892_s29 + $0x4b0] sm:$0xff] %v7175_v9  ;;  %v7067_v56 = vadd.f32 %v7066_v21, %v6978_v18  ;;  %v6980_v26 = vpop.f32.mrf.mxu1 }
 0x66a   : > { %v7112_v31 = vmul.f32 %v14727_v20, %v7067_v56 }
 0x66b   : > { %7744 = vmatmul.bf16.gmra.mxu1 %v11441_v41  ;;  %v11446_v41 = vld [vmem:[#allocation2 + $0x1cc] sm:$0xf0] }
 0x66c   : > { %8282 = vmatmul.bf16.gmra.mxu2 %v11657_v46  ;;  %8371 = vmatmul.bf16.gmra.mxu3 %v11661_v28  ;;  %v6891_v34 = vpop.f32.mrf.mxu0  ;;  %v7144_v13 = vadd.f32 %v14738_v58, %v7112_v31  ;;  %v12473_v28 = vld [vmem:[#allocation2 + $0x1a8] sm:$0xf] }
 0x66d   : > { %v6981_v25 = vadd.f32 %v6980_v26, %v6891_v34  ;;  %v11449_v18 = vor.u32 %v12473_v28, %v11446_v41 }
 0x66e   : > { %v7176_v37 = vmax.f32 %v7144_v13, 0.0  ;;  %v12478_v13 = vld [vmem:[#allocation2 + $0x220] sm:$0xf0] }
 0x66f   : > { %7655 = vmatmul.bf16.gmra.mxu0 %v11437_v33  ;;  %v7069_v39 = vpop.f32.mrf.mxu2  ;;  %v14841_v19 = vpop.f32.mrf.mxu3 }
 0x670   : > { %11373 = vst [vmem:[%s13892_s29 + $0x4b8] sm:$0xff] %v7176_v37  ;;  %v7070_v59 = vadd.f32 %v7069_v39, %v6981_v25  ;;  %v6982_v57 = vpop.f32.mrf.mxu1  ;;  %v12525_v25 = vld [vmem:[#allocation2 + $0x21c] sm:$0xf0]  ;;  %v11682_v39 = vld [vmem:[#allocation2 + $0x220] sm:$0xf0] }
 0x671   : > { %v11681_v5 = vor.u32 %v12525_v25, %v11680_v10  ;;  %v11692_v25 = vld [vmem:[#allocation2 + $0x248] sm:$0xf] }
 0x672   : > { %v7113_v47 = vmul.f32 %v14727_v20, %v7070_v59  ;;  %v11464_v59 = vld [vmem:[#allocation2 + $0x1fc] sm:$0xf] }
 0x674   : > { %v6893_v48 = vpop.f32.mrf.mxu0  ;;  %v7145_v12 = vadd.f32 %v14738_v58, %v7113_v47  ;;  %v12524_v47 = vld [vmem:[#allocation2 + $0x1fc] sm:$0xf] }
 0x675   : > { %v6983_v23 = vadd.f32 %v6982_v57, %v6893_v48  ;;  %v11465_v57 = vor.u32 %v12478_v13, %v11464_v59  ;;  %v11685_v44 = vor.u32 %v12524_v47, %v11682_v39  ;;  %v12527_v39 = vld [vmem:[#allocation2 + $0x24c] sm:$0xf] }
 0x676   : > { %v7177_v16 = vmax.f32 %v7145_v12, 0.0 }
 0x677   : > { %v7071_v42 = vpop.f32.mrf.mxu2  ;;  %v14846_v40 = vpop.f32.mrf.mxu3 }
 0x678   : > { %11374 = vst [vmem:[%s13892_s29 + $0x4c0] sm:$0xff] %v7177_v16  ;;  %v7072_v52 = vadd.f32 %v7071_v42, %v6983_v23  ;;  %v6985_v46 = vpop.f32.mrf.mxu1  ;;  %v12476_v23 = vld [vmem:[#allocation2 + $0x1f8] sm:$0xf] }
 0x679   : > { %v11461_v41 = vor.u32 %v12476_v23, %v11458_v2  ;;  %v12479_v2 = vld [vmem:[#allocation2 + $0x248] sm:$0xf] }
 0x67a   : > { %v7114_v9 = vmul.f32 %v14727_v20, %v7072_v52 }
 0x67b   : > { %7749 = vmatmul.bf16.gmra.mxu1 %v11453_v50 }
 0x67c   : > { %8287 = vmatmul.bf16.gmra.mxu2 %v11669_v15  ;;  %8376 = vmatmul.bf16.gmra.mxu3 %v11673_v54  ;;  %v6896_v32 = vpop.f32.mrf.mxu0  ;;  %v7146_v21 = vadd.f32 %v14738_v58, %v7114_v9 }
 0x67d   : > { %v6986_v56 = vadd.f32 %v6985_v46, %v6896_v32 }
 0x67e   : > { %v7178_v35 = vmax.f32 %v7146_v21, 0.0 }
 0x67f   : > { %7660 = vmatmul.bf16.gmra.mxu0 %v11449_v18  ;;  %v7074_v34 = vpop.f32.mrf.mxu2  ;;  %v14851_v26 = vpop.f32.mrf.mxu3 }
 0x680   : > { %11375 = vst [vmem:[%s13892_s29 + $0x4c8] sm:$0xff] %v7178_v35  ;;  %v7075_v7 = vadd.f32 %v7074_v34, %v6986_v56  ;;  %v6987_v33 = vpop.f32.mrf.mxu1  ;;  %v12481_v56 = vld [vmem:[#allocation2 + $0x270] sm:$0xf0] }
 0x682   : > { %v7115_v37 = vmul.f32 %v14727_v20, %v7075_v7  ;;  %v12528_v7 = vld [vmem:[#allocation2 + $0x26c] sm:$0xf0] }
 0x683   : > { %v11693_v59 = vor.u32 %v12528_v7, %v11692_v25 }
 0x684   : > { %v6898_v31 = vpop.f32.mrf.mxu0  ;;  %v7147_v48 = vadd.f32 %v14738_v58, %v7115_v37 }
 0x685   : > { %v6988_v12 = vadd.f32 %v6987_v33, %v6898_v31  ;;  %v11694_v31 = vld [vmem:[#allocation2 + $0x270] sm:$0xf0]  ;;  %v11476_v33 = vld [vmem:[#allocation2 + $0x24c] sm:$0xf] }
 0x686   : > { %v7179_v30 = vmax.f32 %v7147_v48, 0.0  ;;  %v11477_v37 = vor.u32 %v12481_v56, %v11476_v33  ;;  %v11697_v48 = vor.u32 %v12527_v39, %v11694_v31  ;;  %v11706_v56 = vld [vmem:[#allocation2 + $0x2c0] sm:$0xf0]  ;;  %v11704_v33 = vld [vmem:[#allocation2 + $0x298] sm:$0xf] }
 0x687   : > { %v7076_v50 = vpop.f32.mrf.mxu2  ;;  %v14856_v22 = vpop.f32.mrf.mxu3 }
 0x688   : > { %11376 = vst [vmem:[%s13892_s29 + $0x4d0] sm:$0xff] %v7179_v30  ;;  %v7077_v15 = vadd.f32 %v7076_v50, %v6988_v12  ;;  %v6990_v16 = vpop.f32.mrf.mxu1 }
 0x68a   : > { %v7116_v42 = vmul.f32 %v14727_v20, %v7077_v15 }
 0x68b   : > { %7754 = vmatmul.bf16.gmra.mxu1 %v11465_v57 }
 0x68c   : > { %8292 = vmatmul.bf16.gmra.mxu2 %v11681_v5  ;;  %8381 = vmatmul.bf16.gmra.mxu3 %v11685_v44  ;;  %v6901_v54 = vpop.f32.mrf.mxu0  ;;  %v7148_v52 = vadd.f32 %v14738_v58, %v7116_v42  ;;  %v11470_v44 = vld [vmem:[#allocation2 + $0x26c] sm:$0xf0] }
 0x68d   : > { %v6991_v46 = vadd.f32 %v6990_v16, %v6901_v54  ;;  %v11473_v54 = vor.u32 %v12479_v2, %v11470_v44 }
 0x68e   : > { %v7180_v32 = vmax.f32 %v7148_v52, 0.0 }
 0x68f   : > { %7665 = vmatmul.bf16.gmra.mxu0 %v11461_v41  ;;  %v7079_v28 = vpop.f32.mrf.mxu2  ;;  %v14861_v9 = vpop.f32.mrf.mxu3 }
 0x690   : > { %11377 = vst [vmem:[%s13892_s29 + $0x4d8] sm:$0xff] %v7180_v32  ;;  %v7080_v18 = vadd.f32 %v7079_v28, %v6991_v46  ;;  %v6992_v35 = vpop.f32.mrf.mxu1 }
 0x692   : > { %v7117_v34 = vmul.f32 %v14727_v20, %v7080_v18  ;;  %v12484_v18 = vld [vmem:[#allocation2 + $0x2c0] sm:$0xf0] }
 0x694   : > { %v6903_v21 = vpop.f32.mrf.mxu0  ;;  %v7149_v13 = vadd.f32 %v14738_v58, %v7117_v34  ;;  %v11488_v34 = vld [vmem:[#allocation2 + $0x29c] sm:$0xf] }
 0x695   : > { %v6993_v10 = vadd.f32 %v6992_v35, %v6903_v21  ;;  %v12531_v35 = vld [vmem:[#allocation2 + $0x2bc] sm:$0xf0]  ;;  %v11489_v31 = vor.u32 %v12484_v18, %v11488_v34  ;;  %v12534_v34 = vld [vmem:[#allocation2 + $0x30c] sm:$0xf0] }
 0x696   : > { %v7181_v57 = vmax.f32 %v7149_v13, 0.0  ;;  %v12530_v13 = vld [vmem:[#allocation2 + $0x29c] sm:$0xf] }
 0x697   : > { %v7081_v47 = vpop.f32.mrf.mxu2  ;;  %v14866_v5 = vpop.f32.mrf.mxu3  ;;  %v11709_v25 = vor.u32 %v12530_v13, %v11706_v56 }
 0x698   : > { %11378 = vst [vmem:[%s13892_s29 + $0x4e0] sm:$0xff] %v7181_v57  ;;  %v7082_v30 = vadd.f32 %v7081_v47, %v6993_v10  ;;  %v6995_v50 = vpop.f32.mrf.mxu1  ;;  %v11482_v10 = vld [vmem:[#allocation2 + $0x2bc] sm:$0xf0] }
 0x69a   : > { %v7118_v15 = vmul.f32 %v14727_v20, %v7082_v30  ;;  %v12482_v30 = vld [vmem:[#allocation2 + $0x298] sm:$0xf] }
 0x69b   : > { %7759 = vmatmul.bf16.gmra.mxu1 %v11477_v37  ;;  %v11705_v37 = vor.u32 %v12531_v35, %v11704_v33 }
 0x69c   : > { %8297 = vmatmul.bf16.gmra.mxu2 %v11693_v59  ;;  %8386 = vmatmul.bf16.gmra.mxu3 %v11697_v48  ;;  %v6906_v12 = vpop.f32.mrf.mxu0  ;;  %v7150_v16 = vadd.f32 %v14738_v58, %v7118_v15  ;;  %v11485_v15 = vor.u32 %v12482_v30, %v11482_v10 }
 0x69d   : > { %v6996_v42 = vadd.f32 %v6995_v50, %v6906_v12  ;;  %v14882_v12 = vld [vmem:[%s15336_s5] ss:$0 sm:$0xff] }
 0x69e   : > { %v7182_v23 = vmax.f32 %v7150_v16, 0.0 }
 0x69f   : > { %7670 = vmatmul.bf16.gmra.mxu0 %v11473_v54  ;;  %v7084_v41 = vpop.f32.mrf.mxu2  ;;  %v14871_v52 = vpop.f32.mrf.mxu3 }
 0x6a0   : > { %11379 = vst [vmem:[%s13892_s29 + $0x4e8] sm:$0xff] %v7182_v23  ;;  %v7085_v32 = vadd.f32 %v7084_v41, %v6996_v42  ;;  %v6997_v28 = vpop.f32.mrf.mxu1 }
 0x6a2   : > { %v7119_v21 = vmul.f32 %v14727_v20, %v7085_v32 }
 0x6a4   : > { %v6908_v46 = vpop.f32.mrf.mxu0  ;;  %v7151_v7 = vadd.f32 %v14738_v58, %v7119_v21  ;;  %v12487_v21 = vld [vmem:[#allocation2 + $0x310] sm:$0xf0] }
 0x6a5   : > { %v6998_v59 = vadd.f32 %v6997_v28, %v6908_v46  ;;  %v14892_v46 = vld [vmem:[%s15337_s6] ss:$0 sm:$0xff] }
 0x6a6   : > { %v7183_v39 = vmax.f32 %v7151_v7, 0.0  ;;  %v11718_v7 = vld [vmem:[#allocation2 + $0x310] sm:$0xf0] }
 0x6a7   : > { %v7086_v48 = vpop.f32.mrf.mxu2  ;;  %v14876_v57 = vpop.f32.mrf.mxu3 }
 0x6a8   : > { %11380 = vst [vmem:[%s13892_s29 + $0x4f0] sm:$0xff] %v7183_v39  ;;  %v7087_v20 = vadd.f32 %v7086_v48, %v6998_v59  ;;  %v7725_v44 = vpop.f32.mrf.mxu1 }
 0x6aa   : > { %v7120_v50 = vmul.f32 %v14882_v12, %v7087_v20 }
 0x6ab   : > { %7764 = vmatmul.bf16.gmra.mxu1 %v11489_v31  ;;  %v11500_v31 = vld [vmem:[#allocation2 + $0x2ec] sm:$0xf] }
 0x6ac   : > { %8302 = vmatmul.bf16.gmra.mxu2 %v11705_v37  ;;  %8391 = vmatmul.bf16.gmra.mxu3 %v11709_v25  ;;  %v7636_v47 = vpop.f32.mrf.mxu0  ;;  %v7152_v54 = vadd.f32 %v14738_v58, %v7120_v50  ;;  %v11501_v13 = vor.u32 %v12487_v21, %v11500_v31  ;;  %v11716_v37 = vld [vmem:[#allocation2 + $0x2e8] sm:$0xf]  ;;  %v12533_v25 = vld [vmem:[#allocation2 + $0x2ec] sm:$0xf]  ;;  %v11512_v31 = vld [vmem:[#allocation2 + $0x33c] sm:$0xf] }
 0x6ad   : > { %v7637_v2 = vadd.f32 %v7636_v47, %v14711_v0  ;;  %v11717_v39 = vor.u32 %v12534_v34, %v11716_v37  ;;  %v11721_v59 = vor.u32 %v12533_v25, %v11718_v7  ;;  %v11494_v47 = vld [vmem:[#allocation2 + $0x30c] sm:$0xf0]  ;;  %v11730_v7 = vld [vmem:[#allocation2 + $0x360] sm:$0xf0]  ;;  %v11728_v37 = vld [vmem:[#allocation2 + $0x338] sm:$0xf] }
 0x6ae   : > { %v7184_v23 = vmax.f32 %v7152_v54, 0.0  ;;  %v12536_v25 = vld [vmem:[#allocation2 + $0x33c] sm:$0xf] }
 0x6af   : > { %v7726_v16 = vadd.f32 %v7725_v44, %v7637_v2  ;;  %7675 = vmatmul.bf16.gmra.mxu0 %v11485_v15  ;;  %v8263_v41 = vpop.f32.mrf.mxu2  ;;  %v8352_v32 = vpop.f32.mrf.mxu3  ;;  %v12485_v2 = vld [vmem:[#allocation2 + $0x2e8] sm:$0xf] }
 0x6b0   : > { %11381 = vst [vmem:[%s13892_s29 + $0x4f8] sm:$0xff] %v7184_v23  ;;  %v14895_v0 = vadd.f32 %v8352_v32, %v8263_v41  ;;  %v7727_v58 = vpop.f32.mrf.mxu1 }
 0x6b1   : > { %v7805_v42 = vmul.f32 %v14882_v12, %v7726_v16  ;;  %v11497_v16 = vor.u32 %v12485_v2, %v11494_v47  ;;  %v11506_v47 = vld [vmem:[#allocation2 + $0x35c] sm:$0xf0]  ;;  %v12488_v2 = vld [vmem:[#allocation2 + $0x338] sm:$0xf] }
 0x6b3   : > { %v7837_v28 = vadd.f32 %v14892_v46, %v7805_v42 }
 0x6b4   : > { %v7638_v18 = vpop.f32.mrf.mxu0 }
 0x6b5   : > { %v7869_v35 = vmax.f32 %v7837_v28, 0.0  ;;  %v7639_v56 = vadd.f32 %v7638_v18, %v14716_v45 }
 0x6b7   : > { %11574 = vst [vmem:[%s13892_s29 + $0x500] sm:$0xff] %v7869_v35  ;;  %v7728_v33 = vadd.f32 %v7727_v58, %v7639_v56  ;;  %v8265_v10 = vpop.f32.mrf.mxu2  ;;  %v8354_v20 = vpop.f32.mrf.mxu3  ;;  %v12490_v35 = vld [vmem:[#allocation2 + $0x360] sm:$0xf0] }
 0x6b8   : > { %v14901_v44 = vadd.f32 %v8354_v20, %v8265_v10  ;;  %v7730_v50 = vpop.f32.mrf.mxu1 }
 0x6b9   : > { %v7806_v48 = vmul.f32 %v14882_v12, %v7728_v33 }
 0x6bb   : > { %7769 = vmatmul.bf16.gmra.mxu1 %v11501_v13  ;;  %v7838_v45 = vadd.f32 %v14892_v46, %v7806_v48  ;;  %v11513_v13 = vor.u32 %v12490_v35, %v11512_v31  ;;  %v11524_v31 = vld [vmem:[#allocation2 + $0x38c] sm:$0xf] }
 0x6bc   : > { %8307 = vmatmul.bf16.gmra.mxu2 %v11717_v39  ;;  %8396 = vmatmul.bf16.gmra.mxu3 %v11721_v59  ;;  %v7641_v30 = vpop.f32.mrf.mxu0  ;;  %v11733_v59 = vor.u32 %v12536_v25, %v11730_v7  ;;  %v11742_v7 = vld [vmem:[#allocation2 + $0x3b0] sm:$0xf0]  ;;  %v12539_v25 = vld [vmem:[#allocation2 + $0x38c] sm:$0xf] }
 0x6bd   : > { %v7870_v15 = vmax.f32 %v7838_v45, 0.0  ;;  %v7642_v54 = vadd.f32 %v7641_v30, %v14721_v61  ;;  %v12537_v61 = vld [vmem:[#allocation2 + $0x35c] sm:$0xf0] }
 0x6be   : > { %v11729_v39 = vor.u32 %v12537_v61, %v11728_v37  ;;  %v11740_v37 = vld [vmem:[#allocation2 + $0x388] sm:$0xf] }
 0x6bf   : > { %11575 = vst [vmem:[%s13892_s29 + $0x508] sm:$0xff] %v7870_v15  ;;  %v7731_v23 = vadd.f32 %v7730_v50, %v7642_v54  ;;  %7680 = vmatmul.bf16.gmra.mxu0 %v11497_v16  ;;  %v8268_v41 = vpop.f32.mrf.mxu2  ;;  %v8357_v32 = vpop.f32.mrf.mxu3  ;;  %v11509_v16 = vor.u32 %v12488_v2, %v11506_v47  ;;  %v11518_v47 = vld [vmem:[#allocation2 + $0x3ac] sm:$0xf0]  ;;  %v12491_v2 = vld [vmem:[#allocation2 + $0x388] sm:$0xf] }
 0x6c0   : > { %v14907_v18 = vadd.f32 %v8357_v32, %v8268_v41  ;;  %v7732_v21 = vpop.f32.mrf.mxu1 }
 0x6c1   : > { %v7807_v42 = vmul.f32 %v14882_v12, %v7731_v23 }
 0x6c3   : > { %v7839_v28 = vadd.f32 %v14892_v46, %v7807_v42 }
 0x6c4   : > { %v7643_v58 = vpop.f32.mrf.mxu0 }
 0x6c5   : > { %v7871_v56 = vmax.f32 %v7839_v28, 0.0  ;;  %v7644_v34 = vadd.f32 %v7643_v58, %v14731_v55 }
 0x6c7   : > { %11576 = vst [vmem:[%s13892_s29 + $0x510] sm:$0xff] %v7871_v56  ;;  %v7733_v33 = vadd.f32 %v7732_v21, %v7644_v34  ;;  %v8270_v10 = vpop.f32.mrf.mxu2  ;;  %v8359_v20 = vpop.f32.mrf.mxu3  ;;  %v12493_v56 = vld [vmem:[#allocation2 + $0x3b0] sm:$0xf0] }
 0x6c8   : > { %v14913_v45 = vadd.f32 %v8359_v20, %v8270_v10  ;;  %v7735_v50 = vpop.f32.mrf.mxu1 }
 0x6c9   : > { %v7808_v48 = vmul.f32 %v14882_v12, %v7733_v33 }
 0x6cb   : > { %7774 = vmatmul.bf16.gmra.mxu1 %v11513_v13  ;;  %v7840_v55 = vadd.f32 %v14892_v46, %v7808_v48  ;;  %v11525_v13 = vor.u32 %v12493_v56, %v11524_v31  ;;  %v11536_v31 = vld [vmem:[#allocation2 + $0x3dc] sm:$0xf] }
 0x6cc   : > { %8312 = vmatmul.bf16.gmra.mxu2 %v11729_v39  ;;  %8401 = vmatmul.bf16.gmra.mxu3 %v11733_v59  ;;  %v7646_v30 = vpop.f32.mrf.mxu0  ;;  %v11745_v59 = vor.u32 %v12539_v25, %v11742_v7  ;;  %v11754_v7 = vld [vmem:[#allocation2 + $0x400] sm:$0xf0]  ;;  %v12542_v25 = vld [vmem:[#allocation2 + $0x3dc] sm:$0xf] }
 0x6cd   : > { %v7872_v15 = vmax.f32 %v7840_v55, 0.0  ;;  %v7647_v54 = vadd.f32 %v7646_v30, %v14741_v60  ;;  %v12540_v60 = vld [vmem:[#allocation2 + $0x3ac] sm:$0xf0] }
 0x6ce   : > { %v11741_v39 = vor.u32 %v12540_v60, %v11740_v37  ;;  %v11752_v37 = vld [vmem:[#allocation2 + $0x3d8] sm:$0xf] }
 0x6cf   : > { %11577 = vst [vmem:[%s13892_s29 + $0x518] sm:$0xff] %v7872_v15  ;;  %v7736_v23 = vadd.f32 %v7735_v50, %v7647_v54  ;;  %7685 = vmatmul.bf16.gmra.mxu0 %v11509_v16  ;;  %v8273_v41 = vpop.f32.mrf.mxu2  ;;  %v8362_v32 = vpop.f32.mrf.mxu3  ;;  %v11521_v16 = vor.u32 %v12491_v2, %v11518_v47  ;;  %v11530_v47 = vld [vmem:[#allocation2 + $0x3fc] sm:$0xf0]  ;;  %v12494_v2 = vld [vmem:[#allocation2 + $0x3d8] sm:$0xf] }
 0x6d0   : > { %v14919_v58 = vadd.f32 %v8362_v32, %v8273_v41  ;;  %v7737_v35 = vpop.f32.mrf.mxu1 }
 0x6d1   : > { %v7809_v42 = vmul.f32 %v14882_v12, %v7736_v23 }
 0x6d3   : > { %v7841_v28 = vadd.f32 %v14892_v46, %v7809_v42 }
 0x6d4   : > { %v7648_v21 = vpop.f32.mrf.mxu0 }
 0x6d5   : > { %v7873_v34 = vmax.f32 %v7841_v28, 0.0  ;;  %v7649_v61 = vadd.f32 %v7648_v21, %v14746_v4 }
 0x6d7   : > { %11578 = vst [vmem:[%s13892_s29 + $0x520] sm:$0xff] %v7873_v34  ;;  %v7738_v33 = vadd.f32 %v7737_v35, %v7649_v61  ;;  %v8275_v10 = vpop.f32.mrf.mxu2  ;;  %v8364_v20 = vpop.f32.mrf.mxu3  ;;  %v12496_v34 = vld [vmem:[#allocation2 + $0x400] sm:$0xf0] }
 0x6d8   : > { %v14925_v55 = vadd.f32 %v8364_v20, %v8275_v10  ;;  %v7740_v50 = vpop.f32.mrf.mxu1 }
 0x6d9   : > { %v7810_v48 = vmul.f32 %v14882_v12, %v7738_v33 }
 0x6db   : > { %7779 = vmatmul.bf16.gmra.mxu1 %v11525_v13  ;;  %v7842_v4 = vadd.f32 %v14892_v46, %v7810_v48  ;;  %v11537_v13 = vor.u32 %v12496_v34, %v11536_v31  ;;  %v11548_v31 = vld [vmem:[#allocation2 + $0x42c] sm:$0xf] }
 0x6dc   : > { %8317 = vmatmul.bf16.gmra.mxu2 %v11741_v39  ;;  %8406 = vmatmul.bf16.gmra.mxu3 %v11745_v59  ;;  %v7651_v30 = vpop.f32.mrf.mxu0  ;;  %v11757_v59 = vor.u32 %v12542_v25, %v11754_v7  ;;  %v11766_v7 = vld [vmem:[#allocation2 + $0x450] sm:$0xf0]  ;;  %v12545_v25 = vld [vmem:[#allocation2 + $0x42c] sm:$0xf] }
 0x6dd   : > { %v7874_v15 = vmax.f32 %v7842_v4, 0.0  ;;  %v7652_v54 = vadd.f32 %v7651_v30, %v14751_v6  ;;  %v12543_v6 = vld [vmem:[#allocation2 + $0x3fc] sm:$0xf0] }
 0x6de   : > { %v11753_v39 = vor.u32 %v12543_v6, %v11752_v37  ;;  %v11764_v37 = vld [vmem:[#allocation2 + $0x428] sm:$0xf] }
 0x6df   : > { %11579 = vst [vmem:[%s13892_s29 + $0x528] sm:$0xff] %v7874_v15  ;;  %v7741_v23 = vadd.f32 %v7740_v50, %v7652_v54  ;;  %7690 = vmatmul.bf16.gmra.mxu0 %v11521_v16  ;;  %v8278_v41 = vpop.f32.mrf.mxu2  ;;  %v8367_v32 = vpop.f32.mrf.mxu3  ;;  %v11533_v16 = vor.u32 %v12494_v2, %v11530_v47  ;;  %v11542_v47 = vld [vmem:[#allocation2 + $0x44c] sm:$0xf0]  ;;  %v12497_v2 = vld [vmem:[#allocation2 + $0x428] sm:$0xf] }
 0x6e0   : > { %v14931_v21 = vadd.f32 %v8367_v32, %v8278_v41  ;;  %v7742_v56 = vpop.f32.mrf.mxu1 }
 0x6e1   : > { %v7811_v42 = vmul.f32 %v14882_v12, %v7741_v23 }
 0x6e3   : > { %v7843_v28 = vadd.f32 %v14892_v46, %v7811_v42 }
 0x6e4   : > { %v7653_v35 = vpop.f32.mrf.mxu0 }
 0x6e5   : > { %v7875_v61 = vmax.f32 %v7843_v28, 0.0  ;;  %v7654_v60 = vadd.f32 %v7653_v35, %v14756_v17 }
 0x6e7   : > { %11580 = vst [vmem:[%s13892_s29 + $0x530] sm:$0xff] %v7875_v61  ;;  %v7743_v33 = vadd.f32 %v7742_v56, %v7654_v60  ;;  %v8280_v10 = vpop.f32.mrf.mxu2  ;;  %v8369_v20 = vpop.f32.mrf.mxu3  ;;  %v12499_v61 = vld [vmem:[#allocation2 + $0x450] sm:$0xf0] }
 0x6e8   : > { %v14937_v4 = vadd.f32 %v8369_v20, %v8280_v10  ;;  %v7745_v50 = vpop.f32.mrf.mxu1 }
 0x6e9   : > { %v7812_v48 = vmul.f32 %v14882_v12, %v7743_v33 }
 0x6eb   : > { %7784 = vmatmul.bf16.gmra.mxu1 %v11537_v13  ;;  %v7844_v17 = vadd.f32 %v14892_v46, %v7812_v48  ;;  %v11549_v13 = vor.u32 %v12499_v61, %v11548_v31  ;;  %v11560_v31 = vld [vmem:[#allocation2 + $0x47c] sm:$0xf] }
 0x6ec   : > { %8322 = vmatmul.bf16.gmra.mxu2 %v11753_v39  ;;  %8411 = vmatmul.bf16.gmra.mxu3 %v11757_v59  ;;  %v7656_v30 = vpop.f32.mrf.mxu0  ;;  %v11769_v59 = vor.u32 %v12545_v25, %v11766_v7  ;;  %v11778_v7 = vld [vmem:[#allocation2 + $0x4a0] sm:$0xf0]  ;;  %v12548_v25 = vld [vmem:[#allocation2 + $0x47c] sm:$0xf] }
 0x6ed   : > { %v7876_v15 = vmax.f32 %v7844_v17, 0.0  ;;  %v7657_v54 = vadd.f32 %v7656_v30, %v14761_v49  ;;  %v12546_v49 = vld [vmem:[#allocation2 + $0x44c] sm:$0xf0] }
 0x6ee   : > { %v11765_v39 = vor.u32 %v12546_v49, %v11764_v37  ;;  %v11776_v37 = vld [vmem:[#allocation2 + $0x478] sm:$0xf] }
 0x6ef   : > { %11581 = vst [vmem:[%s13892_s29 + $0x538] sm:$0xff] %v7876_v15  ;;  %v7746_v23 = vadd.f32 %v7745_v50, %v7657_v54  ;;  %7695 = vmatmul.bf16.gmra.mxu0 %v11533_v16  ;;  %v8283_v41 = vpop.f32.mrf.mxu2  ;;  %v8372_v32 = vpop.f32.mrf.mxu3  ;;  %v11545_v16 = vor.u32 %v12497_v2, %v11542_v47  ;;  %v11554_v47 = vld [vmem:[#allocation2 + $0x49c] sm:$0xf0]  ;;  %v12500_v2 = vld [vmem:[#allocation2 + $0x478] sm:$0xf] }
 0x6f0   : > { %v14943_v35 = vadd.f32 %v8372_v32, %v8283_v41  ;;  %v7747_v34 = vpop.f32.mrf.mxu1 }
 0x6f1   : > { %v7813_v42 = vmul.f32 %v14882_v12, %v7746_v23 }
 0x6f3   : > { %v7845_v28 = vadd.f32 %v14892_v46, %v7813_v42 }
 0x6f4   : > { %v7658_v56 = vpop.f32.mrf.mxu0 }
 0x6f5   : > { %v7877_v60 = vmax.f32 %v7845_v28, 0.0  ;;  %v7659_v6 = vadd.f32 %v7658_v56, %v14766_v11 }
 0x6f7   : > { %11582 = vst [vmem:[%s13892_s29 + $0x540] sm:$0xff] %v7877_v60  ;;  %v7748_v33 = vadd.f32 %v7747_v34, %v7659_v6  ;;  %v8285_v10 = vpop.f32.mrf.mxu2  ;;  %v8374_v20 = vpop.f32.mrf.mxu3  ;;  %v12502_v60 = vld [vmem:[#allocation2 + $0x4a0] sm:$0xf0] }
 0x6f8   : > { %v14949_v17 = vadd.f32 %v8374_v20, %v8285_v10  ;;  %v7750_v50 = vpop.f32.mrf.mxu1 }
 0x6f9   : > { %v7814_v48 = vmul.f32 %v14882_v12, %v7748_v33 }
 0x6fb   : > { %7789 = vmatmul.bf16.gmra.mxu1 %v11549_v13  ;;  %v7846_v11 = vadd.f32 %v14892_v46, %v7814_v48  ;;  %v11561_v13 = vor.u32 %v12502_v60, %v11560_v31  ;;  %v11572_v31 = vld [vmem:[#allocation2 + $0x4cc] sm:$0xf] }
 0x6fc   : > { %8327 = vmatmul.bf16.gmra.mxu2 %v11765_v39  ;;  %8416 = vmatmul.bf16.gmra.mxu3 %v11769_v59  ;;  %v7661_v30 = vpop.f32.mrf.mxu0  ;;  %v11781_v59 = vor.u32 %v12548_v25, %v11778_v7  ;;  %v11790_v7 = vld [vmem:[#allocation2 + $0x4f0] sm:$0xf0]  ;;  %v12551_v25 = vld [vmem:[#allocation2 + $0x4cc] sm:$0xf] }
 0x6fd   : > { %v7878_v15 = vmax.f32 %v7846_v11, 0.0  ;;  %v7662_v54 = vadd.f32 %v7661_v30, %v14771_v1  ;;  %v12549_v1 = vld [vmem:[#allocation2 + $0x49c] sm:$0xf0] }
 0x6fe   : > { %v11777_v39 = vor.u32 %v12549_v1, %v11776_v37  ;;  %v11788_v37 = vld [vmem:[#allocation2 + $0x4c8] sm:$0xf] }
 0x6ff   : > { %11583 = vst [vmem:[%s13892_s29 + $0x548] sm:$0xff] %v7878_v15  ;;  %v7751_v23 = vadd.f32 %v7750_v50, %v7662_v54  ;;  %7700 = vmatmul.bf16.gmra.mxu0 %v11545_v16  ;;  %v8288_v41 = vpop.f32.mrf.mxu2  ;;  %v8377_v32 = vpop.f32.mrf.mxu3  ;;  %v11557_v16 = vor.u32 %v12500_v2, %v11554_v47  ;;  %v11566_v47 = vld [vmem:[#allocation2 + $0x4ec] sm:$0xf0]  ;;  %v12503_v2 = vld [vmem:[#allocation2 + $0x4c8] sm:$0xf] }
 0x700   : > { %v14955_v56 = vadd.f32 %v8377_v32, %v8288_v41  ;;  %v7752_v61 = vpop.f32.mrf.mxu1 }
 0x701   : > { %v7815_v42 = vmul.f32 %v14882_v12, %v7751_v23 }
 0x703   : > { %v7847_v28 = vadd.f32 %v14892_v46, %v7815_v42 }
 0x704   : > { %v7663_v34 = vpop.f32.mrf.mxu0 }
 0x705   : > { %v7879_v6 = vmax.f32 %v7847_v28, 0.0  ;;  %v7664_v49 = vadd.f32 %v7663_v34, %v14776_v43 }
 0x707   : > { %11584 = vst [vmem:[%s13892_s29 + $0x550] sm:$0xff] %v7879_v6  ;;  %v7753_v33 = vadd.f32 %v7752_v61, %v7664_v49  ;;  %v8290_v10 = vpop.f32.mrf.mxu2  ;;  %v8379_v20 = vpop.f32.mrf.mxu3  ;;  %v12505_v6 = vld [vmem:[#allocation2 + $0x4f0] sm:$0xf0] }
 0x708   : > { %v14961_v11 = vadd.f32 %v8379_v20, %v8290_v10  ;;  %v7755_v50 = vpop.f32.mrf.mxu1 }
 0x709   : > { %v7816_v48 = vmul.f32 %v14882_v12, %v7753_v33 }
 0x70b   : > { %7794 = vmatmul.bf16.gmra.mxu1 %v11561_v13  ;;  %v7848_v43 = vadd.f32 %v14892_v46, %v7816_v48  ;;  %v11573_v13 = vor.u32 %v12505_v6, %v11572_v31  ;;  %v12556_v6 = vld [vmem:[#allocation2 + $0x48] sm:$0xf0]  ;;  %v11834_v31 = vld [vmem:[#allocation2 + $0x44] sm:$0xf0] }
 0x70c   : > { %8332 = vmatmul.bf16.gmra.mxu2 %v11777_v39  ;;  %8421 = vmatmul.bf16.gmra.mxu3 %v11781_v59  ;;  %v7666_v30 = vpop.f32.mrf.mxu0  ;;  %v11793_v59 = vor.u32 %v12551_v25, %v11790_v7 }
 0x70d   : > { %v7880_v15 = vmax.f32 %v7848_v43, 0.0  ;;  %v7667_v54 = vadd.f32 %v7666_v30, %v14781_v53  ;;  %v12552_v53 = vld [vmem:[#allocation2 + $0x4ec] sm:$0xf0] }
 0x70e   : > { %v11789_v39 = vor.u32 %v12552_v53, %v11788_v37  ;;  %v12555_v53 = vld [vmem:[#allocation2 + $0x40] sm:$0xf0] }
 0x70f   : > { %11585 = vst [vmem:[%s13892_s29 + $0x558] sm:$0xff] %v7880_v15  ;;  %v7756_v23 = vadd.f32 %v7755_v50, %v7667_v54  ;;  %7705 = vmatmul.bf16.gmra.mxu0 %v11557_v16  ;;  %v8293_v41 = vpop.f32.mrf.mxu2  ;;  %v8382_v32 = vpop.f32.mrf.mxu3  ;;  %v11569_v16 = vor.u32 %v12503_v2, %v11566_v47  ;;  %v12508_v47 = vld [vmem:[#allocation2 + $0x44] sm:$0xf0]  ;;  %v11616_v2 = vld [vmem:[#allocation2 + $0x20] sm:$0xf] }
 0x710   : > { %v14967_v34 = vadd.f32 %v8382_v32, %v8293_v41  ;;  %v7757_v60 = vpop.f32.mrf.mxu1 }
 0x711   : > { %v7817_v42 = vmul.f32 %v14882_v12, %v7756_v23 }
 0x713   : > { %v7849_v28 = vadd.f32 %v14892_v46, %v7817_v42 }
 0x714   : > { %v7668_v61 = vpop.f32.mrf.mxu0 }
 0x715   : > { %v7881_v49 = vmax.f32 %v7849_v28, 0.0  ;;  %v7669_v1 = vadd.f32 %v7668_v61, %v14786_v63 }
 0x717   : > { %11586 = vst [vmem:[%s13892_s29 + $0x560] sm:$0xff] %v7881_v49  ;;  %v7758_v33 = vadd.f32 %v7757_v60, %v7669_v1  ;;  %v8295_v10 = vpop.f32.mrf.mxu2  ;;  %v8384_v20 = vpop.f32.mrf.mxu3  ;;  %v11840_v60 = vld [vmem:[#allocation2 + $0x24] sm:$0xf] }
 0x718   : > { %v14973_v43 = vadd.f32 %v8384_v20, %v8295_v10  ;;  %v7760_v50 = vpop.f32.mrf.mxu1 }
 0x719   : > { %v7818_v48 = vmul.f32 %v14882_v12, %v7758_v33  ;;  %v11832_v33 = vld [vmem:[#allocation2 + $0x1c] sm:$0xf] }
 0x71a   : > { %v11833_v25 = vor.u32 %v12555_v53, %v11832_v33  ;;  %v11844_v33 = vld [vmem:[#allocation2 + $0x6c] sm:$0xf] }
 0x71b   : > { %7799 = vmatmul.bf16.gmra.mxu1 %v11573_v13  ;;  %v7850_v63 = vadd.f32 %v14892_v46, %v7818_v48  ;;  %v11841_v13 = vor.u32 %v12556_v6, %v11840_v60  ;;  %v11852_v6 = vld [vmem:[#allocation2 + $0x74] sm:$0xf] }
 0x71c   : > { %8337 = vmatmul.bf16.gmra.mxu2 %v11789_v39  ;;  %8426 = vmatmul.bf16.gmra.mxu3 %v11793_v59  ;;  %v7671_v30 = vpop.f32.mrf.mxu0  ;;  %v12554_v39 = vld [vmem:[#allocation2 + $0x20] sm:$0xf] }
 0x71d   : > { %v7882_v15 = vmax.f32 %v7850_v63, 0.0  ;;  %v7672_v54 = vadd.f32 %v7671_v30, %v14791_v62  ;;  %v11837_v59 = vor.u32 %v12554_v39, %v11834_v31  ;;  %v11846_v31 = vld [vmem:[#allocation2 + $0x94] sm:$0xf0]  ;;  %v12557_v39 = vld [vmem:[#allocation2 + $0x70] sm:$0xf] }
 0x71f   : > { %11587 = vst [vmem:[%s13892_s29 + $0x568] sm:$0xff] %v7882_v15  ;;  %v7761_v23 = vadd.f32 %v7760_v50, %v7672_v54  ;;  %7710 = vmatmul.bf16.gmra.mxu0 %v11569_v16  ;;  %v8298_v41 = vpop.f32.mrf.mxu2  ;;  %v8387_v32 = vpop.f32.mrf.mxu3  ;;  %v11617_v16 = vor.u32 %v12508_v47, %v11616_v2  ;;  %v12511_v47 = vld [vmem:[#allocation2 + $0x94] sm:$0xf0]  ;;  %v11628_v2 = vld [vmem:[#allocation2 + $0x70] sm:$0xf] }
 0x720   : > { %v14979_v61 = vadd.f32 %v8387_v32, %v8298_v41  ;;  %v7762_v1 = vpop.f32.mrf.mxu1 }
 0x721   : > { %v7819_v42 = vmul.f32 %v14882_v12, %v7761_v23 }
 0x723   : > { %v7851_v28 = vadd.f32 %v14892_v46, %v7819_v42 }
 0x724   : > { %v7673_v49 = vpop.f32.mrf.mxu0 }
 0x725   : > { %v7883_v7 = vmax.f32 %v7851_v28, 0.0  ;;  %v7674_v62 = vadd.f32 %v7673_v49, %v14796_v29  ;;  %v12559_v49 = vld [vmem:[#allocation2 + $0x98] sm:$0xf0] }
 0x727   : > { %11588 = vst [vmem:[%s13892_s29 + $0x570] sm:$0xff] %v7883_v7  ;;  %v7763_v37 = vadd.f32 %v7762_v1, %v7674_v62  ;;  %v8300_v10 = vpop.f32.mrf.mxu2  ;;  %v8389_v20 = vpop.f32.mrf.mxu3  ;;  %v12558_v7 = vld [vmem:[#allocation2 + $0x90] sm:$0xf0] }
 0x728   : > { %v14985_v29 = vadd.f32 %v8389_v20, %v8300_v10  ;;  %v7765_v50 = vpop.f32.mrf.mxu1 }
 0x729   : > { %v7820_v48 = vmul.f32 %v14882_v12, %v7763_v37 }
 0x72b   : > { %8978 = vmatmul.bf16.vlgmr.msrb.gmra.mxu1 %v11833_v25  ;;  %v7852_v63 = vadd.f32 %v14892_v46, %v7820_v48  ;;  %v11845_v25 = vor.u32 %v12558_v7, %v11844_v33  ;;  %v11856_v33 = vld [vmem:[#allocation2 + $0xbc] sm:$0xf] }
 0x72c   : > { %9067 = vmatmul.bf16.vlgmr.msrb.gmra.mxu2 %v11837_v59  ;;  %9156 = vmatmul.bf16.vlgmr.msrb.gmra.mxu3 %v11841_v13  ;;  %v7676_v30 = vpop.f32.mrf.mxu0  ;;  %v11853_v13 = vor.u32 %v12559_v49, %v11852_v6  ;;  %v11849_v59 = vor.u32 %v12557_v39, %v11846_v31  ;;  %v11864_v49 = vld [vmem:[#allocation2 + $0xc4] sm:$0xf]  ;;  %v11858_v31 = vld [vmem:[#allocation2 + $0xe4] sm:$0xf0]  ;;  %v12560_v39 = vld [vmem:[#allocation2 + $0xc0] sm:$0xf] }
 0x72d   : > { %v7884_v15 = vmax.f32 %v7852_v63, 0.0  ;;  %v7677_v54 = vadd.f32 %v7676_v30, %v14801_v36 }
 0x72f   : > { %11589 = vst [vmem:[%s13892_s29 + $0x578] sm:$0xff] %v7884_v15  ;;  %v7766_v23 = vadd.f32 %v7765_v50, %v7677_v54  ;;  %8440 = vmatmul.bf16.vlgmr.msrb.gmra.mxu0 %v11617_v16  ;;  %v8303_v41 = vpop.f32.mrf.mxu2  ;;  %v8392_v32 = vpop.f32.mrf.mxu3  ;;  %v11629_v16 = vor.u32 %v12511_v47, %v11628_v2  ;;  %v12514_v47 = vld [vmem:[#allocation2 + $0xe4] sm:$0xf0]  ;;  %v11640_v2 = vld [vmem:[#allocation2 + $0xc0] sm:$0xf] }
 0x730   : > { %v14991_v60 = vadd.f32 %v8392_v32, %v8303_v41  ;;  %v7767_v53 = vpop.f32.mrf.mxu1 }
 0x731   : > { %v7821_v42 = vmul.f32 %v14882_v12, %v7766_v23 }
 0x733   : > { %v7853_v28 = vadd.f32 %v14892_v46, %v7821_v42 }
 0x734   : > { %v7678_v1 = vpop.f32.mrf.mxu0 }
 0x735   : > { %v7885_v62 = vmax.f32 %v7853_v28, 0.0  ;;  %v7679_v36 = vadd.f32 %v7678_v1, %v14806_v14  ;;  %v12562_v1 = vld [vmem:[#allocation2 + $0xe8] sm:$0xf0] }
 0x737   : > { %11590 = vst [vmem:[%s13892_s29 + $0x580] sm:$0xff] %v7885_v62  ;;  %v7768_v37 = vadd.f32 %v7767_v53, %v7679_v36  ;;  %v8305_v10 = vpop.f32.mrf.mxu2  ;;  %v8394_v20 = vpop.f32.mrf.mxu3  ;;  %v12561_v62 = vld [vmem:[#allocation2 + $0xe0] sm:$0xf0] }
 0x738   : > { %v14997_v14 = vadd.f32 %v8394_v20, %v8305_v10  ;;  %v7770_v50 = vpop.f32.mrf.mxu1 }
 0x739   : > { %v7822_v48 = vmul.f32 %v14882_v12, %v7768_v37 }
 0x73b   : > { %8983 = vmatmul.bf16.gmra.mxu1 %v11845_v25  ;;  %v7854_v63 = vadd.f32 %v14892_v46, %v7822_v48  ;;  %v11857_v25 = vor.u32 %v12561_v62, %v11856_v33  ;;  %v11868_v33 = vld [vmem:[#allocation2 + $0x10c] sm:$0xf] }
 0x73c   : > { %9072 = vmatmul.bf16.gmra.mxu2 %v11849_v59  ;;  %9161 = vmatmul.bf16.gmra.mxu3 %v11853_v13  ;;  %v7681_v30 = vpop.f32.mrf.mxu0  ;;  %v11865_v13 = vor.u32 %v12562_v1, %v11864_v49  ;;  %v11861_v59 = vor.u32 %v12560_v39, %v11858_v31  ;;  %v11876_v1 = vld [vmem:[#allocation2 + $0x114] sm:$0xf]  ;;  %v11870_v31 = vld [vmem:[#allocation2 + $0x134] sm:$0xf0]  ;;  %v12563_v39 = vld [vmem:[#allocation2 + $0x110] sm:$0xf] }
 0x73d   : > { %v7886_v15 = vmax.f32 %v7854_v63, 0.0  ;;  %v7682_v54 = vadd.f32 %v7681_v30, %v14811_v27 }
 0x73f   : > { %11591 = vst [vmem:[%s13892_s29 + $0x588] sm:$0xff] %v7886_v15  ;;  %v7771_v23 = vadd.f32 %v7770_v50, %v7682_v54  ;;  %8445 = vmatmul.bf16.gmra.mxu0 %v11629_v16  ;;  %v8308_v41 = vpop.f32.mrf.mxu2  ;;  %v8397_v32 = vpop.f32.mrf.mxu3  ;;  %v11641_v16 = vor.u32 %v12514_v47, %v11640_v2  ;;  %v12517_v47 = vld [vmem:[#allocation2 + $0x134] sm:$0xf0]  ;;  %v11652_v2 = vld [vmem:[#allocation2 + $0x110] sm:$0xf] }
 0x740   : > { %v15003_v6 = vadd.f32 %v8397_v32, %v8308_v41  ;;  %v7772_v7 = vpop.f32.mrf.mxu1 }
 0x741   : > { %v7823_v42 = vmul.f32 %v14882_v12, %v7771_v23 }
 0x743   : > { %v7855_v28 = vadd.f32 %v14892_v46, %v7823_v42 }
 0x744   : > { %v7683_v53 = vpop.f32.mrf.mxu0 }
 0x745   : > { %v7887_v36 = vmax.f32 %v7855_v28, 0.0  ;;  %v7684_v27 = vadd.f32 %v7683_v53, %v14816_v8  ;;  %v12565_v53 = vld [vmem:[#allocation2 + $0x138] sm:$0xf0] }
 0x747   : > { %11592 = vst [vmem:[%s13892_s29 + $0x590] sm:$0xff] %v7887_v36  ;;  %v7773_v37 = vadd.f32 %v7772_v7, %v7684_v27  ;;  %v8310_v10 = vpop.f32.mrf.mxu2  ;;  %v8399_v20 = vpop.f32.mrf.mxu3  ;;  %v12564_v36 = vld [vmem:[#allocation2 + $0x130] sm:$0xf0] }
 0x748   : > { %v15009_v8 = vadd.f32 %v8399_v20, %v8310_v10  ;;  %v7775_v50 = vpop.f32.mrf.mxu1 }
 0x749   : > { %v7824_v48 = vmul.f32 %v14882_v12, %v7773_v37 }
 0x74b   : > { %8988 = vmatmul.bf16.gmra.mxu1 %v11857_v25  ;;  %v7856_v63 = vadd.f32 %v14892_v46, %v7824_v48  ;;  %v11869_v25 = vor.u32 %v12564_v36, %v11868_v33  ;;  %v11880_v33 = vld [vmem:[#allocation2 + $0x15c] sm:$0xf] }
 0x74c   : > { %9077 = vmatmul.bf16.gmra.mxu2 %v11861_v59  ;;  %9166 = vmatmul.bf16.gmra.mxu3 %v11865_v13  ;;  %v7686_v30 = vpop.f32.mrf.mxu0  ;;  %v11877_v13 = vor.u32 %v12565_v53, %v11876_v1  ;;  %v11873_v59 = vor.u32 %v12563_v39, %v11870_v31  ;;  %v11888_v53 = vld [vmem:[#allocation2 + $0x164] sm:$0xf]  ;;  %v11882_v31 = vld [vmem:[#allocation2 + $0x184] sm:$0xf0]  ;;  %v12566_v39 = vld [vmem:[#allocation2 + $0x160] sm:$0xf] }
 0x74d   : > { %v7888_v15 = vmax.f32 %v7856_v63, 0.0  ;;  %v7687_v54 = vadd.f32 %v7686_v30, %v14821_v24 }
 0x74f   : > { %11593 = vst [vmem:[%s13892_s29 + $0x598] sm:$0xff] %v7888_v15  ;;  %v7776_v23 = vadd.f32 %v7775_v50, %v7687_v54  ;;  %8450 = vmatmul.bf16.gmra.mxu0 %v11641_v16  ;;  %v8313_v41 = vpop.f32.mrf.mxu2  ;;  %v8402_v32 = vpop.f32.mrf.mxu3  ;;  %v11653_v16 = vor.u32 %v12517_v47, %v11652_v2  ;;  %v12520_v47 = vld [vmem:[#allocation2 + $0x184] sm:$0xf0]  ;;  %v11664_v2 = vld [vmem:[#allocation2 + $0x160] sm:$0xf] }
 0x750   : > { %v15015_v49 = vadd.f32 %v8402_v32, %v8313_v41  ;;  %v7777_v62 = vpop.f32.mrf.mxu1 }
 0x751   : > { %v7825_v42 = vmul.f32 %v14882_v12, %v7776_v23 }
 0x753   : > { %v7857_v28 = vadd.f32 %v14892_v46, %v7825_v42 }
 0x754   : > { %v7688_v7 = vpop.f32.mrf.mxu0 }
 0x755   : > { %v7889_v27 = vmax.f32 %v7857_v28, 0.0  ;;  %v7689_v24 = vadd.f32 %v7688_v7, %v14826_v51  ;;  %v12568_v7 = vld [vmem:[#allocation2 + $0x188] sm:$0xf0] }
 0x757   : > { %11594 = vst [vmem:[%s13892_s29 + $0x5a0] sm:$0xff] %v7889_v27  ;;  %v7778_v37 = vadd.f32 %v7777_v62, %v7689_v24  ;;  %v8315_v10 = vpop.f32.mrf.mxu2  ;;  %v8404_v20 = vpop.f32.mrf.mxu3  ;;  %v12567_v27 = vld [vmem:[#allocation2 + $0x180] sm:$0xf0] }
 0x758   : > { %v15021_v51 = vadd.f32 %v8404_v20, %v8315_v10  ;;  %v7780_v50 = vpop.f32.mrf.mxu1 }
 0x759   : > { %v7826_v48 = vmul.f32 %v14882_v12, %v7778_v37 }
 0x75b   : > { %8993 = vmatmul.bf16.gmra.mxu1 %v11869_v25  ;;  %v7858_v63 = vadd.f32 %v14892_v46, %v7826_v48  ;;  %v11881_v25 = vor.u32 %v12567_v27, %v11880_v33  ;;  %v11892_v33 = vld [vmem:[#allocation2 + $0x1ac] sm:$0xf] }
 0x75c   : > { %9082 = vmatmul.bf16.gmra.mxu2 %v11873_v59  ;;  %9171 = vmatmul.bf16.gmra.mxu3 %v11877_v13  ;;  %v7691_v30 = vpop.f32.mrf.mxu0  ;;  %v11889_v13 = vor.u32 %v12568_v7, %v11888_v53  ;;  %v11885_v59 = vor.u32 %v12566_v39, %v11882_v31  ;;  %v11900_v7 = vld [vmem:[#allocation2 + $0x1b4] sm:$0xf]  ;;  %v11894_v31 = vld [vmem:[#allocation2 + $0x1d4] sm:$0xf0]  ;;  %v12569_v39 = vld [vmem:[#allocation2 + $0x1b0] sm:$0xf] }
 0x75d   : > { %v7890_v15 = vmax.f32 %v7858_v63, 0.0  ;;  %v7692_v54 = vadd.f32 %v7691_v30, %v14831_v38 }
 0x75f   : > { %11595 = vst [vmem:[%s13892_s29 + $0x5a8] sm:$0xff] %v7890_v15  ;;  %v7781_v23 = vadd.f32 %v7780_v50, %v7692_v54  ;;  %8455 = vmatmul.bf16.gmra.mxu0 %v11653_v16  ;;  %v8318_v41 = vpop.f32.mrf.mxu2  ;;  %v8407_v32 = vpop.f32.mrf.mxu3  ;;  %v11665_v16 = vor.u32 %v12520_v47, %v11664_v2  ;;  %v12523_v47 = vld [vmem:[#allocation2 + $0x1d4] sm:$0xf0]  ;;  %v11676_v2 = vld [vmem:[#allocation2 + $0x1b0] sm:$0xf] }
 0x760   : > { %v15027_v1 = vadd.f32 %v8407_v32, %v8318_v41  ;;  %v7782_v36 = vpop.f32.mrf.mxu1 }
 0x761   : > { %v7827_v42 = vmul.f32 %v14882_v12, %v7781_v23 }
 0x763   : > { %v7859_v28 = vadd.f32 %v14892_v46, %v7827_v42 }
 0x764   : > { %v7693_v62 = vpop.f32.mrf.mxu0 }
 0x765   : > { %v7891_v24 = vmax.f32 %v7859_v28, 0.0  ;;  %v7694_v38 = vadd.f32 %v7693_v62, %v14836_v3  ;;  %v12571_v62 = vld [vmem:[#allocation2 + $0x1d8] sm:$0xf0] }
 0x767   : > { %11596 = vst [vmem:[%s13892_s29 + $0x5b0] sm:$0xff] %v7891_v24  ;;  %v7783_v37 = vadd.f32 %v7782_v36, %v7694_v38  ;;  %v8320_v10 = vpop.f32.mrf.mxu2  ;;  %v8409_v20 = vpop.f32.mrf.mxu3  ;;  %v12570_v24 = vld [vmem:[#allocation2 + $0x1d0] sm:$0xf0] }
 0x768   : > { %v15033_v3 = vadd.f32 %v8409_v20, %v8320_v10  ;;  %v7785_v50 = vpop.f32.mrf.mxu1 }
 0x769   : > { %v7828_v48 = vmul.f32 %v14882_v12, %v7783_v37 }
 0x76b   : > { %8998 = vmatmul.bf16.gmra.mxu1 %v11881_v25  ;;  %v7860_v63 = vadd.f32 %v14892_v46, %v7828_v48  ;;  %v11893_v25 = vor.u32 %v12570_v24, %v11892_v33  ;;  %v11904_v33 = vld [vmem:[#allocation2 + $0x1fc] sm:$0xf] }
 0x76c   : > { %9087 = vmatmul.bf16.gmra.mxu2 %v11885_v59  ;;  %9176 = vmatmul.bf16.gmra.mxu3 %v11889_v13  ;;  %v7696_v30 = vpop.f32.mrf.mxu0  ;;  %v11901_v13 = vor.u32 %v12571_v62, %v11900_v7  ;;  %v11897_v59 = vor.u32 %v12569_v39, %v11894_v31  ;;  %v11912_v62 = vld [vmem:[#allocation2 + $0x204] sm:$0xf]  ;;  %v11906_v31 = vld [vmem:[#allocation2 + $0x224] sm:$0xf0] }
 0x76d   : > { %v7892_v15 = vmax.f32 %v7860_v63, 0.0  ;;  %v7697_v54 = vadd.f32 %v7696_v30, %v14841_v19 }
 0x76f   : > { %11597 = vst [vmem:[%s13892_s29 + $0x5b8] sm:$0xff] %v7892_v15  ;;  %v7786_v23 = vadd.f32 %v7785_v50, %v7697_v54  ;;  %8460 = vmatmul.bf16.gmra.mxu0 %v11665_v16  ;;  %v8323_v41 = vpop.f32.mrf.mxu2  ;;  %v8412_v32 = vpop.f32.mrf.mxu3  ;;  %v11677_v16 = vor.u32 %v12523_v47, %v11676_v2  ;;  %v11688_v2 = vld [vmem:[#allocation2 + $0x200] sm:$0xf] }
 0x770   : > { %v15039_v53 = vadd.f32 %v8412_v32, %v8323_v41  ;;  %v7787_v27 = vpop.f32.mrf.mxu1 }
 0x771   : > { %v7829_v42 = vmul.f32 %v14882_v12, %v7786_v23 }
 0x773   : > { %v7861_v28 = vadd.f32 %v14892_v46, %v7829_v42 }
 0x774   : > { %v7698_v36 = vpop.f32.mrf.mxu0 }
 0x775   : > { %v7893_v38 = vmax.f32 %v7861_v28, 0.0  ;;  %v7699_v19 = vadd.f32 %v7698_v36, %v14846_v40  ;;  %v12574_v36 = vld [vmem:[#allocation2 + $0x228] sm:$0xf0] }
 0x777   : > { %11598 = vst [vmem:[%s13892_s29 + $0x5c0] sm:$0xff] %v7893_v38  ;;  %v7788_v37 = vadd.f32 %v7787_v27, %v7699_v19  ;;  %v8325_v10 = vpop.f32.mrf.mxu2  ;;  %v8414_v20 = vpop.f32.mrf.mxu3  ;;  %v12573_v38 = vld [vmem:[#allocation2 + $0x220] sm:$0xf0] }
 0x778   : > { %v15045_v40 = vadd.f32 %v8414_v20, %v8325_v10  ;;  %v7790_v50 = vpop.f32.mrf.mxu1  ;;  %v15064_v20 = vld [vmem:[%s15337_s6] ss:$0 sm:$0xff] }
 0x779   : > { %v7830_v48 = vmul.f32 %v14882_v12, %v7788_v37 }
 0x77b   : > { %9003 = vmatmul.bf16.gmra.mxu1 %v11893_v25  ;;  %v7862_v63 = vadd.f32 %v14892_v46, %v7830_v48  ;;  %v12572_v25 = vld [vmem:[#allocation2 + $0x200] sm:$0xf] }
 0x77c   : > { %9092 = vmatmul.bf16.gmra.mxu2 %v11897_v59  ;;  %9181 = vmatmul.bf16.gmra.mxu3 %v11901_v13  ;;  %v7701_v30 = vpop.f32.mrf.mxu0  ;;  %v11913_v13 = vor.u32 %v12574_v36, %v11912_v62  ;;  %v11909_v39 = vor.u32 %v12572_v25, %v11906_v31  ;;  %v11924_v36 = vld [vmem:[#allocation2 + $0x254] sm:$0xf]  ;;  %v11918_v31 = vld [vmem:[#allocation2 + $0x274] sm:$0xf0]  ;;  %v12575_v25 = vld [vmem:[#allocation2 + $0x250] sm:$0xf] }
 0x77d   : > { %v7894_v15 = vmax.f32 %v7862_v63, 0.0  ;;  %v7702_v54 = vadd.f32 %v7701_v30, %v14851_v26 }
 0x77f   : > { %11599 = vst [vmem:[%s13892_s29 + $0x5c8] sm:$0xff] %v7894_v15  ;;  %v7791_v23 = vadd.f32 %v7790_v50, %v7702_v54  ;;  %8465 = vmatmul.bf16.gmra.mxu0 %v11677_v16  ;;  %v8328_v41 = vpop.f32.mrf.mxu2  ;;  %v8417_v32 = vpop.f32.mrf.mxu3 }
 0x780   : > { %v15051_v7 = vadd.f32 %v8417_v32, %v8328_v41  ;;  %v7792_v24 = vpop.f32.mrf.mxu1 }
 0x781   : > { %v7831_v42 = vmul.f32 %v14882_v12, %v7791_v23  ;;  %v11905_v12 = vor.u32 %v12573_v38, %v11904_v33  ;;  %v11916_v33 = vld [vmem:[#allocation2 + $0x24c] sm:$0xf] }
 0x783   : > { %v7863_v28 = vadd.f32 %v14892_v46, %v7831_v42  ;;  %v15058_v46 = vld [vmem:[%s15336_s5] ss:$0 sm:$0xff] }
 0x784   : > { %v7703_v27 = vpop.f32.mrf.mxu0 }
 0x785   : > { %v7895_v19 = vmax.f32 %v7863_v28, 0.0  ;;  %v7704_v26 = vadd.f32 %v7703_v27, %v14856_v22  ;;  %v12526_v22 = vld [vmem:[#allocation2 + $0x224] sm:$0xf0]  ;;  %v12577_v27 = vld [vmem:[#allocation2 + $0x278] sm:$0xf0] }
 0x786   : > { %v11689_v16 = vor.u32 %v12526_v22, %v11688_v2  ;;  %v12529_v22 = vld [vmem:[#allocation2 + $0x274] sm:$0xf0]  ;;  %v11700_v2 = vld [vmem:[#allocation2 + $0x250] sm:$0xf] }
 0x787   : > { %11600 = vst [vmem:[%s13892_s29 + $0x5d0] sm:$0xff] %v7895_v19  ;;  %v7793_v37 = vadd.f32 %v7792_v24, %v7704_v26  ;;  %v8330_v48 = vpop.f32.mrf.mxu2  ;;  %v8419_v10 = vpop.f32.mrf.mxu3  ;;  %v12576_v19 = vld [vmem:[#allocation2 + $0x270] sm:$0xf0] }
 0x788   : > { %v15067_v63 = vadd.f32 %v8419_v10, %v8330_v48  ;;  %v7795_v50 = vpop.f32.mrf.mxu1 }
 0x789   : > { %v7832_v59 = vmul.f32 %v15058_v46, %v7793_v37 }
 0x78b   : > { %9008 = vmatmul.bf16.gmra.mxu1 %v11905_v12  ;;  %v7864_v47 = vadd.f32 %v15064_v20, %v7832_v59  ;;  %v11917_v12 = vor.u32 %v12576_v19, %v11916_v33  ;;  %v11928_v33 = vld [vmem:[#allocation2 + $0x29c] sm:$0xf] }
 0x78c   : > { %9097 = vmatmul.bf16.gmra.mxu2 %v11909_v39  ;;  %9186 = vmatmul.bf16.gmra.mxu3 %v11913_v13  ;;  %v7706_v30 = vpop.f32.mrf.mxu0  ;;  %v11925_v13 = vor.u32 %v12577_v27, %v11924_v36  ;;  %v11921_v39 = vor.u32 %v12575_v25, %v11918_v31  ;;  %v11936_v27 = vld [vmem:[#allocation2 + $0x2a4] sm:$0xf]  ;;  %v11930_v31 = vld [vmem:[#allocation2 + $0x2c4] sm:$0xf0]  ;;  %v12578_v25 = vld [vmem:[#allocation2 + $0x2a0] sm:$0xf] }
 0x78d   : > { %v7896_v15 = vmax.f32 %v7864_v47, 0.0  ;;  %v7707_v54 = vadd.f32 %v7706_v30, %v14861_v9 }
 0x78f   : > { %11601 = vst [vmem:[%s13892_s29 + $0x5d8] sm:$0xff] %v7896_v15  ;;  %v7796_v23 = vadd.f32 %v7795_v50, %v7707_v54  ;;  %8470 = vmatmul.bf16.gmra.mxu0 %v11689_v16  ;;  %v8333_v41 = vpop.f32.mrf.mxu2  ;;  %v8422_v32 = vpop.f32.mrf.mxu3  ;;  %v11701_v16 = vor.u32 %v12529_v22, %v11700_v2  ;;  %v12532_v22 = vld [vmem:[#allocation2 + $0x2c4] sm:$0xf0]  ;;  %v11712_v2 = vld [vmem:[#allocation2 + $0x2a0] sm:$0xf] }
 0x790   : > { %v15073_v62 = vadd.f32 %v8422_v32, %v8333_v41  ;;  %v7797_v38 = vpop.f32.mrf.mxu1 }
 0x791   : > { %v7833_v42 = vmul.f32 %v15058_v46, %v7796_v23 }
 0x793   : > { %v7865_v28 = vadd.f32 %v15064_v20, %v7833_v42 }
 0x794   : > { %v7708_v24 = vpop.f32.mrf.mxu0 }
 0x795   : > { %v7897_v26 = vmax.f32 %v7865_v28, 0.0  ;;  %v7709_v9 = vadd.f32 %v7708_v24, %v14866_v5  ;;  %v12580_v24 = vld [vmem:[#allocation2 + $0x2c8] sm:$0xf0] }
 0x797   : > { %11602 = vst [vmem:[%s13892_s29 + $0x5e0] sm:$0xff] %v7897_v26  ;;  %v7798_v37 = vadd.f32 %v7797_v38, %v7709_v9  ;;  %v8335_v48 = vpop.f32.mrf.mxu2  ;;  %v8424_v10 = vpop.f32.mrf.mxu3  ;;  %v12579_v26 = vld [vmem:[#allocation2 + $0x2c0] sm:$0xf0] }
 0x798   : > { %v15079_v5 = vadd.f32 %v8424_v10, %v8335_v48  ;;  %v7800_v50 = vpop.f32.mrf.mxu1 }
 0x799   : > { %v7834_v59 = vmul.f32 %v15058_v46, %v7798_v37 }
 0x79b   : > { %9013 = vmatmul.bf16.gmra.mxu1 %v11917_v12  ;;  %v7866_v47 = vadd.f32 %v15064_v20, %v7834_v59  ;;  %v11929_v12 = vor.u32 %v12579_v26, %v11928_v33  ;;  %v11940_v33 = vld [vmem:[#allocation2 + $0x2ec] sm:$0xf] }
 0x79c   : > { %9102 = vmatmul.bf16.gmra.mxu2 %v11921_v39  ;;  %9191 = vmatmul.bf16.gmra.mxu3 %v11925_v13  ;;  %v7711_v30 = vpop.f32.mrf.mxu0  ;;  %v11937_v13 = vor.u32 %v12580_v24, %v11936_v27  ;;  %v11933_v39 = vor.u32 %v12578_v25, %v11930_v31  ;;  %v11948_v24 = vld [vmem:[#allocation2 + $0x2f4] sm:$0xf]  ;;  %v11942_v31 = vld [vmem:[#allocation2 + $0x314] sm:$0xf0] }
 0x79d   : > { %v7898_v15 = vmax.f32 %v7866_v47, 0.0  ;;  %v7712_v54 = vadd.f32 %v7711_v30, %v14871_v52 }
 0x79f   : > { %11603 = vst [vmem:[%s13892_s29 + $0x5e8] sm:$0xff] %v7898_v15  ;;  %v7801_v23 = vadd.f32 %v7800_v50, %v7712_v54  ;;  %8475 = vmatmul.bf16.gmra.mxu0 %v11701_v16  ;;  %v8338_v41 = vpop.f32.mrf.mxu2  ;;  %v8427_v32 = vpop.f32.mrf.mxu3  ;;  %v11713_v16 = vor.u32 %v12532_v22, %v11712_v2 }
 0x7a0   : > { %v15085_v36 = vadd.f32 %v8427_v32, %v8338_v41  ;;  %v7802_v19 = vpop.f32.mrf.mxu1 }
 0x7a1   : > { %v7835_v42 = vmul.f32 %v15058_v46, %v7801_v23 }
 0x7a3   : > { %v7867_v28 = vadd.f32 %v15064_v20, %v7835_v42 }
 0x7a4   : > { %v7713_v38 = vpop.f32.mrf.mxu0 }
 0x7a5   : > { %v7899_v9 = vmax.f32 %v7867_v28, 0.0  ;;  %v7714_v52 = vadd.f32 %v7713_v38, %v14876_v57  ;;  %v12583_v38 = vld [vmem:[#allocation2 + $0x318] sm:$0xf0] }
 0x7a7   : > { %11604 = vst [vmem:[%s13892_s29 + $0x5f0] sm:$0xff] %v7899_v9  ;;  %v7803_v37 = vadd.f32 %v7802_v19, %v7714_v52  ;;  %v8340_v48 = vpop.f32.mrf.mxu2  ;;  %v8429_v10 = vpop.f32.mrf.mxu3  ;;  %v12582_v9 = vld [vmem:[#allocation2 + $0x310] sm:$0xf0] }
 0x7a8   : > { %v15091_v57 = vadd.f32 %v8429_v10, %v8340_v48  ;;  %v8979_v50 = vpop.f32.mrf.mxu1  ;;  %v11941_v25 = vor.u32 %v12582_v9, %v11940_v33 }
 0x7a9   : > { %v7836_v59 = vmul.f32 %v15058_v46, %v7803_v37 }
 0x7ab   : > { %9018 = vmatmul.bf16.gmra.mxu1 %v11929_v12  ;;  %v7868_v47 = vadd.f32 %v15064_v20, %v7836_v59 }
 0x7ac   : > { %9107 = vmatmul.bf16.gmra.mxu2 %v11933_v39  ;;  %9196 = vmatmul.bf16.gmra.mxu3 %v11937_v13  ;;  %v8441_v30 = vpop.f32.mrf.mxu0  ;;  %v11949_v13 = vor.u32 %v12583_v38, %v11948_v24  ;;  %v12581_v39 = vld [vmem:[#allocation2 + $0x2f0] sm:$0xf] }
 0x7ad   : > { %v7900_v15 = vmax.f32 %v7868_v47, 0.0  ;;  %v8442_v54 = vadd.f32 %v8441_v30, %v14895_v0  ;;  %v11945_v59 = vor.u32 %v12581_v39, %v11942_v31  ;;  %v11952_v39 = vld [vmem:[#allocation2 + $0x33c] sm:$0xf] }
 0x7af   : > { %11605 = vst [vmem:[%s13892_s29 + $0x5f8] sm:$0xff] %v7900_v15  ;;  %v8521_v23 = vmul.f32 %v15058_v46, %v8442_v54  ;;  %8480 = vmatmul.bf16.gmra.mxu0 %v11713_v16  ;;  %v9068_v41 = vpop.f32.mrf.mxu2  ;;  %v9157_v32 = vpop.f32.mrf.mxu3  ;;  %v11724_v16 = vld [vmem:[#allocation2 + $0x2f0] sm:$0xf] }
 0x7b0   : > { %v9069_v27 = vadd.f32 %v9068_v41, %v8979_v50  ;;  %v8981_v26 = vpop.f32.mrf.mxu1 }
 0x7b1   : > { %v8553_v42 = vadd.f32 %v15064_v20, %v8521_v23 }
 0x7b2   : > { %v9158_v52 = vadd.f32 %v9157_v32, %v9069_v27 }
 0x7b3   : > { %v8585_v28 = vmax.f32 %v8553_v42, 0.0 }
 0x7b4   : > { %v8443_v19 = vpop.f32.mrf.mxu0  ;;  %v9237_v37 = vmul.f32 %v15058_v46, %v9158_v52 }
 0x7b5   : > { %11798 = vst [vmem:[%s13892_s29 + $0x600] sm:$0xff] %v8585_v28  ;;  %v8444_v0 = vadd.f32 %v8443_v19, %v14901_v44  ;;  %v12535_v44 = vld [vmem:[#allocation2 + $0x314] sm:$0xf0] }
 0x7b6   : > { %v9269_v48 = vadd.f32 %v15064_v20, %v9237_v37  ;;  %v11725_v41 = vor.u32 %v12535_v44, %v11724_v16 }
 0x7b7   : > { %v8522_v12 = vmul.f32 %v15058_v46, %v8444_v0  ;;  %v9070_v22 = vpop.f32.mrf.mxu2  ;;  %v9159_v47 = vpop.f32.mrf.mxu3  ;;  %v11960_v0 = vld [vmem:[#allocation2 + $0x344] sm:$0xf] }
 0x7b8   : > { %v9301_v30 = vmax.f32 %v9269_v48, 0.0  ;;  %v9071_v2 = vadd.f32 %v9070_v22, %v8981_v26  ;;  %v8984_v54 = vpop.f32.mrf.mxu1 }
 0x7b9   : > { %v8554_v10 = vadd.f32 %v15064_v20, %v8522_v12 }
 0x7ba   : > { %12022 = vst [vmem:[%s13892_s29 + $0x700] sm:$0xff] %v9301_v30  ;;  %v9160_v23 = vadd.f32 %v9159_v47, %v9071_v2  ;;  %v12584_v47 = vld [vmem:[#allocation2 + $0x340] sm:$0xf] }
 0x7bb   : > { %9023 = vmatmul.bf16.gmra.mxu1 %v11941_v25  ;;  %v8586_v50 = vmax.f32 %v8554_v10, 0.0  ;;  %v11954_v25 = vld [vmem:[#allocation2 + $0x364] sm:$0xf0] }
 0x7bc   : > { %9112 = vmatmul.bf16.gmra.mxu2 %v11945_v59  ;;  %9201 = vmatmul.bf16.gmra.mxu3 %v11949_v13  ;;  %v8446_v15 = vpop.f32.mrf.mxu0  ;;  %v9238_v32 = vmul.f32 %v15058_v46, %v9160_v23  ;;  %v12585_v13 = vld [vmem:[#allocation2 + $0x360] sm:$0xf0]  ;;  %v11957_v44 = vor.u32 %v12584_v47, %v11954_v25  ;;  %v12588_v25 = vld [vmem:[#allocation2 + $0x3b0] sm:$0xf0] }
 0x7bd   : > { %v8447_v42 = vadd.f32 %v8446_v15, %v14907_v18  ;;  %11799 = vst [vmem:[%s13892_s29 + $0x608] sm:$0xff] %v8586_v50  ;;  %v12586_v18 = vld [vmem:[#allocation2 + $0x368] sm:$0xf0]  ;;  %v11953_v22 = vor.u32 %v12585_v13, %v11952_v39  ;;  %v12538_v15 = vld [vmem:[#allocation2 + $0x364] sm:$0xf0] }
 0x7be   : > { %v9270_v27 = vadd.f32 %v15064_v20, %v9238_v32  ;;  %v11961_v59 = vor.u32 %v12586_v18, %v11960_v0  ;;  %v11736_v32 = vld [vmem:[#allocation2 + $0x340] sm:$0xf]  ;;  %v11972_v13 = vld [vmem:[#allocation2 + $0x394] sm:$0xf] }
 0x7bf   : > { %v8523_v28 = vmul.f32 %v15058_v46, %v8447_v42  ;;  %8485 = vmatmul.bf16.gmra.mxu0 %v11725_v41  ;;  %v9073_v38 = vpop.f32.mrf.mxu2  ;;  %v9162_v19 = vpop.f32.mrf.mxu3 }
 0x7c0   : > { %v9302_v26 = vmax.f32 %v9270_v27, 0.0  ;;  %v9074_v52 = vadd.f32 %v9073_v38, %v8984_v54  ;;  %v8986_v33 = vpop.f32.mrf.mxu1 }
 0x7c1   : > { %v8555_v24 = vadd.f32 %v15064_v20, %v8523_v28 }
 0x7c2   : > { %12023 = vst [vmem:[%s13892_s29 + $0x708] sm:$0xff] %v9302_v26  ;;  %v9163_v37 = vadd.f32 %v9162_v19, %v9074_v52 }
 0x7c3   : > { %v8587_v9 = vmax.f32 %v8555_v24, 0.0  ;;  %v11737_v24 = vor.u32 %v12538_v15, %v11736_v32 }
 0x7c4   : > { %v8448_v31 = vpop.f32.mrf.mxu0  ;;  %v9239_v48 = vmul.f32 %v15058_v46, %v9163_v37 }
 0x7c5   : > { %v8449_v12 = vadd.f32 %v8448_v31, %v14913_v45  ;;  %11800 = vst [vmem:[%s13892_s29 + $0x610] sm:$0xff] %v8587_v9 }
 0x7c6   : > { %v9271_v30 = vadd.f32 %v15064_v20, %v9239_v48  ;;  %v11966_v48 = vld [vmem:[#allocation2 + $0x3b4] sm:$0xf0] }
 0x7c7   : > { %v8524_v10 = vmul.f32 %v15058_v46, %v8449_v12  ;;  %v9075_v2 = vpop.f32.mrf.mxu2  ;;  %v9164_v45 = vpop.f32.mrf.mxu3 }
 0x7c8   : > { %v9303_v54 = vmax.f32 %v9271_v30, 0.0  ;;  %v9076_v23 = vadd.f32 %v9075_v2, %v8986_v33  ;;  %v8989_v41 = vpop.f32.mrf.mxu1 }
 0x7c9   : > { %v8556_v50 = vadd.f32 %v15064_v20, %v8524_v10  ;;  %v11964_v10 = vld [vmem:[#allocation2 + $0x38c] sm:$0xf] }
 0x7ca   : > { %12024 = vst [vmem:[%s13892_s29 + $0x710] sm:$0xff] %v9303_v54  ;;  %v9165_v28 = vadd.f32 %v9164_v45, %v9076_v23  ;;  %v11965_v30 = vor.u32 %v12588_v25, %v11964_v10  ;;  %v11978_v10 = vld [vmem:[#allocation2 + $0x404] sm:$0xf0] }
 0x7cb   : > { %9028 = vmatmul.bf16.gmra.mxu1 %v11953_v22  ;;  %v8588_v16 = vmax.f32 %v8556_v50, 0.0  ;;  %v12587_v50 = vld [vmem:[#allocation2 + $0x390] sm:$0xf] }
 0x7cc   : > { %9117 = vmatmul.bf16.gmra.mxu2 %v11957_v44  ;;  %9206 = vmatmul.bf16.gmra.mxu3 %v11961_v59  ;;  %v8451_v42 = vpop.f32.mrf.mxu0  ;;  %v9240_v38 = vmul.f32 %v15058_v46, %v9165_v28  ;;  %v11969_v2 = vor.u32 %v12587_v50, %v11966_v48 }
 0x7cd   : > { %v8452_v27 = vadd.f32 %v8451_v42, %v14919_v58  ;;  %11801 = vst [vmem:[%s13892_s29 + $0x618] sm:$0xff] %v8588_v16  ;;  %v12589_v58 = vld [vmem:[#allocation2 + $0x3b8] sm:$0xf0]  ;;  %v12541_v16 = vld [vmem:[#allocation2 + $0x3b4] sm:$0xf0] }
 0x7ce   : > { %v9272_v26 = vadd.f32 %v15064_v20, %v9240_v38  ;;  %v11973_v22 = vor.u32 %v12589_v58, %v11972_v13 }
 0x7cf   : > { %v8525_v19 = vmul.f32 %v15058_v46, %v8452_v27  ;;  %8490 = vmatmul.bf16.gmra.mxu0 %v11737_v24  ;;  %v9078_v52 = vpop.f32.mrf.mxu2  ;;  %v9167_v0 = vpop.f32.mrf.mxu3  ;;  %v11748_v27 = vld [vmem:[#allocation2 + $0x390] sm:$0xf] }
 0x7d0   : > { %v9304_v18 = vmax.f32 %v9272_v26, 0.0  ;;  %v9079_v33 = vadd.f32 %v9078_v52, %v8989_v41  ;;  %v8991_v12 = vpop.f32.mrf.mxu1 }
 0x7d1   : > { %v8557_v9 = vadd.f32 %v15064_v20, %v8525_v19  ;;  %v11749_v19 = vor.u32 %v12541_v16, %v11748_v27  ;;  %v12544_v16 = vld [vmem:[#allocation2 + $0x404] sm:$0xf0]  ;;  %v11760_v27 = vld [vmem:[#allocation2 + $0x3e0] sm:$0xf] }
 0x7d2   : > { %12025 = vst [vmem:[%s13892_s29 + $0x718] sm:$0xff] %v9304_v18  ;;  %v9168_v39 = vadd.f32 %v9167_v0, %v9079_v33 }
 0x7d3   : > { %v8589_v31 = vmax.f32 %v8557_v9, 0.0 }
 0x7d4   : > { %v8453_v37 = vpop.f32.mrf.mxu0  ;;  %v9241_v47 = vmul.f32 %v15058_v46, %v9168_v39  ;;  %v12591_v39 = vld [vmem:[#allocation2 + $0x400] sm:$0xf0] }
 0x7d5   : > { %v8454_v59 = vadd.f32 %v8453_v37, %v14925_v55  ;;  %11802 = vst [vmem:[%s13892_s29 + $0x620] sm:$0xff] %v8589_v31  ;;  %v11984_v37 = vld [vmem:[#allocation2 + $0x3e4] sm:$0xf] }
 0x7d6   : > { %v9273_v45 = vadd.f32 %v15064_v20, %v9241_v47 }
 0x7d7   : > { %v8526_v44 = vmul.f32 %v15058_v46, %v8454_v59  ;;  %v9080_v54 = vpop.f32.mrf.mxu2  ;;  %v9169_v55 = vpop.f32.mrf.mxu3 }
 0x7d8   : > { %v9305_v23 = vmax.f32 %v9273_v45, 0.0  ;;  %v9081_v41 = vadd.f32 %v9080_v54, %v8991_v12  ;;  %v8994_v28 = vpop.f32.mrf.mxu1 }
 0x7d9   : > { %v8558_v15 = vadd.f32 %v15064_v20, %v8526_v44 }
 0x7da   : > { %12026 = vst [vmem:[%s13892_s29 + $0x720] sm:$0xff] %v9305_v23  ;;  %v9170_v24 = vadd.f32 %v9169_v55, %v9081_v41 }
 0x7db   : > { %9033 = vmatmul.bf16.gmra.mxu1 %v11965_v30  ;;  %v8590_v42 = vmax.f32 %v8558_v15, 0.0 }
 0x7dc   : > { %9122 = vmatmul.bf16.gmra.mxu2 %v11969_v2  ;;  %9211 = vmatmul.bf16.gmra.mxu3 %v11973_v22  ;;  %v8456_v32 = vpop.f32.mrf.mxu0  ;;  %v9242_v26 = vmul.f32 %v15058_v46, %v9170_v24  ;;  %v11976_v22 = vld [vmem:[#allocation2 + $0x3dc] sm:$0xf]  ;;  %v12590_v2 = vld [vmem:[#allocation2 + $0x3e0] sm:$0xf] }
 0x7dd   : > { %v8457_v38 = vadd.f32 %v8456_v32, %v14931_v21  ;;  %11803 = vst [vmem:[%s13892_s29 + $0x628] sm:$0xff] %v8590_v42  ;;  %v12592_v21 = vld [vmem:[#allocation2 + $0x408] sm:$0xf0]  ;;  %v11977_v50 = vor.u32 %v12591_v39, %v11976_v22  ;;  %v11981_v45 = vor.u32 %v12590_v2, %v11978_v10 }
 0x7de   : > { %v9274_v52 = vadd.f32 %v15064_v20, %v9242_v26  ;;  %v11985_v47 = vor.u32 %v12592_v21, %v11984_v37  ;;  %v11996_v37 = vld [vmem:[#allocation2 + $0x434] sm:$0xf]  ;;  %v11988_v10 = vld [vmem:[#allocation2 + $0x42c] sm:$0xf] }
 0x7df   : > { %v8527_v9 = vmul.f32 %v15058_v46, %v8457_v38  ;;  %8495 = vmatmul.bf16.gmra.mxu0 %v11749_v19  ;;  %v9083_v18 = vpop.f32.mrf.mxu2  ;;  %v9172_v31 = vpop.f32.mrf.mxu3  ;;  %v11761_v19 = vor.u32 %v12544_v16, %v11760_v27 }
 0x7e0   : > { %v9306_v33 = vmax.f32 %v9274_v52, 0.0  ;;  %v9084_v58 = vadd.f32 %v9083_v18, %v8994_v28  ;;  %v8996_v25 = vpop.f32.mrf.mxu1 }
 0x7e1   : > { %v8559_v0 = vadd.f32 %v15064_v20, %v8527_v9 }
 0x7e2   : > { %12027 = vst [vmem:[%s13892_s29 + $0x728] sm:$0xff] %v9306_v33  ;;  %v9173_v59 = vadd.f32 %v9172_v31, %v9084_v58 }
 0x7e3   : > { %v8591_v13 = vmax.f32 %v8559_v0, 0.0 }
 0x7e4   : > { %v8458_v12 = vpop.f32.mrf.mxu0  ;;  %v9243_v44 = vmul.f32 %v15058_v46, %v9173_v59 }
 0x7e5   : > { %v8459_v48 = vadd.f32 %v8458_v12, %v14937_v4  ;;  %11804 = vst [vmem:[%s13892_s29 + $0x630] sm:$0xff] %v8591_v13 }
 0x7e6   : > { %v9275_v15 = vadd.f32 %v15064_v20, %v9243_v44 }
 0x7e7   : > { %v8528_v30 = vmul.f32 %v15058_v46, %v8459_v48  ;;  %v9085_v55 = vpop.f32.mrf.mxu2  ;;  %v9174_v4 = vpop.f32.mrf.mxu3  ;;  %v11990_v48 = vld [vmem:[#allocation2 + $0x454] sm:$0xf0] }
 0x7e8   : > { %v9307_v23 = vmax.f32 %v9275_v15, 0.0  ;;  %v9086_v41 = vadd.f32 %v9085_v55, %v8996_v25  ;;  %v8999_v28 = vpop.f32.mrf.mxu1  ;;  %v12594_v25 = vld [vmem:[#allocation2 + $0x450] sm:$0xf0]  ;;  %v12547_v55 = vld [vmem:[#allocation2 + $0x454] sm:$0xf0] }
 0x7e9   : > { %v8560_v54 = vadd.f32 %v15064_v20, %v8528_v30  ;;  %v11989_v30 = vor.u32 %v12594_v25, %v11988_v10  ;;  %v12002_v25 = vld [vmem:[#allocation2 + $0x4a4] sm:$0xf0] }
 0x7ea   : > { %12028 = vst [vmem:[%s13892_s29 + $0x730] sm:$0xff] %v9307_v23  ;;  %v9175_v24 = vadd.f32 %v9174_v4, %v9086_v41 }
 0x7eb   : > { %9038 = vmatmul.bf16.gmra.mxu1 %v11977_v50  ;;  %v8592_v42 = vmax.f32 %v8560_v54, 0.0  ;;  %v12593_v50 = vld [vmem:[#allocation2 + $0x430] sm:$0xf] }
 0x7ec   : > { %9127 = vmatmul.bf16.gmra.mxu2 %v11981_v45  ;;  %9216 = vmatmul.bf16.gmra.mxu3 %v11985_v47  ;;  %v8461_v32 = vpop.f32.mrf.mxu0  ;;  %v9244_v26 = vmul.f32 %v15058_v46, %v9175_v24  ;;  %v11993_v2 = vor.u32 %v12593_v50, %v11990_v48 }
 0x7ed   : > { %v8462_v38 = vadd.f32 %v8461_v32, %v14943_v35  ;;  %11805 = vst [vmem:[%s13892_s29 + $0x638] sm:$0xff] %v8592_v42  ;;  %v12595_v35 = vld [vmem:[#allocation2 + $0x458] sm:$0xf0]  ;;  %v11772_v32 = vld [vmem:[#allocation2 + $0x430] sm:$0xf] }
 0x7ee   : > { %v9276_v52 = vadd.f32 %v15064_v20, %v9244_v26  ;;  %v11997_v22 = vor.u32 %v12595_v35, %v11996_v37  ;;  %v11773_v24 = vor.u32 %v12547_v55, %v11772_v32  ;;  %v12597_v35 = vld [vmem:[#allocation2 + $0x4a0] sm:$0xf0] }
 0x7ef   : > { %v8529_v9 = vmul.f32 %v15058_v46, %v8462_v38  ;;  %8500 = vmatmul.bf16.gmra.mxu0 %v11761_v19  ;;  %v9088_v18 = vpop.f32.mrf.mxu2  ;;  %v9177_v31 = vpop.f32.mrf.mxu3 }
 0x7f0   : > { %v9308_v33 = vmax.f32 %v9276_v52, 0.0  ;;  %v9089_v58 = vadd.f32 %v9088_v18, %v8999_v28  ;;  %v9001_v12 = vpop.f32.mrf.mxu1 }
 0x7f1   : > { %v8561_v0 = vadd.f32 %v15064_v20, %v8529_v9 }
 0x7f2   : > { %12029 = vst [vmem:[%s13892_s29 + $0x738] sm:$0xff] %v9308_v33  ;;  %v9178_v39 = vadd.f32 %v9177_v31, %v9089_v58 }
 0x7f3   : > { %v8593_v13 = vmax.f32 %v8561_v0, 0.0 }
 0x7f4   : > { %v8463_v21 = vpop.f32.mrf.mxu0  ;;  %v9245_v47 = vmul.f32 %v15058_v46, %v9178_v39  ;;  %v12000_v39 = vld [vmem:[#allocation2 + $0x47c] sm:$0xf] }
 0x7f5   : > { %v8464_v59 = vadd.f32 %v8463_v21, %v14949_v17  ;;  %11806 = vst [vmem:[%s13892_s29 + $0x640] sm:$0xff] %v8593_v13  ;;  %v12008_v13 = vld [vmem:[#allocation2 + $0x484] sm:$0xf] }
 0x7f6   : > { %v9277_v45 = vadd.f32 %v15064_v20, %v9245_v47  ;;  %v12596_v47 = vld [vmem:[#allocation2 + $0x480] sm:$0xf] }
 0x7f7   : > { %v8530_v44 = vmul.f32 %v15058_v46, %v8464_v59  ;;  %v9090_v54 = vpop.f32.mrf.mxu2  ;;  %v9179_v17 = vpop.f32.mrf.mxu3 }
 0x7f8   : > { %v9309_v4 = vmax.f32 %v9277_v45, 0.0  ;;  %v9091_v23 = vadd.f32 %v9090_v54, %v9001_v12  ;;  %v9004_v41 = vpop.f32.mrf.mxu1  ;;  %v12550_v45 = vld [vmem:[#allocation2 + $0x4a4] sm:$0xf0] }
 0x7f9   : > { %v8562_v15 = vadd.f32 %v15064_v20, %v8530_v44  ;;  %v12005_v44 = vor.u32 %v12596_v47, %v12002_v25  ;;  %v12553_v47 = vld [vmem:[#allocation2 + $0x4f4] sm:$0xf0] }
 0x7fa   : > { %12030 = vst [vmem:[%s13892_s29 + $0x740] sm:$0xff] %v9309_v4  ;;  %v9180_v28 = vadd.f32 %v9179_v17, %v9091_v23 }
 0x7fb   : > { %9043 = vmatmul.bf16.gmra.mxu1 %v11989_v30  ;;  %v8594_v16 = vmax.f32 %v8562_v15, 0.0 }
 0x7fc   : > { %9132 = vmatmul.bf16.gmra.mxu2 %v11993_v2  ;;  %9221 = vmatmul.bf16.gmra.mxu3 %v11997_v22  ;;  %v8466_v42 = vpop.f32.mrf.mxu0  ;;  %v9246_v38 = vmul.f32 %v15058_v46, %v9180_v28  ;;  %v12001_v22 = vor.u32 %v12597_v35, %v12000_v39  ;;  %v12599_v39 = vld [vmem:[#allocation2 + $0x4d0] sm:$0xf] }
 0x7fd   : > { %v8467_v27 = vadd.f32 %v8466_v42, %v14955_v56  ;;  %11807 = vst [vmem:[%s13892_s29 + $0x648] sm:$0xff] %v8594_v16  ;;  %v12598_v56 = vld [vmem:[#allocation2 + $0x4a8] sm:$0xf0]  ;;  %v11784_v16 = vld [vmem:[#allocation2 + $0x480] sm:$0xf] }
 0x7fe   : > { %v9278_v26 = vadd.f32 %v15064_v20, %v9246_v38  ;;  %v12009_v59 = vor.u32 %v12598_v56, %v12008_v13 }
 0x7ff   : > { %v8531_v19 = vmul.f32 %v15058_v46, %v8467_v27  ;;  %8505 = vmatmul.bf16.gmra.mxu0 %v11773_v24  ;;  %v9093_v52 = vpop.f32.mrf.mxu2  ;;  %v9182_v0 = vpop.f32.mrf.mxu3 }
 0x800   : > { %v9310_v18 = vmax.f32 %v9278_v26, 0.0  ;;  %v9094_v33 = vadd.f32 %v9093_v52, %v9004_v41  ;;  %v9006_v37 = vpop.f32.mrf.mxu1  ;;  %v11785_v41 = vor.u32 %v12550_v45, %v11784_v16  ;;  %v11796_v45 = vld [vmem:[#allocation2 + $0x4d0] sm:$0xf] }
 0x801   : > { %v8563_v9 = vadd.f32 %v15064_v20, %v8531_v19 }
 0x802   : > { %12031 = vst [vmem:[%s13892_s29 + $0x748] sm:$0xff] %v9310_v18  ;;  %v9183_v21 = vadd.f32 %v9182_v0, %v9094_v33  ;;  %v12020_v0 = vld [vmem:[#allocation2 + $0x4d4] sm:$0xf] }
 0x803   : > { %v8595_v31 = vmax.f32 %v8563_v9, 0.0  ;;  %v12600_v33 = vld [vmem:[#allocation2 + $0x4f0] sm:$0xf0] }
 0x804   : > { %v8468_v58 = vpop.f32.mrf.mxu0  ;;  %v9247_v48 = vmul.f32 %v15058_v46, %v9183_v21 }
 0x805   : > { %v8469_v12 = vadd.f32 %v8468_v58, %v14961_v11  ;;  %11808 = vst [vmem:[%s13892_s29 + $0x650] sm:$0xff] %v8595_v31  ;;  %v12014_v58 = vld [vmem:[#allocation2 + $0x4f4] sm:$0xf0] }
 0x806   : > { %v9279_v30 = vadd.f32 %v15064_v20, %v9247_v48 }
 0x807   : > { %v8532_v10 = vmul.f32 %v15058_v46, %v8469_v12  ;;  %v9095_v2 = vpop.f32.mrf.mxu2  ;;  %v9184_v11 = vpop.f32.mrf.mxu3 }
 0x808   : > { %v9311_v15 = vmax.f32 %v9279_v30, 0.0  ;;  %v9096_v17 = vadd.f32 %v9095_v2, %v9006_v37  ;;  %v9009_v4 = vpop.f32.mrf.mxu1  ;;  %v12012_v37 = vld [vmem:[#allocation2 + $0x4cc] sm:$0xf] }
 0x809   : > { %v8564_v50 = vadd.f32 %v15064_v20, %v8532_v10  ;;  %v12013_v25 = vor.u32 %v12600_v33, %v12012_v37 }
 0x80a   : > { %12032 = vst [vmem:[%s13892_s29 + $0x750] sm:$0xff] %v9311_v15  ;;  %v9185_v23 = vadd.f32 %v9184_v11, %v9096_v17  ;;  %v11797_v17 = vor.u32 %v12553_v47, %v11796_v45 }
 0x80b   : > { %9048 = vmatmul.bf16.gmra.mxu1 %v12001_v22  ;;  %v8596_v54 = vmax.f32 %v8564_v50, 0.0 }
 0x80c   : > { %9137 = vmatmul.bf16.gmra.mxu2 %v12005_v44  ;;  %9226 = vmatmul.bf16.gmra.mxu3 %v12009_v59  ;;  %v8471_v55 = vpop.f32.mrf.mxu0  ;;  %v9248_v32 = vmul.f32 %v15058_v46, %v9185_v23  ;;  %v12017_v59 = vor.u32 %v12599_v39, %v12014_v58 }
 0x80d   : > { %v8472_v42 = vadd.f32 %v8471_v55, %v14967_v34  ;;  %11809 = vst [vmem:[%s13892_s29 + $0x658] sm:$0xff] %v8596_v54  ;;  %v12601_v34 = vld [vmem:[#allocation2 + $0x4f8] sm:$0xf0] }
 0x80e   : > { %v9280_v27 = vadd.f32 %v15064_v20, %v9248_v32  ;;  %v12021_v35 = vor.u32 %v12601_v34, %v12020_v0 }
 0x80f   : > { %v8533_v28 = vmul.f32 %v15058_v46, %v8472_v42  ;;  %8510 = vmatmul.bf16.gmra.mxu0 %v11785_v41  ;;  %v9098_v38 = vpop.f32.mrf.mxu2  ;;  %v9187_v19 = vpop.f32.mrf.mxu3 }
 0x810   : > { %v9312_v26 = vmax.f32 %v9280_v27, 0.0  ;;  %v9099_v52 = vadd.f32 %v9098_v38, %v9009_v4  ;;  %v9011_v31 = vpop.f32.mrf.mxu1 }
 0x811   : > { %v8565_v24 = vadd.f32 %v15064_v20, %v8533_v28 }
 0x812   : > { %12033 = vst [vmem:[%s13892_s29 + $0x758] sm:$0xff] %v9312_v26  ;;  %v9188_v13 = vadd.f32 %v9187_v19, %v9099_v52 }
 0x813   : > { %v8597_v9 = vmax.f32 %v8565_v24, 0.0 }
 0x814   : > { %v8473_v18 = vpop.f32.mrf.mxu0  ;;  %v9249_v21 = vmul.f32 %v15058_v46, %v9188_v13 }
 0x815   : > { %v8474_v56 = vadd.f32 %v8473_v18, %v14973_v43  ;;  %11810 = vst [vmem:[%s13892_s29 + $0x660] sm:$0xff] %v8597_v9 }
 0x816   : > { %v9281_v48 = vadd.f32 %v15064_v20, %v9249_v21 }
 0x817   : > { %v8534_v12 = vmul.f32 %v15058_v46, %v8474_v56  ;;  %v9100_v22 = vpop.f32.mrf.mxu2  ;;  %v9189_v43 = vpop.f32.mrf.mxu3 }
 0x818   : > { %v9313_v44 = vmax.f32 %v9281_v48, 0.0  ;;  %v9101_v50 = vadd.f32 %v9100_v22, %v9011_v31  ;;  %v9014_v11 = vpop.f32.mrf.mxu1 }
 0x819   : > { %v8566_v10 = vadd.f32 %v15064_v20, %v8534_v12 }
 0x81a   : > { %12034 = vst [vmem:[%s13892_s29 + $0x760] sm:$0xff] %v9313_v44  ;;  %v9190_v15 = vadd.f32 %v9189_v43, %v9101_v50 }
 0x81b   : > { %9053 = vmatmul.bf16.gmra.mxu1 %v12013_v25  ;;  %v8598_v30 = vmax.f32 %v8566_v10, 0.0 }
 0x81c   : > { %9142 = vmatmul.bf16.gmra.mxu2 %v12017_v59  ;;  %9231 = vmatmul.bf16.gmra.mxu3 %v12021_v35  ;;  %v8476_v2 = vpop.f32.mrf.mxu0  ;;  %v9250_v55 = vmul.f32 %v15058_v46, %v9190_v15 }
 0x81d   : > { %v8477_v54 = vadd.f32 %v8476_v2, %v14979_v61  ;;  %11811 = vst [vmem:[%s13892_s29 + $0x668] sm:$0xff] %v8598_v30 }
 0x81e   : > { %v9282_v16 = vadd.f32 %v15064_v20, %v9250_v55 }
 0x81f   : > { %v8535_v4 = vmul.f32 %v15058_v46, %v8477_v54  ;;  %8515 = vmatmul.bf16.gmra.mxu0 %v11797_v17  ;;  %v9103_v42 = vpop.f32.mrf.mxu2  ;;  %v9192_v41 = vpop.f32.mrf.mxu3 }
 0x820   : > { %v9314_v32 = vmax.f32 %v9282_v16, 0.0  ;;  %v9104_v27 = vadd.f32 %v9103_v42, %v9014_v11  ;;  %v9016_v38 = vpop.f32.mrf.mxu1 }
 0x821   : > { %v8567_v23 = vadd.f32 %v15064_v20, %v8535_v4 }
 0x822   : > { %12035 = vst [vmem:[%s13892_s29 + $0x768] sm:$0xff] %v9314_v32  ;;  %v9193_v61 = vadd.f32 %v9192_v41, %v9104_v27 }
 0x823   : > { %v8599_v28 = vmax.f32 %v8567_v23, 0.0 }
 0x824   : > { %v8478_v24 = vpop.f32.mrf.mxu0  ;;  %v9251_v26 = vmul.f32 %v15058_v46, %v9193_v61 }
 0x825   : > { %v8479_v19 = vadd.f32 %v8478_v24, %v14985_v29  ;;  %11812 = vst [vmem:[%s13892_s29 + $0x670] sm:$0xff] %v8599_v28 }
 0x826   : > { %v9283_v52 = vadd.f32 %v15064_v20, %v9251_v26 }
 0x827   : > { %v8536_v9 = vmul.f32 %v15058_v46, %v8479_v19  ;;  %v9105_v34 = vpop.f32.mrf.mxu2  ;;  %v9194_v18 = vpop.f32.mrf.mxu3 }
 0x828   : > { %v9315_v31 = vmax.f32 %v9283_v52, 0.0  ;;  %v9106_v13 = vadd.f32 %v9105_v34, %v9016_v38  ;;  %v9019_v58 = vpop.f32.mrf.mxu1 }
 0x829   : > { %v8568_v0 = vadd.f32 %v15064_v20, %v8536_v9 }
 0x82a   : > { %12036 = vst [vmem:[%s13892_s29 + $0x770] sm:$0xff] %v9315_v31  ;;  %v9195_v29 = vadd.f32 %v9194_v18, %v9106_v13 }
 0x82b   : > { %v8600_v33 = vmax.f32 %v8568_v0, 0.0 }
 0x82c   : > { %v8481_v56 = vpop.f32.mrf.mxu0  ;;  %v9252_v35 = vmul.f32 %v15058_v46, %v9195_v29 }
 0x82d   : > { %v8482_v37 = vadd.f32 %v8481_v56, %v14991_v60  ;;  %11813 = vst [vmem:[%s13892_s29 + $0x678] sm:$0xff] %v8600_v33 }
 0x82e   : > { %v9284_v12 = vadd.f32 %v15064_v20, %v9252_v35 }
 0x82f   : > { %v8537_v21 = vmul.f32 %v15058_v46, %v8482_v37  ;;  %v9108_v39 = vpop.f32.mrf.mxu2  ;;  %v9197_v59 = vpop.f32.mrf.mxu3 }
 0x830   : > { %v9316_v48 = vmax.f32 %v9284_v12, 0.0  ;;  %v9109_v22 = vadd.f32 %v9108_v39, %v9019_v58  ;;  %v9021_v47 = vpop.f32.mrf.mxu1 }
 0x831   : > { %v8569_v25 = vadd.f32 %v15064_v20, %v8537_v21 }
 0x832   : > { %12037 = vst [vmem:[%s13892_s29 + $0x778] sm:$0xff] %v9316_v48  ;;  %v9198_v60 = vadd.f32 %v9197_v59, %v9109_v22 }
 0x833   : > { %v8601_v10 = vmax.f32 %v8569_v25, 0.0 }
 0x834   : > { %v8483_v43 = vpop.f32.mrf.mxu0  ;;  %v9253_v30 = vmul.f32 %v15058_v46, %v9198_v60 }
 0x835   : > { %v8484_v44 = vadd.f32 %v8483_v43, %v14997_v14  ;;  %11814 = vst [vmem:[%s13892_s29 + $0x680] sm:$0xff] %v8601_v10 }
 0x836   : > { %v9285_v2 = vadd.f32 %v15064_v20, %v9253_v30 }
 0x837   : > { %v8538_v50 = vmul.f32 %v15058_v46, %v8484_v44  ;;  %v9110_v45 = vpop.f32.mrf.mxu2  ;;  %v9199_v15 = vpop.f32.mrf.mxu3 }
 0x838   : > { %v9317_v54 = vmax.f32 %v9285_v2, 0.0  ;;  %v9111_v55 = vadd.f32 %v9110_v45, %v9021_v47  ;;  %v9024_v16 = vpop.f32.mrf.mxu1  ;;  %v15250_v45 = vld [vmem:[%s15337_s6] ss:$0 sm:$0xff] }
 0x839   : > { %v8570_v11 = vadd.f32 %v15064_v20, %v8538_v50 }
 0x83a   : > { %12038 = vst [vmem:[%s13892_s29 + $0x780] sm:$0xff] %v9317_v54  ;;  %v9200_v14 = vadd.f32 %v9199_v15, %v9111_v55 }
 0x83b   : > { %v8602_v17 = vmax.f32 %v8570_v11, 0.0 }
 0x83c   : > { %v8486_v4 = vpop.f32.mrf.mxu0  ;;  %v9254_v42 = vmul.f32 %v15058_v46, %v9200_v14 }
 0x83d   : > { %v8487_v23 = vadd.f32 %v8486_v4, %v15003_v6  ;;  %11815 = vst [vmem:[%s13892_s29 + $0x688] sm:$0xff] %v8602_v17 }
 0x83e   : > { %v9286_v32 = vadd.f32 %v15064_v20, %v9254_v42 }
 0x83f   : > { %v8539_v41 = vmul.f32 %v15058_v46, %v8487_v23  ;;  %v9113_v27 = vpop.f32.mrf.mxu2  ;;  %v9202_v24 = vpop.f32.mrf.mxu3 }
 0x840   : > { %v9318_v38 = vmax.f32 %v9286_v32, 0.0  ;;  %v9114_v19 = vadd.f32 %v9113_v27, %v9024_v16  ;;  %v9026_v9 = vpop.f32.mrf.mxu1 }
 0x841   : > { %v8571_v28 = vadd.f32 %v15064_v20, %v8539_v41 }
 0x842   : > { %12039 = vst [vmem:[%s13892_s29 + $0x788] sm:$0xff] %v9318_v38  ;;  %v9203_v6 = vadd.f32 %v9202_v24, %v9114_v19 }
 0x843   : > { %v8603_v61 = vmax.f32 %v8571_v28, 0.0 }
 0x844   : > { %v8488_v26 = vpop.f32.mrf.mxu0  ;;  %v9255_v0 = vmul.f32 %v15058_v46, %v9203_v6 }
 0x845   : > { %v8489_v52 = vadd.f32 %v8488_v26, %v15009_v8  ;;  %11816 = vst [vmem:[%s13892_s29 + $0x690] sm:$0xff] %v8603_v61 }
 0x846   : > { %v9287_v18 = vadd.f32 %v15064_v20, %v9255_v0 }
 0x847   : > { %v8540_v34 = vmul.f32 %v15058_v46, %v8489_v52  ;;  %v9115_v33 = vpop.f32.mrf.mxu2  ;;  %v9204_v13 = vpop.f32.mrf.mxu3 }
 0x848   : > { %v9319_v56 = vmax.f32 %v9287_v18, 0.0  ;;  %v9116_v29 = vadd.f32 %v9115_v33, %v9026_v9  ;;  %v9029_v35 = vpop.f32.mrf.mxu1 }
 0x849   : > { %v8572_v31 = vadd.f32 %v15064_v20, %v8540_v34 }
 0x84a   : > { %12040 = vst [vmem:[%s13892_s29 + $0x790] sm:$0xff] %v9319_v56  ;;  %v9205_v8 = vadd.f32 %v9204_v13, %v9116_v29 }
 0x84b   : > { %v8604_v58 = vmax.f32 %v8572_v31, 0.0 }
 0x84c   : > { %v8491_v37 = vpop.f32.mrf.mxu0  ;;  %v9256_v12 = vmul.f32 %v15058_v46, %v9205_v8 }
 0x84d   : > { %v8492_v21 = vadd.f32 %v8491_v37, %v15015_v49  ;;  %11817 = vst [vmem:[%s13892_s29 + $0x698] sm:$0xff] %v8604_v58 }
 0x84e   : > { %v9288_v39 = vadd.f32 %v15064_v20, %v9256_v12 }
 0x84f   : > { %v8541_v25 = vmul.f32 %v15058_v46, %v8492_v21  ;;  %v9118_v48 = vpop.f32.mrf.mxu2  ;;  %v9207_v10 = vpop.f32.mrf.mxu3  ;;  %v15242_v46 = vld [vmem:[%s15336_s5] ss:$0 sm:$0xff] }
 0x850   : > { %v9320_v22 = vmax.f32 %v9288_v39, 0.0  ;;  %v9119_v47 = vadd.f32 %v9118_v48, %v9029_v35  ;;  %v9031_v44 = vpop.f32.mrf.mxu1 }
 0x851   : > { %v8573_v59 = vadd.f32 %v15064_v20, %v8541_v25 }
 0x852   : > { %12041 = vst [vmem:[%s13892_s29 + $0x798] sm:$0xff] %v9320_v22  ;;  %v9208_v30 = vadd.f32 %v9207_v10, %v9119_v47 }
 0x853   : > { %v8605_v43 = vmax.f32 %v8573_v59, 0.0 }
 0x854   : > { %v8493_v60 = vpop.f32.mrf.mxu0  ;;  %v9257_v50 = vmul.f32 %v15242_v46, %v9208_v30 }
 0x855   : > { %v8494_v49 = vadd.f32 %v8493_v60, %v15021_v51  ;;  %11818 = vst [vmem:[%s13892_s29 + $0x6a0] sm:$0xff] %v8605_v43 }
 0x856   : > { %v9289_v11 = vadd.f32 %v15064_v20, %v9257_v50 }
 0x857   : > { %v8542_v2 = vmul.f32 %v15242_v46, %v8494_v49  ;;  %v9120_v15 = vpop.f32.mrf.mxu2  ;;  %v9209_v54 = vpop.f32.mrf.mxu3 }
 0x858   : > { %v9321_v17 = vmax.f32 %v9289_v11, 0.0  ;;  %v9121_v4 = vadd.f32 %v9120_v15, %v9031_v44  ;;  %v9034_v14 = vpop.f32.mrf.mxu1 }
 0x859   : > { %v8574_v51 = vadd.f32 %v15250_v45, %v8542_v2 }
 0x85a   : > { %12042 = vst [vmem:[%s13892_s29 + $0x7a0] sm:$0xff] %v9321_v17  ;;  %v9210_v23 = vadd.f32 %v9209_v54, %v9121_v4 }
 0x85b   : > { %v8606_v55 = vmax.f32 %v8574_v51, 0.0 }
 0x85c   : > { %v8496_v16 = vpop.f32.mrf.mxu0  ;;  %v9258_v20 = vmul.f32 %v15242_v46, %v9210_v23 }
 0x85d   : > { %v8497_v42 = vadd.f32 %v8496_v16, %v15027_v1  ;;  %11819 = vst [vmem:[%s13892_s29 + $0x6a8] sm:$0xff] %v8606_v55 }
 0x85e   : > { %v9290_v32 = vadd.f32 %v15250_v45, %v9258_v20 }
 0x85f   : > { %v8543_v41 = vmul.f32 %v15242_v46, %v8497_v42  ;;  %v9123_v27 = vpop.f32.mrf.mxu2  ;;  %v9212_v24 = vpop.f32.mrf.mxu3 }
 0x860   : > { %v9322_v38 = vmax.f32 %v9290_v32, 0.0  ;;  %v9124_v19 = vadd.f32 %v9123_v27, %v9034_v14  ;;  %v9036_v9 = vpop.f32.mrf.mxu1 }
 0x861   : > { %v8575_v28 = vadd.f32 %v15250_v45, %v8543_v41 }
 0x862   : > { %12043 = vst [vmem:[%s13892_s29 + $0x7a8] sm:$0xff] %v9322_v38  ;;  %v9213_v1 = vadd.f32 %v9212_v24, %v9124_v19 }
 0x863   : > { %v8607_v61 = vmax.f32 %v8575_v28, 0.0 }
 0x864   : > { %v8498_v26 = vpop.f32.mrf.mxu0  ;;  %v9259_v52 = vmul.f32 %v15242_v46, %v9213_v1 }
 0x865   : > { %v8499_v6 = vadd.f32 %v8498_v26, %v15033_v3  ;;  %11820 = vst [vmem:[%s13892_s29 + $0x6b0] sm:$0xff] %v8607_v61 }
 0x866   : > { %v9291_v34 = vadd.f32 %v15250_v45, %v9259_v52 }
 0x867   : > { %v8544_v0 = vmul.f32 %v15242_v46, %v8499_v6  ;;  %v9125_v31 = vpop.f32.mrf.mxu2  ;;  %v9214_v33 = vpop.f32.mrf.mxu3 }
 0x868   : > { %v9323_v13 = vmax.f32 %v9291_v34, 0.0  ;;  %v9126_v58 = vadd.f32 %v9125_v31, %v9036_v9  ;;  %v9039_v37 = vpop.f32.mrf.mxu1 }
 0x869   : > { %v8576_v18 = vadd.f32 %v15250_v45, %v8544_v0 }
 0x86a   : > { %12044 = vst [vmem:[%s13892_s29 + $0x7b0] sm:$0xff] %v9323_v13  ;;  %v9215_v3 = vadd.f32 %v9214_v33, %v9126_v58 }
 0x86b   : > { %v8608_v56 = vmax.f32 %v8576_v18, 0.0 }
 0x86c   : > { %v8501_v29 = vpop.f32.mrf.mxu0  ;;  %v9260_v8 = vmul.f32 %v15242_v46, %v9215_v3 }
 0x86d   : > { %v8502_v35 = vadd.f32 %v8501_v29, %v15039_v53  ;;  %11821 = vst [vmem:[%s13892_s29 + $0x6b8] sm:$0xff] %v8608_v56 }
 0x86e   : > { %v9292_v12 = vadd.f32 %v15250_v45, %v9260_v8 }
 0x86f   : > { %v8545_v21 = vmul.f32 %v15242_v46, %v8502_v35  ;;  %v9128_v39 = vpop.f32.mrf.mxu2  ;;  %v9217_v59 = vpop.f32.mrf.mxu3 }
 0x870   : > { %v9324_v48 = vmax.f32 %v9292_v12, 0.0  ;;  %v9129_v22 = vadd.f32 %v9128_v39, %v9039_v37  ;;  %v9041_v47 = vpop.f32.mrf.mxu1 }
 0x871   : > { %v8577_v25 = vadd.f32 %v15250_v45, %v8545_v21 }
 0x872   : > { %12045 = vst [vmem:[%s13892_s29 + $0x7b8] sm:$0xff] %v9324_v48  ;;  %v9218_v53 = vadd.f32 %v9217_v59, %v9129_v22 }
 0x873   : > { %v8609_v10 = vmax.f32 %v8577_v25, 0.0 }
 0x874   : > { %v8503_v43 = vpop.f32.mrf.mxu0  ;;  %v9261_v44 = vmul.f32 %v15242_v46, %v9218_v53 }
 0x875   : > { %v8504_v60 = vadd.f32 %v8503_v43, %v15045_v40  ;;  %11822 = vst [vmem:[%s13892_s29 + $0x6c0] sm:$0xff] %v8609_v10 }
 0x876   : > { %v9293_v49 = vadd.f32 %v15250_v45, %v9261_v44 }
 0x877   : > { %v8546_v30 = vmul.f32 %v15242_v46, %v8504_v60  ;;  %v9130_v2 = vpop.f32.mrf.mxu2  ;;  %v9219_v11 = vpop.f32.mrf.mxu3 }
 0x878   : > { %v9325_v51 = vmax.f32 %v9293_v49, 0.0  ;;  %v9131_v54 = vadd.f32 %v9130_v2, %v9041_v47  ;;  %v9044_v55 = vpop.f32.mrf.mxu1 }
 0x879   : > { %v8578_v50 = vadd.f32 %v15250_v45, %v8546_v30 }
 0x87a   : > { %12046 = vst [vmem:[%s13892_s29 + $0x7c0] sm:$0xff] %v9325_v51  ;;  %v9220_v40 = vadd.f32 %v9219_v11, %v9131_v54 }
 0x87b   : > { %v8610_v15 = vmax.f32 %v8578_v50, 0.0 }
 0x87c   : > { %v8506_v17 = vpop.f32.mrf.mxu0  ;;  %v9262_v16 = vmul.f32 %v15242_v46, %v9220_v40 }
 0x87d   : > { %v8507_v4 = vadd.f32 %v8506_v17, %v15051_v7  ;;  %11823 = vst [vmem:[%s13892_s29 + $0x6c8] sm:$0xff] %v8610_v15 }
 0x87e   : > { %v9294_v23 = vadd.f32 %v15250_v45, %v9262_v16 }
 0x87f   : > { %v8547_v14 = vmul.f32 %v15242_v46, %v8507_v4  ;;  %v9133_v20 = vpop.f32.mrf.mxu2  ;;  %v9222_v41 = vpop.f32.mrf.mxu3 }
 0x880   : > { %v9326_v32 = vmax.f32 %v9294_v23, 0.0  ;;  %v9134_v27 = vadd.f32 %v9133_v20, %v9044_v55  ;;  %v9046_v38 = vpop.f32.mrf.mxu1 }
 0x881   : > { %v8579_v42 = vadd.f32 %v15250_v45, %v8547_v14 }
 0x882   : > { %12047 = vst [vmem:[%s13892_s29 + $0x7c8] sm:$0xff] %v9326_v32  ;;  %v9223_v7 = vadd.f32 %v9222_v41, %v9134_v27 }
 0x883   : > { %v8611_v28 = vmax.f32 %v8579_v42, 0.0 }
 0x884   : > { %v8508_v24 = vpop.f32.mrf.mxu0  ;;  %v9263_v19 = vmul.f32 %v15242_v46, %v9223_v7 }
 0x885   : > { %v8509_v61 = vadd.f32 %v8508_v24, %v15067_v63  ;;  %11824 = vst [vmem:[%s13892_s29 + $0x6d0] sm:$0xff] %v8611_v28 }
 0x886   : > { %v9295_v9 = vadd.f32 %v15250_v45, %v9263_v19 }
 0x887   : > { %v8548_v26 = vmul.f32 %v15242_v46, %v8509_v61  ;;  %v9135_v6 = vpop.f32.mrf.mxu2  ;;  %v9224_v52 = vpop.f32.mrf.mxu3 }
 0x888   : > { %v9327_v0 = vmax.f32 %v9295_v9, 0.0  ;;  %v9136_v18 = vadd.f32 %v9135_v6, %v9046_v38  ;;  %v9049_v33 = vpop.f32.mrf.mxu1 }
 0x889   : > { %v8580_v1 = vadd.f32 %v15250_v45, %v8548_v26 }
 0x88a   : > { %12048 = vst [vmem:[%s13892_s29 + $0x7d0] sm:$0xff] %v9327_v0  ;;  %v9225_v63 = vadd.f32 %v9224_v52, %v9136_v18 }
 0x88b   : > { %v8612_v34 = vmax.f32 %v8580_v1, 0.0 }
 0x88c   : > { %v8511_v31 = vpop.f32.mrf.mxu0  ;;  %v9264_v56 = vmul.f32 %v15242_v46, %v9225_v63 }
 0x88d   : > { %v8512_v13 = vadd.f32 %v8511_v31, %v15073_v62  ;;  %11825 = vst [vmem:[%s13892_s29 + $0x6d8] sm:$0xff] %v8612_v34 }
 0x88e   : > { %v9296_v29 = vadd.f32 %v15250_v45, %v9264_v56 }
 0x88f   : > { %v8549_v58 = vmul.f32 %v15242_v46, %v8512_v13  ;;  %v9138_v3 = vpop.f32.mrf.mxu2  ;;  %v9227_v35 = vpop.f32.mrf.mxu3 }
 0x890   : > { %v9328_v8 = vmax.f32 %v9296_v29, 0.0  ;;  %v9139_v12 = vadd.f32 %v9138_v3, %v9049_v33  ;;  %v9051_v59 = vpop.f32.mrf.mxu1 }
 0x891   : > { %v8581_v37 = vadd.f32 %v15250_v45, %v8549_v58 }
 0x892   : > { %12049 = vst [vmem:[%s13892_s29 + $0x7d8] sm:$0xff] %v9328_v8  ;;  %v9228_v39 = vadd.f32 %v9227_v35, %v9139_v12 }
 0x893   : > { %v8613_v21 = vmax.f32 %v8581_v37, 0.0 }
 0x894   : > { %v8513_v25 = vpop.f32.mrf.mxu0  ;;  %v9265_v48 = vmul.f32 %v15242_v46, %v9228_v39 }
 0x895   : > { %v8514_v62 = vadd.f32 %v8513_v25, %v15079_v5  ;;  %11826 = vst [vmem:[%s13892_s29 + $0x6e0] sm:$0xff] %v8613_v21 }
 0x896   : > { %v9297_v22 = vadd.f32 %v15250_v45, %v9265_v48 }
 0x897   : > { %v8550_v10 = vmul.f32 %v15242_v46, %v8514_v62  ;;  %v9140_v47 = vpop.f32.mrf.mxu2  ;;  %v9229_v53 = vpop.f32.mrf.mxu3 }
 0x898   : > { %v9329_v60 = vmax.f32 %v9297_v22, 0.0  ;;  %v9141_v30 = vadd.f32 %v9140_v47, %v9051_v59  ;;  %v9054_v51 = vpop.f32.mrf.mxu1 }
 0x899   : > { %v8582_v43 = vadd.f32 %v15250_v45, %v8550_v10 }
 0x89a   : > { %12050 = vst [vmem:[%s13892_s29 + $0x7e0] sm:$0xff] %v9329_v60  ;;  %v9230_v5 = vadd.f32 %v9229_v53, %v9141_v30 }
 0x89b   : > { %v8614_v44 = vmax.f32 %v8582_v43, 0.0 }
 0x89c   : > { %v8516_v49 = vpop.f32.mrf.mxu0  ;;  %v9266_v2 = vmul.f32 %v15242_v46, %v9230_v5 }
 0x89d   : > { %v8517_v50 = vadd.f32 %v8516_v49, %v15085_v36  ;;  %11827 = vst [vmem:[%s13892_s29 + $0x6e8] sm:$0xff] %v8614_v44 }
 0x89e   : > { %v9298_v15 = vadd.f32 %v15250_v45, %v9266_v2 }
 0x89f   : > { %v8551_v11 = vmul.f32 %v15242_v46, %v8517_v50  ;;  %v9143_v17 = vpop.f32.mrf.mxu2  ;;  %v9232_v55 = vpop.f32.mrf.mxu3 }
 0x8a0   : > { %v9330_v40 = vmax.f32 %v9298_v15, 0.0  ;;  %v9144_v16 = vadd.f32 %v9143_v17, %v9054_v51  ;;  %v9056_v28 = vpop.f32.mrf.mxu1 }
 0x8a1   : > { %v8583_v54 = vadd.f32 %v15250_v45, %v8551_v11 }
 0x8a2   : > { %12051 = vst [vmem:[%s13892_s29 + $0x7e8] sm:$0xff] %v9330_v40  ;;  %v9233_v36 = vadd.f32 %v9232_v55, %v9144_v16 }
 0x8a3   : > { %v8615_v4 = vmax.f32 %v8583_v54, 0.0 }
 0x8a4   : > { %v8518_v14 = vpop.f32.mrf.mxu0  ;;  %v9267_v42 = vmul.f32 %v15242_v46, %v9233_v36 }
 0x8a5   : > { %v8519_v23 = vadd.f32 %v8518_v14, %v15091_v57  ;;  %11828 = vst [vmem:[%s13892_s29 + $0x6f0] sm:$0xff] %v8615_v4 }
 0x8a6   : > { %v9299_v41 = vadd.f32 %v15250_v45, %v9267_v42 }
 0x8a7   : > { %v8552_v20 = vmul.f32 %v15242_v46, %v8519_v23  ;;  %v9145_v27 = vpop.f32.mrf.mxu2  ;;  %v9234_v61 = vpop.f32.mrf.mxu3 }
 0x8a8   : > { %v9331_v24 = vmax.f32 %v9299_v41, 0.0  ;;  %v9146_v7 = vadd.f32 %v9145_v27, %v9056_v28 }
 0x8a9   : > { %v8584_v32 = vadd.f32 %v15250_v45, %v8552_v20 }
 0x8aa   : > { %12052 = vst [vmem:[%s13892_s29 + $0x7f0] sm:$0xff] %v9331_v24  ;;  %v9235_v19 = vadd.f32 %v9234_v61, %v9146_v7 }
 0x8ab   : > { %v8616_v38 = vmax.f32 %v8584_v32, 0.0 }
 0x8ac   : > { %v9268_v57 = vmul.f32 %v15242_v46, %v9235_v19 }
 0x8ad   : > { %11829 = vst [vmem:[%s13892_s29 + $0x6f8] sm:$0xff] %v8616_v38 }
 0x8ae   : > { %v9300_v26 = vadd.f32 %v15250_v45, %v9268_v57 }
 0x8b0   : > { %v9332_v9 = vmax.f32 %v9300_v26, 0.0 }
 0x8b2   : > { %12053 = vst [vmem:[%s13892_s29 + $0x7f8] sm:$0xff] %v9332_v9 }
 0x8b3 PF: > { %s17_s24 = sadd.s32 1, %s12731_s24  }
 0x8b4   : > { %p14_p4 = scmp.ge.s32.totalorder %s17_s24, 4  }
 0x8b6   :  { %16 = sbr.rel (!%p14_p4) target bundleno = 1 (0x1), region = 92 }

</bundles_post_ra>
